<compile_context>
chip_gen: v5e
topology: v5e:2x2
jax: 0.10.0
libtpu: 0.0.40
codegen_flags: <defaults>
</compile_context>

<pallas_src>
import jax
import jax.numpy as jnp
from jax import lax
from jax.experimental import pallas as pl
from jax.experimental.pallas import tpu as pltpu

N = 8          # samples / tokens per problem
DIM = 32       # feature dim
HIDDEN = 16    # fixed by FeedForwardClassifier (Linear(dim, 16))
OUT_DIM = 4    # classifier output dim
DEPTH = 3      # number of CKAFormer layers
GAMMA = 0.01   # gamma used by CKAFormer

BATCH = 64     # independent problems per call
G = 16         # problems per grid step -> M = G*N = 128 rows per MXU matmul
LANES = 128    # lane-dense output slab width: [x_out(32) | logits(4) | pad(92)]

# Packed parameter buffer layout (single VMEM input), 8-aligned row offsets:
P_ROWS = 64
P_W1_ROW = 0                  # rows  0..31 : w1 (DIM, HIDDEN)
P_B1_ROW = DIM                # row      32 : b1 (HIDDEN,)
P_W2_ROW = 40                 # rows 40..55 : w2 (HIDDEN, OUT_DIM)
P_B2_ROW = 56                 # row      56 : b2 (OUT_DIM,)


# ---------------------------------------------------------------------------
# In-kernel math (operates on a (G, N, DIM) block of G independent problems)
# ---------------------------------------------------------------------------
def _lcls(x3, w1, b1, w2, b2):
    """FeedForwardClassifier on a (G, N, DIM) block, packed to M = G*N rows."""
    g, n, d = x3.shape
    xf = x3.reshape(g * n, d)                       # (128, 32) -> fills MXU M
    h = jnp.dot(xf, w1, preferred_element_type=jnp.float32) + b1
    h = jnp.maximum(h, 0.0)
    out = jnp.dot(h, w2, preferred_element_type=jnp.float32) + b2
    return out.reshape(g, n, -1)                    # (G, N, OUT_DIM)


def _fro_inner(u, v):
    """sum(u*v) over the last two axes, keepdims -> (G,1,1)."""
    s = jnp.sum(u * v, axis=-1, keepdims=True)
    return jnp.sum(s, axis=-2, keepdims=True)


def _cka_layer(x, w1, b1, w2, b2):
    """One CKAFormer layer: LayerNorm() then CompressionAnnilation(lcls, gamma)."""
    # LayerNorm(): x / ||x||_2 along last dim  ->  x * rsqrt(sum(x^2))  (EUP)
    x = x * lax.rsqrt(jnp.sum(x * x, axis=-1, keepdims=True))

    # P = softmax(lcls(x), dim=-1)
    logits = _lcls(x, w1, b1, w2, b2)                       # (G, N, OUT_DIM)
    m = jnp.max(logits, axis=-1, keepdims=True)
    e = jnp.exp(logits - m)
    p = e * pl.reciprocal(jnp.sum(e, axis=-1, keepdims=True), approx=True)

    # TODO(synk): CKA_derivative is undefined in the reference source; we use
    # the standard closed-form gradient of linear CKA(X Xᵀ, P Pᵀ) w.r.t. X,
    # written in sample-Gram form (identical to the feature-Gram formulation).
    xc = x - jnp.mean(x, axis=1, keepdims=True)             # (G, N, DIM)
    pc = p - jnp.mean(p, axis=1, keepdims=True)             # (G, N, OUT_DIM)

    kc = jnp.einsum('gnd,gmd->gnm', xc, xc,
                    preferred_element_type=jnp.float32)     # (G, N, N)
    lc = jnp.einsum('gnd,gmd->gnm', pc, pc,
                    preferred_element_type=jnp.float32)     # (G, N, N)

    a = _fro_inner(kc, lc)    # tr(K H L H)   (G,1,1)
    b = _fro_inner(kc, kc)    # tr(K H K H)
    c = _fro_inner(lc, lc)    # tr(L H L H)

    term1 = jnp.einsum('gnm,gmd->gnd', lc, xc,
                       preferred_element_type=jnp.float32)  # H L H X
    term2 = jnp.einsum('gnm,gmd->gnd', kc, xc,
                       preferred_element_type=jnp.float32)  # H K H X

    inv_denom = lax.rsqrt(b * c)                            # EUP
    a_over_b = a * pl.reciprocal(b, approx=True)            # EUP
    deriv = 2.0 * inv_denom * (term1 - a_over_b * term2)

    return x + GAMMA * deriv


# ---------------------------------------------------------------------------
# Kernel + wrapper
# ---------------------------------------------------------------------------
def ckaformer_kernel(x_ref, p_ref, out_ref):
    # Static slices of the single packed-parameter buffer (one DMA).
    w1 = p_ref[P_W1_ROW:P_W1_ROW + DIM, 0:HIDDEN]        # (DIM, HIDDEN)
    b1 = p_ref[P_B1_ROW:P_B1_ROW + 1, 0:HIDDEN]          # (1, HIDDEN)
    w2 = p_ref[P_W2_ROW:P_W2_ROW + HIDDEN, 0:OUT_DIM]    # (HIDDEN, OUT_DIM)
    b2 = p_ref[P_B2_ROW:P_B2_ROW + 1, 0:OUT_DIM]         # (1, OUT_DIM)

    x = x_ref[...]                                       # (G, N, DIM)
    for _ in range(DEPTH):                               # small static depth
        x = _cka_layer(x, w1, b1, w2, b2)
    logits = _lcls(x, w1, b1, w2, b2)                    # (G, N, OUT_DIM)

    # Lane-dense output slab: [x_out | logits | zero pad] -> one full-width store.
    pad = jnp.zeros((G, N, LANES - DIM - OUT_DIM), jnp.float32)
    out_ref[...] = jnp.concatenate([x, logits, pad], axis=-1)


def pack_params(w1, b1, w2, b2):
    p = jnp.zeros((P_ROWS, LANES), jnp.float32)
    p = p.at[P_W1_ROW:P_W1_ROW + DIM, 0:HIDDEN].set(w1)
    p = p.at[P_B1_ROW, 0:HIDDEN].set(b1)
    p = p.at[P_W2_ROW:P_W2_ROW + HIDDEN, 0:OUT_DIM].set(w2)
    p = p.at[P_B2_ROW, 0:OUT_DIM].set(b2)
    return p


def ckaformer_forward(x, params):
    """x: (BATCH, N, DIM) float32; params: packed (P_ROWS, LANES) buffer."""
    slab = pl.pallas_call(
        ckaformer_kernel,
        out_shape=jax.ShapeDtypeStruct((BATCH, N, LANES), jnp.float32),
        grid_spec=pltpu.PrefetchScalarGridSpec(
            num_scalar_prefetch=0,
            grid=(BATCH // G,),
            in_specs=[
                pl.BlockSpec((G, N, DIM), lambda i: (i, 0, 0)),
                pl.BlockSpec((P_ROWS, LANES), lambda i: (0, 0)),
            ],
            out_specs=pl.BlockSpec((G, N, LANES), lambda i: (i, 0, 0)),
        ),
        compiler_params=pltpu.CompilerParams(
            dimension_semantics=("parallel",)),   # shards across TCs on v7x
    )(x, params)
    return slab[..., :DIM], slab[..., DIM:DIM + OUT_DIM]


# ---------------------------------------------------------------------------
# Pure-JAX per-problem reference (feature-Gram form, exact divides)
# ---------------------------------------------------------------------------
def _reference_single(x, w1, b1, w2, b2):
    def lcls(z):
        h = jnp.maximum(z @ w1 + b1, 0.0)
        return h @ w2 + b2

    for _ in range(DEPTH):
        x = x / jnp.linalg.norm(x, axis=-1, keepdims=True)
        p = jax.nn.softmax(lcls(x), axis=-1)
        xc = x - x.mean(0, keepdims=True)
        pc = p - p.mean(0, keepdims=True)
        xtx = xc.T @ xc
        ptx = pc.T @ xc
        ptp = pc.T @ pc
        a = jnp.sum(ptx * ptx)
        b = jnp.sum(xtx * xtx)
        c = jnp.sum(ptp * ptp)
        deriv = 2.0 / jnp.sqrt(b * c) * (pc @ ptx - (a / b) * (xc @ xtx))
        x = x + GAMMA * deriv
    return x, lcls(x)


reference_forward = jax.vmap(_reference_single, in_axes=(0, None, None, None, None))


if __name__ == "__main__":
    key = jax.random.PRNGKey(0)
    kx, k1, kb1, k2, kb2 = jax.random.split(key, 5)

    x = jax.random.normal(kx, (BATCH, N, DIM), jnp.float32)

    # PyTorch-style uniform(-1/sqrt(fan_in), +1/sqrt(fan_in)) init; weights are
    # stored as (in, out) so the kernel computes x @ W + b (== x @ W_pt.T + b).
    lim1 = 1.0 / (DIM ** 0.5)
    w1 = jax.random.uniform(k1, (DIM, HIDDEN), jnp.float32, -lim1, lim1)
    b1 = jax.random.uniform(kb1, (HIDDEN,), jnp.float32, -lim1, lim1)
    lim2 = 1.0 / (HIDDEN ** 0.5)
    w2 = jax.random.uniform(k2, (HIDDEN, OUT_DIM), jnp.float32, -lim2, lim2)
    b2 = jax.random.uniform(kb2, (OUT_DIM,), jnp.float32, -lim2, lim2)

    params = pack_params(w1, b1, w2, b2)

    x_out, logits = jax.block_until_ready(ckaformer_forward(x, params))

    x_ref_, logits_ref_ = reference_forward(x, w1, b1, w2, b2)
    assert jnp.all(jnp.isfinite(x_out)) and jnp.all(jnp.isfinite(logits))
    assert jnp.allclose(x_out, x_ref_, rtol=1e-2, atol=1e-2)
    assert jnp.allclose(logits, logits_ref_, rtol=1e-2, atol=1e-2)

    print("KERNEL_OK")
</pallas_src>

<mosaic_0001>
module attributes {stable_mosaic.version = 11 : i64} {
  func.func @ckaformer_kernel(%arg0: i32, %arg1: memref<16x8x32xf32, #tpu.memory_space<vmem>>, %arg2: memref<64x128xf32, #tpu.memory_space<vmem>>, %arg3: memref<16x8x128xf32, #tpu.memory_space<vmem>>) attributes {dimension_semantics = [#tpu.dimension_semantics<parallel>], iteration_bounds = array<i64: 4>, scalar_prefetch = 0 : i64, scratch_operands = 0 : i64, tpu.core_type = #tpu.core_type<tc>, window_params = [{transform_indices = @transform_0, window_bounds = array<i64: 16, 8, 32>}, {pipeline_mode = #tpu.pipeline_mode<synchronous>, transform_indices = @transform_1, window_bounds = array<i64: 64, 128>}, {transform_indices = @transform_2, window_bounds = array<i64: 16, 8, 128>}]} {
    %c0 = arith.constant 0 : index
    %c0_0 = arith.constant 0 : index
    %0 = vector.load %arg2[%c0, %c0_0] : memref<64x128xf32, #tpu.memory_space<vmem>>, vector<32x16xf32>
    %c32 = arith.constant 32 : index
    %c0_1 = arith.constant 0 : index
    %1 = vector.load %arg2[%c32, %c0_1] : memref<64x128xf32, #tpu.memory_space<vmem>>, vector<1x16xf32>
    %c40 = arith.constant 40 : index
    %c0_2 = arith.constant 0 : index
    %2 = vector.load %arg2[%c40, %c0_2] : memref<64x128xf32, #tpu.memory_space<vmem>>, vector<16x4xf32>
    %c56 = arith.constant 56 : index
    %c0_3 = arith.constant 0 : index
    %3 = vector.load %arg2[%c56, %c0_3] : memref<64x128xf32, #tpu.memory_space<vmem>>, vector<1x4xf32>
    %c0_4 = arith.constant 0 : index
    %c0_5 = arith.constant 0 : index
    %c0_6 = arith.constant 0 : index
    %4 = vector.load %arg1[%c0_4, %c0_5, %c0_6] : memref<16x8x32xf32, #tpu.memory_space<vmem>>, vector<16x8x32xf32>
    %5 = arith.mulf %4, %4 : vector<16x8x32xf32>
    %cst = arith.constant dense<0.000000e+00> : vector<16x8xf32>
    %6 = vector.multi_reduction <add>, %5, %cst [2] : vector<16x8x32xf32> to vector<16x8xf32>
    %7 = vector.shape_cast %6 : vector<16x8xf32> to vector<16x8x1xf32>
    %8 = math.rsqrt %7 : vector<16x8x1xf32>
    %9 = vector.broadcast %8 : vector<16x8x1xf32> to vector<16x8x32xf32>
    %10 = arith.mulf %4, %9 : vector<16x8x32xf32>
    %11 = vector.shape_cast %10 : vector<16x8x32xf32> to vector<128x32xf32>
    %cst_7 = arith.constant dense<0.000000e+00> : vector<128x16xf32>
    %12 = tpu.matmul %11, %0, %cst_7 {dimension_numbers = #tpu.dot_dimension_numbers<[1], [0], [0], [1], [0, 0, 1, 1], [], []>} : vector<128x32xf32>, vector<32x16xf32>, vector<128x16xf32> -> vector<128x16xf32>
    %13 = vector.broadcast %1 : vector<1x16xf32> to vector<128x16xf32>
    %14 = arith.addf %12, %13 : vector<128x16xf32>
    %cst_8 = arith.constant 0.000000e+00 : f32
    %15 = vector.broadcast %cst_8 : f32 to vector<128x16xf32>
    %16 = arith.maximumf %14, %15 : vector<128x16xf32>
    %cst_9 = arith.constant dense<0.000000e+00> : vector<128x4xf32>
    %17 = tpu.matmul %16, %2, %cst_9 {dimension_numbers = #tpu.dot_dimension_numbers<[1], [0], [0], [1], [0, 0, 1, 1], [], []>} : vector<128x16xf32>, vector<16x4xf32>, vector<128x4xf32> -> vector<128x4xf32>
    %18 = vector.broadcast %3 : vector<1x4xf32> to vector<128x4xf32>
    %19 = arith.addf %17, %18 : vector<128x4xf32>
    %20 = vector.shape_cast %19 : vector<128x4xf32> to vector<16x8x4xf32>
    %cst_10 = arith.constant dense<0xFF800000> : vector<16x8xf32>
    %21 = vector.multi_reduction <maximumf>, %20, %cst_10 [2] : vector<16x8x4xf32> to vector<16x8xf32>
    %22 = vector.shape_cast %21 : vector<16x8xf32> to vector<16x8x1xf32>
    %23 = vector.broadcast %22 : vector<16x8x1xf32> to vector<16x8x4xf32>
    %24 = arith.subf %20, %23 : vector<16x8x4xf32>
    %25 = math.exp %24 : vector<16x8x4xf32>
    %cst_11 = arith.constant dense<0.000000e+00> : vector<16x8xf32>
    %26 = vector.multi_reduction <add>, %25, %cst_11 [2] : vector<16x8x4xf32> to vector<16x8xf32>
    %27 = vector.shape_cast %26 : vector<16x8xf32> to vector<16x8x1xf32>
    %28 = tpu.reciprocal %27 {approx = true} : vector<16x8x1xf32> -> vector<16x8x1xf32>
    %29 = vector.broadcast %28 : vector<16x8x1xf32> to vector<16x8x4xf32>
    %30 = arith.mulf %25, %29 : vector<16x8x4xf32>
    %cst_12 = arith.constant dense<0.000000e+00> : vector<16x32xf32>
    %31 = vector.multi_reduction <add>, %10, %cst_12 [1] : vector<16x8x32xf32> to vector<16x32xf32>
    %32 = vector.shape_cast %31 : vector<16x32xf32> to vector<16x1x32xf32>
    %cst_13 = arith.constant 8.000000e+00 : f32
    %33 = vector.broadcast %cst_13 : f32 to vector<16x1x32xf32>
    %34 = arith.divf %32, %33 : vector<16x1x32xf32>
    %35 = vector.broadcast %34 : vector<16x1x32xf32> to vector<16x8x32xf32>
    %36 = arith.subf %10, %35 : vector<16x8x32xf32>
    %cst_14 = arith.constant dense<0.000000e+00> : vector<16x4xf32>
    %37 = vector.multi_reduction <add>, %30, %cst_14 [1] : vector<16x8x4xf32> to vector<16x4xf32>
    %38 = vector.shape_cast %37 : vector<16x4xf32> to vector<16x1x4xf32>
    %cst_15 = arith.constant 8.000000e+00 : f32
    %39 = vector.broadcast %cst_15 : f32 to vector<16x1x4xf32>
    %40 = arith.divf %38, %39 : vector<16x1x4xf32>
    %41 = vector.broadcast %40 : vector<16x1x4xf32> to vector<16x8x4xf32>
    %42 = arith.subf %30, %41 : vector<16x8x4xf32>
    "tpu.trace_start"() <{level = 10 : i32, message = "gnd,gmd->gnm"}> : () -> ()
    %cst_16 = arith.constant dense<0.000000e+00> : vector<16x8x8xf32>
    %43 = tpu.matmul %36, %36, %cst_16 {dimension_numbers = #tpu.dot_dimension_numbers<[2], [2], [1], [1], [0, 0, 0, 1, 1, 1], [0], [0]>} : vector<16x8x32xf32>, vector<16x8x32xf32>, vector<16x8x8xf32> -> vector<16x8x8xf32>
    %cst_17 = arith.constant dense<0.000000e+00> : vector<16x8x8xf32>
    %44 = tpu.matmul %42, %42, %cst_17 {dimension_numbers = #tpu.dot_dimension_numbers<[2], [2], [1], [1], [0, 0, 0, 1, 1, 1], [0], [0]>} : vector<16x8x4xf32>, vector<16x8x4xf32>, vector<16x8x8xf32> -> vector<16x8x8xf32>
    "tpu.trace_stop"() : () -> ()
    %45 = arith.mulf %43, %44 : vector<16x8x8xf32>
    %cst_18 = arith.constant dense<0.000000e+00> : vector<16x8xf32>
    %46 = vector.multi_reduction <add>, %45, %cst_18 [2] : vector<16x8x8xf32> to vector<16x8xf32>
    %47 = vector.shape_cast %46 : vector<16x8xf32> to vector<16x8x1xf32>
    %cst_19 = arith.constant dense<0.000000e+00> : vector<16x1xf32>
    %48 = vector.multi_reduction <add>, %47, %cst_19 [1] : vector<16x8x1xf32> to vector<16x1xf32>
    %49 = vector.shape_cast %48 : vector<16x1xf32> to vector<16x1x1xf32>
    %50 = arith.mulf %43, %43 : vector<16x8x8xf32>
    %cst_20 = arith.constant dense<0.000000e+00> : vector<16x8xf32>
    %51 = vector.multi_reduction <add>, %50, %cst_20 [2] : vector<16x8x8xf32> to vector<16x8xf32>
    %52 = vector.shape_cast %51 : vector<16x8xf32> to vector<16x8x1xf32>
    %cst_21 = arith.constant dense<0.000000e+00> : vector<16x1xf32>
    %53 = vector.multi_reduction <add>, %52, %cst_21 [1] : vector<16x8x1xf32> to vector<16x1xf32>
    %54 = vector.shape_cast %53 : vector<16x1xf32> to vector<16x1x1xf32>
    %55 = arith.mulf %44, %44 : vector<16x8x8xf32>
    %cst_22 = arith.constant dense<0.000000e+00> : vector<16x8xf32>
    %56 = vector.multi_reduction <add>, %55, %cst_22 [2] : vector<16x8x8xf32> to vector<16x8xf32>
    %57 = vector.shape_cast %56 : vector<16x8xf32> to vector<16x8x1xf32>
    %cst_23 = arith.constant dense<0.000000e+00> : vector<16x1xf32>
    %58 = vector.multi_reduction <add>, %57, %cst_23 [1] : vector<16x8x1xf32> to vector<16x1xf32>
    %59 = vector.shape_cast %58 : vector<16x1xf32> to vector<16x1x1xf32>
    "tpu.trace_start"() <{level = 10 : i32, message = "gnm,gmd->gnd"}> : () -> ()
    %cst_24 = arith.constant dense<0.000000e+00> : vector<16x8x32xf32>
    %60 = tpu.matmul %44, %36, %cst_24 {dimension_numbers = #tpu.dot_dimension_numbers<[2], [1], [1], [2], [0, 0, 0, 1, 1, 2], [0], [0]>} : vector<16x8x8xf32>, vector<16x8x32xf32>, vector<16x8x32xf32> -> vector<16x8x32xf32>
    %cst_25 = arith.constant dense<0.000000e+00> : vector<16x8x32xf32>
    %61 = tpu.matmul %43, %36, %cst_25 {dimension_numbers = #tpu.dot_dimension_numbers<[2], [1], [1], [2], [0, 0, 0, 1, 1, 2], [0], [0]>} : vector<16x8x8xf32>, vector<16x8x32xf32>, vector<16x8x32xf32> -> vector<16x8x32xf32>
    "tpu.trace_stop"() : () -> ()
    %62 = arith.mulf %54, %59 : vector<16x1x1xf32>
    %63 = math.rsqrt %62 : vector<16x1x1xf32>
    %64 = tpu.reciprocal %54 {approx = true} : vector<16x1x1xf32> -> vector<16x1x1xf32>
    %65 = arith.mulf %49, %64 : vector<16x1x1xf32>
    %cst_26 = arith.constant 2.000000e+00 : f32
    %66 = vector.broadcast %cst_26 : f32 to vector<16x1x1xf32>
    %67 = arith.mulf %66, %63 : vector<16x1x1xf32>
    %68 = vector.broadcast %65 : vector<16x1x1xf32> to vector<16x8x32xf32>
    %69 = arith.mulf %68, %61 : vector<16x8x32xf32>
    %70 = arith.subf %60, %69 : vector<16x8x32xf32>
    %71 = vector.broadcast %67 : vector<16x1x1xf32> to vector<16x8x32xf32>
    %72 = arith.mulf %71, %70 : vector<16x8x32xf32>
    %cst_27 = arith.constant 0.00999999977 : f32
    %73 = vector.broadcast %cst_27 : f32 to vector<16x8x32xf32>
    %74 = arith.mulf %73, %72 : vector<16x8x32xf32>
    %75 = arith.addf %10, %74 : vector<16x8x32xf32>
    %76 = arith.mulf %75, %75 : vector<16x8x32xf32>
    %cst_28 = arith.constant dense<0.000000e+00> : vector<16x8xf32>
    %77 = vector.multi_reduction <add>, %76, %cst_28 [2] : vector<16x8x32xf32> to vector<16x8xf32>
    %78 = vector.shape_cast %77 : vector<16x8xf32> to vector<16x8x1xf32>
    %79 = math.rsqrt %78 : vector<16x8x1xf32>
    %80 = vector.broadcast %79 : vector<16x8x1xf32> to vector<16x8x32xf32>
    %81 = arith.mulf %75, %80 : vector<16x8x32xf32>
    %82 = vector.shape_cast %81 : vector<16x8x32xf32> to vector<128x32xf32>
    %cst_29 = arith.constant dense<0.000000e+00> : vector<128x16xf32>
    %83 = tpu.matmul %82, %0, %cst_29 {dimension_numbers = #tpu.dot_dimension_numbers<[1], [0], [0], [1], [0, 0, 1, 1], [], []>} : vector<128x32xf32>, vector<32x16xf32>, vector<128x16xf32> -> vector<128x16xf32>
    %84 = vector.broadcast %1 : vector<1x16xf32> to vector<128x16xf32>
    %85 = arith.addf %83, %84 : vector<128x16xf32>
    %cst_30 = arith.constant 0.000000e+00 : f32
    %86 = vector.broadcast %cst_30 : f32 to vector<128x16xf32>
    %87 = arith.maximumf %85, %86 : vector<128x16xf32>
    %cst_31 = arith.constant dense<0.000000e+00> : vector<128x4xf32>
    %88 = tpu.matmul %87, %2, %cst_31 {dimension_numbers = #tpu.dot_dimension_numbers<[1], [0], [0], [1], [0, 0, 1, 1], [], []>} : vector<128x16xf32>, vector<16x4xf32>, vector<128x4xf32> -> vector<128x4xf32>
    %89 = vector.broadcast %3 : vector<1x4xf32> to vector<128x4xf32>
    %90 = arith.addf %88, %89 : vector<128x4xf32>
    %91 = vector.shape_cast %90 : vector<128x4xf32> to vector<16x8x4xf32>
    %cst_32 = arith.constant dense<0xFF800000> : vector<16x8xf32>
    %92 = vector.multi_reduction <maximumf>, %91, %cst_32 [2] : vector<16x8x4xf32> to vector<16x8xf32>
    %93 = vector.shape_cast %92 : vector<16x8xf32> to vector<16x8x1xf32>
    %94 = vector.broadcast %93 : vector<16x8x1xf32> to vector<16x8x4xf32>
    %95 = arith.subf %91, %94 : vector<16x8x4xf32>
    %96 = math.exp %95 : vector<16x8x4xf32>
    %cst_33 = arith.constant dense<0.000000e+00> : vector<16x8xf32>
    %97 = vector.multi_reduction <add>, %96, %cst_33 [2] : vector<16x8x4xf32> to vector<16x8xf32>
    %98 = vector.shape_cast %97 : vector<16x8xf32> to vector<16x8x1xf32>
    %99 = tpu.reciprocal %98 {approx = true} : vector<16x8x1xf32> -> vector<16x8x1xf32>
    %100 = vector.broadcast %99 : vector<16x8x1xf32> to vector<16x8x4xf32>
    %101 = arith.mulf %96, %100 : vector<16x8x4xf32>
    %cst_34 = arith.constant dense<0.000000e+00> : vector<16x32xf32>
    %102 = vector.multi_reduction <add>, %81, %cst_34 [1] : vector<16x8x32xf32> to vector<16x32xf32>
    %103 = vector.shape_cast %102 : vector<16x32xf32> to vector<16x1x32xf32>
    %cst_35 = arith.constant 8.000000e+00 : f32
    %104 = vector.broadcast %cst_35 : f32 to vector<16x1x32xf32>
    %105 = arith.divf %103, %104 : vector<16x1x32xf32>
    %106 = vector.broadcast %105 : vector<16x1x32xf32> to vector<16x8x32xf32>
    %107 = arith.subf %81, %106 : vector<16x8x32xf32>
    %cst_36 = arith.constant dense<0.000000e+00> : vector<16x4xf32>
    %108 = vector.multi_reduction <add>, %101, %cst_36 [1] : vector<16x8x4xf32> to vector<16x4xf32>
    %109 = vector.shape_cast %108 : vector<16x4xf32> to vector<16x1x4xf32>
    %cst_37 = arith.constant 8.000000e+00 : f32
    %110 = vector.broadcast %cst_37 : f32 to vector<16x1x4xf32>
    %111 = arith.divf %109, %110 : vector<16x1x4xf32>
    %112 = vector.broadcast %111 : vector<16x1x4xf32> to vector<16x8x4xf32>
    %113 = arith.subf %101, %112 : vector<16x8x4xf32>
    "tpu.trace_start"() <{level = 10 : i32, message = "gnd,gmd->gnm"}> : () -> ()
    %cst_38 = arith.constant dense<0.000000e+00> : vector<16x8x8xf32>
    %114 = tpu.matmul %107, %107, %cst_38 {dimension_numbers = #tpu.dot_dimension_numbers<[2], [2], [1], [1], [0, 0, 0, 1, 1, 1], [0], [0]>} : vector<16x8x32xf32>, vector<16x8x32xf32>, vector<16x8x8xf32> -> vector<16x8x8xf32>
    %cst_39 = arith.constant dense<0.000000e+00> : vector<16x8x8xf32>
    %115 = tpu.matmul %113, %113, %cst_39 {dimension_numbers = #tpu.dot_dimension_numbers<[2], [2], [1], [1], [0, 0, 0, 1, 1, 1], [0], [0]>} : vector<16x8x4xf32>, vector<16x8x4xf32>, vector<16x8x8xf32> -> vector<16x8x8xf32>
    "tpu.trace_stop"() : () -> ()
    %116 = arith.mulf %114, %115 : vector<16x8x8xf32>
    %cst_40 = arith.constant dense<0.000000e+00> : vector<16x8xf32>
    %117 = vector.multi_reduction <add>, %116, %cst_40 [2] : vector<16x8x8xf32> to vector<16x8xf32>
    %118 = vector.shape_cast %117 : vector<16x8xf32> to vector<16x8x1xf32>
    %cst_41 = arith.constant dense<0.000000e+00> : vector<16x1xf32>
    %119 = vector.multi_reduction <add>, %118, %cst_41 [1] : vector<16x8x1xf32> to vector<16x1xf32>
    %120 = vector.shape_cast %119 : vector<16x1xf32> to vector<16x1x1xf32>
    %121 = arith.mulf %114, %114 : vector<16x8x8xf32>
    %cst_42 = arith.constant dense<0.000000e+00> : vector<16x8xf32>
    %122 = vector.multi_reduction <add>, %121, %cst_42 [2] : vector<16x8x8xf32> to vector<16x8xf32>
    %123 = vector.shape_cast %122 : vector<16x8xf32> to vector<16x8x1xf32>
    %cst_43 = arith.constant dense<0.000000e+00> : vector<16x1xf32>
    %124 = vector.multi_reduction <add>, %123, %cst_43 [1] : vector<16x8x1xf32> to vector<16x1xf32>
    %125 = vector.shape_cast %124 : vector<16x1xf32> to vector<16x1x1xf32>
    %126 = arith.mulf %115, %115 : vector<16x8x8xf32>
    %cst_44 = arith.constant dense<0.000000e+00> : vector<16x8xf32>
    %127 = vector.multi_reduction <add>, %126, %cst_44 [2] : vector<16x8x8xf32> to vector<16x8xf32>
    %128 = vector.shape_cast %127 : vector<16x8xf32> to vector<16x8x1xf32>
    %cst_45 = arith.constant dense<0.000000e+00> : vector<16x1xf32>
    %129 = vector.multi_reduction <add>, %128, %cst_45 [1] : vector<16x8x1xf32> to vector<16x1xf32>
    %130 = vector.shape_cast %129 : vector<16x1xf32> to vector<16x1x1xf32>
    "tpu.trace_start"() <{level = 10 : i32, message = "gnm,gmd->gnd"}> : () -> ()
    %cst_46 = arith.constant dense<0.000000e+00> : vector<16x8x32xf32>
    %131 = tpu.matmul %115, %107, %cst_46 {dimension_numbers = #tpu.dot_dimension_numbers<[2], [1], [1], [2], [0, 0, 0, 1, 1, 2], [0], [0]>} : vector<16x8x8xf32>, vector<16x8x32xf32>, vector<16x8x32xf32> -> vector<16x8x32xf32>
    %cst_47 = arith.constant dense<0.000000e+00> : vector<16x8x32xf32>
    %132 = tpu.matmul %114, %107, %cst_47 {dimension_numbers = #tpu.dot_dimension_numbers<[2], [1], [1], [2], [0, 0, 0, 1, 1, 2], [0], [0]>} : vector<16x8x8xf32>, vector<16x8x32xf32>, vector<16x8x32xf32> -> vector<16x8x32xf32>
    "tpu.trace_stop"() : () -> ()
    %133 = arith.mulf %125, %130 : vector<16x1x1xf32>
    %134 = math.rsqrt %133 : vector<16x1x1xf32>
    %135 = tpu.reciprocal %125 {approx = true} : vector<16x1x1xf32> -> vector<16x1x1xf32>
    %136 = arith.mulf %120, %135 : vector<16x1x1xf32>
    %cst_48 = arith.constant 2.000000e+00 : f32
    %137 = vector.broadcast %cst_48 : f32 to vector<16x1x1xf32>
    %138 = arith.mulf %137, %134 : vector<16x1x1xf32>
    %139 = vector.broadcast %136 : vector<16x1x1xf32> to vector<16x8x32xf32>
    %140 = arith.mulf %139, %132 : vector<16x8x32xf32>
    %141 = arith.subf %131, %140 : vector<16x8x32xf32>
    %142 = vector.broadcast %138 : vector<16x1x1xf32> to vector<16x8x32xf32>
    %143 = arith.mulf %142, %141 : vector<16x8x32xf32>
    %cst_49 = arith.constant 0.00999999977 : f32
    %144 = vector.broadcast %cst_49 : f32 to vector<16x8x32xf32>
    %145 = arith.mulf %144, %143 : vector<16x8x32xf32>
    %146 = arith.addf %81, %145 : vector<16x8x32xf32>
    %147 = arith.mulf %146, %146 : vector<16x8x32xf32>
    %cst_50 = arith.constant dense<0.000000e+00> : vector<16x8xf32>
    %148 = vector.multi_reduction <add>, %147, %cst_50 [2] : vector<16x8x32xf32> to vector<16x8xf32>
    %149 = vector.shape_cast %148 : vector<16x8xf32> to vector<16x8x1xf32>
    %150 = math.rsqrt %149 : vector<16x8x1xf32>
    %151 = vector.broadcast %150 : vector<16x8x1xf32> to vector<16x8x32xf32>
    %152 = arith.mulf %146, %151 : vector<16x8x32xf32>
    %153 = vector.shape_cast %152 : vector<16x8x32xf32> to vector<128x32xf32>
    %cst_51 = arith.constant dense<0.000000e+00> : vector<128x16xf32>
    %154 = tpu.matmul %153, %0, %cst_51 {dimension_numbers = #tpu.dot_dimension_numbers<[1], [0], [0], [1], [0, 0, 1, 1], [], []>} : vector<128x32xf32>, vector<32x16xf32>, vector<128x16xf32> -> vector<128x16xf32>
    %155 = vector.broadcast %1 : vector<1x16xf32> to vector<128x16xf32>
    %156 = arith.addf %154, %155 : vector<128x16xf32>
    %cst_52 = arith.constant 0.000000e+00 : f32
    %157 = vector.broadcast %cst_52 : f32 to vector<128x16xf32>
    %158 = arith.maximumf %156, %157 : vector<128x16xf32>
    %cst_53 = arith.constant dense<0.000000e+00> : vector<128x4xf32>
    %159 = tpu.matmul %158, %2, %cst_53 {dimension_numbers = #tpu.dot_dimension_numbers<[1], [0], [0], [1], [0, 0, 1, 1], [], []>} : vector<128x16xf32>, vector<16x4xf32>, vector<128x4xf32> -> vector<128x4xf32>
    %160 = vector.broadcast %3 : vector<1x4xf32> to vector<128x4xf32>
    %161 = arith.addf %159, %160 : vector<128x4xf32>
    %162 = vector.shape_cast %161 : vector<128x4xf32> to vector<16x8x4xf32>
    %cst_54 = arith.constant dense<0xFF800000> : vector<16x8xf32>
    %163 = vector.multi_reduction <maximumf>, %162, %cst_54 [2] : vector<16x8x4xf32> to vector<16x8xf32>
    %164 = vector.shape_cast %163 : vector<16x8xf32> to vector<16x8x1xf32>
    %165 = vector.broadcast %164 : vector<16x8x1xf32> to vector<16x8x4xf32>
    %166 = arith.subf %162, %165 : vector<16x8x4xf32>
    %167 = math.exp %166 : vector<16x8x4xf32>
    %cst_55 = arith.constant dense<0.000000e+00> : vector<16x8xf32>
    %168 = vector.multi_reduction <add>, %167, %cst_55 [2] : vector<16x8x4xf32> to vector<16x8xf32>
    %169 = vector.shape_cast %168 : vector<16x8xf32> to vector<16x8x1xf32>
    %170 = tpu.reciprocal %169 {approx = true} : vector<16x8x1xf32> -> vector<16x8x1xf32>
    %171 = vector.broadcast %170 : vector<16x8x1xf32> to vector<16x8x4xf32>
    %172 = arith.mulf %167, %171 : vector<16x8x4xf32>
    %cst_56 = arith.constant dense<0.000000e+00> : vector<16x32xf32>
    %173 = vector.multi_reduction <add>, %152, %cst_56 [1] : vector<16x8x32xf32> to vector<16x32xf32>
    %174 = vector.shape_cast %173 : vector<16x32xf32> to vector<16x1x32xf32>
    %cst_57 = arith.constant 8.000000e+00 : f32
    %175 = vector.broadcast %cst_57 : f32 to vector<16x1x32xf32>
    %176 = arith.divf %174, %175 : vector<16x1x32xf32>
    %177 = vector.broadcast %176 : vector<16x1x32xf32> to vector<16x8x32xf32>
    %178 = arith.subf %152, %177 : vector<16x8x32xf32>
    %cst_58 = arith.constant dense<0.000000e+00> : vector<16x4xf32>
    %179 = vector.multi_reduction <add>, %172, %cst_58 [1] : vector<16x8x4xf32> to vector<16x4xf32>
    %180 = vector.shape_cast %179 : vector<16x4xf32> to vector<16x1x4xf32>
    %cst_59 = arith.constant 8.000000e+00 : f32
    %181 = vector.broadcast %cst_59 : f32 to vector<16x1x4xf32>
    %182 = arith.divf %180, %181 : vector<16x1x4xf32>
    %183 = vector.broadcast %182 : vector<16x1x4xf32> to vector<16x8x4xf32>
    %184 = arith.subf %172, %183 : vector<16x8x4xf32>
    "tpu.trace_start"() <{level = 10 : i32, message = "gnd,gmd->gnm"}> : () -> ()
    %cst_60 = arith.constant dense<0.000000e+00> : vector<16x8x8xf32>
    %185 = tpu.matmul %178, %178, %cst_60 {dimension_numbers = #tpu.dot_dimension_numbers<[2], [2], [1], [1], [0, 0, 0, 1, 1, 1], [0], [0]>} : vector<16x8x32xf32>, vector<16x8x32xf32>, vector<16x8x8xf32> -> vector<16x8x8xf32>
    %cst_61 = arith.constant dense<0.000000e+00> : vector<16x8x8xf32>
    %186 = tpu.matmul %184, %184, %cst_61 {dimension_numbers = #tpu.dot_dimension_numbers<[2], [2], [1], [1], [0, 0, 0, 1, 1, 1], [0], [0]>} : vector<16x8x4xf32>, vector<16x8x4xf32>, vector<16x8x8xf32> -> vector<16x8x8xf32>
    "tpu.trace_stop"() : () -> ()
    %187 = arith.mulf %185, %186 : vector<16x8x8xf32>
    %cst_62 = arith.constant dense<0.000000e+00> : vector<16x8xf32>
    %188 = vector.multi_reduction <add>, %187, %cst_62 [2] : vector<16x8x8xf32> to vector<16x8xf32>
    %189 = vector.shape_cast %188 : vector<16x8xf32> to vector<16x8x1xf32>
    %cst_63 = arith.constant dense<0.000000e+00> : vector<16x1xf32>
    %190 = vector.multi_reduction <add>, %189, %cst_63 [1] : vector<16x8x1xf32> to vector<16x1xf32>
    %191 = vector.shape_cast %190 : vector<16x1xf32> to vector<16x1x1xf32>
    %192 = arith.mulf %185, %185 : vector<16x8x8xf32>
    %cst_64 = arith.constant dense<0.000000e+00> : vector<16x8xf32>
    %193 = vector.multi_reduction <add>, %192, %cst_64 [2] : vector<16x8x8xf32> to vector<16x8xf32>
    %194 = vector.shape_cast %193 : vector<16x8xf32> to vector<16x8x1xf32>
    %cst_65 = arith.constant dense<0.000000e+00> : vector<16x1xf32>
    %195 = vector.multi_reduction <add>, %194, %cst_65 [1] : vector<16x8x1xf32> to vector<16x1xf32>
    %196 = vector.shape_cast %195 : vector<16x1xf32> to vector<16x1x1xf32>
    %197 = arith.mulf %186, %186 : vector<16x8x8xf32>
    %cst_66 = arith.constant dense<0.000000e+00> : vector<16x8xf32>
    %198 = vector.multi_reduction <add>, %197, %cst_66 [2] : vector<16x8x8xf32> to vector<16x8xf32>
    %199 = vector.shape_cast %198 : vector<16x8xf32> to vector<16x8x1xf32>
    %cst_67 = arith.constant dense<0.000000e+00> : vector<16x1xf32>
    %200 = vector.multi_reduction <add>, %199, %cst_67 [1] : vector<16x8x1xf32> to vector<16x1xf32>
    %201 = vector.shape_cast %200 : vector<16x1xf32> to vector<16x1x1xf32>
    "tpu.trace_start"() <{level = 10 : i32, message = "gnm,gmd->gnd"}> : () -> ()
    %cst_68 = arith.constant dense<0.000000e+00> : vector<16x8x32xf32>
    %202 = tpu.matmul %186, %178, %cst_68 {dimension_numbers = #tpu.dot_dimension_numbers<[2], [1], [1], [2], [0, 0, 0, 1, 1, 2], [0], [0]>} : vector<16x8x8xf32>, vector<16x8x32xf32>, vector<16x8x32xf32> -> vector<16x8x32xf32>
    %cst_69 = arith.constant dense<0.000000e+00> : vector<16x8x32xf32>
    %203 = tpu.matmul %185, %178, %cst_69 {dimension_numbers = #tpu.dot_dimension_numbers<[2], [1], [1], [2], [0, 0, 0, 1, 1, 2], [0], [0]>} : vector<16x8x8xf32>, vector<16x8x32xf32>, vector<16x8x32xf32> -> vector<16x8x32xf32>
    "tpu.trace_stop"() : () -> ()
    %204 = arith.mulf %196, %201 : vector<16x1x1xf32>
    %205 = math.rsqrt %204 : vector<16x1x1xf32>
    %206 = tpu.reciprocal %196 {approx = true} : vector<16x1x1xf32> -> vector<16x1x1xf32>
    %207 = arith.mulf %191, %206 : vector<16x1x1xf32>
    %cst_70 = arith.constant 2.000000e+00 : f32
    %208 = vector.broadcast %cst_70 : f32 to vector<16x1x1xf32>
    %209 = arith.mulf %208, %205 : vector<16x1x1xf32>
    %210 = vector.broadcast %207 : vector<16x1x1xf32> to vector<16x8x32xf32>
    %211 = arith.mulf %210, %203 : vector<16x8x32xf32>
    %212 = arith.subf %202, %211 : vector<16x8x32xf32>
    %213 = vector.broadcast %209 : vector<16x1x1xf32> to vector<16x8x32xf32>
    %214 = arith.mulf %213, %212 : vector<16x8x32xf32>
    %cst_71 = arith.constant 0.00999999977 : f32
    %215 = vector.broadcast %cst_71 : f32 to vector<16x8x32xf32>
    %216 = arith.mulf %215, %214 : vector<16x8x32xf32>
    %217 = arith.addf %152, %216 : vector<16x8x32xf32>
    %218 = vector.shape_cast %217 : vector<16x8x32xf32> to vector<128x32xf32>
    %cst_72 = arith.constant dense<0.000000e+00> : vector<128x16xf32>
    %219 = tpu.matmul %218, %0, %cst_72 {dimension_numbers = #tpu.dot_dimension_numbers<[1], [0], [0], [1], [0, 0, 1, 1], [], []>} : vector<128x32xf32>, vector<32x16xf32>, vector<128x16xf32> -> vector<128x16xf32>
    %220 = vector.broadcast %1 : vector<1x16xf32> to vector<128x16xf32>
    %221 = arith.addf %219, %220 : vector<128x16xf32>
    %cst_73 = arith.constant 0.000000e+00 : f32
    %222 = vector.broadcast %cst_73 : f32 to vector<128x16xf32>
    %223 = arith.maximumf %221, %222 : vector<128x16xf32>
    %cst_74 = arith.constant dense<0.000000e+00> : vector<128x4xf32>
    %224 = tpu.matmul %223, %2, %cst_74 {dimension_numbers = #tpu.dot_dimension_numbers<[1], [0], [0], [1], [0, 0, 1, 1], [], []>} : vector<128x16xf32>, vector<16x4xf32>, vector<128x4xf32> -> vector<128x4xf32>
    %225 = vector.broadcast %3 : vector<1x4xf32> to vector<128x4xf32>
    %226 = arith.addf %224, %225 : vector<128x4xf32>
    %227 = vector.shape_cast %226 : vector<128x4xf32> to vector<16x8x4xf32>
    %cst_75 = arith.constant 0.000000e+00 : f32
    %228 = vector.broadcast %cst_75 : f32 to vector<16x8x92xf32>
    %229 = tpu.concatenate %217, %227, %228 in 2 : vector<16x8x32xf32>, vector<16x8x4xf32>, vector<16x8x92xf32> -> vector<16x8x128xf32>
    %c0_76 = arith.constant 0 : index
    %c0_77 = arith.constant 0 : index
    %c0_78 = arith.constant 0 : index
    %230 = vector.load %arg3[%c0_76, %c0_77, %c0_78] : memref<16x8x128xf32, #tpu.memory_space<vmem>>, vector<16x8x128xf32>
    tpu.vector_store %arg3[%c0_76, %c0_77, %c0_78], %229 {strides = array<i32>} : memref<16x8x128xf32, #tpu.memory_space<vmem>>, vector<16x8x128xf32>,
    return
  }
  func.func @transform_0(%arg0: i32) -> (i32, i32, i32) {
    %c0_i32 = arith.constant 0 : i32
    %c0_i32_0 = arith.constant 0 : i32
    %c0_i32_1 = arith.constant 0 : i32
    return %arg0, %c0_i32, %c0_i32_0 : i32, i32, i32
  }
  func.func @transform_1(%arg0: i32) -> (i32, i32) {
    %c0_i32 = arith.constant 0 : i32
    %c0_i32_0 = arith.constant 0 : i32
    %c0_i32_1 = arith.constant 0 : i32
    return %c0_i32, %c0_i32_0 : i32, i32
  }
  func.func @transform_2(%arg0: i32) -> (i32, i32, i32) {
    %c0_i32 = arith.constant 0 : i32
    %c0_i32_0 = arith.constant 0 : i32
    %c0_i32_1 = arith.constant 0 : i32
    return %arg0, %c0_i32, %c0_i32_0 : i32, i32, i32
  }
}

</mosaic_0001>

<bundles_post_ra>
// kernel: tpu_custom_call.1
= control target key start
LH: loop header
LB: loop body
LE: loop exit
PB: predicated region body
PF: predicated region fallthrough
CT: control target
= control target key end

     0   :  { %7 = vsyncpa [#allocation3], 0  ;;  %s15893_s0 = inlined_call_operand.vmem [shape: f32[64,8,32], index: 0, kind: input, shape index: {}]   ;;  %s15894_s1 = inlined_call_operand.vmem [shape: f32[64,128], index: 1, kind: input, shape index: {}]   ;;  %s15895_s2 = inlined_call_operand.hbm [shape: f32[64,8,128], index: 2, kind: output, shape index: {}]  }
   0x1   :  { %9 = vsyncpa [#allocation3 + $0x1], 0  ;;  %s11288_s9 = smov 0   ;;  %s11290_s10 = smov 0  }
   0x2   :  { %s11292_s11 = smov 0   ;;  %s11294_s12 = smov 0  }
   0x3 LB: > { %s11309_s13 = sadd.s32 4294967295, %s11267_s12   ;;  %s10221_s14 = sadd.s32 4294967294, %s11267_s12   ;;  %s11267_s12 = sphi %s11294_s12, %s16176_s12   ;;  %s11263_s11 = sphi %s11292_s11, %s16175_s11   ;;  %s11259_s10 = sphi %s11290_s10, %s16174_s10   ;;  %s11255_s9 = sphi %s11288_s9, %s16173_s9  }
   0x4   : > { %s11313_s15 = sadd.s32 1, %s11267_s12   ;;  %s69_s16 = sadd.s32 1, %s11263_s11 }
   0x5   : > { %s66_s17 = ssub.s32 %s11267_s12, %s11313_s15  ;;  %p79_p0 = scmp.ne.s32.totalorder %s11263_s11, %s11259_s10 }
   0x6   : > { %p67_p1 = scmp.eq.s32.totalorder %s66_s17, 0  ;;  %p80_p2 = scmp.eq.s32.totalorder %s11309_s13, 3 }
   0x7   : > { %p85_p3 = scmp.ne.s32.totalorder %s11259_s10, %s11255_s9  ;;  %p86_p4 = scmp.eq.s32.totalorder %s10221_s14, 3 }
   0x8   : > { %s11324_s18 = scalar_select %p67_p1, %s11263_s11, %s69_s16  }
   0x9   : > { %p11326_p5 = por %p80_p2, %p79_p0  ;;  %p11330_p6 = por %p86_p4, %p85_p3 }
   0xa   : > { %p10224_p7 = scmp.ge.s32.totalorder %s11267_s12, 1  ;;  %p116_p8 = scmp.lt.s32.totalorder %s11267_s12, 5 }
   0xc   : > { %p117_p9 = pnand %p10224_p7, %p116_p8 }
   0xe   : > { %120 = sbr.rel (%p117_p9) target bundleno = 3892 (0xf34), region = 28 }
  0x13   : > { %s10226_s21 = sshll.u32 %s11309_s13, 4  ;;  %vm185_vm0 = vcmask 261120   ;;  %v148_v48 = vld [vmem:[%s15894_s1 + $0x18] sm:$0xff]  ;;  %v147_v49 = vld [vmem:[%s15894_s1 + $0x10] sm:$0xff]  ;;  %v146_v50 = vld [vmem:[%s15894_s1 + $0x8] sm:$0xff]  ;;  %v11269_v54 = vmov 8.0  }
  0x14   : > { %p139_p10 = scmp.lt.s32.totalorder %s10226_s21, 63  ;;  %471 = vmatpush.msra.mxu0 %v148_v48  ;;  %v145_v51 = vld [vmem:[%s15894_s1] sm:$0xff]  ;;  %10699 = vrcp.f32 %v11269_v54  ;;  %s11270_s5 = smov 32  }
  0x15   : > { %s135_s6 = sand.u32 1, %s11259_s10   ;;  %s10649_s14 = sshll.u32 %s11309_s13, 7 }
  0x16   : > { %s16178_s21 = smov (!%p139_p10, %s10226_s21), 63  ;;  %472 = vmatpush.msra.mxu0 %v147_v49  ;;  %s10225_s7 = sshll.u32 %s135_s6, 7 }
  0x17   : > { %s10227_s22 = sshll.u32 %s16178_s21, 3  ;;  %s15782_s8 = scalar_lea.vmem [#allocation2], %s10225_s7 }
  0x18   : > { %s11340_s25 = scalar_lea.vmem %s15893_s0, %s10227_s22  ;;  %473 = vmatpush.msra.mxu0 %v146_v50  ;;  %s10155_s21 = scalar_lea.hbm %s15895_s2, %s10649_s14 }
  0x19   : > { %v11343_v0 = vld [vmem:[%s11340_s25 + $0x10] sm:$0xff]  ;;  %v11346_v1 = vld [vmem:[%s11340_s25] sm:$0xff]  ;;  %v11356_v5 = vld [vmem:[%s11340_s25 + $0x18] sm:$0xff]  ;;  %s10156_s22 = sshll.u32 %s15782_s8, 4  ;;  %s10158_s23 = sshll.u32 %s10155_s21, 4  ;;  %s10157_s22 = int_to_ptr.vmem [resolvable:$true] %s10156_s22  ;;  %s10159_s23 = int_to_ptr.hbm [resolvable:$true] %s10158_s23 }
  0x1a   : > { %v171_v2 = vmul.f32 %v11343_v0, %v11343_v0  ;;  %v169_v3 = vmul.f32 %v11346_v1, %v11346_v1  ;;  %v11353_v4 = vld [vmem:[%s11340_s25 + $0x20] sm:$0xff]  ;;  %v11359_v6 = vld [vmem:[%s11340_s25 + $0x8] sm:$0xff]  ;;  %v172_v12 = vmul.f32 %v11356_v5, %v11356_v5  ;;  %v11379_v18 = vld [vmem:[%s11340_s25 + $0x30] sm:$0xff]  ;;  %474 = vmatpush.msra.mxu0 %v145_v51  ;;  %v11450_v56 = vpop.eup %10699  ;;  %s10144_s13 = scalar_lea.sflag [#allocation3], %s135_s6  ;;  %s11219_s24 = sshra.s32 %s10159_s23, 4  ;;  %s11220_s24 = int_to_ptr.hbm [resolvable:$true] %s11219_s24 }
  0x1b   : > { %v173_v7 = vmul.f32 %v11353_v4, %v11353_v4  ;;  %v11366_v10 = vld [vmem:[%s11340_s25 + $0x28] sm:$0xff]  ;;  %v170_v13 = vmul.f32 %v11359_v6, %v11359_v6  ;;  %v11382_v19 = vld [vmem:[%s11340_s25 + $0x38] sm:$0xff]  ;;  %v11385_v20 = vld [vmem:[%s11340_s25 + $0x40] sm:$0xff]  ;;  %v175_v21 = vmul.f32 %v11379_v18, %v11379_v18  ;;  %vm949_vm14 = vweird.f32 %v11450_v56  ;;  %s11225_s28 = scalar_lea.hbm %s15895_s2, 512  ;;  %p11226_p0 = scmp.lt.s32.totalorder %s11220_s24, %s15895_s2 }
  0x1c   : > { %v192_v8 = vsel %vm185_vm0, %v171_v2, 0.0  ;;  %v186_v9 = vsel %vm185_vm0, %v169_v3, 0.0  ;;  %v174_v14 = vmul.f32 %v11366_v10, %v11366_v10  ;;  %v195_v15 = vsel %vm185_vm0, %v172_v12, 0.0  ;;  %v11397_v27 = vld [vmem:[%s11340_s25 + $0x48] sm:$0xff]  ;;  %v11400_v28 = vld [vmem:[%s11340_s25 + $0x50] sm:$0xff]  ;;  %v11403_v29 = vld [vmem:[%s11340_s25 + $0x58] sm:$0xff] }
  0x1d   : > { %193 = vadd.xlane.f32.xlu1 %v192_v8  ;;  %187 = vadd.xlane.f32.xlu0 %v186_v9  ;;  %v198_v11 = vsel %vm185_vm0, %v173_v7, 0.0  ;;  %v189_v16 = vsel %vm185_vm0, %v170_v13, 0.0  ;;  %v176_v22 = vmul.f32 %v11382_v19, %v11382_v19  ;;  %v177_v23 = vmul.f32 %v11385_v20, %v11385_v20  ;;  %v11415_v36 = vld [vmem:[%s11340_s25 + $0x60] sm:$0xff]  ;;  %v11418_v37 = vld [vmem:[%s11340_s25 + $0x68] sm:$0xff]  ;;  %v11421_v38 = vld [vmem:[%s11340_s25 + $0x70] sm:$0xff] }
  0x1e   : > { %199 = vadd.xlane.f32.xlu2 %v198_v11  ;;  %v201_v17 = vsel %vm185_vm0, %v174_v14, 0.0  ;;  %v204_v24 = vsel %vm185_vm0, %v175_v21, 0.0  ;;  %v178_v30 = vmul.f32 %v11397_v27, %v11397_v27  ;;  %v179_v31 = vmul.f32 %v11400_v28, %v11400_v28  ;;  %v11433_v45 = vld [vmem:[%s11340_s25 + $0x78] sm:$0xff]  ;;  %v151_v2 = vld [vmem:[%s15894_s1 + $0x30] sm:$0xff]  ;;  %v150_v14 = vld [vmem:[%s15894_s1 + $0x28] sm:$0xff]  ;;  %s11221_s25 = scalar_lea.hbm %s11220_s24, 128 }
  0x1f   : > { %v207_v25 = vsel %vm185_vm0, %v176_v22, 0.0  ;;  %v210_v26 = vsel %vm185_vm0, %v177_v23, 0.0  ;;  %v180_v32 = vmul.f32 %v11403_v29, %v11403_v29  ;;  %v181_v39 = vmul.f32 %v11415_v36, %v11415_v36  ;;  %10650 = vmatpush.msra.mxu3 %v151_v2  ;;  %604 = vmatpush.msra.mxu1 %v151_v2  ;;  %p11222_p11 = scmp.ne.s32.totalorder %s11220_s24, %s11221_s25  ;;  %p11227_p1 = scmp.lt.s32.totalorder %s11225_s28, %s11221_s25 }
  0x20   : > { %v213_v33 = vsel %vm185_vm0, %v178_v30, 0.0  ;;  %v216_v34 = vsel %vm185_vm0, %v179_v31, 0.0  ;;  %v182_v40 = vmul.f32 %v11418_v37, %v11418_v37  ;;  %v183_v41 = vmul.f32 %v11421_v38, %v11421_v38 }
  0x21   : > { %v219_v35 = vsel %vm185_vm0, %v180_v32, 0.0  ;;  %v222_v42 = vsel %vm185_vm0, %v181_v39, 0.0  ;;  %v184_v46 = vmul.f32 %v11433_v45, %v11433_v45  ;;  %v945_v8 = vmul.f32 8.0, %v11450_v56  ;;  %10651 = vmatpush.msra.mxu3 %v150_v14  ;;  %605 = vmatpush.msra.mxu1 %v150_v14  ;;  %p11223_p12 = pnand %p11222_p11, %p11326_p5  ;;  %p11228_p2 = por %p11227_p1, %p11226_p0 }
  0x22   : > { %v225_v43 = vsel %vm185_vm0, %v182_v40, 0.0  ;;  %v228_v44 = vsel %vm185_vm0, %v183_v41, 0.0 }
  0x23   : > { %v231_v47 = vsel %vm185_vm0, %v184_v46, 0.0  ;;  %p11224_p13 = pneg %p11223_p12 }
  0x25   : > { %196 = vadd.xlane.f32.xlu1 %v195_v15  ;;  %190 = vadd.xlane.f32.xlu0 %v189_v16  ;;  %p11229_p3 = pnand %p11228_p2, %p11224_p13 }
  0x26   : > { %202 = vadd.xlane.f32.xlu2 %v201_v17  ;;  %v946_v17 = vsub.f32 1.0, %v945_v8 }
  0x2d   : > { %205 = vadd.xlane.f32.xlu0 %v204_v24  ;;  %208 = vadd.xlane.f32.xlu1 %v207_v25 }
  0x2e   : > { %211 = vadd.xlane.f32.xlu2 %v210_v26 }
  0x35   : > { %214 = vadd.xlane.f32.xlu0 %v213_v33  ;;  %217 = vadd.xlane.f32.xlu1 %v216_v34 }
  0x36   : > { %220 = vadd.xlane.f32.xlu2 %v219_v35 }
  0x3d   : > { %223 = vadd.xlane.f32.xlu0 %v222_v42  ;;  %226 = vadd.xlane.f32.xlu1 %v225_v43  ;;  %v947_v42 = vmul.f32 %v11450_v56, %v946_v17 }
  0x3e   : > { %229 = vadd.xlane.f32.xlu2 %v228_v44 }
  0x3f   : > { %v948_v54 = vadd.f32 %v11450_v56, %v947_v42 }
  0x45   : > { %232 = vadd.xlane.f32.xlu0 %v231_v47 }
  0x90   : > { %v194_v52 = vpop.xlane.xlu1 %193  ;;  %v188_v53 = vpop.xlane.xlu0 %187 }
  0x91   : > { %10701 = vrsqrt.f32 %v194_v52  ;;  %v200_v55 = vpop.xlane.xlu2 %199  ;;  %vm260_vm1 = vweird.f32 %v194_v52  ;;  %vm240_vm7 = vweird.f32 %v188_v53 }
  0x92   : > { %10703 = vrsqrt.f32 %v188_v53  ;;  %vm280_vm5 = vweird.f32 %v200_v55 }
  0x93   : > { %10705 = vrsqrt.f32 %v200_v55 }
  0x97   : > { %v10702_v57 = vpop.eup %10701 }
  0x98   : > { %v10704_v58 = vpop.eup %10703  ;;  %v255_v59 = vmul.f32 %v10702_v57, %v194_v52  ;;  %v197_v60 = vpop.xlane.xlu1 %196  ;;  %vm261_vm2 = vweird.f32 %v10702_v57 }
  0x99   : > { %v11452_v61 = vpop.xlane.xlu0 %190  ;;  %v11454_v62 = vpop.eup %10705  ;;  %v235_v63 = vmul.f32 %v10704_v58, %v188_v53  ;;  %10707 = vrsqrt.f32 %v197_v60  ;;  %vm241_vm3 = vweird.f32 %v10704_v58  ;;  %vm11466_vm4 = vmor %vm260_vm1, %vm261_vm2  ;;  %vm270_vm10 = vweird.f32 %v197_v60 }
  0x9a   : > { %v256_v3 = vmul.f32 %v10702_v57, %v255_v59  ;;  %10709 = vrsqrt.f32 %v11452_v61  ;;  %v275_v7 = vmul.f32 %v11454_v62, %v200_v55  ;;  %vm281_vm6 = vweird.f32 %v11454_v62  ;;  %vm242_vm8 = vmor %vm240_vm7, %vm241_vm3  ;;  %v11483_v41 = vpop.xlane.xlu2 %202 }
  0x9b   : > { %v236_v9 = vmul.f32 %v10704_v58, %v235_v63  ;;  %vm11477_vm9 = vmor %vm280_vm5, %vm281_vm6  ;;  %vm250_vm15 = vweird.f32 %v11452_v61 }
  0x9c   : > { %v257_v11 = vmul.f32 0.5, %v256_v3  ;;  %v276_v12 = vmul.f32 %v11454_v62, %v275_v7 }
  0x9d   : > { %v237_v13 = vmul.f32 0.5, %v236_v9 }
  0x9e   : > { %v258_v15 = vsub.f32 1.5, %v257_v11  ;;  %v277_v16 = vmul.f32 0.5, %v276_v12 }
  0x9f   : > { %v10708_v21 = vpop.eup %10707  ;;  %v238_v23 = vsub.f32 1.5, %v237_v13 }
  0xa0   : > { %v10710_v24 = vpop.eup %10709  ;;  %v259_v25 = vmul.f32 %v10702_v57, %v258_v15  ;;  %v265_v26 = vmul.f32 %v10708_v21, %v197_v60  ;;  %v278_v30 = vsub.f32 1.5, %v277_v16  ;;  %vm271_vm11 = vweird.f32 %v10708_v21 }
  0xa1   : > { %v11471_v31 = vpop.xlane.xlu0 %205  ;;  %v239_v32 = vmul.f32 %v10704_v58, %v238_v23  ;;  %v245_v33 = vmul.f32 %v10710_v24, %v11452_v61  ;;  %vm11504_vm12 = vmor %vm270_vm10, %vm271_vm11  ;;  %vm251_vm13 = vweird.f32 %v10710_v24 }
  0xa2   : > { %10711 = vrsqrt.f32 %v11471_v31  ;;  %v266_v34 = vmul.f32 %v10708_v21, %v265_v26  ;;  %v279_v35 = vmul.f32 %v11454_v62, %v278_v30  ;;  %v263_v40 = vsel %vm11466_vm4, %v10702_v57, %v259_v25  ;;  %vm252_vm1 = vmor %vm250_vm15, %vm251_vm13  ;;  %v11521_v11 = vpop.xlane.xlu2 %211 }
  0xa3   : > { %v246_v43 = vmul.f32 %v10710_v24, %v245_v33  ;;  %v243_v44 = vsel %vm242_vm8, %v10704_v58, %v239_v32  ;;  %v11487_v46 = vmul.f32 %v263_v40, %v11343_v0  ;;  %10713 = vrsqrt.f32 %v11483_v41  ;;  %v11545_v33 = vpop.xlane.xlu1 %208 }
  0xa4   : > { %v267_v47 = vmul.f32 0.5, %v266_v34  ;;  %v11490_v48 = vmul.f32 %v243_v44, %v11346_v1  ;;  %v283_v51 = vsel %vm11477_vm9, %v11454_v62, %v279_v35  ;;  %vm300_vm2 = vweird.f32 %v11471_v31 }
  0xa5   : > { %v247_v49 = vmul.f32 0.5, %v246_v43  ;;  %v846_v50 = vsel %vm185_vm0, %v11487_v46, 0.0  ;;  %v11509_v59 = vmul.f32 %v283_v51, %v11353_v4  ;;  %10715 = vrsqrt.f32 %v11521_v11 }
  0xa6   : > { %v268_v52 = vsub.f32 1.5, %v267_v47  ;;  %10228 = vmatmul.msk.f32.vlgmr.msra.gmra.mxu0 %vm185_vm0, %v11490_v48  ;;  %v832_v0 = vsel %vm185_vm0, %v11490_v48, 0.0  ;;  %v847_v53 = vrot.slane %v846_v50, 4  ;;  %v11543_v32 = vsel %vm949_vm14, %v11450_v56, %v948_v54 }
  0xa7   : > { %v248_v57 = vsub.f32 1.5, %v247_v49  ;;  %v833_v58 = vrot.slane %v832_v0, 4  ;;  %v860_v9 = vsel %vm185_vm0, %v11509_v59, 0.0  ;;  %15963 = vst [vmem:[#allocation6_spill] sm:$0xff] %v11543_v32  ;;  %vm320_vm5 = vweird.f32 %v11521_v11 }
  0xa8   : > { %v11502_v1 = vpop.eup %10711  ;;  %v269_v60 = vmul.f32 %v10708_v21, %v268_v52  ;;  %v848_v62 = vadd.f32 %v847_v53, %v846_v50  ;;  %v861_v22 = vrot.slane %v860_v9, 4  ;;  %vm290_vm8 = vweird.f32 %v11483_v41 }
  0xa9   : > { %v295_v63 = vmul.f32 %v11502_v1, %v11471_v31  ;;  %v249_v2 = vmul.f32 %v10710_v24, %v248_v57  ;;  %v834_v3 = vadd.f32 %v833_v58, %v832_v0  ;;  %vm301_vm3 = vweird.f32 %v11502_v1  ;;  %v11538_v25 = vpop.eup %10713 }
  0xaa   : > { %v849_v7 = vrot.slane %v848_v62, 2  ;;  %v273_v4 = vsel %vm11504_vm12, %v10708_v21, %v269_v60  ;;  %vm11552_vm4 = vmor %vm300_vm2, %vm301_vm3  ;;  %v862_v47 = vadd.f32 %v861_v22, %v860_v9  ;;  %v285_v50 = vmul.f32 %v11538_v25, %v11483_v41 }
  0xab   : > { %v296_v8 = vmul.f32 %v11502_v1, %v295_v63  ;;  %v253_v12 = vsel %vm252_vm1, %v10710_v24, %v249_v2  ;;  %v835_v13 = vrot.slane %v834_v3, 2  ;;  %v11525_v61 = vmul.f32 %v273_v4, %v11356_v5  ;;  %v10716_v49 = vpop.eup %10715 }
  0xac   : > { %v11528_v14 = vmul.f32 %v253_v12, %v11359_v6  ;;  %v850_v15 = vadd.f32 %v849_v7, %v848_v62  ;;  %v315_v54 = vmul.f32 %v10716_v49, %v11521_v11  ;;  %v863_v62 = vrot.slane %v862_v47, 2 }
  0xad   : > { %15962 = vst [vmem:[#allocation5_spill] sm:$0xff] %v11525_v61  ;;  %v297_v16 = vmul.f32 0.5, %v296_v8  ;;  %v836_v17 = vadd.f32 %v835_v13, %v834_v3  ;;  %v853_v21 = vsel %vm185_vm0, %v11525_v61, 0.0  ;;  %v286_v63 = vmul.f32 %v11538_v25, %v285_v50  ;;  %v11580_v3 = vpop.xlane.xlu1 %217 }
  0xae   : > { %10229 = vmatmul.msk.f32.gmra.mxu0 %vm185_vm0, %v11528_v14  ;;  %v839_v5 = vsel %vm185_vm0, %v11528_v14, 0.0  ;;  %v851_v23 = vrot.slane %v850_v15, 1  ;;  %v854_v24 = vrot.slane %v853_v21, 4  ;;  %v316_v60 = vmul.f32 %v10716_v49, %v315_v54 }
  0xaf   : > { %v298_v6 = vsub.f32 1.5, %v297_v16  ;;  %v840_v26 = vrot.slane %v839_v5, 4  ;;  %v837_v30 = vrot.slane %v836_v17, 1  ;;  %v864_v4 = vadd.f32 %v863_v62, %v862_v47 }
  0xb0   : > { %v852_v34 = vadd.f32 %v851_v23, %v850_v15  ;;  %v855_v40 = vadd.f32 %v854_v24, %v853_v21  ;;  %v317_v8 = vmul.f32 0.5, %v316_v60  ;;  %vm321_vm6 = vweird.f32 %v10716_v49 }
  0xb1   : > { %v299_v35 = vmul.f32 %v11502_v1, %v298_v6  ;;  %v838_v42 = vadd.f32 %v837_v30, %v836_v17  ;;  %v841_v43 = vadd.f32 %v840_v26, %v839_v5  ;;  %v865_v16 = vrot.slane %v864_v4, 1  ;;  %vm322_vm7 = vmor %vm320_vm5, %vm321_vm6  ;;  %v11600_v30 = vpop.xlane.xlu0 %214 }
  0xb2   : > { %v953_v44 = vmul.f32 %v11543_v32, %v852_v34  ;;  %v856_v56 = vrot.slane %v855_v40, 2  ;;  %v318_v15 = vsub.f32 1.5, %v317_v8  ;;  %10717 = vrsqrt.f32 %v11580_v3 }
  0xb3   : > { %v951_v51 = vmul.f32 %v11543_v32, %v838_v42  ;;  %v842_v52 = vrot.slane %v841_v43, 2  ;;  %v303_v31 = vsel %vm11552_vm4, %v11502_v1, %v299_v35  ;;  %v287_v17 = vmul.f32 0.5, %v286_v63 }
  0xb4   : > { %v11564_v0 = vsub.f32 %v11487_v46, %v953_v44  ;;  %v857_v53 = vadd.f32 %v856_v56, %v855_v40  ;;  %v11575_v1 = vmul.f32 %v303_v31, %v11379_v18  ;;  %10719 = vrsqrt.f32 %v11545_v33 }
  0xb5   : > { %v11568_v55 = vsub.f32 %v11490_v48, %v951_v51  ;;  %v843_v57 = vadd.f32 %v842_v52, %v841_v43  ;;  %v319_v23 = vmul.f32 %v10716_v49, %v318_v15  ;;  %v866_v11 = vadd.f32 %v865_v16, %v864_v4 }
  0xb6   : > { %10230 = vmatmul.msk.f32.gmra.mxu0 %vm185_vm0, %v11487_v46  ;;  %10264 = vmatpush.xpose.msk.msra.mxu2 %vm185_vm0, %v11564_v0  ;;  %v858_v58 = vrot.slane %v857_v53, 1  ;;  %15966 = vst [vmem:[#allocation7_spill] sm:$0xff] %v11575_v1  ;;  %v874_v9 = vsel %vm185_vm0, %v11575_v1, 0.0  ;;  %v288_v40 = vsub.f32 1.5, %v287_v17  ;;  %vm291_vm9 = vweird.f32 %v11538_v25 }
  0xb7   : > { %10260 = vmatpush.xpose.msk.msrb.mxu0 %vm185_vm0, %v11568_v55  ;;  %v844_v2 = vrot.slane %v843_v57, 1  ;;  %v875_v18 = vrot.slane %v874_v9, 4  ;;  %v955_v26 = vmul.f32 %v11543_v32, %v866_v11  ;;  %v323_v35 = vsel %vm322_vm7, %v10716_v49, %v319_v23  ;;  %vm11627_vm10 = vmor %vm290_vm8, %vm291_vm9 }
  0xb8   : > { %v859_v7 = vadd.f32 %v858_v58, %v857_v53  ;;  %v10718_v39 = vpop.eup %10717  ;;  %v11609_v43 = vmul.f32 %v323_v35, %v11385_v20  ;;  %v289_v52 = vmul.f32 %v11538_v25, %v288_v40  ;;  %vm340_vm11 = vweird.f32 %v11580_v3 }
  0xb9   : > { %10265 = vmatmul.msk.f32.vlgmr.msra.gmra.mxu2 %vm185_vm0, %v11564_v0  ;;  %v845_v12 = vadd.f32 %v844_v2, %v843_v57  ;;  %v876_v22 = vadd.f32 %v875_v18, %v874_v9  ;;  %v11606_v42 = vsub.f32 %v11509_v59, %v955_v26  ;;  %v335_v44 = vmul.f32 %v10718_v39, %v11580_v3  ;;  %v224_v58 = vpop.xlane.xlu0 %223 }
  0xba   : > { %v954_v13 = vmul.f32 %v11543_v32, %v859_v7  ;;  %15967 = vst [vmem:[#allocation8_spill] sm:$0xff] %v11609_v43  ;;  %v11612_v47 = vpop.eup %10719  ;;  %v888_v49 = vsel %vm185_vm0, %v11609_v43, 0.0  ;;  %vm341_vm12 = vweird.f32 %v10718_v39  ;;  %10721 = vrsqrt.f32 %v224_v58 }
  0xbb   : > { %v952_v21 = vmul.f32 %v11543_v32, %v845_v12  ;;  %v877_v24 = vrot.slane %v876_v22, 2  ;;  %10268 = vmatpush.xpose.msk.msrb.mxu2 %vm185_vm0, %v11606_v42  ;;  %2454 = vmatpush.msrb.mxu1 %v11606_v42  ;;  %v336_v50 = vmul.f32 %v10718_v39, %v335_v44  ;;  %v889_v51 = vrot.slane %v888_v49, 4  ;;  %vm342_vm13 = vmor %vm340_vm11, %vm341_vm12 }
  0xbc   : > { %v11591_v5 = vsub.f32 %v11525_v61, %v954_v13  ;;  %v305_v31 = vmul.f32 %v11612_v47, %v11545_v33  ;;  %v293_v7 = vsel %vm11627_vm10, %v11538_v25, %v289_v52  ;;  %10723 = vrsqrt.f32 %v11600_v30  ;;  %v11651_v25 = vpop.xlane.xlu2 %220 }
  0xbd   : > { %v11595_v6 = vsub.f32 %v11528_v14, %v952_v21  ;;  %v878_v34 = vadd.f32 %v877_v24, %v876_v22  ;;  %v337_v41 = vmul.f32 0.5, %v336_v50  ;;  %v890_v54 = vadd.f32 %v889_v51, %v888_v49 }
  0xbe   : > { %10231 = vmatmul.msk.f32.gmra.mxu0 %vm185_vm0, %v11525_v61  ;;  %v306_v2 = vmul.f32 %v11612_v47, %v305_v31  ;;  %v11644_v12 = vmul.f32 %v293_v7, %v11366_v10  ;;  %vm310_vm14 = vweird.f32 %v11545_v33  ;;  %vm311_vm15 = vweird.f32 %v11612_v47 }
  0xbf   : > { %10262 = vmatpush.xpose.msk.msrb.mxu3 %vm185_vm0, %v11595_v6  ;;  %2431 = vmatpush.msra.mxu0 %v11591_v5  ;;  %v879_v56 = vrot.slane %v878_v34, 1  ;;  %v338_v60 = vsub.f32 1.5, %v337_v41  ;;  %v891_v63 = vrot.slane %v890_v54, 2  ;;  %vm312_vm1 = vmor %vm310_vm14, %vm311_vm15  ;;  %vm360_vm2 = vweird.f32 %v224_v58 }
  0xc0   : > { %15970 = vst [vmem:[#allocation9_spill] sm:$0xff] %v11644_v12  ;;  %v307_v3 = vmul.f32 0.5, %v306_v2  ;;  %v10722_v13 = vpop.eup %10721  ;;  %vm330_vm5 = vweird.f32 %v11600_v30  ;;  %vm350_vm11 = vweird.f32 %v11651_v25 }
  0xc1   : > { %v880_v20 = vadd.f32 %v879_v56, %v878_v34  ;;  %10269 = vmatmul.msk.f32.vlgmr.msrb.gmra.mxu2 %vm185_vm0, %v11606_v42  ;;  %v892_v8 = vadd.f32 %v891_v63, %v890_v54  ;;  %v339_v4 = vmul.f32 %v10718_v39, %v338_v60  ;;  %v355_v16 = vmul.f32 %v10722_v13, %v224_v58 }
  0xc2   : > { %v308_v21 = vsub.f32 1.5, %v307_v3  ;;  %v11660_v11 = vpop.eup %10723  ;;  %vm361_vm3 = vweird.f32 %v10722_v13 }
  0xc3   : > { %v957_v53 = vmul.f32 %v11543_v32, %v880_v20  ;;  %v893_v9 = vrot.slane %v892_v8, 1  ;;  %v343_v15 = vsel %vm342_vm13, %v10718_v39, %v339_v4  ;;  %v356_v22 = vmul.f32 %v10722_v13, %v355_v16  ;;  %vm362_vm4 = vmor %vm360_vm2, %vm361_vm3  ;;  %v227_v16 = vpop.xlane.xlu1 %226 }
  0xc4   : > { %v11655_v10 = vmul.f32 %v343_v15, %v11400_v28  ;;  %v309_v34 = vmul.f32 %v11612_v47, %v308_v21  ;;  %v325_v35 = vmul.f32 %v11660_v11, %v11600_v30  ;;  %v230_v33 = vpop.xlane.xlu2 %229  ;;  %vm331_vm6 = vweird.f32 %v11660_v11 }
  0xc5   : > { %v11634_v62 = vsub.f32 %v11575_v1, %v957_v53  ;;  %v894_v18 = vadd.f32 %v893_v9, %v892_v8  ;;  %v357_v26 = vmul.f32 0.5, %v356_v22  ;;  %10725 = vrsqrt.f32 %v230_v33  ;;  %vm332_vm7 = vmor %vm330_vm5, %vm331_vm6 }
  0xc6   : > { %10232 = vmatmul.msk.f32.gmra.mxu0 %vm185_vm0, %v11509_v59  ;;  %15971 = vst [vmem:[#allocation10_spill] sm:$0xff] %v11655_v10  ;;  %v902_v24 = vsel %vm185_vm0, %v11655_v10, 0.0  ;;  %v326_v56 = vmul.f32 %v11660_v11, %v325_v35  ;;  %v313_v49 = vsel %vm312_vm1, %v11612_v47, %v309_v34  ;;  %10727 = vrsqrt.f32 %v11651_v25 }
  0xc7   : > { %10272 = vmatpush.xpose.msk.msra.mxu2 %vm185_vm0, %v11634_v62  ;;  %v959_v17 = vmul.f32 %v11543_v32, %v894_v18  ;;  %v903_v28 = vrot.slane %v902_v24, 4  ;;  %v358_v40 = vsub.f32 1.5, %v357_v26  ;;  %v11678_v52 = vmul.f32 %v313_v49, %v11382_v19 }
  0xc8   : > { %v327_v31 = vmul.f32 0.5, %v326_v56  ;;  %vm380_vm8 = vweird.f32 %v230_v33  ;;  %10729 = vrsqrt.f32 %v227_v16  ;;  %vm370_vm14 = vweird.f32 %v227_v16 }
  0xc9   : > { %v11658_v23 = vsub.f32 %v11609_v43, %v959_v17  ;;  %v904_v39 = vadd.f32 %v903_v28, %v902_v24  ;;  %v359_v20 = vmul.f32 %v10722_v13, %v358_v40  ;;  %15972 = vst [vmem:[#allocation11_spill] sm:$0xff] %v11678_v52  ;;  %vm541_vm5 = vcmask 130048  }
  0xca   : > { %10273 = vmatmul.msk.f32.vlgmr.msra.gmra.mxu2 %vm185_vm0, %v11634_v62  ;;  %v328_v60 = vsub.f32 1.5, %v327_v31  ;;  %vm655_vm6 = vcmask 31744  }
  0xcb   : > { %10276 = vmatpush.xpose.msk.msrb.mxu2 %vm185_vm0, %v11658_v23  ;;  %v905_v44 = vrot.slane %v904_v39, 2  ;;  %v10726_v53 = vpop.eup %10725  ;;  %v363_v54 = vsel %vm362_vm4, %v10722_v13, %v359_v20 }
  0xcc   : > { %v375_v57 = vmul.f32 %v10726_v53, %v230_v33  ;;  %v11685_v47 = vmul.f32 %v363_v54, %v11415_v36  ;;  %v10728_v2 = vpop.eup %10727  ;;  %v329_v36 = vmul.f32 %v11660_v11, %v328_v60  ;;  %vm381_vm9 = vweird.f32 %v10726_v53 }
  0xcd   : > { %v906_v50 = vadd.f32 %v905_v44, %v904_v39  ;;  %v345_v9 = vmul.f32 %v10728_v2, %v11651_v25  ;;  %vm382_vm10 = vmor %vm380_vm8, %vm381_vm9  ;;  %vm351_vm12 = vweird.f32 %v10728_v2 }
  0xce   : > { %10233 = vmatmul.msk.f32.gmra.mxu0 %vm185_vm0, %v11644_v12  ;;  %15973 = vst [vmem:[#allocation12_spill] sm:$0xff] %v11685_v47  ;;  %v376_v63 = vmul.f32 %v10726_v53, %v375_v57  ;;  %v916_v7 = vsel %vm185_vm0, %v11685_v47, 0.0  ;;  %v333_v15 = vsel %vm332_vm7, %v11660_v11, %v329_v36  ;;  %v10730_v33 = vpop.eup %10729  ;;  %vm352_vm13 = vmor %vm350_vm11, %vm351_vm12  ;;  %vm1879_vm7 = vcmask 64512  }
  0xcf   : > { %v907_v51 = vrot.slane %v906_v50, 1  ;;  %v917_v4 = vrot.slane %v916_v7, 4  ;;  %v346_v13 = vmul.f32 %v10728_v2, %v345_v9  ;;  %v11704_v24 = vmul.f32 %v333_v15, %v11397_v27 }
  0xd0   : > { %v377_v8 = vmul.f32 0.5, %v376_v63  ;;  %v365_v49 = vmul.f32 %v10730_v33, %v227_v16  ;;  %vm371_vm15 = vweird.f32 %v10730_v33 }
  0xd1   : > { %v908_v41 = vadd.f32 %v907_v51, %v906_v50  ;;  %v918_v3 = vadd.f32 %v917_v4, %v916_v7  ;;  %15974 = vst [vmem:[#allocation13_spill] sm:$0xff] %v11704_v24  ;;  %v347_v26 = vmul.f32 0.5, %v346_v13  ;;  %vm372_vm1 = vmor %vm370_vm14, %vm371_vm15 }
  0xd2   : > { %10277 = vmatmul.msk.f32.vlgmr.msrb.gmra.mxu2 %vm185_vm0, %v11658_v23  ;;  %v378_v18 = vsub.f32 1.5, %v377_v8  ;;  %v366_v51 = vmul.f32 %v10730_v33, %v365_v49  ;;  %v881_v8 = vsel %vm185_vm0, %v11678_v52, 0.0 }
  0xd3   : > { %v961_v58 = vmul.f32 %v11543_v32, %v908_v41  ;;  %v919_v30 = vrot.slane %v918_v3, 2  ;;  %v348_v11 = vsub.f32 1.5, %v347_v26  ;;  %v882_v36 = vrot.slane %v881_v8, 4 }
  0xd4   : > { %v379_v21 = vmul.f32 %v10726_v53, %v378_v18  ;;  %v367_v54 = vmul.f32 0.5, %v366_v51 }
  0xd5   : > { %v11688_v19 = vsub.f32 %v11655_v10, %v961_v58  ;;  %v920_v17 = vadd.f32 %v919_v30, %v918_v3  ;;  %v349_v56 = vmul.f32 %v10728_v2, %v348_v11  ;;  %v883_v30 = vadd.f32 %v882_v36, %v881_v8 }
  0xd6   : > { %10234 = vmatmul.msk.f32.gmra.mxu0 %vm185_vm0, %v11575_v1  ;;  %v383_v34 = vsel %vm382_vm10, %v10726_v53, %v379_v21  ;;  %v368_v63 = vsub.f32 1.5, %v367_v54 }
  0xd7   : > { %10280 = vmatpush.xpose.msk.msra.mxu2 %vm185_vm0, %v11688_v19  ;;  %v921_v22 = vrot.slane %v920_v17, 1  ;;  %v11710_v39 = vmul.f32 %v383_v34, %v11421_v38  ;;  %v233_v38 = vpop.xlane.xlu0 %232  ;;  %v353_v31 = vsel %vm352_vm13, %v10728_v2, %v349_v56  ;;  %v884_v15 = vrot.slane %v883_v30, 2 }
  0xd8   : > { %10731 = vrsqrt.f32 %v233_v38  ;;  %v11725_v53 = vmul.f32 %v353_v31, %v11403_v29  ;;  %v369_v29 = vmul.f32 %v10730_v33, %v368_v63  ;;  %vm390_vm2 = vweird.f32 %v233_v38 }
  0xd9   : > { %v922_v28 = vadd.f32 %v921_v22, %v920_v17  ;;  %15975 = vst [vmem:[#allocation14_spill] sm:$0xff] %v11710_v39  ;;  %v930_v27 = vsel %vm185_vm0, %v11710_v39, 0.0  ;;  %v885_v17 = vadd.f32 %v884_v15, %v883_v30 }
  0xda   : > { %10281 = vmatmul.msk.f32.vlgmr.msra.gmra.mxu2 %vm185_vm0, %v11688_v19  ;;  %v931_v44 = vrot.slane %v930_v27, 4  ;;  %15976 = vst [vmem:[#allocation15_spill] sm:$0xff] %v11725_v53  ;;  %v373_v9 = vsel %vm372_vm1, %v10730_v33, %v369_v29 }
  0xdb   : > { %v963_v35 = vmul.f32 %v11543_v32, %v922_v28  ;;  %v11742_v18 = vmul.f32 %v373_v9, %v11418_v37  ;;  %v886_v22 = vrot.slane %v885_v17, 1  ;;  %v11756_v28 = vld [vmem:[%s15894_s1 + $0x20] ss:$0 sm:$0xff] }
  0xdc   : > { %v932_v50 = vadd.f32 %v931_v44, %v930_v27 }
  0xdd   : > { %v11713_v40 = vsub.f32 %v11685_v47, %v963_v35  ;;  %15977 = vst [vmem:[#allocation16_spill] sm:$0xff] %v11742_v18  ;;  %v887_v37 = vadd.f32 %v886_v22, %v885_v17 }
  0xde   : > { %10235 = vmatmul.msk.f32.gmra.mxu0 %vm185_vm0, %v11678_v52  ;;  %v933_v20 = vrot.slane %v932_v50, 2  ;;  %v10732_v60 = vpop.eup %10731 }
  0xdf   : > { %10284 = vmatpush.xpose.msk.msrb.mxu2 %vm185_vm0, %v11713_v40  ;;  %v385_v2 = vmul.f32 %v10732_v60, %v233_v38  ;;  %vm391_vm3 = vweird.f32 %v10732_v60  ;;  %v958_v34 = vmul.f32 %v11543_v32, %v887_v37 }
  0xe0   : > { %v934_v25 = vadd.f32 %v933_v20, %v932_v50  ;;  %vm392_vm4 = vmor %vm390_vm2, %vm391_vm3 }
  0xe1   : > { %v386_v4 = vmul.f32 %v10732_v60, %v385_v2  ;;  %v11761_v33 = vsub.f32 %v11678_v52, %v958_v34 }
  0xe2   : > { %10285 = vmatmul.msk.f32.vlgmr.msrb.gmra.mxu2 %vm185_vm0, %v11713_v40  ;;  %v935_v41 = vrot.slane %v934_v25, 1 }
  0xe3   : > { %v387_v3 = vmul.f32 0.5, %v386_v4 }
  0xe4   : > { %v936_v57 = vadd.f32 %v935_v41, %v934_v25 }
  0xe5   : > { %v388_v13 = vsub.f32 1.5, %v387_v3 }
  0xe6   : > { %10236 = vmatmul.msk.f32.gmra.mxu0 %vm185_vm0, %v11609_v43  ;;  %v965_v58 = vmul.f32 %v11543_v32, %v936_v57 }
  0xe7   : > { %v389_v16 = vmul.f32 %v10732_v60, %v388_v13 }
  0xe8   : > { %v11731_v7 = vsub.f32 %v11710_v39, %v965_v58 }
  0xe9   : > { %v393_v21 = vsel %vm392_vm4, %v10732_v60, %v389_v16 }
  0xea   : > { %10288 = vmatpush.xpose.msk.msra.mxu2 %vm185_vm0, %v11731_v7  ;;  %v11749_v26 = vmul.f32 %v393_v21, %v11433_v45 }
  0xec   : > { %15978 = vst [vmem:[#allocation17_spill] sm:$0xff] %v11749_v26 }
  0xed   : > { %10289 = vmatmul.msk.f32.vlgmr.msra.gmra.mxu2 %vm185_vm0, %v11731_v7 }
  0xee   : > { %10237 = vmatmul.msk.f32.gmra.mxu0 %vm185_vm0, %v11704_v24 }
  0xf6   : > { %10238 = vmatmul.msk.f32.gmra.mxu0 %vm185_vm0, %v11655_v10 }
  0xfe   : > { %10239 = vmatmul.msk.f32.gmra.mxu0 %vm185_vm0, %v11725_v53 }
 0x106   : > { %10240 = vmatmul.msk.f32.gmra.mxu0 %vm185_vm0, %v11685_v47 }
 0x10e   : > { %10241 = vmatmul.msk.f32.gmra.mxu0 %vm185_vm0, %v11742_v18 }
 0x116   : > { %10242 = vmatmul.msk.f32.gmra.mxu0 %vm185_vm0, %v11710_v39 }
 0x11e   : > { %10243 = vmatmul.msk.f32.gmra.mxu0 %vm185_vm0, %v11749_v26 }
 0x123   : > { %v476_v35 = vpop.f32.mrf.mxu0 }
 0x124   : > { %v477_v11 = vadd.f32 %v11756_v28, %v476_v35 }
 0x126   : > { %v524_v45 = vmax.f32 %v477_v11, 0.0  ;;  %10261 = vmatmul.msk.f32.vlgmr.msrb.gmra.mxu0 %vm185_vm0, %v11568_v55 }
 0x127   : > { %2523 = vmatpush.msrb.mxu0 %v11761_v33 }
 0x128   : > { %10244 = vmatmul.msk.f32.vlgmr.msra.gmra.mxu1 %vm541_vm5, %v524_v45 }
 0x129   : > { %2546 = vmatpush.msra.mxu1 %v11658_v23 }
 0x12b   : > { %v479_v27 = vpop.f32.mrf.mxu0 }
 0x12c   : > { %v480_v44 = vadd.f32 %v11756_v28, %v479_v27 }
 0x12e   : > { %v525_v56 = vmax.f32 %v480_v44, 0.0  ;;  %v867_v44 = vsel %vm185_vm0, %v11644_v12, 0.0 }
 0x130   : > { %10245 = vmatmul.msk.f32.gmra.mxu1 %vm541_vm5, %v525_v56  ;;  %v868_v56 = vrot.slane %v867_v44, 4 }
 0x133   : > { %v482_v49 = vpop.f32.mrf.mxu0 }
 0x134   : > { %v483_v50 = vadd.f32 %v11756_v28, %v482_v49 }
 0x136   : > { %v526_v38 = vmax.f32 %v483_v50, 0.0 }
 0x138   : > { %10246 = vmatmul.msk.f32.gmra.mxu1 %vm541_vm5, %v526_v38 }
 0x13b   : > { %v485_v20 = vpop.f32.mrf.mxu0 }
 0x13c   : > { %v486_v51 = vadd.f32 %v11756_v28, %v485_v20  ;;  %v869_v20 = vadd.f32 %v868_v56, %v867_v44 }
 0x13e   : > { %v527_v31 = vmax.f32 %v486_v51, 0.0  ;;  %v870_v51 = vrot.slane %v869_v20, 2 }
 0x140   : > { %10247 = vmatmul.msk.f32.gmra.mxu1 %vm541_vm5, %v527_v31 }
 0x143   : > { %v488_v25 = vpop.f32.mrf.mxu0 }
 0x144   : > { %v489_v41 = vadd.f32 %v11756_v28, %v488_v25 }
 0x146   : > { %v528_v54 = vmax.f32 %v489_v41, 0.0 }
 0x148   : > { %10248 = vmatmul.msk.f32.gmra.mxu1 %vm541_vm5, %v528_v54  ;;  %v871_v54 = vadd.f32 %v870_v51, %v869_v20 }
 0x14b   : > { %v491_v57 = vpop.f32.mrf.mxu0 }
 0x14c   : > { %v492_v58 = vadd.f32 %v11756_v28, %v491_v57  ;;  %v895_v57 = vsel %vm185_vm0, %v11704_v24, 0.0 }
 0x14e   : > { %v529_v60 = vmax.f32 %v492_v58, 0.0  ;;  %v896_v58 = vrot.slane %v895_v57, 4 }
 0x150   : > { %10249 = vmatmul.msk.f32.gmra.mxu1 %vm541_vm5, %v529_v60 }
 0x153   : > { %v494_v63 = vpop.f32.mrf.mxu0 }
 0x154   : > { %v495_v2 = vadd.f32 %v11756_v28, %v494_v63  ;;  %v872_v63 = vrot.slane %v871_v54, 1 }
 0x156   : > { %v530_v29 = vmax.f32 %v495_v2, 0.0 }
 0x158   : > { %10250 = vmatmul.msk.f32.gmra.mxu1 %vm541_vm5, %v530_v29 }
 0x15b   : > { %v497_v8 = vpop.f32.mrf.mxu0 }
 0x15c   : > { %v498_v4 = vadd.f32 %v11756_v28, %v497_v8  ;;  %v897_v8 = vadd.f32 %v896_v58, %v895_v57 }
 0x15e   : > { %v531_v36 = vmax.f32 %v498_v4, 0.0  ;;  %v873_v4 = vadd.f32 %v872_v63, %v871_v54 }
 0x160   : > { %10251 = vmatmul.msk.f32.gmra.mxu1 %vm541_vm5, %v531_v36  ;;  %v909_v36 = vsel %vm185_vm0, %v11725_v53, 0.0 }
 0x163   : > { %v500_v9 = vpop.f32.mrf.mxu0 }
 0x164   : > { %v501_v3 = vadd.f32 %v11756_v28, %v500_v9  ;;  %v11809_v9 = vld [vmem:[%s15894_s1 + $0x38] ss:$0 sm:$0xff] }
 0x166   : > { %v532_v30 = vmax.f32 %v501_v3, 0.0  ;;  %v898_v3 = vrot.slane %v897_v8, 2 }
 0x168   : > { %10252 = vmatmul.msk.f32.gmra.mxu1 %vm541_vm5, %v532_v30  ;;  %v910_v30 = vrot.slane %v909_v36, 4 }
 0x16b   : > { %v503_v13 = vpop.f32.mrf.mxu0 }
 0x16c   : > { %v504_v15 = vadd.f32 %v11756_v28, %v503_v13  ;;  %v956_v13 = vmul.f32 %v11543_v32, %v873_v4 }
 0x16e   : > { %v533_v16 = vmax.f32 %v504_v15, 0.0 }
 0x170   : > { %10253 = vmatmul.msk.f32.vlgmr.msra.gmra.mxu3 %vm541_vm5, %v533_v16  ;;  %v911_v16 = vadd.f32 %v910_v30, %v909_v36 }
 0x171   : > { %10266 = vmatpush.xpose.msk.msra.mxu3 %vm185_vm0, %v11591_v5 }
 0x173   : > { %v506_v17 = vpop.f32.mrf.mxu0 }
 0x174   : > { %v507_v21 = vadd.f32 %v11756_v28, %v506_v17  ;;  %v11816_v17 = vsub.f32 %v11644_v12, %v956_v13 }
 0x176   : > { %v534_v22 = vmax.f32 %v507_v21, 0.0  ;;  %v899_v21 = vadd.f32 %v898_v3, %v897_v8 }
 0x178   : > { %10254 = vmatmul.msk.f32.gmra.mxu3 %vm541_vm5, %v534_v22  ;;  %v923_v22 = vsel %vm185_vm0, %v11742_v18, 0.0 }
 0x17b   : > { %v509_v37 = vpop.f32.mrf.mxu0 }
 0x17c   : > { %v510_v34 = vadd.f32 %v11756_v28, %v509_v37 }
 0x17e   : > { %v535_v35 = vmax.f32 %v510_v34, 0.0  ;;  %v912_v34 = vrot.slane %v911_v16, 2 }
 0x180   : > { %10255 = vmatmul.msk.f32.gmra.mxu3 %vm541_vm5, %v535_v35  ;;  %v924_v35 = vrot.slane %v923_v22, 4 }
 0x182   : > { %v925_v44 = vadd.f32 %v924_v35, %v923_v22 }
 0x183   : > { %v512_v11 = vpop.f32.mrf.mxu0 }
 0x184   : > { %v513_v45 = vadd.f32 %v11756_v28, %v512_v11  ;;  %v900_v11 = vrot.slane %v899_v21, 1  ;;  %v926_v20 = vrot.slane %v925_v44, 2 }
 0x186   : > { %v536_v27 = vmax.f32 %v513_v45, 0.0  ;;  %v901_v56 = vadd.f32 %v900_v11, %v899_v21  ;;  %v927_v63 = vadd.f32 %v926_v20, %v925_v44 }
 0x188   : > { %10256 = vmatmul.msk.f32.gmra.mxu3 %vm541_vm5, %v536_v27  ;;  %v928_v4 = vrot.slane %v927_v63, 1 }
 0x18a   : > { %v929_v13 = vadd.f32 %v928_v4, %v927_v63 }
 0x18b   : > { %v515_v49 = vpop.f32.mrf.mxu0 }
 0x18c   : > { %v516_v50 = vadd.f32 %v11756_v28, %v515_v49  ;;  %v913_v49 = vadd.f32 %v912_v34, %v911_v16  ;;  %v964_v21 = vmul.f32 %v11543_v32, %v929_v13 }
 0x18e   : > { %v537_v38 = vmax.f32 %v516_v50, 0.0  ;;  %v937_v50 = vsel %vm185_vm0, %v11749_v26, 0.0  ;;  %v11868_v35 = vsub.f32 %v11742_v18, %v964_v21 }
 0x18f   : > { %v938_v51 = vrot.slane %v937_v50, 4 }
 0x190   : > { %10257 = vmatmul.msk.f32.gmra.mxu3 %vm541_vm5, %v537_v38 }
 0x191   : > { %v939_v57 = vadd.f32 %v938_v51, %v937_v50 }
 0x193   : > { %v518_v31 = vpop.f32.mrf.mxu0 }
 0x194   : > { %v519_v25 = vadd.f32 %v11756_v28, %v518_v31  ;;  %v960_v31 = vmul.f32 %v11543_v32, %v901_v56 }
 0x196   : > { %v538_v41 = vmax.f32 %v519_v25, 0.0  ;;  %v914_v25 = vrot.slane %v913_v49, 1  ;;  %v11842_v58 = vsub.f32 %v11704_v24, %v960_v31 }
 0x198   : > { %10258 = vmatmul.msk.f32.gmra.mxu3 %vm541_vm5, %v538_v41 }
 0x19b   : > { %v521_v60 = vpop.f32.mrf.mxu0 }
 0x19c   : > { %v522_v2 = vadd.f32 %v11756_v28, %v521_v60  ;;  %v915_v60 = vadd.f32 %v914_v25, %v913_v49 }
 0x19e   : > { %v539_v29 = vmax.f32 %v522_v2, 0.0  ;;  %v962_v8 = vmul.f32 %v11543_v32, %v915_v60 }
 0x1a0   : > { %10259 = vmatmul.msk.f32.gmra.mxu3 %vm541_vm5, %v539_v29  ;;  %v940_v29 = vrot.slane %v939_v57, 2  ;;  %v11855_v30 = vsub.f32 %v11725_v53, %v962_v8 }
 0x1a5   : > { %v607_v15 = vpop.f32.mrf.mxu1 }
 0x1a6   : > { %v11813_v28 = vadd.f32 %v11809_v9, %v607_v15  ;;  %v941_v15 = vadd.f32 %v940_v29, %v939_v57 }
 0x1a8   : > { %10263 = vmatmul.msk.f32.vlgmr.msrb.gmra.mxu3 %vm185_vm0, %v11595_v6  ;;  %v656_v37 = vsel %vm655_vm6, %v11813_v28, -inf  ;;  %v942_v22 = vrot.slane %v941_v15, 1 }
 0x1a9   : > { %10270 = vmatpush.xpose.msk.msrb.mxu3 %vm185_vm0, %v11816_v17  ;;  %657 = vmax.xlane.f32.xlu1 %v656_v37 }
 0x1aa   : > { %v943_v11 = vadd.f32 %v942_v22, %v941_v15 }
 0x1ac   : > { %v966_v44 = vmul.f32 %v11543_v32, %v943_v11 }
 0x1ad   : > { %v610_v45 = vpop.f32.mrf.mxu1 }
 0x1ae   : > { %v11827_v27 = vadd.f32 %v11809_v9, %v610_v45  ;;  %v11881_v50 = vsub.f32 %v11749_v26, %v966_v44 }
 0x1b0   : > { %10267 = vmatmul.msk.f32.vlgmr.msra.gmra.mxu3 %vm185_vm0, %v11591_v5  ;;  %v659_v38 = vsel %vm655_vm6, %v11827_v27, -inf }
 0x1b1   : > { %10274 = vmatpush.xpose.msk.msra.mxu3 %vm185_vm0, %v11761_v33  ;;  %660 = vmax.xlane.f32.xlu2 %v659_v38 }
 0x1b5   : > { %v613_v41 = vpop.f32.mrf.mxu1 }
 0x1b6   : > { %v11839_v54 = vadd.f32 %v11809_v9, %v613_v41 }
 0x1b8   : > { %10271 = vmatmul.msk.f32.vlgmr.msrb.gmra.mxu3 %vm185_vm0, %v11816_v17  ;;  %v662_v2 = vsel %vm655_vm6, %v11839_v54, -inf }
 0x1b9   : > { %10278 = vmatpush.xpose.msk.msrb.mxu3 %vm185_vm0, %v11842_v58  ;;  %663 = vmax.xlane.f32.xlu0 %v662_v2 }
 0x1bd   : > { %v616_v36 = vpop.f32.mrf.mxu1 }
 0x1be   : > { %v11852_v3 = vadd.f32 %v11809_v9, %v616_v36 }
 0x1c0   : > { %10275 = vmatmul.msk.f32.vlgmr.msra.gmra.mxu3 %vm185_vm0, %v11761_v33  ;;  %v665_v16 = vsel %vm655_vm6, %v11852_v3, -inf }
 0x1c1   : > { %10282 = vmatpush.xpose.msk.msra.mxu3 %vm185_vm0, %v11855_v30  ;;  %666 = vmax.xlane.f32.xlu1 %v665_v16 }
 0x1c5   : > { %v619_v37 = vpop.f32.mrf.mxu1 }
 0x1c6   : > { %v11865_v34 = vadd.f32 %v11809_v9, %v619_v37 }
 0x1c8   : > { %10279 = vmatmul.msk.f32.vlgmr.msrb.gmra.mxu3 %vm185_vm0, %v11842_v58  ;;  %v668_v45 = vsel %vm655_vm6, %v11865_v34, -inf }
 0x1c9   : > { %10286 = vmatpush.xpose.msk.msrb.mxu3 %vm185_vm0, %v11868_v35  ;;  %669 = vmax.xlane.f32.xlu2 %v668_v45 }
 0x1cd   : > { %v622_v56 = vpop.f32.mrf.mxu1 }
 0x1ce   : > { %v11878_v49 = vadd.f32 %v11809_v9, %v622_v56 }
 0x1d0   : > { %10283 = vmatmul.msk.f32.vlgmr.msra.gmra.mxu3 %vm185_vm0, %v11855_v30  ;;  %v671_v38 = vsel %vm655_vm6, %v11878_v49, -inf }
 0x1d1   : > { %10290 = vmatpush.xpose.msk.msra.mxu3 %vm185_vm0, %v11881_v50  ;;  %672 = vmax.xlane.f32.xlu0 %v671_v38 }
 0x1d5   : > { %v625_v20 = vpop.f32.mrf.mxu1 }
 0x1d6   : > { %v11890_v51 = vadd.f32 %v11809_v9, %v625_v20 }
 0x1d8   : > { %10287 = vmatmul.msk.f32.vlgmr.msrb.gmra.mxu3 %vm185_vm0, %v11868_v35  ;;  %v674_v31 = vsel %vm655_vm6, %v11890_v51, -inf }
 0x1d9   : > { %675 = vmax.xlane.f32.xlu1 %v674_v31 }
 0x1dd   : > { %v628_v25 = vpop.f32.mrf.mxu1 }
 0x1de   : > { %v11897_v41 = vadd.f32 %v11809_v9, %v628_v25 }
 0x1e0   : > { %10291 = vmatmul.msk.f32.vlgmr.msra.gmra.mxu3 %vm185_vm0, %v11881_v50  ;;  %v677_v57 = vsel %vm655_vm6, %v11897_v41, -inf }
 0x1e1   : > { %678 = vmax.xlane.f32.xlu2 %v677_v57 }
 0x1e5   : > { %v631_v60 = vpop.f32.mrf.mxu1 }
 0x1e6   : > { %v11904_v63 = vadd.f32 %v11809_v9, %v631_v60 }
 0x1e8   : > { %v680_v2 = vsel %vm655_vm6, %v11904_v63, -inf }
 0x1e9   : > { %681 = vmax.xlane.f32.xlu0 %v680_v2 }
 0x1f3   : > { %v634_v29 = vpop.f32.mrf.mxu3 }
 0x1f4   : > { %v11909_v8 = vadd.f32 %v11809_v9, %v634_v29 }
 0x1f6   : > { %v683_v4 = vsel %vm655_vm6, %v11909_v8, -inf }
 0x1f7   : > { %684 = vmax.xlane.f32.xlu1 %v683_v4 }
 0x1fb   : > { %v637_v36 = vpop.f32.mrf.mxu3 }
 0x1fc   : > { %v11914_v13 = vadd.f32 %v11809_v9, %v637_v36 }
 0x1fe   : > { %v686_v15 = vsel %vm655_vm6, %v11914_v13, -inf }
 0x1ff   : > { %687 = vmax.xlane.f32.xlu2 %v686_v15 }
 0x203   : > { %v640_v16 = vpop.f32.mrf.mxu3 }
 0x204   : > { %v11919_v21 = vadd.f32 %v11809_v9, %v640_v16 }
 0x206   : > { %v689_v22 = vsel %vm655_vm6, %v11919_v21, -inf }
 0x207   : > { %690 = vmax.xlane.f32.xlu0 %v689_v22 }
 0x20b   : > { %v643_v37 = vpop.f32.mrf.mxu3 }
 0x20c   : > { %v11924_v11 = vadd.f32 %v11809_v9, %v643_v37 }
 0x20e   : > { %v692_v45 = vsel %vm655_vm6, %v11924_v11, -inf }
 0x20f   : > { %693 = vmax.xlane.f32.xlu1 %v692_v45 }
 0x213   : > { %v646_v44 = vpop.f32.mrf.mxu3 }
 0x214   : > { %v11929_v56 = vadd.f32 %v11809_v9, %v646_v44 }
 0x216   : > { %v695_v38 = vsel %vm655_vm6, %v11929_v56, -inf }
 0x217   : > { %696 = vmax.xlane.f32.xlu2 %v695_v38 }
 0x21b   : > { %v649_v20 = vpop.f32.mrf.mxu3 }
 0x21c   : > { %v11934_v31 = vadd.f32 %v11809_v9, %v649_v20  ;;  %v658_v25 = vpop.xlane.xlu1 %657 }
 0x21d   : > { %v704_v57 = vsub.f32 %v11813_v28, %v658_v25 }
 0x21e   : > { %v698_v60 = vsel %vm655_vm6, %v11934_v31, -inf }
 0x21f   : > { %v720_v2 = vmul.f32 1.442695, %v704_v57  ;;  %699 = vmax.xlane.f32.xlu2 %v698_v60 }
 0x221   : > { %10733 = vpow2.f32 %v720_v2 }
 0x224   : > { %v661_v29 = vpop.xlane.xlu2 %660 }
 0x225   : > { %v705_v4 = vsub.f32 %v11827_v27, %v661_v29 }
 0x227   : > { %v11940_v36 = vpop.eup %10733  ;;  %v722_v15 = vmul.f32 1.442695, %v705_v4 }
 0x228   : > { %v752_v16 = vsel %vm655_vm6, %v11940_v36, 0.0 }
 0x229   : > { %10735 = vpow2.f32 %v722_v15  ;;  %753 = vadd.xlane.f32.xlu0 %v752_v16 }
 0x22c   : > { %v664_v22 = vpop.xlane.xlu0 %663 }
 0x22d   : > { %v706_v28 = vsub.f32 %v11839_v54, %v664_v22 }
 0x22f   : > { %v11945_v37 = vpop.eup %10735  ;;  %v724_v45 = vmul.f32 1.442695, %v706_v28 }
 0x230   : > { %v755_v44 = vsel %vm655_vm6, %v11945_v37, 0.0 }
 0x231   : > { %10737 = vpow2.f32 %v724_v45  ;;  %756 = vadd.xlane.f32.xlu1 %v755_v44 }
 0x234   : > { %v667_v27 = vpop.xlane.xlu1 %666 }
 0x235   : > { %v707_v38 = vsub.f32 %v11852_v3, %v667_v27  ;;  %v652_v3 = vpop.f32.mrf.mxu3 }
 0x236   : > { %v11960_v15 = vadd.f32 %v11809_v9, %v652_v3 }
 0x237   : > { %v11950_v20 = vpop.eup %10737  ;;  %v726_v25 = vmul.f32 1.442695, %v707_v38 }
 0x238   : > { %v758_v57 = vsel %vm655_vm6, %v11950_v20, 0.0  ;;  %v701_v44 = vsel %vm655_vm6, %v11960_v15, -inf }
 0x239   : > { %10739 = vpow2.f32 %v726_v25  ;;  %759 = vadd.xlane.f32.xlu0 %v758_v57 }
 0x23c   : > { %v670_v54 = vpop.xlane.xlu2 %669 }
 0x23d   : > { %v708_v60 = vsub.f32 %v11865_v34, %v670_v54 }
 0x23f   : > { %v11955_v2 = vpop.eup %10739  ;;  %v728_v29 = vmul.f32 1.442695, %v708_v60 }
 0x240   : > { %v761_v4 = vsel %vm655_vm6, %v11955_v2, 0.0 }
 0x241   : > { %10741 = vpow2.f32 %v728_v29  ;;  %762 = vadd.xlane.f32.xlu1 %v761_v4 }
 0x244   : > { %v673_v16 = vpop.xlane.xlu0 %672 }
 0x245   : > { %v709_v22 = vsub.f32 %v11878_v49, %v673_v16 }
 0x247   : > { %v11963_v28 = vpop.eup %10741  ;;  %v730_v45 = vmul.f32 1.442695, %v709_v22 }
 0x248   : > { %v764_v34 = vsel %vm655_vm6, %v11963_v28, 0.0 }
 0x249   : > { %10743 = vpow2.f32 %v730_v45  ;;  %765 = vadd.xlane.f32.xlu2 %v764_v34  ;;  %702 = vmax.xlane.f32.xlu1 %v701_v44 }
 0x24c   : > { %v676_v27 = vpop.xlane.xlu1 %675 }
 0x24d   : > { %v710_v38 = vsub.f32 %v11890_v51, %v676_v27 }
 0x24f   : > { %v11970_v9 = vpop.eup %10743  ;;  %v732_v25 = vmul.f32 1.442695, %v710_v38  ;;  %v11989_v38 = vpop.f32.mrf.mxu3 }
 0x250   : > { %v767_v49 = vsel %vm655_vm6, %v11970_v9, 0.0 }
 0x251   : > { %10745 = vpow2.f32 %v732_v25  ;;  %768 = vadd.xlane.f32.xlu0 %v767_v49 }
 0x254   : > { %v679_v57 = vpop.xlane.xlu2 %678 }
 0x255   : > { %v711_v54 = vsub.f32 %v11897_v41, %v679_v57 }
 0x257   : > { %v11975_v60 = vpop.eup %10745  ;;  %v734_v29 = vmul.f32 1.442695, %v711_v54 }
 0x258   : > { %v770_v4 = vsel %vm655_vm6, %v11975_v60, 0.0 }
 0x259   : > { %10747 = vpow2.f32 %v734_v29  ;;  %771 = vadd.xlane.f32.xlu2 %v770_v4  ;;  %v11996_v4 = vpop.f32.mrf.mxu3 }
 0x25c   : > { %v682_v51 = vpop.xlane.xlu0 %681 }
 0x25d   : > { %v712_v3 = vsub.f32 %v11904_v63, %v682_v51 }
 0x25f   : > { %v11980_v16 = vpop.eup %10747  ;;  %v736_v22 = vmul.f32 1.442695, %v712_v3 }
 0x260   : > { %v773_v45 = vsel %vm655_vm6, %v11980_v16, 0.0 }
 0x261   : > { %10749 = vpow2.f32 %v736_v22  ;;  %774 = vadd.xlane.f32.xlu0 %v773_v45 }
 0x267   : > { %v11984_v41 = vpop.eup %10749 }
 0x268   : > { %v776_v34 = vsel %vm655_vm6, %v11984_v41, 0.0 }
 0x269   : > { %777 = vadd.xlane.f32.xlu1 %v776_v34 }
 0x26a   : > { %v685_v44 = vpop.xlane.xlu1 %684 }
 0x26b   : > { %v713_v27 = vsub.f32 %v11909_v8, %v685_v44 }
 0x26d   : > { %v738_v63 = vmul.f32 1.442695, %v713_v27 }
 0x26f   : > { %10751 = vpow2.f32 %v738_v63 }
 0x272   : > { %v688_v25 = vpop.xlane.xlu2 %687 }
 0x273   : > { %v714_v49 = vsub.f32 %v11914_v13, %v688_v25  ;;  %v12003_v13 = vpop.f32.mrf.mxu3 }
 0x275   : > { %v11992_v57 = vpop.eup %10751  ;;  %v740_v54 = vmul.f32 1.442695, %v714_v49 }
 0x276   : > { %v779_v29 = vsel %vm655_vm6, %v11992_v57, 0.0 }
 0x277   : > { %10753 = vpow2.f32 %v740_v54  ;;  %780 = vadd.xlane.f32.xlu2 %v779_v29 }
 0x27a   : > { %v691_v51 = vpop.xlane.xlu0 %690 }
 0x27b   : > { %v715_v8 = vsub.f32 %v11919_v21, %v691_v51  ;;  %v12010_v49 = vpop.f32.mrf.mxu3 }
 0x27d   : > { %v11999_v3 = vpop.eup %10753  ;;  %v742_v22 = vmul.f32 1.442695, %v715_v8 }
 0x27e   : > { %v782_v45 = vsel %vm655_vm6, %v11999_v3, 0.0 }
 0x27f   : > { %10755 = vpow2.f32 %v742_v22  ;;  %783 = vadd.xlane.f32.xlu0 %v782_v45 }
 0x282   : > { %v694_v34 = vpop.xlane.xlu1 %693 }
 0x283   : > { %v716_v44 = vsub.f32 %v11924_v11, %v694_v34  ;;  %v12020_v34 = vpop.f32.mrf.mxu3 }
 0x285   : > { %v12006_v27 = vpop.eup %10755  ;;  %v744_v63 = vmul.f32 1.442695, %v716_v44 }
 0x286   : > { %v785_v25 = vsel %vm655_vm6, %v12006_v27, 0.0 }
 0x287   : > { %10757 = vpow2.f32 %v744_v63  ;;  %786 = vadd.xlane.f32.xlu1 %v785_v25 }
 0x28a   : > { %v697_v21 = vpop.xlane.xlu2 %696 }
 0x28b   : > { %v717_v54 = vsub.f32 %v11929_v56, %v697_v21  ;;  %v12024_v56 = vpop.f32.mrf.mxu0 }
 0x28c   : > { %v2024_v25 = vmul.f32 %v12024_v56, %v12024_v56 }
 0x28d   : > { %v12013_v29 = vpop.eup %10757  ;;  %v746_v51 = vmul.f32 1.442695, %v717_v54 }
 0x28e   : > { %v788_v8 = vsel %vm655_vm6, %v12013_v29, 0.0 }
 0x28f   : > { %10759 = vpow2.f32 %v746_v51  ;;  %789 = vadd.xlane.f32.xlu2 %v788_v8  ;;  %v12033_v8 = vpop.f32.mrf.mxu3 }
 0x292   : > { %v700_v11 = vpop.xlane.xlu2 %699 }
 0x293   : > { %v718_v22 = vsub.f32 %v11934_v31, %v700_v11  ;;  %v2040_v31 = vsel %vm1879_vm7, %v2024_v25, 0.0  ;;  %v2035_v11 = vmul.f32 %v12033_v8, %v12033_v8 }
 0x295   : > { %v12018_v45 = vpop.eup %10759  ;;  %v748_v44 = vmul.f32 1.442695, %v718_v22  ;;  %v2073_v26 = vsel %vm1879_vm7, %v2035_v11, 0.0 }
 0x296   : > { %v791_v63 = vsel %vm655_vm6, %v12018_v45, 0.0 }
 0x297   : > { %10761 = vpow2.f32 %v748_v44  ;;  %792 = vadd.xlane.f32.xlu0 %v791_v63 }
 0x29c   : > { %v754_v21 = vpop.xlane.xlu0 %753 }
 0x29d   : > { %v12028_v54 = vpop.eup %10761  ;;  %10763 = vrcp.f32 %v754_v21 }
 0x29e   : > { %v794_v51 = vsel %vm655_vm6, %v12028_v54, 0.0 }
 0x29f   : > { %2041 = vadd.xlane.f32.xlu0 %v2040_v31  ;;  %795 = vadd.xlane.f32.xlu1 %v794_v51 }
 0x2a3   : > { %v10764_v22 = vpop.eup %10763 }
 0x2a4   : > { %v816_v44 = vmul.f32 %v10764_v22, %v11940_v36  ;;  %v757_v63 = vpop.xlane.xlu1 %756 }
 0x2a5   : > { %10765 = vrcp.f32 %v757_v63 }
 0x2a6   : > { %v983_v21 = vsel %vm655_vm6, %v816_v44, 0.0 }
 0x2a7   : > { %v984_v25 = vrot.slane %v983_v21, 4  ;;  %2074 = vadd.xlane.f32.xlu0 %v2073_v26 }
 0x2a9   : > { %v985_v39 = vadd.f32 %v984_v25, %v983_v21 }
 0x2ab   : > { %v10766_v18 = vpop.eup %10765  ;;  %v986_v47 = vrot.slane %v985_v39, 2 }
 0x2ac   : > { %v817_v31 = vmul.f32 %v10766_v18, %v11945_v37  ;;  %v760_v51 = vpop.xlane.xlu0 %759 }
 0x2ad   : > { %v987_v53 = vadd.f32 %v986_v47, %v985_v39  ;;  %10767 = vrcp.f32 %v760_v51 }
 0x2ae   : > { %v990_v10 = vsel %vm655_vm6, %v817_v31, 0.0 }
 0x2af   : > { %v988_v43 = vrot.slane %v987_v53, 1  ;;  %v991_v36 = vrot.slane %v990_v10, 4 }
 0x2b1   : > { %v989_v22 = vadd.f32 %v988_v43, %v987_v53  ;;  %v992_v63 = vadd.f32 %v991_v36, %v990_v10 }
 0x2b3   : > { %v10768_v24 = vpop.eup %10767  ;;  %v1095_v12 = vmul.f32 %v989_v22, %v11543_v32  ;;  %v993_v11 = vrot.slane %v992_v63, 2 }
 0x2b4   : > { %v818_v26 = vmul.f32 %v10768_v24, %v11950_v20  ;;  %v763_v21 = vpop.xlane.xlu1 %762 }
 0x2b5   : > { %v1111_v25 = vsub.f32 %v816_v44, %v1095_v12  ;;  %v994_v52 = vadd.f32 %v993_v11, %v992_v63  ;;  %10769 = vrcp.f32 %v763_v21 }
 0x2b6   : > { %v997_v18 = vsel %vm655_vm6, %v818_v26, 0.0 }
 0x2b7   : > { %v995_v47 = vrot.slane %v994_v52, 1  ;;  %v998_v39 = vrot.slane %v997_v18, 4  ;;  %10292 = vmatpush.xpose.msk.msrb.mxu2 %vm655_vm6, %v1111_v25 }
 0x2b9   : > { %v996_v37 = vadd.f32 %v995_v47, %v994_v52  ;;  %v999_v51 = vadd.f32 %v998_v39, %v997_v18 }
 0x2ba   : > { %10293 = vmatmul.msk.f32.vlgmr.msrb.gmra.mxu2 %vm655_vm6, %v1111_v25 }
 0x2bb   : > { %v10770_v43 = vpop.eup %10769  ;;  %v1096_v10 = vmul.f32 %v996_v37, %v11543_v32  ;;  %v1000_v53 = vrot.slane %v999_v51, 2 }
 0x2bc   : > { %v819_v24 = vmul.f32 %v10770_v43, %v11955_v2  ;;  %v766_v20 = vpop.xlane.xlu2 %765  ;;  %v703_v12 = vpop.xlane.xlu1 %702 }
 0x2bd   : > { %v1112_v44 = vsub.f32 %v817_v31, %v1096_v10  ;;  %v1001_v36 = vadd.f32 %v1000_v53, %v999_v51  ;;  %10771 = vrcp.f32 %v766_v20  ;;  %v719_v22 = vsub.f32 %v11960_v15, %v703_v12 }
 0x2be   : > { %v1004_v63 = vsel %vm655_vm6, %v819_v24, 0.0 }
 0x2bf   : > { %v1002_v11 = vrot.slane %v1001_v36, 1  ;;  %v1005_v52 = vrot.slane %v1004_v63, 4  ;;  %v750_v21 = vmul.f32 1.442695, %v719_v22  ;;  %10294 = vmatpush.xpose.msk.msrb.mxu3 %vm655_vm6, %v1112_v44 }
 0x2c1   : > { %v1003_v25 = vadd.f32 %v1002_v11, %v1001_v36  ;;  %v1006_v18 = vadd.f32 %v1005_v52, %v1004_v63  ;;  %10773 = vpow2.f32 %v750_v21  ;;  %v2025_v52 = vmul.f32 %v11989_v38, %v11989_v38 }
 0x2c2   : > { %10295 = vmatmul.msk.f32.vlgmr.msrb.gmra.mxu3 %vm655_vm6, %v1112_v44 }
 0x2c3   : > { %v10772_v2 = vpop.eup %10771  ;;  %v1097_v47 = vmul.f32 %v1003_v25, %v11543_v32  ;;  %v1007_v31 = vrot.slane %v1006_v18, 2 }
 0x2c4   : > { %v820_v39 = vmul.f32 %v10772_v2, %v11963_v28  ;;  %v769_v37 = vpop.xlane.xlu0 %768 }
 0x2c5   : > { %v1113_v15 = vsub.f32 %v818_v26, %v1097_v47  ;;  %v1008_v51 = vadd.f32 %v1007_v31, %v1006_v18  ;;  %10775 = vrcp.f32 %v769_v37  ;;  %v2043_v31 = vsel %vm1879_vm7, %v2025_v52, 0.0  ;;  %v12069_v37 = vpop.f32.mrf.mxu2 }
 0x2c6   : > { %v1011_v43 = vsel %vm655_vm6, %v820_v39, 0.0 }
 0x2c7   : > { %v12056_v10 = vpop.eup %10773  ;;  %v1009_v53 = vrot.slane %v1008_v51, 1  ;;  %v1012_v20 = vrot.slane %v1011_v43, 4  ;;  %10296 = vmatpush.xpose.msk.msra.mxu2 %vm655_vm6, %v1113_v15 }
 0x2c8   : > { %v797_v12 = vsel %vm655_vm6, %v12056_v10, 0.0 }
 0x2c9   : > { %v1010_v44 = vadd.f32 %v1009_v53, %v1008_v51  ;;  %v1013_v36 = vadd.f32 %v1012_v20, %v1011_v43  ;;  %798 = vadd.xlane.f32.xlu2 %v797_v12  ;;  %v2026_v12 = vmul.f32 %v12069_v37, %v12069_v37 }
 0x2ca   : > { %10297 = vmatmul.msk.f32.vlgmr.msra.gmra.mxu2 %vm655_vm6, %v1113_v15 }
 0x2cb   : > { %v10776_v28 = vpop.eup %10775  ;;  %v1098_v26 = vmul.f32 %v1010_v44, %v11543_v32  ;;  %v1014_v22 = vrot.slane %v1013_v36, 2 }
 0x2cc   : > { %v821_v63 = vmul.f32 %v10776_v28, %v11970_v9  ;;  %v772_v11 = vpop.xlane.xlu2 %771 }
 0x2cd   : > { %v1114_v21 = vsub.f32 %v819_v24, %v1098_v26  ;;  %v1015_v25 = vadd.f32 %v1014_v22, %v1013_v36  ;;  %10777 = vrcp.f32 %v772_v11  ;;  %v2046_v11 = vsel %vm1879_vm7, %v2026_v12, 0.0 }
 0x2ce   : > { %v1018_v18 = vsel %vm655_vm6, %v821_v63, 0.0 }
 0x2cf   : > { %v1016_v2 = vrot.slane %v1015_v25, 1  ;;  %v1019_v47 = vrot.slane %v1018_v18, 4  ;;  %10298 = vmatpush.xpose.msk.msra.mxu3 %vm655_vm6, %v1114_v21 }
 0x2d1   : > { %v1017_v15 = vadd.f32 %v1016_v2, %v1015_v25  ;;  %v1020_v51 = vadd.f32 %v1019_v47, %v1018_v18  ;;  %2044 = vadd.xlane.f32.xlu2 %v2043_v31  ;;  %v2027_v47 = vmul.f32 %v11996_v4, %v11996_v4 }
 0x2d2   : > { %10299 = vmatmul.msk.f32.vlgmr.msra.gmra.mxu3 %vm655_vm6, %v1114_v21 }
 0x2d3   : > { %v10778_v9 = vpop.eup %10777  ;;  %v1099_v24 = vmul.f32 %v1017_v15, %v11543_v32  ;;  %v1021_v43 = vrot.slane %v1020_v51, 2 }
 0x2d4   : > { %v822_v53 = vmul.f32 %v10778_v9, %v11975_v60  ;;  %v775_v20 = vpop.xlane.xlu0 %774 }
 0x2d5   : > { %v1115_v44 = vsub.f32 %v820_v39, %v1099_v24  ;;  %v1022_v36 = vadd.f32 %v1021_v43, %v1020_v51  ;;  %10779 = vrcp.f32 %v775_v20  ;;  %v2049_v43 = vsel %vm1879_vm7, %v2027_v47, 0.0  ;;  %v12087_v20 = vpop.f32.mrf.mxu2 }
 0x2d6   : > { %v1025_v28 = vsel %vm655_vm6, %v822_v53, 0.0 }
 0x2d7   : > { %v1023_v26 = vrot.slane %v1022_v36, 1  ;;  %v1026_v22 = vrot.slane %v1025_v28, 4  ;;  %10300 = vmatpush.xpose.msk.msrb.mxu2 %vm655_vm6, %v1115_v44 }
 0x2d9   : > { %v1024_v52 = vadd.f32 %v1023_v26, %v1022_v36  ;;  %v1027_v21 = vadd.f32 %v1026_v22, %v1025_v28  ;;  %2047 = vadd.xlane.f32.xlu2 %v2046_v11  ;;  %v2028_v26 = vmul.f32 %v12087_v20, %v12087_v20 }
 0x2da   : > { %10301 = vmatmul.msk.f32.vlgmr.msrb.gmra.mxu2 %vm655_vm6, %v1115_v44 }
 0x2db   : > { %v10780_v60 = vpop.eup %10779  ;;  %v1100_v25 = vmul.f32 %v1024_v52, %v11543_v32  ;;  %v1028_v18 = vrot.slane %v1027_v21, 2 }
 0x2dc   : > { %v823_v39 = vmul.f32 %v10780_v60, %v11980_v16  ;;  %v778_v2 = vpop.xlane.xlu1 %777 }
 0x2dd   : > { %v1116_v31 = vsub.f32 %v821_v63, %v1100_v25  ;;  %v1029_v15 = vadd.f32 %v1028_v18, %v1027_v21  ;;  %10781 = vrcp.f32 %v778_v2  ;;  %v2052_v25 = vsel %vm1879_vm7, %v2028_v26, 0.0 }
 0x2de   : > { %v1032_v51 = vsel %vm655_vm6, %v823_v39, 0.0 }
 0x2df   : > { %v1030_v9 = vrot.slane %v1029_v15, 1  ;;  %v1033_v24 = vrot.slane %v1032_v51, 4  ;;  %10302 = vmatpush.xpose.msk.msrb.mxu3 %vm655_vm6, %v1116_v31 }
 0x2e1   : > { %v1031_v12 = vadd.f32 %v1030_v9, %v1029_v15  ;;  %v1034_v44 = vadd.f32 %v1033_v24, %v1032_v51  ;;  %2050 = vadd.xlane.f32.xlu2 %v2049_v43 }
 0x2e2   : > { %10303 = vmatmul.msk.f32.vlgmr.msrb.gmra.mxu3 %vm655_vm6, %v1116_v31 }
 0x2e3   : > { %v10782_v16 = vpop.eup %10781  ;;  %v1101_v63 = vmul.f32 %v1031_v12, %v11543_v32  ;;  %v1035_v36 = vrot.slane %v1034_v44, 2  ;;  %v12103_v12 = vpop.f32.mrf.mxu2 }
 0x2e4   : > { %v824_v28 = vmul.f32 %v10782_v16, %v11984_v41  ;;  %v2030_v26 = vmul.f32 %v12103_v12, %v12103_v12 }
 0x2e5   : > { %v1117_v22 = vsub.f32 %v822_v53, %v1101_v63  ;;  %v1036_v11 = vadd.f32 %v1035_v36, %v1034_v44  ;;  %v2029_v53 = vmul.f32 %v12003_v13, %v12003_v13 }
 0x2e6   : > { %v1039_v52 = vsel %vm655_vm6, %v824_v28, 0.0 }
 0x2e7   : > { %v1037_v21 = vrot.slane %v1036_v11, 1  ;;  %v1040_v60 = vrot.slane %v1039_v52, 4  ;;  %10304 = vmatpush.xpose.msk.msra.mxu2 %vm655_vm6, %v1117_v22  ;;  %v2055_v24 = vsel %vm1879_vm7, %v2029_v53, 0.0 }
 0x2e9   : > { %v1038_v18 = vadd.f32 %v1037_v21, %v1036_v11  ;;  %v1041_v2 = vadd.f32 %v1040_v60, %v1039_v52  ;;  %2053 = vadd.xlane.f32.xlu2 %v2052_v25  ;;  %v2058_v21 = vsel %vm1879_vm7, %v2030_v26, 0.0 }
 0x2ea   : > { %v781_v47 = vpop.xlane.xlu2 %780  ;;  %10305 = vmatmul.msk.f32.vlgmr.msra.gmra.mxu2 %vm655_vm6, %v1117_v22 }
 0x2eb   : > { %v1102_v41 = vmul.f32 %v1038_v18, %v11543_v32  ;;  %v1042_v31 = vrot.slane %v1041_v2, 2  ;;  %10783 = vrcp.f32 %v781_v47 }
 0x2ed   : > { %v1118_v15 = vsub.f32 %v823_v39, %v1102_v41  ;;  %v1043_v51 = vadd.f32 %v1042_v31, %v1041_v2 }
 0x2ef   : > { %v1044_v9 = vrot.slane %v1043_v51, 1  ;;  %10306 = vmatpush.xpose.msk.msra.mxu3 %vm655_vm6, %v1118_v15 }
 0x2f1   : > { %v10784_v43 = vpop.eup %10783  ;;  %v1045_v44 = vadd.f32 %v1044_v9, %v1043_v51  ;;  %2056 = vadd.xlane.f32.xlu2 %v2055_v24  ;;  %v12119_v24 = vpop.f32.mrf.mxu2 }
 0x2f2   : > { %v825_v16 = vmul.f32 %v10784_v43, %v11992_v57  ;;  %10307 = vmatmul.msk.f32.vlgmr.msra.gmra.mxu3 %vm655_vm6, %v1118_v15  ;;  %v784_v63 = vpop.xlane.xlu0 %783 }
 0x2f3   : > { %v1103_v36 = vmul.f32 %v1045_v44, %v11543_v32  ;;  %10785 = vrcp.f32 %v784_v63 }
 0x2f4   : > { %v1046_v39 = vsel %vm655_vm6, %v825_v16, 0.0 }
 0x2f5   : > { %v1119_v22 = vsub.f32 %v824_v28, %v1103_v36  ;;  %v1047_v11 = vrot.slane %v1046_v39, 4  ;;  %v2031_v28 = vmul.f32 %v12010_v49, %v12010_v49 }
 0x2f7   : > { %v1048_v52 = vadd.f32 %v1047_v11, %v1046_v39  ;;  %10308 = vmatpush.xpose.msk.msrb.mxu2 %vm655_vm6, %v1119_v22  ;;  %v2061_v51 = vsel %vm1879_vm7, %v2031_v28, 0.0 }
 0x2f9   : > { %v10786_v60 = vpop.eup %10785  ;;  %v1049_v57 = vrot.slane %v1048_v52, 2  ;;  %2059 = vadd.xlane.f32.xlu2 %v2058_v21 }
 0x2fa   : > { %v826_v25 = vmul.f32 %v10786_v60, %v11999_v3  ;;  %v787_v18 = vpop.xlane.xlu1 %786  ;;  %10309 = vmatmul.msk.f32.vlgmr.msrb.gmra.mxu2 %vm655_vm6, %v1119_v22  ;;  %v2032_v22 = vmul.f32 %v12119_v24, %v12119_v24 }
 0x2fb   : > { %v1050_v2 = vadd.f32 %v1049_v57, %v1048_v52  ;;  %10787 = vrcp.f32 %v787_v18 }
 0x2fc   : > { %v1053_v47 = vsel %vm655_vm6, %v826_v25, 0.0  ;;  %v2064_v57 = vsel %vm1879_vm7, %v2032_v22, 0.0 }
 0x2fd   : > { %v1051_v41 = vrot.slane %v1050_v2, 1  ;;  %v1054_v31 = vrot.slane %v1053_v47, 4 }
 0x2ff   : > { %v1052_v53 = vadd.f32 %v1051_v41, %v1050_v2  ;;  %v1055_v15 = vadd.f32 %v1054_v31, %v1053_v47 }
 0x301   : > { %v10788_v9 = vpop.eup %10787  ;;  %v1104_v3 = vmul.f32 %v1052_v53, %v11543_v32  ;;  %v1056_v43 = vrot.slane %v1055_v15, 2  ;;  %2062 = vadd.xlane.f32.xlu2 %v2061_v51  ;;  %v2033_v53 = vmul.f32 %v12020_v34, %v12020_v34 }
 0x302   : > { %v827_v44 = vmul.f32 %v10788_v9, %v12006_v27  ;;  %v790_v63 = vpop.xlane.xlu2 %789 }
 0x303   : > { %v1120_v36 = vsub.f32 %v825_v16, %v1104_v3  ;;  %v1057_v39 = vadd.f32 %v1056_v43, %v1055_v15  ;;  %10789 = vrcp.f32 %v790_v63  ;;  %v2067_v43 = vsel %vm1879_vm7, %v2033_v53, 0.0  ;;  %v12137_v63 = vpop.f32.mrf.mxu2 }
 0x304   : > { %v1060_v26 = vsel %vm655_vm6, %v827_v44, 0.0 }
 0x305   : > { %v1058_v11 = vrot.slane %v1057_v39, 1  ;;  %v1061_v52 = vrot.slane %v1060_v26, 4  ;;  %10310 = vmatpush.xpose.msk.msrb.mxu3 %vm655_vm6, %v1120_v36 }
 0x307   : > { %v1059_v21 = vadd.f32 %v1058_v11, %v1057_v39  ;;  %v1062_v60 = vadd.f32 %v1061_v52, %v1060_v26 }
 0x308   : > { %10311 = vmatmul.msk.f32.vlgmr.msrb.gmra.mxu3 %vm655_vm6, %v1120_v36 }
 0x309   : > { %v10790_v27 = vpop.eup %10789  ;;  %v1105_v16 = vmul.f32 %v1059_v21, %v11543_v32  ;;  %v1063_v18 = vrot.slane %v1062_v60, 2  ;;  %2065 = vadd.xlane.f32.xlu2 %v2064_v57  ;;  %v2034_v21 = vmul.f32 %v12137_v63, %v12137_v63 }
 0x30a   : > { %v828_v2 = vmul.f32 %v10790_v27, %v12013_v29  ;;  %v793_v47 = vpop.xlane.xlu0 %792 }
 0x30b   : > { %v1121_v28 = vsub.f32 %v826_v25, %v1105_v16  ;;  %v1064_v41 = vadd.f32 %v1063_v18, %v1062_v60  ;;  %10791 = vrcp.f32 %v793_v47  ;;  %v2070_v18 = vsel %vm1879_vm7, %v2034_v21, 0.0 }
 0x30c   : > { %v1067_v31 = vsel %vm655_vm6, %v828_v2, 0.0 }
 0x30d   : > { %v1065_v15 = vrot.slane %v1064_v41, 1  ;;  %v1068_v51 = vrot.slane %v1067_v31, 4  ;;  %10312 = vmatpush.xpose.msk.msra.mxu2 %vm655_vm6, %v1121_v28 }
 0x30f   : > { %v1066_v9 = vadd.f32 %v1065_v15, %v1064_v41  ;;  %v1069_v3 = vadd.f32 %v1068_v51, %v1067_v31 }
 0x310   : > { %10313 = vmatmul.msk.f32.vlgmr.msra.gmra.mxu2 %vm655_vm6, %v1121_v28 }
 0x311   : > { %v10792_v29 = vpop.eup %10791  ;;  %v1106_v25 = vmul.f32 %v1066_v9, %v11543_v32  ;;  %v1070_v36 = vrot.slane %v1069_v3, 2  ;;  %2068 = vadd.xlane.f32.xlu2 %v2067_v43 }
 0x312   : > { %v829_v39 = vmul.f32 %v10792_v29, %v12018_v45  ;;  %v796_v26 = vpop.xlane.xlu1 %795 }
 0x313   : > { %v1122_v22 = vsub.f32 %v827_v44, %v1106_v25  ;;  %v1071_v11 = vadd.f32 %v1070_v36, %v1069_v3  ;;  %10793 = vrcp.f32 %v796_v26 }
 0x314   : > { %v1074_v52 = vsel %vm655_vm6, %v829_v39, 0.0 }
 0x315   : > { %v1072_v60 = vrot.slane %v1071_v11, 1  ;;  %v1075_v57 = vrot.slane %v1074_v52, 4  ;;  %10314 = vmatpush.xpose.msk.msra.mxu3 %vm655_vm6, %v1122_v22 }
 0x317   : > { %v1073_v27 = vadd.f32 %v1072_v60, %v1071_v11  ;;  %v1076_v16 = vadd.f32 %v1075_v57, %v1074_v52  ;;  %v12156_v11 = vpop.f32.mrf.mxu2 }
 0x318   : > { %10315 = vmatmul.msk.f32.vlgmr.msra.gmra.mxu3 %vm655_vm6, %v1122_v22 }
 0x319   : > { %v10794_v45 = vpop.eup %10793  ;;  %v1107_v44 = vmul.f32 %v1073_v27, %v11543_v32  ;;  %v1077_v47 = vrot.slane %v1076_v16, 2  ;;  %2071 = vadd.xlane.f32.xlu2 %v2070_v18 }
 0x31a   : > { %v830_v28 = vmul.f32 %v10794_v45, %v12028_v54 }
 0x31b   : > { %v1123_v41 = vsub.f32 %v828_v2, %v1107_v44  ;;  %v1078_v31 = vadd.f32 %v1077_v47, %v1076_v16 }
 0x31c   : > { %v1081_v53 = vsel %vm655_vm6, %v830_v28, 0.0 }
 0x31d   : > { %v1079_v15 = vrot.slane %v1078_v31, 1  ;;  %v1082_v51 = vrot.slane %v1081_v53, 4  ;;  %10316 = vmatpush.xpose.msk.msrb.mxu2 %vm655_vm6, %v1123_v41 }
 0x31f   : > { %v1080_v9 = vadd.f32 %v1079_v15, %v1078_v31  ;;  %v1083_v3 = vadd.f32 %v1082_v51, %v1081_v53  ;;  %v12164_v52 = vpop.f32.mrf.mxu2 }
 0x320   : > { %10317 = vmatmul.msk.f32.vlgmr.msrb.gmra.mxu2 %vm655_vm6, %v1123_v41  ;;  %15980 = vst [vmem:[#allocation19_spill] sm:$0xff] %v12164_v52 }
 0x321   : > { %v1108_v43 = vmul.f32 %v1080_v9, %v11543_v32  ;;  %v1084_v29 = vrot.slane %v1083_v3, 2 }
 0x323   : > { %v1124_v25 = vsub.f32 %v829_v39, %v1108_v43  ;;  %v1085_v36 = vadd.f32 %v1084_v29, %v1083_v3  ;;  %v12162_v39 = vpop.f32.mrf.mxu3 }
 0x324   : > { %15979 = vst [vmem:[#allocation18_spill] sm:$0xff] %v12162_v39 }
 0x325   : > { %v1086_v26 = vrot.slane %v1085_v36, 1  ;;  %10318 = vmatpush.xpose.msk.msrb.mxu3 %vm655_vm6, %v1124_v25 }
 0x327   : > { %v1087_v54 = vadd.f32 %v1086_v26, %v1085_v36 }
 0x328   : > { %10319 = vmatmul.msk.f32.vlgmr.msrb.gmra.mxu3 %vm655_vm6, %v1124_v25 }
 0x329   : > { %v1109_v2 = vmul.f32 %v1087_v54, %v11543_v32 }
 0x32b   : > { %v1125_v22 = vsub.f32 %v830_v28, %v1109_v2  ;;  %v12166_v60 = vpop.f32.mrf.mxu3 }
 0x32c   : > { %15981 = vst [vmem:[#allocation20_spill] sm:$0xff] %v12166_v60 }
 0x32d   : > { %10320 = vmatpush.xpose.msk.msra.mxu2 %vm655_vm6, %v1125_v22 }
 0x330   : > { %10321 = vmatmul.msk.f32.vlgmr.msra.gmra.mxu2 %vm655_vm6, %v1125_v22 }
 0x331   : > { %2385 = vmatpush.msrb.mxu2 %v11595_v6 }
 0x333   : > { %2477 = vmatpush.msra.mxu2 %v11816_v17 }
 0x33c   : > { %v799_v21 = vpop.xlane.xlu2 %798 }
 0x33d   : > { %10795 = vrcp.f32 %v799_v21  ;;  %v1515_v57 = vpop.f32.mrf.mxu2 }
 0x33e   : > { %v2184_v27 = vmul.f32 %v1515_v57, %v1515_v57  ;;  %v1863_v44 = vmul.f32 %v1515_v57, %v12024_v56 }
 0x340   : > { %v2200_v16 = vsel %vm1879_vm7, %v2184_v27, 0.0  ;;  %v1880_v15 = vsel %vm1879_vm7, %v1863_v44, 0.0 }
 0x341   : > { %2201 = vadd.xlane.f32.xlu1 %v2200_v16 }
 0x343   : > { %v10796_v18 = vpop.eup %10795 }
 0x344   : > { %v831_v45 = vmul.f32 %v10796_v18, %v12056_v10 }
 0x345   : > { %v1538_v47 = vpop.f32.mrf.mxu3 }
 0x346   : > { %v1088_v28 = vsel %vm655_vm6, %v831_v45, 0.0  ;;  %10325 = vmatmul.msk.f32.vlgmr.msrb.gmra.mxu2 %vm1879_vm7, %v1538_v47  ;;  %v2185_v41 = vmul.f32 %v1538_v47, %v1538_v47  ;;  %v1864_v10 = vmul.f32 %v1538_v47, %v11989_v38 }
 0x347   : > { %v1089_v31 = vrot.slane %v1088_v28, 4  ;;  %2569 = vmatpush.msrb.mxu2 %v11842_v58 }
 0x348   : > { %v2203_v53 = vsel %vm1879_vm7, %v2185_v41, 0.0  ;;  %v1883_v36 = vsel %vm1879_vm7, %v1864_v10, 0.0 }
 0x349   : > { %v1090_v51 = vadd.f32 %v1089_v31, %v1088_v28  ;;  %2204 = vadd.xlane.f32.xlu0 %v2203_v53  ;;  %1881 = vadd.xlane.f32.xlu1 %v1880_v15 }
 0x34b   : > { %v1091_v9 = vrot.slane %v1090_v51, 2 }
 0x34d   : > { %v1092_v3 = vadd.f32 %v1091_v9, %v1090_v51  ;;  %v1561_v43 = vpop.f32.mrf.mxu2 }
 0x34e   : > { %v2186_v29 = vmul.f32 %v1561_v43, %v1561_v43  ;;  %v1865_v22 = vmul.f32 %v1561_v43, %v12069_v37 }
 0x34f   : > { %v1093_v25 = vrot.slane %v1092_v3, 1 }
 0x350   : > { %v2206_v26 = vsel %vm1879_vm7, %v2186_v29, 0.0  ;;  %v1886_v44 = vsel %vm1879_vm7, %v1865_v22, 0.0 }
 0x351   : > { %v1094_v54 = vadd.f32 %v1093_v25, %v1092_v3  ;;  %1884 = vadd.xlane.f32.xlu1 %v1883_v36  ;;  %2207 = vadd.xlane.f32.xlu0 %v2206_v26 }
 0x353   : > { %v1110_v2 = vmul.f32 %v1094_v54, %v11543_v32 }
 0x355   : > { %v1126_v21 = vsub.f32 %v831_v45, %v1110_v2  ;;  %v1584_v27 = vpop.f32.mrf.mxu3 }
 0x356   : > { %10327 = vmatmul.msk.f32.vlgmr.msra.gmra.mxu0 %vm1879_vm7, %v1584_v27  ;;  %v2187_v16 = vmul.f32 %v1584_v27, %v1584_v27  ;;  %v1866_v45 = vmul.f32 %v1584_v27, %v11996_v4 }
 0x357   : > { %2615 = vmatpush.msra.mxu0 %v11855_v30  ;;  %10322 = vmatpush.xpose.msk.msra.mxu3 %vm655_vm6, %v1126_v21 }
 0x358   : > { %v2209_v18 = vsel %vm1879_vm7, %v2187_v16, 0.0  ;;  %v1889_v41 = vsel %vm1879_vm7, %v1866_v45, 0.0 }
 0x359   : > { %2210 = vadd.xlane.f32.xlu0 %v2209_v18  ;;  %1887 = vadd.xlane.f32.xlu1 %v1886_v44 }
 0x35a   : > { %10323 = vmatmul.msk.f32.vlgmr.msra.gmra.mxu3 %vm655_vm6, %v1126_v21 }
 0x35b   : > { %2362 = vmatpush.msrb.mxu3 %v11568_v55 }
 0x35d   : > { %2408 = vmatpush.msra.mxu3 %v11564_v0  ;;  %v1607_v47 = vpop.f32.mrf.mxu2 }
 0x35e   : > { %10328 = vmatmul.msk.f32.vlgmr.msrb.gmra.mxu1 %vm1879_vm7, %v1607_v47  ;;  %v2188_v28 = vmul.f32 %v1607_v47, %v1607_v47  ;;  %v1867_v53 = vmul.f32 %v1607_v47, %v12087_v20 }
 0x35f   : > { %2638 = vmatpush.msrb.mxu1 %v11713_v40 }
 0x360   : > { %v2212_v31 = vsel %vm1879_vm7, %v2188_v28, 0.0  ;;  %v1892_v9 = vsel %vm1879_vm7, %v1867_v53, 0.0 }
 0x361   : > { %1890 = vadd.xlane.f32.xlu1 %v1889_v41  ;;  %2213 = vadd.xlane.f32.xlu0 %v2212_v31 }
 0x362   : > { %10324 = vmatmul.msk.f32.vlgmr.msrb.gmra.mxu3 %vm1879_vm7, %v1515_v57 }
 0x363   : > { %2500 = vmatpush.msrb.mxu3 %v11634_v62 }
 0x365   : > { %v1630_v15 = vpop.f32.mrf.mxu3 }
 0x366   : > { %10329 = vmatmul.msk.f32.vlgmr.msra.gmra.mxu2 %vm1879_vm7, %v1630_v15  ;;  %v2189_v51 = vmul.f32 %v1630_v15, %v1630_v15  ;;  %v1868_v57 = vmul.f32 %v1630_v15, %v12003_v13 }
 0x367   : > { %2661 = vmatpush.msra.mxu2 %v11868_v35 }
 0x368   : > { %v2215_v10 = vsel %vm1879_vm7, %v2189_v51, 0.0  ;;  %v1895_v36 = vsel %vm1879_vm7, %v1868_v57, 0.0 }
 0x369   : > { %1893 = vadd.xlane.f32.xlu1 %v1892_v9  ;;  %2216 = vadd.xlane.f32.xlu0 %v2215_v10 }
 0x36a   : > { %10326 = vmatmul.msk.f32.vlgmr.msra.gmra.mxu3 %vm1879_vm7, %v1561_v43 }
 0x36b   : > { %2592 = vmatpush.msra.mxu3 %v11688_v19 }
 0x36d   : > { %v1653_v3 = vpop.f32.mrf.mxu2 }
 0x36e   : > { %v2190_v29 = vmul.f32 %v1653_v3, %v1653_v3  ;;  %v1869_v26 = vmul.f32 %v1653_v3, %v12103_v12 }
 0x370   : > { %v2218_v25 = vsel %vm1879_vm7, %v2190_v29, 0.0  ;;  %v1898_v2 = vsel %vm1879_vm7, %v1869_v26, 0.0 }
 0x371   : > { %2219 = vadd.xlane.f32.xlu0 %v2218_v25  ;;  %1896 = vadd.xlane.f32.xlu1 %v1895_v36 }
 0x372   : > { %10330 = vmatmul.msk.f32.vlgmr.msrb.gmra.mxu3 %vm1879_vm7, %v1653_v3 }
 0x373   : > { %2684 = vmatpush.msrb.mxu3 %v11731_v7 }
 0x375   : > { %v1676_v54 = vpop.f32.mrf.mxu3 }
 0x376   : > { %10331 = vmatmul.msk.f32.vlgmr.msrb.gmra.mxu0 %vm1879_vm7, %v1676_v54  ;;  %v2191_v43 = vmul.f32 %v1676_v54, %v1676_v54  ;;  %v1870_v21 = vmul.f32 %v1676_v54, %v12010_v49 }
 0x377   : > { %2707 = vmatpush.msrb.mxu0 %v11881_v50 }
 0x378   : > { %v2221_v22 = vsel %vm1879_vm7, %v2191_v43, 0.0  ;;  %v1901_v44 = vsel %vm1879_vm7, %v1870_v21, 0.0 }
 0x379   : > { %1899 = vadd.xlane.f32.xlu1 %v1898_v2  ;;  %2222 = vadd.xlane.f32.xlu0 %v2221_v22 }
 0x37d   : > { %v1699_v27 = vpop.f32.mrf.mxu2 }
 0x37e   : > { %10332 = vmatmul.msk.f32.vlgmr.msra.gmra.mxu1 %vm1879_vm7, %v1699_v27  ;;  %v2192_v16 = vmul.f32 %v1699_v27, %v1699_v27  ;;  %v1871_v45 = vmul.f32 %v1699_v27, %v12119_v24 }
 0x37f   : > { %2730 = vmatpush.msra.mxu1 %v11568_v55 }
 0x380   : > { %v2224_v18 = vsel %vm1879_vm7, %v2192_v16, 0.0  ;;  %v1904_v47 = vsel %vm1879_vm7, %v1871_v45, 0.0 }
 0x381   : > { %2225 = vadd.xlane.f32.xlu0 %v2224_v18  ;;  %1902 = vadd.xlane.f32.xlu1 %v1901_v44 }
 0x389   : > { %1905 = vadd.xlane.f32.xlu1 %v1904_v47 }
 0x38b   : > { %v1722_v28 = vpop.f32.mrf.mxu3 }
 0x38c   : > { %10333 = vmatmul.msk.f32.vlgmr.msrb.gmra.mxu2 %vm1879_vm7, %v1722_v28  ;;  %v2193_v41 = vmul.f32 %v1722_v28, %v1722_v28  ;;  %v1872_v31 = vmul.f32 %v1722_v28, %v12020_v34 }
 0x38d   : > { %2753 = vmatpush.msrb.mxu2 %v11595_v6 }
 0x38e   : > { %v2227_v55 = vsel %vm1879_vm7, %v2193_v41, 0.0  ;;  %v1907_v53 = vsel %vm1879_vm7, %v1872_v31, 0.0 }
 0x38f   : > { %2228 = vadd.xlane.f32.xlu0 %v2227_v55  ;;  %1908 = vadd.xlane.f32.xlu2 %v1907_v53 }
 0x393   : > { %v1745_v15 = vpop.f32.mrf.mxu2 }
 0x394   : > { %10334 = vmatmul.msk.f32.vlgmr.msra.gmra.mxu3 %vm1879_vm7, %v1745_v15  ;;  %v2194_v51 = vmul.f32 %v1745_v15, %v1745_v15  ;;  %v1873_v10 = vmul.f32 %v1745_v15, %v12137_v63 }
 0x395   : > { %2776 = vmatpush.msra.mxu3 %v11564_v0 }
 0x396   : > { %v2230_v9 = vsel %vm1879_vm7, %v2194_v51, 0.0  ;;  %v1910_v29 = vsel %vm1879_vm7, %v1873_v10, 0.0 }
 0x397   : > { %2231 = vadd.xlane.f32.xlu0 %v2230_v9 }
 0x39b   : > { %v12229_v57 = vpop.f32.mrf.mxu3 }
 0x39c   : > { %10335 = vmatmul.msk.f32.vlgmr.msra.gmra.mxu0 %vm1879_vm7, %v12229_v57  ;;  %v2195_v6 = vmul.f32 %v12229_v57, %v12229_v57 }
 0x39d   : > { %2799 = vmatpush.msra.mxu0 %v11591_v5 }
 0x39e   : > { %v2233_v3 = vsel %vm1879_vm7, %v2195_v6, 0.0 }
 0x39f   : > { %2234 = vadd.xlane.f32.xlu1 %v2233_v3  ;;  %1911 = vadd.xlane.f32.xlu0 %v1910_v29 }
 0x3a3   : > { %v12238_v0 = vpop.f32.mrf.mxu2 }
 0x3a4   : > { %10336 = vmatmul.msk.f32.vlgmr.msrb.gmra.mxu1 %vm1879_vm7, %v12238_v0  ;;  %v2196_v25 = vmul.f32 %v12238_v0, %v12238_v0 }
 0x3a5   : > { %2822 = vmatpush.msrb.mxu1 %v11606_v42  ;;  %v11181_v42 = vld [vmem:[%s15894_s1 + $0x18] sm:$0xff] }
 0x3a6   : > { %v2236_v36 = vsel %vm1879_vm7, %v2196_v25, 0.0 }
 0x3a7   : > { %2237 = vadd.xlane.f32.xlu2 %v2236_v36 }
 0x3ab   : > { %v12246_v5 = vpop.f32.mrf.mxu3 }
 0x3ac   : > { %10337 = vmatmul.msk.f32.vlgmr.msra.gmra.mxu2 %vm1879_vm7, %v12246_v5  ;;  %10340 = vmatmul.msk.f32.vlgmr.msra.gmra.mxu1 %vm1879_vm7, %v12024_v56 }
 0x3ad   : > { %2845 = vmatpush.msra.mxu2 %v11816_v17  ;;  %2914 = vmatpush.msra.mxu1 %v11658_v23  ;;  %v11183_v23 = vld [vmem:[%s15894_s1 + $0x8] sm:$0xff] }
 0x3ae   : > { %v11186_v17 = vld [vmem:[%s15894_s1 + $0x28] sm:$0xff] }
 0x3b3   : > { %v12254_v26 = vpop.f32.mrf.mxu2 }
 0x3b4   : > { %15982 = vst [vmem:[#allocation21_spill] sm:$0xff] %v12254_v26  ;;  %10338 = vmatmul.msk.f32.vlgmr.msrb.gmra.mxu3 %vm1879_vm7, %v12254_v26  ;;  %10341 = vmatmul.msk.f32.vlgmr.msrb.gmra.mxu2 %vm1879_vm7, %v11989_v38 }
 0x3b5   : > { %10344 = vmatmul.msk.f32.vlgmr.msrb.gmra.mxu1 %vm1879_vm7, %v12087_v20  ;;  %2868 = vmatpush.msrb.mxu3 %v11634_v62  ;;  %v11182_v62 = vld [vmem:[%s15894_s1 + $0x10] sm:$0xff] }
 0x3b6   : > { %2937 = vmatpush.msrb.mxu2 %v11842_v58  ;;  %3006 = vmatpush.msrb.mxu1 %v11713_v40  ;;  %v11185_v40 = vld [vmem:[%s15894_s1 + $0x30] sm:$0xff] }
 0x3bc   : > { %10342 = vmatmul.msk.f32.vlgmr.msra.gmra.mxu3 %vm1879_vm7, %v12069_v37  ;;  %10345 = vmatmul.msk.f32.vlgmr.msra.gmra.mxu2 %vm1879_vm7, %v12003_v13  ;;  %v2202_v37 = vpop.xlane.xlu1 %2201 }
 0x3bd   : > { %10348 = vmatmul.msk.f32.vlgmr.msra.gmra.mxu1 %vm1879_vm7, %v12119_v24  ;;  %2960 = vmatpush.msra.mxu3 %v11688_v19  ;;  %v11184_v19 = vld [vmem:[%s15894_s1] sm:$0xff] }
 0x3be   : > { %3029 = vmatpush.msra.mxu2 %v11868_v35  ;;  %3684 = vmatpush.msra.mxu1 %v11181_v42  ;;  %v2045_v35 = vpop.xlane.xlu2 %2044 }
 0x3c0   : > { %3685 = vmatpush.msra.mxu1 %v11182_v62 }
 0x3c2   : > { %3686 = vmatpush.msra.mxu1 %v11183_v23 }
 0x3c4   : > { %10346 = vmatmul.msk.f32.vlgmr.msrb.gmra.mxu3 %vm1879_vm7, %v12103_v12  ;;  %10349 = vmatmul.msk.f32.vlgmr.msrb.gmra.mxu2 %vm1879_vm7, %v12020_v34  ;;  %v2248_v12 = vrot.slane %v2202_v37, 4  ;;  %v1882_v2 = vpop.xlane.xlu1 %1881 }
 0x3c5   : > { %10352 = vmatmul.msk.f32.vlgmr.msrb.gmra.mxu1 %vm1879_vm7, %v12156_v11  ;;  %3052 = vmatpush.msrb.mxu3 %v11731_v7  ;;  %v2042_v7 = vpop.xlane.xlu0 %2041 }
 0x3c6   : > { %3687 = vmatpush.msra.mxu1 %v11184_v19  ;;  %10652 = vmatpush.msrb.mxu2 %v11185_v40  ;;  %v2048_v34 = vpop.xlane.xlu2 %2047  ;;  %v2088_v24 = vrot.slane %v2042_v7, 4 }
 0x3c7   : > { %v2100_v53 = vrot.slane %v2048_v34, 4 }
 0x3c8   : > { %10653 = vmatpush.msrb.mxu2 %v11186_v17  ;;  %v2089_v54 = vadd.f32 %v2088_v24, %v2042_v7 }
 0x3c9   : > { %v2101_v3 = vadd.f32 %v2100_v53, %v2048_v34 }
 0x3ca   : > { %v2090_v43 = vrot.slane %v2089_v54, 2 }
 0x3cb   : > { %v2102_v23 = vrot.slane %v2101_v3, 2 }
 0x3cc   : > { %10350 = vmatmul.msk.f32.vlgmr.msra.gmra.mxu3 %vm1879_vm7, %v12137_v63  ;;  %10353 = vmatmul.msk.f32.vlgmr.msra.gmra.mxu2 %vm1879_vm7, %v12162_v39  ;;  %v2249_v63 = vadd.f32 %v2248_v12, %v2202_v37  ;;  %v2091_v21 = vadd.f32 %v2090_v43, %v2089_v54  ;;  %v12327_v41 = vpop.xlane.xlu1 %1884 }
 0x3cd   : > { %v12304_v58 = vpop.xlane.xlu0 %2074  ;;  %v2103_v24 = vadd.f32 %v2102_v23, %v2101_v3 }
 0x3ce   : > { %15983 = vst [vmem:[#allocation22_spill] sm:$0xff] %v12304_v58  ;;  %v12314_v20 = vpop.xlane.xlu2 %2050  ;;  %v2092_v18 = vrot.slane %v2091_v21, 1 }
 0x3d0   : > { %v12329_v55 = vadd.f32 %v2092_v18, %v2091_v21  ;;  %v2104_v18 = vrot.slane %v2103_v24, 1 }
 0x3d2   : > { %v12360_v3 = vadd.f32 %v2104_v18, %v2103_v24 }
 0x3d4   : > { %10354 = vmatmul.msk.f32.vlgmr.msrb.gmra.mxu3 %vm1879_vm7, %v12164_v52 }
 0x3d5   : > { %v2205_v13 = vpop.xlane.xlu0 %2204 }
 0x3db   : > { %v12340_v12 = vpop.f32.mrf.mxu1 }
 0x3dd   : > { %v12306_v38 = vpop.f32.mrf.mxu3  ;;  %v2208_v56 = vpop.xlane.xlu0 %2207 }
 0x3de   : > { %15984 = vst [vmem:[#allocation23_spill] sm:$0xff] %v12306_v38  ;;  %10339 = vmatmul.msk.f32.vlgmr.msrb.gmra.mxu0 %vm1879_vm7, %v12306_v38  ;;  %v2260_v31 = vrot.slane %v2208_v56, 4 }
 0x3df   : > { %2891 = vmatpush.msrb.mxu0 %v11761_v33 }
 0x3e0   : > { %v2261_v10 = vadd.f32 %v2260_v31, %v2208_v56  ;;  %v2106_v56 = vrot.slane %v12314_v20, 4 }
 0x3e2   : > { %v2262_v42 = vrot.slane %v2261_v10, 2 }
 0x3e5   : > { %v12319_v33 = vpop.xlane.xlu0 %2210  ;;  %v12344_v43 = vpop.f32.mrf.mxu3 }
 0x3e6   : > { %10343 = vmatmul.msk.f32.vlgmr.msra.gmra.mxu0 %vm1879_vm7, %v11996_v4  ;;  %v2250_v4 = vrot.slane %v2249_v63, 2 }
 0x3e7   : > { %2983 = vmatpush.msra.mxu0 %v11855_v30  ;;  %v2054_v30 = vpop.xlane.xlu2 %2053 }
 0x3e8   : > { %v2251_v22 = vadd.f32 %v2250_v4, %v2249_v63  ;;  %v2112_v19 = vrot.slane %v2054_v30, 4 }
 0x3ea   : > { %v2252_v16 = vrot.slane %v2251_v22, 1  ;;  %v2113_v63 = vadd.f32 %v2112_v19, %v2054_v30  ;;  %v12353_v30 = vpop.f32.mrf.mxu2 }
 0x3ec   : > { %v2253_v28 = vadd.f32 %v2252_v16, %v2251_v22  ;;  %v2107_v16 = vadd.f32 %v2106_v56, %v12314_v20  ;;  %v1934_v56 = vrot.slane %v12327_v41, 4 }
 0x3ed   : > { %v2214_v27 = vpop.xlane.xlu0 %2213 }
 0x3ee   : > { %10347 = vmatmul.msk.f32.vlgmr.msrb.gmra.mxu0 %vm1879_vm7, %v12010_v49  ;;  %v2254_v49 = vrot.slane %v2205_v13, 4  ;;  %v12332_v9 = vmul.f32 %v2253_v28, %v12329_v55  ;;  %v2272_v62 = vrot.slane %v2214_v27, 4 }
 0x3ef   : > { %3075 = vmatpush.msrb.mxu0 %v11881_v50  ;;  %v2094_v50 = vrot.slane %v2045_v35, 4  ;;  %v12325_v44 = vpop.xlane.xlu2 %2056 }
 0x3f0   : > { %v2255_v45 = vadd.f32 %v2254_v49, %v2205_v13  ;;  %10797 = vrsqrt.f32 %v12332_v9  ;;  %v2263_v13 = vadd.f32 %v2262_v42, %v2261_v10  ;;  %v2273_v37 = vadd.f32 %v2272_v62, %v2214_v27 }
 0x3f1   : > { %v2095_v47 = vadd.f32 %v2094_v50, %v2045_v35  ;;  %v1928_v35 = vrot.slane %v1882_v2, 4  ;;  %vm3102_vm9 = vweird.f32 %v12332_v9 }
 0x3f2   : > { %v2256_v15 = vrot.slane %v2255_v45, 2  ;;  %v2264_v49 = vrot.slane %v2263_v13, 1  ;;  %v2274_v50 = vrot.slane %v2273_v37, 2 }
 0x3f3   : > { %v2096_v51 = vrot.slane %v2095_v47, 2  ;;  %v1929_v21 = vadd.f32 %v1928_v35, %v1882_v2 }
 0x3f4   : > { %v2257_v29 = vadd.f32 %v2256_v15, %v2255_v45  ;;  %v2114_v45 = vrot.slane %v2113_v63, 2  ;;  %v2265_v53 = vadd.f32 %v2264_v49, %v2263_v13  ;;  %v2275_v2 = vadd.f32 %v2274_v50, %v2273_v37 }
 0x3f5   : > { %v12334_v6 = vpop.xlane.xlu0 %2216  ;;  %v2097_v25 = vadd.f32 %v2096_v51, %v2095_v47  ;;  %v1930_v31 = vrot.slane %v1929_v21, 2  ;;  %v2108_v51 = vrot.slane %v2107_v16, 2  ;;  %v2118_v37 = vrot.slane %v12325_v44, 4 }
 0x3f6   : > { %10351 = vmatmul.msk.f32.vlgmr.msra.gmra.mxu0 %vm1879_vm7, %v12033_v8  ;;  %v12342_v34 = vpop.eup %10797  ;;  %v12364_v62 = vmul.f32 %v2265_v53, %v12360_v3  ;;  %v2276_v23 = vrot.slane %v2275_v2, 1  ;;  %v2038_v49 = vmul.f32 %v12164_v52, %v12164_v52  ;;  %v2037_v53 = vmul.f32 %v12162_v39, %v12162_v39 }
 0x3f7   : > { %3815 = vmatpush.msra.mxu0 %v11185_v40  ;;  %v2060_v36 = vpop.xlane.xlu2 %2059  ;;  %v2258_v40 = vrot.slane %v2257_v29, 1  ;;  %v2098_v7 = vrot.slane %v2097_v25, 1  ;;  %v3097_v27 = vmul.f32 %v12342_v34, %v12332_v9  ;;  %v1931_v42 = vadd.f32 %v1930_v31, %v1929_v21 }
 0x3f8   : > { %v2036_v21 = vmul.f32 %v12156_v11, %v12156_v11  ;;  %v2277_v18 = vadd.f32 %v2276_v23, %v2275_v2  ;;  %v12396_v23 = vsel %vm1879_vm7, %v2038_v49, 0.0  ;;  %vm3103_vm8 = vweird.f32 %v12342_v34 }
 0x3f9   : > { %3816 = vmatpush.msra.mxu0 %v11186_v17  ;;  %v12337_v17 = vpop.xlane.xlu1 %1887  ;;  %v2259_v54 = vadd.f32 %v2258_v40, %v2257_v29  ;;  %v2099_v22 = vadd.f32 %v2098_v7, %v2097_v25  ;;  %v3098_v20 = vmul.f32 %v12342_v34, %v3097_v27  ;;  %v2115_v29 = vadd.f32 %v2114_v45, %v2113_v63  ;;  %v12368_v7 = vpop.f32.mrf.mxu3  ;;  %vm12425_vm10 = vmor %vm3102_vm9, %vm3103_vm8 }
 0x3fa   : > { %v2124_v25 = vrot.slane %v2060_v36, 4  ;;  %v2109_v40 = vadd.f32 %v2108_v51, %v2107_v16  ;;  %v1932_v27 = vrot.slane %v1931_v42, 1  ;;  %15988 = vst [vmem:[#allocation27_spill] sm:$0xff] %v12396_v23  ;;  %vm3122_vm15 = vweird.f32 %v12364_v62 }
 0x3fb   : > { %v12351_v28 = vmul.f32 %v2259_v54, %v2099_v22  ;;  %v12357_v10 = vpop.f32.mrf.mxu1  ;;  %v3099_v35 = vmul.f32 0.5, %v3098_v20  ;;  %v2116_v13 = vrot.slane %v2115_v29, 1  ;;  %v12372_v54 = vpop.f32.mrf.mxu2  ;;  %v2119_v20 = vadd.f32 %v2118_v37, %v12325_v44 }
 0x3fc   : > { %15985 = vst [vmem:[#allocation24_spill] sm:$0xff] %v12357_v10  ;;  %v2125_v63 = vadd.f32 %v2124_v25, %v2060_v36  ;;  %v2110_v45 = vrot.slane %v2109_v40, 1  ;;  %v1935_v25 = vadd.f32 %v1934_v56, %v12327_v41  ;;  %v1933_v44 = vadd.f32 %v1932_v27, %v1931_v42 }
 0x3fd   : > { %v2220_v4 = vpop.xlane.xlu0 %2219  ;;  %10799 = vrsqrt.f32 %v12351_v28  ;;  %15986 = vst [vmem:[#allocation25_spill] sm:$0xff] %v12372_v54  ;;  %v3100_v31 = vsub.f32 1.5, %v3099_v35  ;;  %v2117_v51 = vadd.f32 %v2116_v13, %v2115_v29  ;;  %v1940_v29 = vrot.slane %v12337_v17, 4 }
 0x3fe   : > { %10355 = vmatmul.msk.f32.vlgmr.msrb.gmra.mxu0 %vm1879_vm7, %v12166_v60  ;;  %v2284_v24 = vrot.slane %v2220_v4, 4  ;;  %10801 = vrsqrt.f32 %v12364_v62  ;;  %v2126_v10 = vrot.slane %v2125_v63, 2  ;;  %v12409_v56 = vadd.f32 %v2110_v45, %v2109_v40 }
 0x3ff   : > { %v12349_v47 = vpop.xlane.xlu2 %2062  ;;  %10803 = vrcp.f32 %v12329_v55  ;;  %v12393_v55 = vsel %vm1879_vm7, %v2036_v21, 0.0  ;;  %v12400_v13 = vmul.f32 %v2277_v18, %v2117_v51  ;;  %v3101_v41 = vmul.f32 %v12342_v34, %v3100_v31 }
 0x400   : > { %v2285_v58 = vadd.f32 %v2284_v24, %v2220_v4  ;;  %v2130_v35 = vrot.slane %v12349_v47, 4  ;;  %10805 = vrcp.f32 %v2099_v22  ;;  %v12405_v4 = vsel %vm1879_vm7, %v2037_v53, 0.0 }
 0x401   : > { %v12355_v15 = vpop.xlane.xlu1 %1890  ;;  %v2120_v24 = vrot.slane %v2119_v20, 2  ;;  %v1936_v21 = vrot.slane %v1935_v25, 2  ;;  %v2127_v60 = vadd.f32 %v2126_v10, %v2125_v63  ;;  %v2266_v22 = vrot.slane %v12319_v33, 4  ;;  %v12414_v42 = vpop.f32.mrf.mxu3 }
 0x402   : > { %v2286_v49 = vrot.slane %v2285_v58, 2  ;;  %v2131_v40 = vadd.f32 %v2130_v35, %v12349_v47  ;;  %v1941_v45 = vadd.f32 %v1940_v29, %v12337_v17  ;;  %10807 = vrsqrt.f32 %v12400_v13 }
 0x403   : > { %v12378_v50 = vpop.eup %10799  ;;  %10809 = vrcp.f32 %v12360_v3  ;;  %v3105_v17 = vsel %vm12425_vm10, %v12342_v34, %v3101_v41  ;;  %v12435_v47 = vadd.f32 %v2120_v24, %v2119_v20  ;;  %v1937_v29 = vadd.f32 %v1936_v21, %v1935_v25 }
 0x404   : > { %v3107_v2 = vmul.f32 %v12378_v50, %v12351_v28  ;;  %v12407_v37 = vpop.eup %10801  ;;  %v2287_v61 = vadd.f32 %v2286_v49, %v2285_v58  ;;  %10811 = vrcp.f32 %v12409_v56  ;;  %v2267_v3 = vadd.f32 %v2266_v22, %v12319_v33 }
 0x405   : > { %v12366_v19 = vpop.xlane.xlu0 %2222  ;;  %v10804_v18 = vpop.eup %10803  ;;  %v3117_v9 = vmul.f32 %v12407_v37, %v12364_v62  ;;  %v2132_v1 = vrot.slane %v2131_v40, 2  ;;  %v1942_v38 = vrot.slane %v1941_v45, 2  ;;  %v3288_v26 = vmul.f32 2.0, %v3105_v17 }
 0x406   : > { %v3108_v31 = vmul.f32 %v12378_v50, %v3107_v2  ;;  %v3272_v63 = vmul.f32 %v10804_v18, %v1933_v44  ;;  %v10806_v54 = vpop.eup %10805  ;;  %v2128_v44 = vrot.slane %v2127_v60, 1  ;;  %10813 = vrcp.f32 %v2117_v51 }
 0x407   : > { %v12380_v16 = vpop.xlane.xlu2 %2065  ;;  %v3118_v58 = vmul.f32 %v12407_v37, %v3117_v9  ;;  %v1938_v21 = vrot.slane %v1937_v29, 1  ;;  %v2288_v49 = vrot.slane %v2287_v61, 1  ;;  %v12455_v9 = vadd.f32 %v2132_v1, %v2131_v40 }
 0x408   : > { %v3109_v18 = vmul.f32 0.5, %v3108_v31  ;;  %v12443_v25 = vpop.eup %10807  ;;  %v12448_v10 = vadd.f32 %v2128_v44, %v2127_v60  ;;  %vm3113_vm11 = vweird.f32 %v12378_v50  ;;  %vm3112_vm12 = vweird.f32 %v12351_v28 }
 0x409   : > { %v1894_v32 = vpop.xlane.xlu1 %1893  ;;  %v12446_v31 = vpop.eup %10809  ;;  %v3137_v60 = vmul.f32 %v12443_v25, %v12400_v13  ;;  %v2289_v52 = vadd.f32 %v2288_v49, %v2287_v61  ;;  %vm12479_vm13 = vmor %vm3112_vm12, %vm3113_vm11  ;;  %vm3123_vm14 = vweird.f32 %v12407_v37  ;;  %vm3143_vm2 = vweird.f32 %v12443_v25 }
 0x40a   : > { %v1952_v53 = vrot.slane %v1894_v32, 4  ;;  %v12458_v24 = vpop.eup %10811  ;;  %vm12504_vm1 = vmor %vm3122_vm15, %vm3123_vm14  ;;  %vm3142_vm3 = vweird.f32 %v12400_v13 }
 0x40b   : > { %vm12544_vm4 = vmor %vm3142_vm3, %vm3143_vm2 }
 0x40c   : > { %v1953_v41 = vadd.f32 %v1952_v53, %v1894_v32  ;;  %v1943_v53 = vadd.f32 %v1942_v38, %v1941_v45  ;;  %v12465_v1 = vpop.eup %10813 }
 0x40e   : > { %v1954_v44 = vrot.slane %v1953_v41, 2 }
 0x40f   : > { %v12416_v27 = vpop.f32.mrf.mxu2  ;;  %v2069_v35 = vpop.xlane.xlu2 %2068 }
 0x410   : > { %15989 = vst [vmem:[#allocation28_spill] sm:$0xff] %v12416_v27  ;;  %v2142_v20 = vrot.slane %v2069_v35, 4 }
 0x411   : > { %v12439_v23 = vpop.xlane.xlu1 %1896 }
 0x417   : > { %v12451_v51 = vpop.f32.mrf.mxu3 }
 0x418   : > { %15992 = vst [vmem:[#allocation29_spill] sm:$0xff] %v12451_v51  ;;  %v1939_v51 = vadd.f32 %v1938_v21, %v1937_v29  ;;  %v1955_v29 = vadd.f32 %v1954_v44, %v1953_v41 }
 0x421   : > { %v12384_v36 = vpop.f32.mrf.mxu1 }
 0x422   : > { %15987 = vst [vmem:[#allocation26_spill] sm:$0xff] %v12384_v36  ;;  %v12411_v36 = vpop.xlane.xlu0 %2225 }
 0x429   : > { %v2732_v2 = vpop.f32.mrf.mxu1 }
 0x42a   : > { %v3304_v27 = vmul.f32 %v3272_v63, %v2732_v2  ;;  %v2229_v33 = vpop.xlane.xlu0 %2228  ;;  %v2268_v63 = vrot.slane %v2267_v3, 2  ;;  %v2290_v2 = vrot.slane %v12366_v19, 4 }
 0x42b   : > { %v2302_v39 = vrot.slane %v2229_v33, 4 }
 0x42c   : > { %v3320_v34 = vsub.f32 %v12344_v43, %v3304_v27  ;;  %v2278_v43 = vrot.slane %v12334_v6, 4  ;;  %v3110_v27 = vsub.f32 1.5, %v3109_v18  ;;  %v2269_v38 = vadd.f32 %v2268_v63, %v2267_v3 }
 0x42d   : > { %v1944_v18 = vrot.slane %v1943_v53, 1  ;;  %v2303_v21 = vadd.f32 %v2302_v39, %v2229_v33 }
 0x42e   : > { %v3336_v22 = vmul.f32 %v3320_v34, %v3288_v26  ;;  %v2143_v26 = vadd.f32 %v2142_v20, %v2069_v35  ;;  %v3119_v34 = vmul.f32 0.5, %v3118_v58  ;;  %v2279_v40 = vadd.f32 %v2278_v43, %v12334_v6  ;;  %v1900_v58 = vpop.xlane.xlu1 %1899 }
 0x42f   : > { %v12453_v32 = vpop.f32.mrf.mxu2  ;;  %v3111_v45 = vmul.f32 %v12378_v50, %v3110_v27  ;;  %v2136_v35 = vrot.slane %v12380_v16, 4  ;;  %v2291_v20 = vadd.f32 %v2290_v2, %v12366_v19  ;;  %v12477_v6 = vmul.f32 %v2289_v52, %v12448_v10 }
 0x430   : > { %15993 = vst [vmem:[#allocation30_spill] sm:$0xff] %v12453_v32  ;;  %v3352_v17 = vmul.f32 0.01, %v3336_v22  ;;  %v3120_v3 = vsub.f32 1.5, %v3119_v34  ;;  %v3273_v22 = vmul.f32 %v10806_v54, %v1939_v51  ;;  %v2144_v63 = vrot.slane %v2143_v26, 2 }
 0x431   : > { %v2270_v43 = vrot.slane %v2269_v38, 1  ;;  %v2280_v41 = vrot.slane %v2279_v40, 2  ;;  %v3115_v52 = vsel %vm12479_vm13, %v12378_v50, %v3111_v45  ;;  %v2292_v28 = vrot.slane %v2291_v20, 2 }
 0x432   : > { %v12463_v32 = vadd.f32 %v3352_v17, %v11490_v48  ;;  %v3138_v48 = vmul.f32 %v12443_v25, %v3137_v60  ;;  %v1945_v33 = vadd.f32 %v1944_v18, %v1943_v53  ;;  %v1956_v17 = vrot.slane %v1955_v29, 1 }
 0x433   : > { %v1964_v54 = vrot.slane %v1900_v58, 4  ;;  %v3121_v60 = vmul.f32 %v12407_v37, %v3120_v3  ;;  %10815 = vrsqrt.f32 %v12477_v6  ;;  %v2304_v44 = vrot.slane %v2303_v21, 2 }
 0x434   : > { %v3384_v61 = vmul.f32 %v12463_v32, %v12463_v32  ;;  %v3139_v51 = vmul.f32 0.5, %v3138_v48  ;;  %v3289_v34 = vmul.f32 2.0, %v3115_v52  ;;  %v2271_v50 = vadd.f32 %v2270_v43, %v2269_v38  ;;  %v2824_v52 = vpop.f32.mrf.mxu1 }
 0x435   : > { %v2281_v45 = vadd.f32 %v2280_v41, %v2279_v40  ;;  %v15997_v53 = vrot.slane %v12435_v47, 1  ;;  %v2134_v48 = vrot.slane %v12455_v9, 1  ;;  %v2293_v3 = vadd.f32 %v2292_v28, %v2291_v20 }
 0x436   : > { %v3400_v19 = vsel %vm185_vm0, %v3384_v61, 0.0  ;;  %v3140_v38 = vsub.f32 1.5, %v3139_v51  ;;  %v3125_v62 = vsel %vm12504_vm1, %v12407_v37, %v3121_v60  ;;  %v2305_v40 = vadd.f32 %v2304_v44, %v2303_v21 }
 0x437   : > { %v12484_v27 = vpop.f32.mrf.mxu3  ;;  %v2755_v2 = vpop.f32.mrf.mxu2  ;;  %3401 = vadd.xlane.f32.xlu1 %v3400_v19  ;;  %v12499_v18 = vadd.f32 %v15997_v53, %v12435_v47  ;;  %v12512_v47 = vadd.f32 %v2136_v35, %v12380_v16  ;;  %v3274_v20 = vmul.f32 %v12446_v31, %v1945_v33  ;;  %v12517_v43 = vmul.f32 %v2271_v50, %v12409_v56 }
 0x438   : > { %15996 = vst [vmem:[#allocation31_spill] sm:$0xff] %v12484_v27  ;;  %v3305_v39 = vmul.f32 %v3273_v22, %v2755_v2  ;;  %v12493_v27 = vadd.f32 %v2144_v63, %v2143_v26  ;;  %v1957_v26 = vadd.f32 %v1956_v17, %v1955_v29  ;;  %v2282_v41 = vrot.slane %v2281_v45, 1  ;;  %v2232_v22 = vpop.xlane.xlu0 %2231 }
 0x439   : > { %v1874_v29 = vmul.f32 %v12229_v57, %v12033_v8  ;;  %v12522_v37 = vpop.eup %10815  ;;  %v2294_v16 = vrot.slane %v2293_v3, 1  ;;  %v3290_v35 = vmul.f32 2.0, %v3125_v62  ;;  %v3141_v56 = vmul.f32 %v12443_v25, %v3140_v38 }
 0x43a   : > { %v3321_v61 = vsub.f32 %v12353_v30, %v3305_v39  ;;  %v1965_v30 = vadd.f32 %v1964_v54, %v1900_v58  ;;  %v2146_v63 = vrot.slane %v12493_v27, 1  ;;  %v3276_v28 = vmul.f32 %v12465_v1, %v1957_v26 }
 0x43b   : > { %v2296_v39 = vrot.slane %v12411_v36, 4  ;;  %v2306_v8 = vrot.slane %v2305_v40, 1  ;;  %10817 = vrsqrt.f32 %v12517_v43  ;;  %v2283_v17 = vadd.f32 %v2282_v41, %v2281_v45 }
 0x43c   : > { %v3337_v49 = vmul.f32 %v3321_v61, %v3289_v34  ;;  %v1966_v31 = vrot.slane %v1965_v30, 2  ;;  %v3157_v54 = vmul.f32 %v12522_v37, %v12477_v6  ;;  %v2295_v1 = vadd.f32 %v2294_v16, %v2293_v3 }
 0x43d   : > { %v3308_v51 = vmul.f32 %v3276_v28, %v2824_v52  ;;  %v1913_v45 = vsel %vm1879_vm7, %v1874_v29, 0.0  ;;  %v2297_v13 = vadd.f32 %v2296_v39, %v12411_v36  ;;  %v2307_v53 = vadd.f32 %v2306_v8, %v2305_v40  ;;  %v1903_v8 = vpop.xlane.xlu1 %1902 }
 0x43e   : > { %v3353_v19 = vmul.f32 0.01, %v3337_v49  ;;  %v1967_v61 = vadd.f32 %v1966_v31, %v1965_v30  ;;  %v3145_v3 = vsel %vm12544_vm4, %v12443_v25, %v3141_v56  ;;  %10819 = vrcp.f32 %v12448_v10 }
 0x43f   : > { %v2778_v58 = vpop.f32.mrf.mxu3  ;;  %2077 = vadd.xlane.f32.xlu1 %v12393_v55  ;;  %v2072_v55 = vpop.xlane.xlu2 %2071  ;;  %v3158_v30 = vmul.f32 %v12522_v37, %v3157_v54  ;;  %v12560_v26 = vadd.f32 %v2146_v63, %v12493_v27  ;;  %v3324_v38 = vsub.f32 %v12340_v12, %v3308_v51  ;;  %v1946_v40 = vrot.slane %v12355_v15, 4 }
 0x440   : > { %v3306_v21 = vmul.f32 %v3274_v20, %v2778_v58  ;;  %v12525_v2 = vadd.f32 %v3353_v19, %v11528_v14  ;;  %v12535_v14 = vpop.f32.mrf.mxu0  ;;  %v2148_v34 = vrot.slane %v2072_v55, 4  ;;  %v1968_v19 = vrot.slane %v1967_v61, 1 }
 0x441   : > { %v12568_v10 = vpop.eup %10817  ;;  %v3292_v20 = vmul.f32 2.0, %v3145_v3  ;;  %v2298_v41 = vrot.slane %v2297_v13, 2  ;;  %v12572_v58 = vmul.f32 %v2307_v53, %v12560_v26  ;;  %v2308_v27 = vrot.slane %v2232_v22, 4 }
 0x442   : > { %v3322_v57 = vsub.f32 %v12368_v7, %v3306_v21  ;;  %v3385_v33 = vmul.f32 %v12525_v2, %v12525_v2  ;;  %v2135_v7 = vadd.f32 %v2134_v48, %v12455_v9  ;;  %v2138_v9 = vrot.slane %v12512_v47, 2 }
 0x443   : > { %v12556_v48 = vmul.f32 %v2283_v17, %v12499_v18  ;;  %v2149_v62 = vadd.f32 %v2148_v34, %v2072_v55  ;;  %v3127_v21 = vmul.f32 %v12568_v10, %v12517_v43  ;;  %v3340_v31 = vmul.f32 %v3324_v38, %v3292_v20 }
 0x444   : > { %v3338_v60 = vmul.f32 %v3322_v57, %v3290_v35  ;;  %v3403_v44 = vsel %vm185_vm0, %v3385_v33, 0.0  ;;  %v12562_v36 = vmul.f32 %v2295_v1, %v2135_v7  ;;  %v2139_v12 = vadd.f32 %v2138_v9, %v12512_v47  ;;  %v10820_v56 = vpop.eup %10819 }
 0x445   : > { %3404 = vadd.xlane.f32.xlu2 %v3403_v44  ;;  %10821 = vrsqrt.f32 %v12556_v48  ;;  %v3159_v35 = vmul.f32 0.5, %v3158_v30  ;;  %v2150_v28 = vrot.slane %v2149_v62, 2  ;;  %v1947_v47 = vadd.f32 %v1946_v40, %v12355_v15 }
 0x446   : > { %v3354_v49 = vmul.f32 0.01, %v3338_v60  ;;  %10823 = vrsqrt.f32 %v12562_v36  ;;  %v1969_v55 = vadd.f32 %v1968_v19, %v1967_v61  ;;  %v1875_v39 = vmul.f32 %v12238_v0, %v12156_v11 }
 0x447   : > { %1914 = vadd.xlane.f32.xlu1 %v1913_v45  ;;  %v1909_v16 = vpop.xlane.xlu2 %1908  ;;  %v2299_v57 = vadd.f32 %v2298_v41, %v2297_v13  ;;  %10825 = vrsqrt.f32 %v12572_v58  ;;  %v2309_v17 = vadd.f32 %v2308_v27, %v2232_v22  ;;  %v3160_v1 = vsub.f32 1.5, %v3159_v35  ;;  %v2870_v61 = vpop.f32.mrf.mxu3 }
 0x448   : > { %v12566_v25 = vadd.f32 %v3354_v49, %v11487_v46  ;;  %v1958_v46 = vrot.slane %v12439_v23, 4  ;;  %v12579_v29 = vpop.f32.mrf.mxu0  ;;  %v1982_v33 = vrot.slane %v1909_v16, 4  ;;  %10827 = vrcp.f32 %v12499_v18 }
 0x449   : > { %v2197_v15 = vmul.f32 %v12246_v5, %v12246_v5  ;;  %10829 = vrcp.f32 %v2135_v7  ;;  %v3356_v51 = vmul.f32 0.01, %v3340_v31  ;;  %v3128_v60 = vmul.f32 %v12568_v10, %v3127_v21 }
 0x44a   : > { %v3386_v63 = vmul.f32 %v12566_v25, %v12566_v25  ;;  %v1959_v54 = vadd.f32 %v1958_v46, %v12439_v23  ;;  %v12597_v0 = vadd.f32 %v2150_v28, %v2149_v62  ;;  %v1948_v44 = vrot.slane %v1947_v47, 2 }
 0x44b   : > { %v12595_v11 = vpop.eup %10821  ;;  %v1970_v34 = vrot.slane %v1903_v8, 4  ;;  %v1916_v18 = vsel %vm1879_vm7, %v1875_v39, 0.0  ;;  %v2300_v23 = vrot.slane %v2299_v57, 1  ;;  %v1983_v45 = vadd.f32 %v1982_v33, %v1909_v16 }
 0x44c   : > { %v3406_v52 = vsel %vm185_vm0, %v3386_v63, 0.0  ;;  %v12600_v50 = vpop.eup %10823  ;;  %v2310_v13 = vrot.slane %v2309_v17, 2  ;;  %v3278_v53 = vmul.f32 %v10820_v56, %v1969_v55  ;;  %v1960_v7 = vrot.slane %v1959_v54, 2 }
 0x44d   : > { %2080 = vadd.xlane.f32.xlu2 %v12405_v4  ;;  %3407 = vadd.xlane.f32.xlu0 %v3406_v52  ;;  %v2140_v4 = vrot.slane %v2139_v12, 1  ;;  %v3161_v49 = vmul.f32 %v12522_v37, %v3160_v1  ;;  %vm3163_vm8 = vweird.f32 %v12522_v37  ;;  %v2239_v9 = vsel %vm1879_vm7, %v2197_v15, 0.0  ;;  %v12607_v22 = vpop.eup %10825  ;;  %v1906_v1 = vpop.xlane.xlu1 %1905 }
 0x44e   : > { %v3147_v30 = vmul.f32 %v12595_v11, %v12556_v48  ;;  %v3310_v38 = vmul.f32 %v3278_v53, %v2870_v61  ;;  %v12612_v62 = vadd.f32 %v3356_v51, %v11509_v59  ;;  %v3129_v40 = vmul.f32 0.5, %v3128_v60  ;;  %v12614_v19 = vpop.eup %10827  ;;  %v16006_v61 = vld [vmem:[#allocation21_spill] sm:$0xff] }
 0x44f   : > { %v1949_v20 = vadd.f32 %v1948_v44, %v1947_v47  ;;  %v3167_v41 = vmul.f32 %v12600_v50, %v12562_v36  ;;  %v1971_v27 = vadd.f32 %v1970_v34, %v1903_v8  ;;  %vm3162_vm9 = vweird.f32 %v12477_v6  ;;  %v12619_v63 = vpop.eup %10829  ;;  %v16005_v34 = vld [vmem:[#allocation19_spill] sm:$0xff] }
 0x450   : > { %v12602_v3 = vpop.f32.mrf.mxu0  ;;  %v12621_v46 = vadd.f32 %v2140_v4, %v2139_v12  ;;  %v2301_v16 = vadd.f32 %v2300_v23, %v2299_v57  ;;  %v1984_v35 = vrot.slane %v1983_v45, 2  ;;  %v2311_v59 = vadd.f32 %v2310_v13, %v2309_v17  ;;  %vm12625_vm10 = vmor %vm3162_vm9, %vm3163_vm8  ;;  %v16004_v57 = vld [vmem:[#allocation18_spill] sm:$0xff] }
 0x451   : > { %v2152_v31 = vrot.slane %v12597_v0, 1  ;;  %v1961_v52 = vadd.f32 %v1960_v7, %v1959_v54  ;;  %v3187_v6 = vmul.f32 %v12607_v22, %v12572_v58  ;;  %v3165_v12 = vsel %vm12625_vm10, %v12522_v37, %v3161_v49  ;;  %v16007_v49 = vld [vmem:[#allocation27_spill] sm:$0xff] }
 0x452   : > { %v3148_v56 = vmul.f32 %v12595_v11, %v3147_v30  ;;  %v3326_v28 = vsub.f32 %v12414_v42, %v3310_v38  ;;  %v3388_v47 = vmul.f32 %v12612_v62, %v12612_v62  ;;  %v3130_v55 = vsub.f32 1.5, %v3129_v40  ;;  %v2847_v42 = vpop.f32.mrf.mxu2 }
 0x453   : > { %v1950_v39 = vrot.slane %v1949_v20, 1  ;;  %v1972_v8 = vrot.slane %v1971_v27, 2  ;;  %v1876_v33 = vmul.f32 %v12246_v5, %v16004_v57  ;;  %v3168_v17 = vmul.f32 %v12600_v50, %v3167_v41 }
 0x454   : > { %v12643_v54 = vmul.f32 %v2301_v16, %v12621_v46  ;;  %v1985_v37 = vadd.f32 %v1984_v35, %v1983_v45  ;;  %v2312_v15 = vrot.slane %v2311_v59, 1  ;;  %v3294_v4 = vmul.f32 2.0, %v3165_v12 }
 0x455   : > { %1917 = vadd.xlane.f32.xlu2 %v1916_v18  ;;  %2240 = vadd.xlane.f32.xlu0 %v2239_v9  ;;  %v1962_v51 = vrot.slane %v1961_v52, 1  ;;  %v3188_v60 = vmul.f32 %v12607_v22, %v3187_v6  ;;  %vm3133_vm11 = vweird.f32 %v12568_v10  ;;  %v1877_v5 = vmul.f32 %v16006_v61, %v16005_v34 }
 0x456   : > { %v3149_v18 = vmul.f32 0.5, %v3148_v56  ;;  %v3342_v23 = vmul.f32 %v3326_v28, %v3294_v4  ;;  %v3412_v13 = vsel %vm185_vm0, %v3388_v47, 0.0  ;;  %v3131_v53 = vmul.f32 %v12568_v10, %v3130_v55  ;;  %v16010_v28 = vld [vmem:[#allocation23_spill] sm:$0xff]  ;;  %v1912_v55 = vpop.xlane.xlu0 %1911 }
 0x457   : > { %v1973_v45 = vadd.f32 %v1972_v8, %v1971_v27  ;;  %v1976_v7 = vrot.slane %v1906_v1, 4  ;;  %vm3132_vm12 = vweird.f32 %v12517_v43  ;;  %v3169_v9 = vmul.f32 0.5, %v3168_v17 }
 0x458   : > { %10831 = vrsqrt.f32 %v12643_v54  ;;  %v1986_v30 = vrot.slane %v1985_v37, 1  ;;  %v2313_v38 = vadd.f32 %v2312_v15, %v2311_v59  ;;  %v1951_v40 = vadd.f32 %v1950_v39, %v1949_v20  ;;  %vm12662_vm13 = vmor %vm3132_vm12, %vm3133_vm11 }
 0x459   : > { %10833 = vrcp.f32 %v12560_v26  ;;  %v12658_v41 = vadd.f32 %v2152_v31, %v12597_v0  ;;  %v1963_v16 = vadd.f32 %v1962_v51, %v1961_v52  ;;  %v3189_v35 = vmul.f32 0.5, %v3188_v60 }
 0x45a   : > { %v3150_v43 = vsub.f32 1.5, %v3149_v18  ;;  %v3358_v21 = vmul.f32 0.01, %v3342_v23  ;;  %v3135_v59 = vsel %vm12662_vm13, %v12568_v10, %v3131_v53  ;;  %v1919_v20 = vsel %vm1879_vm7, %v1876_v33, 0.0  ;;  %v2939_v51 = vpop.f32.mrf.mxu2 }
 0x45b   : > { %v12646_v44 = vpop.f32.mrf.mxu0  ;;  %v1974_v26 = vrot.slane %v1973_v45, 1  ;;  %v1977_v6 = vadd.f32 %v1976_v7, %v1906_v1  ;;  %v1922_v0 = vsel %vm1879_vm7, %v1877_v5, 0.0  ;;  %v3170_v31 = vsub.f32 1.5, %v3169_v9 }
 0x45c   : > { %v12672_v52 = vmul.f32 %v2313_v38, %v12658_v41  ;;  %v1987_v12 = vadd.f32 %v1986_v30, %v1985_v37  ;;  %v3275_v56 = vmul.f32 %v12458_v24, %v1951_v40  ;;  %v2199_v47 = vmul.f32 %v16010_v28, %v16010_v28  ;;  %v16011_v37 = vld [vmem:[#allocation7_spill] sm:$0xff]  ;;  %v16023_v38 = vld [vmem:[#allocation9_spill] sm:$0xff] }
 0x45d   : > { %2083 = vadd.xlane.f32.xlu0 %v16007_v49  ;;  %3413 = vadd.xlane.f32.xlu2 %v3412_v13  ;;  %vm3152_vm14 = vweird.f32 %v12556_v48  ;;  %v3277_v10 = vmul.f32 %v12614_v19, %v1963_v16  ;;  %v3190_v39 = vsub.f32 1.5, %v3189_v35  ;;  %v3291_v57 = vmul.f32 2.0, %v3135_v59  ;;  %v16018_v16 = vld [vmem:[#allocation25_spill] sm:$0xff] }
 0x45e   : > { %v12679_v33 = vpop.eup %10831  ;;  %v3151_v17 = vmul.f32 %v12595_v11, %v3150_v43  ;;  %vm3153_vm15 = vweird.f32 %v12595_v11  ;;  %v12684_v24 = vadd.f32 %v3358_v21, %v16011_v37  ;;  %v1978_v4 = vrot.slane %v1977_v6, 2 }
 0x45f   : > { %v10834_v15 = vpop.eup %10833  ;;  %v1975_v60 = vadd.f32 %v1974_v26, %v1973_v45  ;;  %v3171_v19 = vmul.f32 %v12600_v50, %v3170_v31  ;;  %vm3173_vm1 = vweird.f32 %v12600_v50  ;;  %10835 = vrsqrt.f32 %v12672_v52  ;;  %vm12698_vm3 = vmor %vm3152_vm14, %vm3153_vm15  ;;  %v2916_v45 = vpop.f32.mrf.mxu1 }
 0x460   : > { %v1988_v34 = vrot.slane %v1912_v55, 4  ;;  %v3281_v5 = vmul.f32 %v10834_v15, %v1987_v12  ;;  %v3177_v23 = vmul.f32 %v12679_v33, %v12643_v54  ;;  %v3309_v13 = vmul.f32 %v3277_v10, %v2847_v42 }
 0x461   : > { %v3191_v53 = vmul.f32 %v12607_v22, %v3190_v39  ;;  %vm3193_vm2 = vweird.f32 %v12607_v22  ;;  %vm3172_vm4 = vweird.f32 %v12562_v36  ;;  %v1979_v42 = vadd.f32 %v1978_v4, %v1977_v6 }
 0x462   : > { %v3313_v7 = vmul.f32 %v3281_v5, %v2939_v51  ;;  %v3155_v9 = vsel %vm12698_vm3, %v12595_v11, %v3151_v17  ;;  %vm3192_vm8 = vweird.f32 %v12572_v58  ;;  %vm12711_vm9 = vmor %vm3172_vm4, %vm3173_vm1  ;;  %v1989_v30 = vadd.f32 %v1988_v34, %v1912_v55 }
 0x463   : > { %v2801_v8 = vpop.f32.mrf.mxu0  ;;  %vm12715_vm10 = vmor %vm3192_vm8, %vm3193_vm2  ;;  %v3175_v40 = vsel %vm12711_vm9, %v12600_v50, %v3171_v19  ;;  %v3279_v11 = vmul.f32 %v12619_v63, %v1975_v60  ;;  %v3178_v58 = vmul.f32 %v12679_v33, %v3177_v23  ;;  %v3325_v35 = vsub.f32 %v16018_v16, %v3309_v13 }
 0x464   : > { %v3307_v1 = vmul.f32 %v3275_v56, %v2801_v8  ;;  %v3195_v27 = vsel %vm12715_vm10, %v12607_v22, %v3191_v53  ;;  %v2245_v21 = vsel %vm1879_vm7, %v2199_v47, 0.0  ;;  %v1980_v31 = vrot.slane %v1979_v42, 1 }
 0x465   : > { %1920 = vadd.xlane.f32.xlu0 %v1919_v20  ;;  %1923 = vadd.xlane.f32.xlu2 %v1922_v0  ;;  %v12729_v59 = vpop.eup %10835  ;;  %v16019_v20 = vld [vmem:[#allocation28_spill] sm:$0xff]  ;;  %v16020_v0 = vld [vmem:[#allocation5_spill] sm:$0xff]  ;;  %v3293_v12 = vmul.f32 2.0, %v3155_v9  ;;  %v3295_v56 = vmul.f32 2.0, %v3175_v40  ;;  %v1990_v55 = vrot.slane %v1989_v30, 2  ;;  %v3297_v22 = vmul.f32 2.0, %v3195_v27 }
 0x466   : > { %v3323_v18 = vsub.f32 %v12535_v14, %v3307_v1  ;;  %v3390_v14 = vmul.f32 %v12684_v24, %v12684_v24  ;;  %v3329_v26 = vsub.f32 %v16019_v20, %v3313_v7  ;;  %10837 = vrcp.f32 %v12621_v46  ;;  %v16024_v40 = vld [vmem:[#allocation13_spill] sm:$0xff]  ;;  %v16025_v27 = vld [vmem:[#allocation24_spill] sm:$0xff] }
 0x467   : > { %v3197_v39 = vmul.f32 %v12729_v59, %v12672_v52  ;;  %v3179_v8 = vmul.f32 0.5, %v3178_v58  ;;  %v3341_v1 = vmul.f32 %v3325_v35, %v3293_v12  ;;  %v1991_v51 = vadd.f32 %v1990_v55, %v1989_v30 }
 0x468   : > { %v3339_v49 = vmul.f32 %v3323_v18, %v3291_v57  ;;  %v3418_v50 = vsel %vm185_vm0, %v3390_v14, 0.0  ;;  %v16021_v57 = vld [vmem:[#allocation20_spill] sm:$0xff]  ;;  %v3345_v37 = vmul.f32 %v3329_v26, %v3297_v22  ;;  %v2198_v46 = vmul.f32 %v16006_v61, %v16006_v61  ;;  %v2962_v26 = vpop.f32.mrf.mxu3  ;;  %v16026_v22 = vld [vmem:[#allocation29_spill] sm:$0xff] }
 0x469   : > { %v1878_v17 = vmul.f32 %v16010_v28, %v16021_v57  ;;  %v3180_v19 = vsub.f32 1.5, %v3179_v8  ;;  %v3198_v34 = vmul.f32 %v12729_v59, %v3197_v39  ;;  %v3357_v5 = vmul.f32 0.01, %v3341_v1  ;;  %v16022_v28 = vld [vmem:[#allocation11_spill] sm:$0xff]  ;;  %v16027_v1 = vld [vmem:[#allocation8_spill] sm:$0xff] }
 0x46a   : > { %v3355_v36 = vmul.f32 0.01, %v3339_v49  ;;  %v3361_v18 = vmul.f32 0.01, %v3345_v37  ;;  %10839 = vrcp.f32 %v12658_v41  ;;  %v1992_v7 = vrot.slane %v1991_v51, 1 }
 0x46b   : > { %v2893_v43 = vpop.f32.mrf.mxu0  ;;  %v1925_v23 = vsel %vm1879_vm7, %v1878_v17, 0.0  ;;  %vm3183_vm11 = vweird.f32 %v12679_v33  ;;  %v3199_v61 = vmul.f32 0.5, %v3198_v34  ;;  %v2242_v9 = vsel %vm1879_vm7, %v2198_v46, 0.0 }
 0x46c   : > { %v3311_v6 = vmul.f32 %v3279_v11, %v2893_v43  ;;  %v12734_v63 = vadd.f32 %v3355_v36, %v16020_v0  ;;  %v10838_v53 = vpop.eup %10837  ;;  %v12760_v36 = vadd.f32 %v3357_v5, %v16023_v38  ;;  %v12763_v41 = vadd.f32 %v3361_v18, %v16024_v40 }
 0x46d   : > { %2246 = vadd.xlane.f32.xlu2 %v2245_v21  ;;  %3419 = vadd.xlane.f32.xlu0 %v3418_v50  ;;  %vm3182_vm12 = vweird.f32 %v12643_v54  ;;  %v1993_v11 = vadd.f32 %v1992_v7, %v1991_v51  ;;  %v3200_v16 = vsub.f32 1.5, %v3199_v61  ;;  %vm3203_vm14 = vweird.f32 %v12729_v59  ;;  %v16028_v51 = vld [vmem:[#allocation22_spill] sm:$0xff] }
 0x46e   : > { %v3327_v10 = vsub.f32 %v12579_v29, %v3311_v6  ;;  %v3387_v47 = vmul.f32 %v12734_v63, %v12734_v63  ;;  %v1981_v29 = vadd.f32 %v1980_v31, %v1979_v42  ;;  %v3181_v42 = vmul.f32 %v12679_v33, %v3180_v19  ;;  %vm3184_vm13 = vmor %vm3182_vm12, %vm3183_vm11  ;;  %v16029_v19 = vld [vmem:[#allocation10_spill] sm:$0xff] }
 0x46f   : > { %v3389_v21 = vmul.f32 %v12760_v36, %v12760_v36  ;;  %v3393_v20 = vmul.f32 %v12763_v41, %v12763_v41  ;;  %v3201_v54 = vmul.f32 %v12729_v59, %v3200_v16  ;;  %vm3202_vm15 = vweird.f32 %v12672_v52  ;;  %v2235_v52 = vpop.xlane.xlu1 %2234 }
 0x470   : > { %v3343_v15 = vmul.f32 %v3327_v10, %v3295_v56  ;;  %v3409_v4 = vsel %vm185_vm0, %v3387_v47, 0.0  ;;  %v3280_v49 = vmul.f32 %v10838_v53, %v1981_v29  ;;  %v3185_v58 = vsel %vm3184_vm13, %v12679_v33, %v3181_v42  ;;  %v10840_v35 = vpop.eup %10839  ;;  %vm3204_vm1 = vmor %vm3202_vm15, %vm3203_vm14 }
 0x471   : > { %3410 = vadd.xlane.f32.xlu1 %v3409_v4  ;;  %v3296_v6 = vmul.f32 2.0, %v3185_v58  ;;  %v3282_v50 = vmul.f32 %v10840_v35, %v1993_v11  ;;  %v3415_v33 = vsel %vm185_vm0, %v3389_v21, 0.0  ;;  %v3427_v12 = vsel %vm185_vm0, %v3393_v20, 0.0 }
 0x472   : > { %v3359_v60 = vmul.f32 0.01, %v3343_v15  ;;  %v3312_v48 = vmul.f32 %v3280_v49, %v2916_v45  ;;  %v3205_v56 = vsel %vm3204_vm1, %v12729_v59, %v3201_v54  ;;  %v2039_v47 = vmul.f32 %v16021_v57, %v16021_v57 }
 0x473   : > { %v3314_v31 = vmul.f32 %v3282_v50, %v2962_v26  ;;  %v3298_v39 = vmul.f32 2.0, %v3205_v56  ;;  %v2314_v59 = vrot.slane %v2235_v52, 4  ;;  %v2154_v29 = vrot.slane %v16028_v51, 4 }
 0x474   : > { %v12750_v13 = vadd.f32 %v3359_v60, %v16022_v28  ;;  %v3328_v43 = vsub.f32 %v16025_v27, %v3312_v48  ;;  %v2085_v17 = vsel %vm1879_vm7, %v2039_v47, 0.0 }
 0x475   : > { %1926 = vadd.xlane.f32.xlu2 %v1925_v23  ;;  %v3330_v10 = vsub.f32 %v16026_v22, %v3314_v31  ;;  %v2315_v34 = vadd.f32 %v2314_v59, %v2235_v52  ;;  %v2155_v46 = vadd.f32 %v2154_v29, %v16028_v51 }
 0x476   : > { %v3391_v14 = vmul.f32 %v12750_v13, %v12750_v13  ;;  %v3344_v0 = vmul.f32 %v3328_v43, %v3296_v6 }
 0x477   : > { %v3346_v8 = vmul.f32 %v3330_v10, %v3298_v39  ;;  %v2316_v18 = vrot.slane %v2315_v34, 2  ;;  %v2156_v23 = vrot.slane %v2155_v46, 2 }
 0x478   : > { %v3421_v30 = vsel %vm185_vm0, %v3391_v14, 0.0  ;;  %v3360_v55 = vmul.f32 0.01, %v3344_v0 }
 0x479   : > { %2243 = vadd.xlane.f32.xlu1 %v2242_v9  ;;  %3422 = vadd.xlane.f32.xlu0 %v3421_v30  ;;  %v3362_v15 = vmul.f32 0.01, %v3346_v8  ;;  %v2317_v53 = vadd.f32 %v2316_v18, %v2315_v34  ;;  %v2157_v45 = vadd.f32 %v2156_v23, %v2155_v46  ;;  %v2238_v9 = vpop.xlane.xlu2 %2237 }
 0x47a   : > { %v12783_v37 = vadd.f32 %v3360_v55, %v16027_v1  ;;  %v2320_v48 = vrot.slane %v2238_v9, 4 }
 0x47b   : > { %v12790_v57 = vadd.f32 %v3362_v15, %v16029_v19  ;;  %v2318_v7 = vrot.slane %v2317_v53, 1  ;;  %v2158_v49 = vrot.slane %v2157_v45, 1 }
 0x47c   : > { %v3392_v4 = vmul.f32 %v12783_v37, %v12783_v37  ;;  %v2321_v38 = vadd.f32 %v2320_v48, %v2238_v9 }
 0x47d   : > { %v3394_v5 = vmul.f32 %v12790_v57, %v12790_v57  ;;  %v2319_v14 = vadd.f32 %v2318_v7, %v2317_v53  ;;  %v2159_v42 = vadd.f32 %v2158_v49, %v2157_v45 }
 0x47e   : > { %v3424_v60 = vsel %vm185_vm0, %v3392_v4, 0.0  ;;  %v2322_v58 = vrot.slane %v2321_v38, 2 }
 0x47f   : > { %v3430_v28 = vsel %vm185_vm0, %v3394_v5, 0.0  ;;  %v12796_v61 = vmul.f32 %v2319_v14, %v2159_v42 }
 0x480   : > { %v2323_v20 = vadd.f32 %v2322_v58, %v2321_v38 }
 0x481   : > { %3416 = vadd.xlane.f32.xlu1 %v3415_v33  ;;  %3428 = vadd.xlane.f32.xlu0 %v3427_v12  ;;  %10841 = vrsqrt.f32 %v12796_v61  ;;  %vm3212_vm9 = vweird.f32 %v12796_v61 }
 0x482   : > { %v2324_v33 = vrot.slane %v2323_v20, 1 }
 0x484   : > { %v2325_v8 = vadd.f32 %v2324_v33, %v2323_v20  ;;  %v2985_v33 = vpop.f32.mrf.mxu0 }
 0x487   : > { %v12799_v40 = vpop.eup %10841 }
 0x488   : > { %v3207_v16 = vmul.f32 %v12799_v40, %v12796_v61  ;;  %vm3213_vm8 = vweird.f32 %v12799_v40 }
 0x489   : > { %2086 = vadd.xlane.f32.xlu1 %v2085_v17  ;;  %vm12820_vm10 = vmor %vm3212_vm9, %vm3213_vm8 }
 0x48a   : > { %v3208_v6 = vmul.f32 %v12799_v40, %v3207_v16 }
 0x48c   : > { %v3209_v22 = vmul.f32 0.5, %v3208_v6 }
 0x48e   : > { %v3210_v15 = vsub.f32 1.5, %v3209_v22 }
 0x491   : > { %3425 = vadd.xlane.f32.xlu1 %v3424_v60 }
 0x499   : > { %3431 = vadd.xlane.f32.xlu1 %v3430_v28  ;;  %v3211_v28 = vmul.f32 %v12799_v40, %v3210_v15 }
 0x49b   : > { %v3215_v38 = vsel %vm12820_vm10, %v12799_v40, %v3211_v28 }
 0x4aa   : > { %v3402_v30 = vpop.xlane.xlu1 %3401 }
 0x4ab   : > { %10843 = vrsqrt.f32 %v3402_v30  ;;  %vm3454_vm3 = vweird.f32 %v3402_v30 }
 0x4b1   : > { %v10844_v11 = vpop.eup %10843 }
 0x4b2   : > { %v3449_v35 = vmul.f32 %v10844_v11, %v3402_v30  ;;  %v2078_v27 = vpop.xlane.xlu1 %2077  ;;  %vm3455_vm2 = vweird.f32 %v10844_v11 }
 0x4b3   : > { %v2160_v43 = vrot.slane %v2078_v27, 4  ;;  %vm3456_vm4 = vmor %vm3454_vm3, %vm3455_vm2 }
 0x4b4   : > { %v3450_v21 = vmul.f32 %v10844_v11, %v3449_v35 }
 0x4b5   : > { %v2161_v26 = vadd.f32 %v2160_v43, %v2078_v27 }
 0x4b6   : > { %v3451_v50 = vmul.f32 0.5, %v3450_v21 }
 0x4b7   : > { %v2162_v54 = vrot.slane %v2161_v26, 2 }
 0x4b8   : > { %v3452_v0 = vsub.f32 1.5, %v3451_v50  ;;  %v3405_v31 = vpop.xlane.xlu2 %3404  ;;  %v3299_v50 = vmul.f32 2.0, %v3215_v38 }
 0x4b9   : > { %v2163_v12 = vadd.f32 %v2162_v54, %v2161_v26  ;;  %10845 = vrsqrt.f32 %v3405_v31  ;;  %vm3464_vm12 = vweird.f32 %v3405_v31 }
 0x4ba   : > { %v3453_v56 = vmul.f32 %v10844_v11, %v3452_v0  ;;  %v1915_v55 = vpop.xlane.xlu1 %1914  ;;  %10847 = vrcp.f32 %v2159_v42 }
 0x4bb   : > { %v2164_v10 = vrot.slane %v2163_v12, 1  ;;  %v1994_v47 = vrot.slane %v1915_v55, 4 }
 0x4bc   : > { %v3457_v39 = vsel %vm3456_vm4, %v10844_v11, %v3453_v56 }
 0x4bd   : > { %v12805_v17 = vmul.f32 %v3457_v39, %v12463_v32  ;;  %v2165_v1 = vadd.f32 %v2164_v10, %v2163_v12  ;;  %v1995_v52 = vadd.f32 %v1994_v47, %v1915_v55  ;;  %v16033_v47 = vld [vmem:[#allocation6_spill] sm:$0xff] }
 0x4bf   : > { %v10846_v4 = vpop.eup %10845  ;;  %v4042_v59 = vsel %vm185_vm0, %v12805_v17, 0.0  ;;  %v12809_v51 = vmul.f32 %v2325_v8, %v2165_v1  ;;  %v1996_v29 = vrot.slane %v1995_v52, 2  ;;  %10356 = vmatmul.msk.f32.vlgmr.msra.gmra.mxu1 %vm185_vm0, %v12805_v17 }
 0x4c0   : > { %v4043_v60 = vrot.slane %v4042_v59, 4  ;;  %v3459_v19 = vmul.f32 %v10846_v4, %v3405_v31  ;;  %v2081_v34 = vpop.xlane.xlu2 %2080  ;;  %v12813_v46 = vpop.xlane.xlu0 %3407  ;;  %vm3465_vm11 = vweird.f32 %v10846_v4 }
 0x4c1   : > { %10849 = vrsqrt.f32 %v12809_v51  ;;  %v1997_v32 = vadd.f32 %v1996_v29, %v1995_v52  ;;  %v2166_v5 = vrot.slane %v2081_v34, 4  ;;  %v10848_v9 = vpop.eup %10847  ;;  %vm3466_vm13 = vmor %vm3464_vm12, %vm3465_vm11  ;;  %vm3474_vm15 = vweird.f32 %v12813_v46 }
 0x4c2   : > { %v4044_v18 = vadd.f32 %v4043_v60, %v4042_v59  ;;  %v3460_v23 = vmul.f32 %v10846_v4, %v3459_v19  ;;  %10851 = vrsqrt.f32 %v12813_v46  ;;  %vm3222_vm3 = vweird.f32 %v12809_v51 }
 0x4c3   : > { %v1998_v53 = vrot.slane %v1997_v32, 1  ;;  %v2167_v45 = vadd.f32 %v2166_v5, %v2081_v34  ;;  %10853 = vrcp.f32 %v2165_v1 }
 0x4c4   : > { %v3461_v7 = vmul.f32 0.5, %v3460_v23  ;;  %v4045_v49 = vrot.slane %v4044_v18, 2 }
 0x4c5   : > { %v1999_v14 = vadd.f32 %v1998_v53, %v1997_v32  ;;  %v2168_v58 = vrot.slane %v2167_v45, 2 }
 0x4c6   : > { %v3462_v48 = vsub.f32 1.5, %v3461_v7  ;;  %v4046_v30 = vadd.f32 %v4045_v49, %v4044_v18 }
 0x4c7   : > { %v12827_v11 = vpop.eup %10849  ;;  %v3283_v27 = vmul.f32 %v10848_v9, %v1999_v14  ;;  %v2169_v12 = vadd.f32 %v2168_v58, %v2167_v45 }
 0x4c8   : > { %v10852_v16 = vpop.eup %10851  ;;  %v3217_v61 = vmul.f32 %v12827_v11, %v12809_v51  ;;  %v3463_v35 = vmul.f32 %v10846_v4, %v3462_v48  ;;  %v1918_v43 = vpop.xlane.xlu2 %1917  ;;  %v4047_v20 = vrot.slane %v4046_v30, 1  ;;  %vm3223_vm2 = vweird.f32 %v12827_v11 }
 0x4c9   : > { %v2241_v21 = vpop.xlane.xlu0 %2240  ;;  %v3469_v26 = vmul.f32 %v10852_v16, %v12813_v46  ;;  %v2000_v6 = vrot.slane %v1918_v43, 4  ;;  %v3315_v8 = vmul.f32 %v3283_v27, %v2985_v33  ;;  %vm3475_vm14 = vweird.f32 %v10852_v16  ;;  %v10854_v9 = vpop.eup %10853  ;;  %vm3224_vm4 = vmor %vm3222_vm3, %vm3223_vm2 }
 0x4ca   : > { %v3218_v40 = vmul.f32 %v12827_v11, %v3217_v61  ;;  %v2326_v54 = vrot.slane %v2241_v21, 4  ;;  %v3467_v0 = vsel %vm3466_vm13, %v10846_v4, %v3463_v35  ;;  %v4048_v31 = vadd.f32 %v4047_v20, %v4046_v30  ;;  %vm3476_vm1 = vmor %vm3474_vm15, %vm3475_vm14  ;;  %v16035_v35 = vld [vmem:[#allocation15_spill] sm:$0xff]  ;;  %v3008_v20 = vpop.f32.mrf.mxu1 }
 0x4cb   : > { %v3470_v56 = vmul.f32 %v10852_v16, %v3469_v26  ;;  %v2001_v55 = vadd.f32 %v2000_v6, %v1918_v43  ;;  %v12834_v22 = vmul.f32 %v3467_v0, %v12525_v2  ;;  %v3331_v2 = vsub.f32 %v12602_v3, %v3315_v8  ;;  %v16036_v8 = vld [vmem:[#allocation26_spill] sm:$0xff] }
 0x4cc   : > { %v2327_v10 = vadd.f32 %v2326_v54, %v2241_v21  ;;  %v4154_v39 = vmul.f32 %v4048_v31, %v16033_v47  ;;  %v3219_v52 = vmul.f32 0.5, %v3218_v40  ;;  %v2170_v1 = vrot.slane %v2169_v12, 1 }
 0x4cd   : > { %16032 = vst [vmem:[#allocation18_spill] sm:$0xff] %v12834_v22  ;;  %v3471_v15 = vmul.f32 0.5, %v3470_v56  ;;  %v2002_v59 = vrot.slane %v2001_v55, 2  ;;  %10357 = vmatmul.msk.f32.gmra.mxu1 %vm185_vm0, %v12834_v22  ;;  %v4049_v4 = vsel %vm185_vm0, %v12834_v22, 0.0  ;;  %v3347_v45 = vmul.f32 %v3331_v2, %v3299_v50 }
 0x4ce   : > { %v2328_v29 = vrot.slane %v2327_v10, 2  ;;  %v4050_v60 = vrot.slane %v4049_v4, 4  ;;  %v12842_v19 = vsub.f32 %v12805_v17, %v4154_v39  ;;  %v3220_v5 = vsub.f32 1.5, %v3219_v52 }
 0x4cf   : > { %v3472_v34 = vsub.f32 1.5, %v3471_v15  ;;  %v2003_v32 = vadd.f32 %v2002_v59, %v2001_v55  ;;  %v3363_v42 = vmul.f32 0.01, %v3347_v45  ;;  %v2171_v58 = vadd.f32 %v2170_v1, %v2169_v12 }
 0x4d0   : > { %v2329_v18 = vadd.f32 %v2328_v29, %v2327_v10  ;;  %v4051_v23 = vadd.f32 %v4050_v60, %v4049_v4  ;;  %10388 = vmatpush.xpose.msk.msra.mxu3 %vm185_vm0, %v12842_v19  ;;  %5564 = vmatpush.msrb.mxu1 %v12842_v19  ;;  %v12848_v28 = vpop.xlane.xlu2 %3413  ;;  %v3221_v38 = vmul.f32 %v12827_v11, %v3220_v5 }
 0x4d1   : > { %v12850_v53 = vpop.xlane.xlu0 %2083  ;;  %v3473_v7 = vmul.f32 %v10852_v16, %v3472_v34  ;;  %v2004_v3 = vrot.slane %v2003_v32, 1  ;;  %10855 = vrsqrt.f32 %v12848_v28  ;;  %v12863_v27 = vadd.f32 %v3363_v42, %v16035_v35 }
 0x4d2   : > { %v2330_v49 = vrot.slane %v2329_v18, 1  ;;  %v4052_v14 = vrot.slane %v4051_v23, 2  ;;  %v3225_v54 = vsel %vm3224_vm4, %v12827_v11, %v3221_v38  ;;  %vm3494_vm9 = vweird.f32 %v12848_v28 }
 0x4d3   : > { %v2005_v48 = vadd.f32 %v2004_v3, %v2003_v32  ;;  %10389 = vmatmul.msk.f32.vlgmr.msra.gmra.mxu3 %vm185_vm0, %v12842_v19  ;;  %v3477_v30 = vsel %vm3476_vm1, %v10852_v16, %v3473_v7  ;;  %v3300_v39 = vmul.f32 2.0, %v3225_v54  ;;  %v16037_v3 = vld [vmem:[#allocation12_spill] sm:$0xff]  ;;  %v3031_v54 = vpop.f32.mrf.mxu2 }
 0x4d4   : > { %v2331_v46 = vadd.f32 %v2330_v49, %v2329_v18  ;;  %v12860_v61 = vmul.f32 %v3477_v30, %v12566_v25  ;;  %v4053_v21 = vadd.f32 %v4052_v14, %v4051_v23  ;;  %v3395_v25 = vmul.f32 %v12863_v27, %v12863_v27 }
 0x4d5   : > { %v3284_v43 = vmul.f32 %v10854_v9, %v2005_v48  ;;  %v2172_v9 = vrot.slane %v12850_v53, 4 }
 0x4d6   : > { %16034 = vst [vmem:[#allocation19_spill] sm:$0xff] %v12860_v61  ;;  %v12866_v26 = vmul.f32 %v2331_v46, %v2171_v58  ;;  %10358 = vmatmul.msk.f32.gmra.mxu1 %vm185_vm0, %v12860_v61  ;;  %v4056_v16 = vsel %vm185_vm0, %v12860_v61, 0.0  ;;  %v4054_v40 = vrot.slane %v4053_v21, 1  ;;  %v3433_v12 = vsel %vm185_vm0, %v3395_v25, 0.0 }
 0x4d7   : > { %v10856_v6 = vpop.eup %10855  ;;  %v4057_v50 = vrot.slane %v4056_v16, 4  ;;  %v3316_v0 = vmul.f32 %v3284_v43, %v3008_v20  ;;  %3434 = vadd.xlane.f32.xlu2 %v3433_v12 }
 0x4d8   : > { %10857 = vrsqrt.f32 %v12866_v26  ;;  %v3489_v51 = vmul.f32 %v10856_v6, %v12848_v28  ;;  %v4055_v10 = vadd.f32 %v4054_v40, %v4053_v21  ;;  %vm3495_vm8 = vweird.f32 %v10856_v6  ;;  %v1924_v46 = vpop.xlane.xlu2 %1923 }
 0x4d9   : > { %v1921_v31 = vpop.xlane.xlu0 %1920  ;;  %v4058_v33 = vadd.f32 %v4057_v50, %v4056_v16  ;;  %v3332_v52 = vsub.f32 %v16036_v8, %v3316_v0  ;;  %10859 = vrcp.f32 %v2171_v58  ;;  %vm3496_vm10 = vmor %vm3494_vm9, %vm3495_vm8  ;;  %vm3232_vm12 = vweird.f32 %v12866_v26 }
 0x4da   : > { %v2006_v56 = vrot.slane %v1921_v31, 4  ;;  %v3490_v55 = vmul.f32 %v10856_v6, %v3489_v51  ;;  %v4155_v11 = vmul.f32 %v4055_v10, %v16033_v47 }
 0x4db   : > { %v4059_v15 = vrot.slane %v4058_v33, 2  ;;  %v3348_v29 = vmul.f32 %v3332_v52, %v3300_v39 }
 0x4dc   : > { %v2007_v59 = vadd.f32 %v2006_v56, %v1921_v31  ;;  %v3491_v4 = vmul.f32 0.5, %v3490_v55  ;;  %v12883_v5 = vsub.f32 %v12834_v22, %v4155_v11  ;;  %v2012_v55 = vrot.slane %v1924_v46, 4 }
 0x4dd   : > { %v4060_v2 = vadd.f32 %v4059_v15, %v4058_v33  ;;  %v3364_v1 = vmul.f32 0.01, %v3348_v29 }
 0x4de   : > { %v2008_v60 = vrot.slane %v2007_v59, 2  ;;  %v12880_v34 = vpop.eup %10857  ;;  %v3492_v32 = vsub.f32 1.5, %v3491_v4  ;;  %10390 = vmatpush.xpose.msk.msrb.mxu0 %vm185_vm0, %v12883_v5  ;;  %5587 = vmatpush.msra.mxu2 %v12883_v5  ;;  %v16039_v4 = vld [vmem:[#allocation30_spill] sm:$0xff] }
 0x4df   : > { %v3227_v18 = vmul.f32 %v12880_v34, %v12866_v26  ;;  %v12894_v49 = vadd.f32 %v3364_v1, %v16037_v3  ;;  %v4061_v14 = vrot.slane %v4060_v2, 1  ;;  %v10860_v38 = vpop.eup %10859  ;;  %vm3233_vm11 = vweird.f32 %v12880_v34 }
 0x4e0   : > { %v2009_v23 = vadd.f32 %v2008_v60, %v2007_v59  ;;  %v3493_v45 = vmul.f32 %v10856_v6, %v3492_v32  ;;  %vm3234_vm13 = vmor %vm3232_vm12, %vm3233_vm11  ;;  %v2247_v60 = vpop.xlane.xlu2 %2246 }
 0x4e1   : > { %v12891_v7 = vpop.xlane.xlu0 %3419  ;;  %v3228_v42 = vmul.f32 %v12880_v34, %v3227_v18  ;;  %v3396_v28 = vmul.f32 %v12894_v49, %v12894_v49  ;;  %v4062_v20 = vadd.f32 %v4061_v14, %v4060_v2  ;;  %v2013_v18 = vadd.f32 %v2012_v55, %v1924_v46 }
 0x4e2   : > { %v2010_v48 = vrot.slane %v2009_v23, 1  ;;  %v3497_v30 = vsel %vm3496_vm10, %v10856_v6, %v3493_v45  ;;  %10861 = vrsqrt.f32 %v12891_v7  ;;  %v2173_v6 = vadd.f32 %v2172_v9, %v12850_v53 }
 0x4e3   : > { %v12902_v58 = vmul.f32 %v3497_v30, %v12612_v62  ;;  %v3436_v21 = vsel %vm185_vm0, %v3396_v28, 0.0  ;;  %v3229_v16 = vmul.f32 0.5, %v3228_v42  ;;  %v4156_v62 = vmul.f32 %v4062_v20, %v16033_v47 }
 0x4e4   : > { %v2011_v35 = vadd.f32 %v2010_v48, %v2009_v23  ;;  %v12904_v43 = vpop.xlane.xlu1 %3410  ;;  %3437 = vadd.xlane.f32.xlu0 %v3436_v21  ;;  %v2174_v56 = vrot.slane %v2173_v6, 2  ;;  %v2338_v42 = vrot.slane %v2247_v60, 4  ;;  %vm3514_vm15 = vweird.f32 %v12891_v7 }
 0x4e5   : > { %16038 = vst [vmem:[#allocation21_spill] sm:$0xff] %v12902_v58  ;;  %v4070_v25 = vsel %vm185_vm0, %v12902_v58, 0.0  ;;  %10863 = vrsqrt.f32 %v12904_v43  ;;  %v3230_v0 = vsub.f32 1.5, %v3229_v16  ;;  %v12913_v33 = vsub.f32 %v12860_v61, %v4156_v62  ;;  %v16041_v62 = vld [vmem:[#allocation16_spill] sm:$0xff] }
 0x4e6   : > { %v3285_v50 = vmul.f32 %v10860_v38, %v2011_v35  ;;  %v4071_v40 = vrot.slane %v4070_v25, 4  ;;  %v2175_v1 = vadd.f32 %v2174_v56, %v2173_v6  ;;  %v2014_v20 = vrot.slane %v2013_v18, 2 }
 0x4e7   : > { %10392 = vmatpush.xpose.msk.msrb.mxu3 %vm185_vm0, %v12913_v33  ;;  %v3231_v10 = vmul.f32 %v12880_v34, %v3230_v0  ;;  %v2339_v0 = vadd.f32 %v2338_v42, %v2247_v60  ;;  %vm3484_vm3 = vweird.f32 %v12904_v43 }
 0x4e8   : > { %v10862_v51 = vpop.eup %10861  ;;  %v4072_v31 = vadd.f32 %v4071_v40, %v4070_v25  ;;  %v3317_v12 = vmul.f32 %v3285_v50, %v3031_v54  ;;  %v2176_v38 = vrot.slane %v2175_v1, 1  ;;  %v1927_v60 = vpop.xlane.xlu2 %1926 }
 0x4e9   : > { %v3509_v53 = vmul.f32 %v10862_v51, %v12891_v7  ;;  %v3235_v59 = vsel %vm3234_vm13, %v12880_v34, %v3231_v10  ;;  %vm3515_vm14 = vweird.f32 %v10862_v51 }
 0x4ea   : > { %v4073_v39 = vrot.slane %v4072_v31, 2  ;;  %v3333_v11 = vsub.f32 %v16039_v4, %v3317_v12  ;;  %10393 = vmatmul.msk.f32.vlgmr.msrb.gmra.mxu3 %vm185_vm0, %v12913_v33  ;;  %v3301_v23 = vmul.f32 2.0, %v3235_v59  ;;  %vm3516_vm1 = vmor %vm3514_vm15, %vm3515_vm14  ;;  %v2177_v56 = vadd.f32 %v2176_v38, %v2175_v1 }
 0x4eb   : > { %v3510_v8 = vmul.f32 %v10862_v51, %v3509_v53  ;;  %v10864_v52 = vpop.eup %10863  ;;  %v2015_v53 = vadd.f32 %v2014_v20, %v2013_v18 }
 0x4ec   : > { %v2244_v15 = vpop.xlane.xlu1 %2243  ;;  %v4074_v29 = vadd.f32 %v4073_v39, %v4072_v31  ;;  %v3479_v32 = vmul.f32 %v10864_v52, %v12904_v43  ;;  %v3349_v9 = vmul.f32 %v3333_v11, %v3301_v23  ;;  %vm3485_vm2 = vweird.f32 %v10864_v52  ;;  %v12927_v25 = vpop.xlane.xlu0 %3422 }
 0x4ed   : > { %v3511_v2 = vmul.f32 0.5, %v3510_v8  ;;  %v2332_v26 = vrot.slane %v2244_v15, 4  ;;  %vm3486_vm4 = vmor %vm3484_vm3, %vm3485_vm2  ;;  %vm3524_vm15 = vweird.f32 %v12927_v25 }
 0x4ee   : > { %v3480_v3 = vmul.f32 %v10864_v52, %v3479_v32  ;;  %v4075_v14 = vrot.slane %v4074_v29, 1  ;;  %v3365_v21 = vmul.f32 0.01, %v3349_v9  ;;  %v2016_v32 = vrot.slane %v2015_v53, 1 }
 0x4ef   : > { %v3512_v45 = vsub.f32 1.5, %v3511_v2  ;;  %v2333_v34 = vadd.f32 %v2332_v26, %v2244_v15  ;;  %v2340_v15 = vrot.slane %v2339_v0, 2 }
 0x4f0   : > { %v3481_v30 = vmul.f32 0.5, %v3480_v3  ;;  %v4076_v28 = vadd.f32 %v4075_v14, %v4074_v29  ;;  %v12935_v7 = vadd.f32 %v3365_v21, %v16041_v62  ;;  %v2017_v9 = vadd.f32 %v2016_v32, %v2015_v53 }
 0x4f1   : > { %v3513_v48 = vmul.f32 %v10862_v51, %v3512_v45  ;;  %v2334_v35 = vrot.slane %v2333_v34, 2  ;;  %v2341_v18 = vadd.f32 %v2340_v15, %v2339_v0  ;;  %v2018_v45 = vrot.slane %v1927_v60, 4 }
 0x4f2   : > { %v3482_v16 = vsub.f32 1.5, %v3481_v30  ;;  %v4158_v54 = vmul.f32 %v4076_v28, %v16033_v47 }
 0x4f3   : > { %v3517_v46 = vsel %vm3516_vm1, %v10862_v51, %v3513_v48  ;;  %v2335_v50 = vadd.f32 %v2334_v35, %v2333_v34  ;;  %v2342_v28 = vrot.slane %v2341_v18, 1  ;;  %v2019_v20 = vadd.f32 %v2018_v45, %v1927_v60 }
 0x4f4   : > { %v12930_v6 = vmul.f32 %v3517_v46, %v12684_v24  ;;  %v12932_v40 = vpop.xlane.xlu1 %3416  ;;  %v3483_v31 = vmul.f32 %v10864_v52, %v3482_v16  ;;  %v3397_v24 = vmul.f32 %v12935_v7, %v12935_v7  ;;  %v12948_v43 = vsub.f32 %v12902_v58, %v4158_v54  ;;  %v12970_v62 = vpop.xlane.xlu0 %3428 }
 0x4f5   : > { %10865 = vrsqrt.f32 %v12932_v40  ;;  %v2336_v12 = vrot.slane %v2335_v50, 1  ;;  %vm3504_vm9 = vweird.f32 %v12932_v40 }
 0x4f6   : > { %16040 = vst [vmem:[#allocation27_spill] sm:$0xff] %v12930_v6  ;;  %v4084_v51 = vsel %vm185_vm0, %v12930_v6, 0.0  ;;  %10867 = vrsqrt.f32 %v12927_v25  ;;  %v3439_v39 = vsel %vm185_vm0, %v3397_v24, 0.0  ;;  %v3487_v8 = vsel %vm3486_vm4, %v10864_v52, %v3483_v31  ;;  %10396 = vmatpush.xpose.msk.msra.mxu3 %vm185_vm0, %v12948_v43  ;;  %5656 = vmatpush.msra.mxu1 %v12948_v43 }
 0x4f7   : > { %v4085_v55 = vrot.slane %v4084_v51, 4  ;;  %v2337_v10 = vadd.f32 %v2336_v12, %v2335_v50  ;;  %3440 = vadd.xlane.f32.xlu1 %v3439_v39  ;;  %v12951_v4 = vmul.f32 %v3487_v8, %v12734_v63  ;;  %10869 = vrcp.f32 %v2177_v56 }
 0x4f8   : > { %v2343_v24 = vadd.f32 %v2342_v28, %v2341_v18 }
 0x4f9   : > { %v4086_v59 = vadd.f32 %v4085_v55, %v4084_v51  ;;  %16042 = vst [vmem:[#allocation23_spill] sm:$0xff] %v12951_v4  ;;  %v12953_v11 = vmul.f32 %v2337_v10, %v2177_v56  ;;  %10359 = vmatmul.msk.f32.gmra.mxu1 %vm185_vm0, %v12951_v4  ;;  %10397 = vmatmul.msk.f32.vlgmr.msra.gmra.mxu3 %vm185_vm0, %v12948_v43  ;;  %v2020_v55 = vrot.slane %v2019_v20, 2 }
 0x4fb   : > { %v10866_v29 = vpop.eup %10865  ;;  %v4087_v52 = vrot.slane %v4086_v59, 2  ;;  %10871 = vrsqrt.f32 %v12953_v11  ;;  %vm3242_vm12 = vweird.f32 %v12953_v11 }
 0x4fc   : > { %v12960_v2 = vpop.eup %10867  ;;  %v3499_v63 = vmul.f32 %v10866_v29, %v12932_v40  ;;  %v2087_v1 = vpop.xlane.xlu1 %2086  ;;  %vm3505_vm8 = vweird.f32 %v10866_v29 }
 0x4fd   : > { %v2178_v26 = vrot.slane %v2087_v1, 4  ;;  %v4088_v23 = vadd.f32 %v4087_v52, %v4086_v59  ;;  %v3519_v14 = vmul.f32 %v12960_v2, %v12927_v25  ;;  %v10870_v30 = vpop.eup %10869  ;;  %vm3506_vm10 = vmor %vm3504_vm9, %vm3505_vm8  ;;  %v3054_v40 = vpop.f32.mrf.mxu3  ;;  %vm3525_vm14 = vweird.f32 %v12960_v2 }
 0x4fe   : > { %v3500_v3 = vmul.f32 %v10866_v29, %v3499_v63  ;;  %v3286_v31 = vmul.f32 %v10870_v30, %v2017_v9  ;;  %v2021_v63 = vadd.f32 %v2020_v55, %v2019_v20  ;;  %vm13001_vm1 = vmor %vm3524_vm15, %vm3525_vm14  ;;  %vm3544_vm15 = vweird.f32 %v12970_v62 }
 0x4ff   : > { %v2179_v42 = vadd.f32 %v2178_v26, %v2087_v1  ;;  %v4089_v34 = vrot.slane %v4088_v23, 1  ;;  %v3520_v50 = vmul.f32 %v12960_v2, %v3519_v14 }
 0x500   : > { %v3501_v48 = vmul.f32 0.5, %v3500_v3  ;;  %v3318_v1 = vmul.f32 %v3286_v31, %v3054_v40 }
 0x501   : > { %v2180_v38 = vrot.slane %v2179_v42, 2  ;;  %v4090_v35 = vadd.f32 %v4089_v34, %v4088_v23  ;;  %v10872_v21 = vpop.eup %10871  ;;  %10360 = vmatmul.msk.f32.gmra.mxu1 %vm185_vm0, %v12902_v58  ;;  %v3521_v8 = vmul.f32 0.5, %v3520_v50  ;;  %v16044_v34 = vld [vmem:[#allocation31_spill] sm:$0xff] }
 0x502   : > { %v3502_v46 = vsub.f32 1.5, %v3501_v48  ;;  %v3237_v16 = vmul.f32 %v10872_v21, %v12953_v11  ;;  %vm3243_vm11 = vweird.f32 %v10872_v21  ;;  %v3334_v9 = vsub.f32 %v16044_v34, %v3318_v1 }
 0x503   : > { %v2181_v54 = vadd.f32 %v2180_v38, %v2179_v42  ;;  %v4160_v0 = vmul.f32 %v4090_v35, %v16033_v47  ;;  %v3522_v26 = vsub.f32 1.5, %v3521_v8  ;;  %vm3244_vm13 = vmor %vm3242_vm12, %vm3243_vm11  ;;  %v2022_v48 = vrot.slane %v2021_v63, 1 }
 0x504   : > { %v3503_v51 = vmul.f32 %v10866_v29, %v3502_v46  ;;  %v3426_v12 = vpop.xlane.xlu1 %3425  ;;  %v3238_v56 = vmul.f32 %v10872_v21, %v3237_v16 }
 0x505   : > { %v2182_v53 = vrot.slane %v2181_v54, 1  ;;  %10873 = vrsqrt.f32 %v3426_v12  ;;  %v12978_v10 = vsub.f32 %v12930_v6, %v4160_v0  ;;  %v3523_v30 = vmul.f32 %v12960_v2, %v3522_v26 }
 0x506   : > { %10875 = vrsqrt.f32 %v12970_v62  ;;  %v3507_v39 = vsel %vm3506_vm10, %v10866_v29, %v3503_v51  ;;  %v3239_v60 = vmul.f32 0.5, %v3238_v56  ;;  %v2023_v0 = vadd.f32 %v2022_v48, %v2021_v63  ;;  %v3077_v63 = vpop.f32.mrf.mxu0 }
 0x507   : > { %v2183_v15 = vadd.f32 %v2182_v53, %v2181_v54  ;;  %v12981_v59 = vmul.f32 %v3507_v39, %v12760_v36  ;;  %10400 = vmatpush.xpose.msk.msrb.mxu3 %vm185_vm0, %v12978_v10  ;;  %v3527_v25 = vsel %vm13001_vm1, %v12960_v2, %v3523_v30  ;;  %vm3534_vm3 = vweird.f32 %v3426_v12  ;;  %v16047_v53 = vld [vmem:[#allocation14_spill] sm:$0xff] }
 0x508   : > { %v3240_v32 = vsub.f32 1.5, %v3239_v60 }
 0x509   : > { %16043 = vst [vmem:[#allocation7_spill] sm:$0xff] %v12981_v59  ;;  %v12985_v52 = vmul.f32 %v2343_v24, %v2183_v15  ;;  %10361 = vmatmul.msk.f32.gmra.mxu1 %vm185_vm0, %v12981_v59 }
 0x50a   : > { %10401 = vmatmul.msk.f32.vlgmr.msrb.gmra.mxu3 %vm185_vm0, %v12978_v10  ;;  %v3241_v36 = vmul.f32 %v10872_v21, %v3240_v32  ;;  %v13018_v32 = vmul.f32 %v3527_v25, %v12750_v13 }
 0x50b   : > { %v10874_v18 = vpop.eup %10873  ;;  %10877 = vrsqrt.f32 %v12985_v52  ;;  %vm3252_vm9 = vweird.f32 %v12985_v52 }
 0x50c   : > { %v12993_v29 = vpop.eup %10875  ;;  %10879 = vrcp.f32 %v2183_v15  ;;  %v3529_v23 = vmul.f32 %v10874_v18, %v3426_v12  ;;  %v3432_v45 = vpop.xlane.xlu1 %3431  ;;  %v3245_v3 = vsel %vm3244_vm13, %v10872_v21, %v3241_v36  ;;  %vm3535_vm2 = vweird.f32 %v10874_v18  ;;  %16048 = vst [vmem:[#allocation25_spill] sm:$0xff] %v13018_v32 }
 0x50d   : > { %10881 = vrsqrt.f32 %v3432_v45  ;;  %v3302_v42 = vmul.f32 2.0, %v3245_v3  ;;  %v3539_v11 = vmul.f32 %v12993_v29, %v12970_v62  ;;  %vm3536_vm4 = vmor %vm3534_vm3, %vm3535_vm2  ;;  %vm3554_vm12 = vweird.f32 %v3432_v45 }
 0x50e   : > { %v3530_v14 = vmul.f32 %v10874_v18, %v3529_v23  ;;  %v4063_v21 = vsel %vm185_vm0, %v12951_v4, 0.0  ;;  %vm3545_vm14 = vweird.f32 %v12993_v29 }
 0x50f   : > { %v3350_v38 = vmul.f32 %v3334_v9, %v3302_v42  ;;  %v3540_v31 = vmul.f32 %v12993_v29, %v3539_v11  ;;  %vm3546_vm1 = vmor %vm3544_vm15, %vm3545_vm14 }
 0x510   : > { %v3531_v28 = vmul.f32 0.5, %v3530_v14 }
 0x511   : > { %v10878_v35 = vpop.eup %10877  ;;  %v3366_v50 = vmul.f32 0.01, %v3350_v38  ;;  %10362 = vmatmul.msk.f32.gmra.mxu1 %vm185_vm0, %v12930_v6  ;;  %v3541_v12 = vmul.f32 0.5, %v3540_v31 }
 0x512   : > { %v10880_v20 = vpop.eup %10879  ;;  %v3247_v46 = vmul.f32 %v10878_v35, %v12985_v52  ;;  %v3532_v16 = vsub.f32 1.5, %v3531_v28  ;;  %vm3253_vm8 = vweird.f32 %v10878_v35 }
 0x513   : > { %v10882_v54 = vpop.eup %10881  ;;  %v13013_v55 = vadd.f32 %v3366_v50, %v16047_v53  ;;  %v3287_v39 = vmul.f32 %v10880_v20, %v2023_v0  ;;  %vm3254_vm11 = vmor %vm3252_vm9, %vm3253_vm8  ;;  %v3542_v30 = vsub.f32 1.5, %v3541_v12  ;;  %v16051_v50 = vld [vmem:[#allocation17_spill] sm:$0xff] }
 0x514   : > { %v3248_v51 = vmul.f32 %v10878_v35, %v3247_v46  ;;  %v3533_v24 = vmul.f32 %v10874_v18, %v3532_v16  ;;  %v3549_v56 = vmul.f32 %v10882_v54, %v3432_v45  ;;  %vm3555_vm10 = vweird.f32 %v10882_v54 }
 0x515   : > { %v3398_v40 = vmul.f32 %v13013_v55, %v13013_v55  ;;  %v3319_v23 = vmul.f32 %v3287_v39, %v3077_v63  ;;  %vm3556_vm13 = vmor %vm3554_vm12, %vm3555_vm10 }
 0x516   : > { %v3550_v8 = vmul.f32 %v10882_v54, %v3549_v56  ;;  %v3537_v15 = vsel %vm3536_vm4, %v10874_v18, %v3533_v24  ;;  %v3249_v60 = vmul.f32 0.5, %v3248_v51 }
 0x517   : > { %v13021_v2 = vmul.f32 %v3537_v15, %v12783_v37  ;;  %v3442_v36 = vsel %vm185_vm0, %v3398_v40, 0.0  ;;  %v3335_v48 = vsub.f32 %v12646_v44, %v3319_v23  ;;  %v13076_v23 = vld [vmem:[%s15894_s1 + $0x20] ss:$0 sm:$0xff] }
 0x518   : > { %v3551_v1 = vmul.f32 0.5, %v3550_v8  ;;  %v3250_v26 = vsub.f32 1.5, %v3249_v60  ;;  %3443 = vadd.xlane.f32.xlu2 %v3442_v36 }
 0x519   : > { %16049 = vst [vmem:[#allocation28_spill] sm:$0xff] %v13021_v2  ;;  %v4098_v18 = vsel %vm185_vm0, %v13021_v2, 0.0  ;;  %10363 = vmatmul.msk.f32.gmra.mxu1 %vm185_vm0, %v13018_v32 }
 0x51a   : > { %v3552_v3 = vsub.f32 1.5, %v3551_v1  ;;  %v4099_v13 = vrot.slane %v4098_v18, 4  ;;  %v3251_v14 = vmul.f32 %v10878_v35, %v3250_v26 }
 0x51c   : > { %v3553_v37 = vmul.f32 %v10882_v54, %v3552_v3  ;;  %v4100_v42 = vadd.f32 %v4099_v13, %v4098_v18  ;;  %v3255_v34 = vsel %vm3254_vm11, %v10878_v35, %v3251_v14  ;;  %v3543_v35 = vmul.f32 %v12993_v29, %v3542_v30 }
 0x51d   : > { %v3303_v9 = vmul.f32 2.0, %v3255_v34 }
 0x51e   : > { %v4101_v52 = vrot.slane %v4100_v42, 2  ;;  %v3557_v11 = vsel %vm3556_vm13, %v10882_v54, %v3553_v37  ;;  %v4064_v54 = vrot.slane %v4063_v21, 4  ;;  %v3547_v51 = vsel %vm3546_vm1, %v12993_v29, %v3543_v35 }
 0x51f   : > { %v3351_v28 = vmul.f32 %v3335_v48, %v3303_v9  ;;  %v13031_v38 = vmul.f32 %v3557_v11, %v12790_v57  ;;  %v13054_v15 = vmul.f32 %v3547_v51, %v12763_v41 }
 0x520   : > { %v4102_v20 = vadd.f32 %v4101_v52, %v4100_v42  ;;  %v4065_v39 = vadd.f32 %v4064_v54, %v4063_v21 }
 0x521   : > { %16050 = vst [vmem:[#allocation5_spill] sm:$0xff] %v13031_v38  ;;  %v3367_v46 = vmul.f32 0.01, %v3351_v28  ;;  %v4112_v45 = vsel %vm185_vm0, %v13031_v38, 0.0  ;;  %10364 = vmatmul.msk.f32.gmra.mxu1 %vm185_vm0, %v13021_v2 }
 0x522   : > { %v4103_v44 = vrot.slane %v4102_v20, 1  ;;  %v4113_v16 = vrot.slane %v4112_v45, 4  ;;  %16052 = vst [vmem:[#allocation20_spill] sm:$0xff] %v13054_v15  ;;  %v4066_v29 = vrot.slane %v4065_v39, 2 }
 0x523   : > { %v13042_v57 = vadd.f32 %v3367_v46, %v16051_v50 }
 0x524   : > { %v4104_v0 = vadd.f32 %v4103_v44, %v4102_v20  ;;  %v4114_v31 = vadd.f32 %v4113_v16, %v4112_v45  ;;  %v4067_v1 = vadd.f32 %v4066_v29, %v4065_v39 }
 0x525   : > { %v3399_v25 = vmul.f32 %v13042_v57, %v13042_v57 }
 0x526   : > { %v4162_v24 = vmul.f32 %v4104_v0, %v16033_v47  ;;  %v4115_v56 = vrot.slane %v4114_v31, 2  ;;  %v4068_v41 = vrot.slane %v4067_v1, 1 }
 0x527   : > { %v3445_v53 = vsel %vm185_vm0, %v3399_v25, 0.0 }
 0x528   : > { %3446 = vadd.xlane.f32.xlu0 %v3445_v53  ;;  %v13051_v8 = vsub.f32 %v13021_v2, %v4162_v24  ;;  %v4116_v62 = vadd.f32 %v4115_v56, %v4114_v31  ;;  %v4069_v26 = vadd.f32 %v4068_v41, %v4067_v1 }
 0x529   : > { %10365 = vmatmul.msk.f32.gmra.mxu1 %vm185_vm0, %v13054_v15 }
 0x52a   : > { %10404 = vmatpush.xpose.msk.msra.mxu3 %vm185_vm0, %v13051_v8  ;;  %v4117_v60 = vrot.slane %v4116_v62, 1  ;;  %v4157_v18 = vmul.f32 %v4069_v26, %v16033_v47 }
 0x52c   : > { %v4118_v40 = vadd.f32 %v4117_v60, %v4116_v62  ;;  %v13080_v14 = vsub.f32 %v12951_v4, %v4157_v18 }
 0x52d   : > { %10405 = vmatmul.msk.f32.vlgmr.msra.gmra.mxu3 %vm185_vm0, %v13051_v8 }
 0x52e   : > { %v4164_v63 = vmul.f32 %v4118_v40, %v16033_v47 }
 0x530   : > { %v13064_v12 = vsub.f32 %v13031_v38, %v4164_v63 }
 0x531   : > { %10366 = vmatmul.msk.f32.gmra.mxu1 %vm185_vm0, %v13031_v38 }
 0x532   : > { %10408 = vmatpush.xpose.msk.msrb.mxu3 %vm185_vm0, %v13064_v12 }
 0x535   : > { %10409 = vmatmul.msk.f32.vlgmr.msrb.gmra.mxu3 %vm185_vm0, %v13064_v12 }
 0x53c   : > { %v3689_v36 = vpop.f32.mrf.mxu1 }
 0x53d   : > { %v3690_v3 = vadd.f32 %v13076_v23, %v3689_v36 }
 0x53f   : > { %v3737_v13 = vmax.f32 %v3690_v3, 0.0 }
 0x541   : > { %10372 = vmatmul.msk.f32.vlgmr.msra.gmra.mxu0 %vm541_vm5, %v3737_v13 }
 0x542   : > { %10394 = vmatpush.xpose.msk.msra.mxu0 %vm185_vm0, %v13080_v14 }
 0x54a   : > { %v3692_v37 = vpop.f32.mrf.mxu1  ;;  %v3435_v34 = vpop.xlane.xlu2 %3434 }
 0x54b   : > { %v3693_v42 = vadd.f32 %v13076_v23, %v3692_v37  ;;  %10883 = vrsqrt.f32 %v3435_v34  ;;  %vm3564_vm3 = vweird.f32 %v3435_v34 }
 0x54d   : > { %v3738_v9 = vmax.f32 %v3693_v42, 0.0 }
 0x54f   : > { %10373 = vmatmul.msk.f32.gmra.mxu0 %vm541_vm5, %v3738_v9  ;;  %v4077_v9 = vsel %vm185_vm0, %v12981_v59, 0.0 }
 0x551   : > { %v10884_v30 = vpop.eup %10883 }
 0x552   : > { %v3559_v11 = vmul.f32 %v10884_v30, %v3435_v34  ;;  %vm3565_vm2 = vweird.f32 %v10884_v30 }
 0x553   : > { %v3695_v48 = vpop.f32.mrf.mxu1  ;;  %vm3566_vm4 = vmor %vm3564_vm3, %vm3565_vm2 }
 0x554   : > { %v3696_v52 = vadd.f32 %v13076_v23, %v3695_v48  ;;  %v3560_v20 = vmul.f32 %v10884_v30, %v3559_v11 }
 0x556   : > { %v3739_v28 = vmax.f32 %v3696_v52, 0.0  ;;  %v3561_v46 = vmul.f32 0.5, %v3560_v20  ;;  %v4078_v52 = vrot.slane %v4077_v9, 4 }
 0x557   : > { %v3438_v21 = vpop.xlane.xlu0 %3437 }
 0x558   : > { %10374 = vmatmul.msk.f32.gmra.mxu0 %vm541_vm5, %v3739_v28  ;;  %10885 = vrsqrt.f32 %v3438_v21  ;;  %v3562_v45 = vsub.f32 1.5, %v3561_v46  ;;  %vm3574_vm9 = vweird.f32 %v3438_v21  ;;  %v4091_v46 = vsel %vm185_vm0, %v13018_v32, 0.0 }
 0x55a   : > { %v3563_v35 = vmul.f32 %v10884_v30, %v3562_v45  ;;  %v4092_v45 = vrot.slane %v4091_v46, 4 }
 0x55c   : > { %v3567_v16 = vsel %vm3566_vm4, %v10884_v30, %v3563_v35 }
 0x55d   : > { %v13090_v54 = vmul.f32 %v3567_v16, %v12863_v27  ;;  %v4093_v16 = vadd.f32 %v4092_v45, %v4091_v46 }
 0x55e   : > { %v10886_v44 = vpop.eup %10885 }
 0x55f   : > { %v3569_v50 = vmul.f32 %v10886_v44, %v3438_v21  ;;  %16053 = vst [vmem:[#allocation11_spill] sm:$0xff] %v13090_v54  ;;  %10367 = vmatmul.msk.f32.gmra.mxu1 %vm185_vm0, %v13090_v54  ;;  %vm3575_vm8 = vweird.f32 %v10886_v44  ;;  %v4079_v21 = vadd.f32 %v4078_v52, %v4077_v9 }
 0x560   : > { %vm3576_vm10 = vmor %vm3574_vm9, %vm3575_vm8 }
 0x561   : > { %v3570_v0 = vmul.f32 %v10886_v44, %v3569_v50 }
 0x563   : > { %v3571_v31 = vmul.f32 0.5, %v3570_v0 }
 0x565   : > { %v3572_v25 = vsub.f32 1.5, %v3571_v31  ;;  %v4105_v31 = vsel %vm185_vm0, %v13054_v15, 0.0 }
 0x567   : > { %v3573_v51 = vmul.f32 %v10886_v44, %v3572_v25 }
 0x569   : > { %v3577_v24 = vsel %vm3576_vm10, %v10886_v44, %v3573_v51  ;;  %v4094_v51 = vrot.slane %v4093_v16, 2 }
 0x56a   : > { %v13095_v56 = vmul.f32 %v3577_v24, %v12894_v49  ;;  %v3441_v53 = vpop.xlane.xlu1 %3440  ;;  %v4106_v24 = vrot.slane %v4105_v31, 4 }
 0x56b   : > { %10887 = vrsqrt.f32 %v3441_v53  ;;  %vm3584_vm12 = vweird.f32 %v3441_v53 }
 0x56c   : > { %16054 = vst [vmem:[#allocation9_spill] sm:$0xff] %v13095_v56  ;;  %10368 = vmatmul.msk.f32.gmra.mxu1 %vm185_vm0, %v13095_v56  ;;  %v4126_v27 = vsel %vm185_vm0, %v13095_v56, 0.0 }
 0x56d   : > { %v4127_v39 = vrot.slane %v4126_v27, 4 }
 0x56f   : > { %v4128_v62 = vadd.f32 %v4127_v39, %v4126_v27 }
 0x571   : > { %v4129_v60 = vrot.slane %v4128_v62, 2  ;;  %v10888_v29 = vpop.eup %10887 }
 0x572   : > { %v3579_v40 = vmul.f32 %v10888_v29, %v3441_v53  ;;  %vm3585_vm11 = vweird.f32 %v10888_v29 }
 0x573   : > { %v4130_v63 = vadd.f32 %v4129_v60, %v4128_v62  ;;  %vm3586_vm13 = vmor %vm3584_vm12, %vm3585_vm11  ;;  %v4095_v60 = vadd.f32 %v4094_v51, %v4093_v16 }
 0x574   : > { %v3580_v1 = vmul.f32 %v10888_v29, %v3579_v40  ;;  %v4107_v40 = vadd.f32 %v4106_v24, %v4105_v31 }
 0x575   : > { %v4131_v41 = vrot.slane %v4130_v63, 1 }
 0x576   : > { %v3581_v26 = vmul.f32 0.5, %v3580_v1  ;;  %v3698_v36 = vpop.f32.mrf.mxu1  ;;  %v4119_v1 = vsel %vm185_vm0, %v13090_v54, 0.0 }
 0x577   : > { %v4132_v49 = vadd.f32 %v4131_v41, %v4130_v63  ;;  %v3699_v18 = vadd.f32 %v13076_v23, %v3698_v36  ;;  %v4096_v36 = vrot.slane %v4095_v60, 1 }
 0x578   : > { %v3582_v3 = vsub.f32 1.5, %v3581_v26 }
 0x579   : > { %v4166_v13 = vmul.f32 %v4132_v49, %v16033_v47  ;;  %v3740_v37 = vmax.f32 %v3699_v18, 0.0  ;;  %v4108_v49 = vrot.slane %v4107_v40, 2  ;;  %v4120_v18 = vrot.slane %v4119_v1, 4 }
 0x57a   : > { %v3583_v42 = vmul.f32 %v10888_v29, %v3582_v3 }
 0x57b   : > { %v13104_v34 = vsub.f32 %v13095_v56, %v4166_v13  ;;  %10375 = vmatmul.msk.f32.gmra.mxu0 %vm541_vm5, %v3740_v37 }
 0x57c   : > { %v3587_v48 = vsel %vm3586_vm13, %v10888_v29, %v3583_v42 }
 0x57d   : > { %10412 = vmatpush.xpose.msk.msra.mxu3 %vm185_vm0, %v13104_v34  ;;  %v13112_v30 = vmul.f32 %v3587_v48, %v12935_v7  ;;  %v4080_v7 = vrot.slane %v4079_v21, 2 }
 0x57e   : > { %v3701_v11 = vpop.f32.mrf.mxu1 }
 0x57f   : > { %16055 = vst [vmem:[#allocation13_spill] sm:$0xff] %v13112_v30  ;;  %10369 = vmatmul.msk.f32.gmra.mxu1 %vm185_vm0, %v13112_v30  ;;  %v3702_v28 = vadd.f32 %v13076_v23, %v3701_v11  ;;  %v4081_v0 = vadd.f32 %v4080_v7, %v4079_v21  ;;  %v4097_v11 = vadd.f32 %v4096_v36, %v4095_v60  ;;  %v4133_v46 = vsel %vm185_vm0, %v13112_v30, 0.0 }
 0x580   : > { %10413 = vmatmul.msk.f32.vlgmr.msra.gmra.mxu3 %vm185_vm0, %v13104_v34  ;;  %v4109_v21 = vadd.f32 %v4108_v49, %v4107_v40  ;;  %v4134_v16 = vrot.slane %v4133_v46, 4 }
 0x581   : > { %v3741_v20 = vmax.f32 %v3702_v28, 0.0  ;;  %v4082_v27 = vrot.slane %v4081_v0, 1  ;;  %v4121_v28 = vadd.f32 %v4120_v18, %v4119_v1 }
 0x582   : > { %v4110_v31 = vrot.slane %v4109_v21, 1 }
 0x583   : > { %10376 = vmatmul.msk.f32.gmra.mxu0 %vm541_vm5, %v3741_v20  ;;  %v4083_v63 = vadd.f32 %v4082_v27, %v4081_v0 }
 0x585   : > { %v4159_v13 = vmul.f32 %v4083_v63, %v16033_v47 }
 0x586   : > { %v3704_v35 = vpop.f32.mrf.mxu1 }
 0x587   : > { %v3705_v44 = vadd.f32 %v13076_v23, %v3704_v35  ;;  %v13133_v20 = vsub.f32 %v12981_v59, %v4159_v13  ;;  %v4161_v35 = vmul.f32 %v4097_v11, %v16033_v47 }
 0x589   : > { %v3742_v50 = vmax.f32 %v3705_v44, 0.0  ;;  %v4122_v44 = vrot.slane %v4121_v28, 2  ;;  %v13153_v60 = vsub.f32 %v13018_v32, %v4161_v35 }
 0x58b   : > { %10377 = vmatmul.msk.f32.gmra.mxu0 %vm541_vm5, %v3742_v50  ;;  %v3444_v25 = vpop.xlane.xlu2 %3443 }
 0x58c   : > { %10889 = vrsqrt.f32 %v3444_v25  ;;  %vm3594_vm15 = vweird.f32 %v3444_v25 }
 0x58e   : > { %v3707_v53 = vpop.f32.mrf.mxu1 }
 0x58f   : > { %v3708_v39 = vadd.f32 %v13076_v23, %v3707_v53 }
 0x591   : > { %v3743_v62 = vmax.f32 %v3708_v39, 0.0 }
 0x592   : > { %v10890_v29 = vpop.eup %10889 }
 0x593   : > { %v3589_v41 = vmul.f32 %v10890_v29, %v3444_v25  ;;  %10378 = vmatmul.msk.f32.gmra.mxu0 %vm541_vm5, %v3743_v62  ;;  %vm3595_vm14 = vweird.f32 %v10890_v29  ;;  %v4135_v62 = vadd.f32 %v4134_v16, %v4133_v46 }
 0x594   : > { %vm3596_vm1 = vmor %vm3594_vm15, %vm3595_vm14 }
 0x595   : > { %v3590_v26 = vmul.f32 %v10890_v29, %v3589_v41 }
 0x596   : > { %v3710_v3 = vpop.f32.mrf.mxu1 }
 0x597   : > { %v3591_v37 = vmul.f32 0.5, %v3590_v26  ;;  %v3711_v42 = vadd.f32 %v13076_v23, %v3710_v3  ;;  %v4136_v26 = vrot.slane %v4135_v62, 2 }
 0x599   : > { %v3592_v9 = vsub.f32 1.5, %v3591_v37  ;;  %v3744_v48 = vmax.f32 %v3711_v42, 0.0 }
 0x59b   : > { %v3447_v52 = vpop.xlane.xlu0 %3446  ;;  %v3593_v45 = vmul.f32 %v10890_v29, %v3592_v9  ;;  %10379 = vmatmul.msk.f32.vlgmr.msrb.gmra.mxu2 %vm541_vm5, %v3744_v48  ;;  %10391 = vmatmul.msk.f32.vlgmr.msrb.gmra.mxu0 %vm185_vm0, %v12883_v5 }
 0x59c   : > { %10891 = vrsqrt.f32 %v3447_v52  ;;  %10398 = vmatpush.xpose.msk.msrb.mxu0 %vm185_vm0, %v13133_v20  ;;  %5679 = vmatpush.msrb.mxu2 %v13133_v20  ;;  %vm3604_vm3 = vweird.f32 %v3447_v52 }
 0x59d   : > { %v3597_v7 = vsel %vm3596_vm1, %v10890_v29, %v3593_v45  ;;  %v4111_v29 = vadd.f32 %v4110_v31, %v4109_v21  ;;  %v4137_v21 = vadd.f32 %v4136_v26, %v4135_v62 }
 0x59e   : > { %v3713_v50 = vpop.f32.mrf.mxu1  ;;  %v13145_v0 = vmul.f32 %v3597_v7, %v13013_v55  ;;  %v4123_v55 = vadd.f32 %v4122_v44, %v4121_v28 }
 0x59f   : > { %v3714_v25 = vadd.f32 %v13076_v23, %v3713_v50  ;;  %v4163_v49 = vmul.f32 %v4111_v29, %v16033_v47  ;;  %v4138_v50 = vrot.slane %v4137_v21, 1 }
 0x5a0   : > { %16056 = vst [vmem:[#allocation24_spill] sm:$0xff] %v13145_v0  ;;  %10370 = vmatmul.msk.f32.gmra.mxu1 %vm185_vm0, %v13145_v0  ;;  %v4140_v24 = vsel %vm185_vm0, %v13145_v0, 0.0  ;;  %v4124_v18 = vrot.slane %v4123_v55, 1 }
 0x5a1   : > { %v3745_v27 = vmax.f32 %v3714_v25, 0.0  ;;  %v4141_v39 = vrot.slane %v4140_v24, 4  ;;  %v13163_v11 = vsub.f32 %v13054_v15, %v4163_v49 }
 0x5a2   : > { %v10892_v51 = vpop.eup %10891  ;;  %v4125_v28 = vadd.f32 %v4124_v18, %v4123_v55 }
 0x5a3   : > { %v3599_v53 = vmul.f32 %v10892_v51, %v3447_v52  ;;  %v4142_v63 = vadd.f32 %v4141_v39, %v4140_v24  ;;  %10380 = vmatmul.msk.f32.gmra.mxu2 %vm541_vm5, %v3745_v27  ;;  %10395 = vmatmul.msk.f32.vlgmr.msra.gmra.mxu0 %vm185_vm0, %v13080_v14  ;;  %vm3605_vm2 = vweird.f32 %v10892_v51  ;;  %v4139_v27 = vadd.f32 %v4138_v50, %v4137_v21 }
 0x5a4   : > { %10402 = vmatpush.xpose.msk.msra.mxu0 %vm185_vm0, %v13153_v60  ;;  %vm3606_vm4 = vmor %vm3604_vm3, %vm3605_vm2  ;;  %v4165_v16 = vmul.f32 %v4125_v28, %v16033_v47 }
 0x5a5   : > { %v3600_v40 = vmul.f32 %v10892_v51, %v3599_v53  ;;  %v4143_v41 = vrot.slane %v4142_v63, 2  ;;  %v4167_v29 = vmul.f32 %v4139_v27, %v16033_v47 }
 0x5a6   : > { %v3716_v36 = vpop.f32.mrf.mxu1  ;;  %v13186_v53 = vsub.f32 %v13090_v54, %v4165_v16 }
 0x5a7   : > { %v3601_v1 = vmul.f32 0.5, %v3600_v40  ;;  %v3717_v13 = vadd.f32 %v13076_v23, %v3716_v36  ;;  %v4144_v37 = vadd.f32 %v4143_v41, %v4142_v63  ;;  %v13197_v40 = vsub.f32 %v13112_v30, %v4167_v29  ;;  %v13206_v41 = vld [vmem:[%s15894_s1 + $0x38] ss:$0 sm:$0xff] }
 0x5a9   : > { %v3602_v3 = vsub.f32 1.5, %v3601_v1  ;;  %v3746_v9 = vmax.f32 %v3717_v13, 0.0  ;;  %v4145_v48 = vrot.slane %v4144_v37, 1 }
 0x5ab   : > { %v3603_v42 = vmul.f32 %v10892_v51, %v3602_v3  ;;  %10381 = vmatmul.msk.f32.gmra.mxu2 %vm541_vm5, %v3746_v9  ;;  %10399 = vmatmul.msk.f32.vlgmr.msrb.gmra.mxu0 %vm185_vm0, %v13133_v20  ;;  %v4146_v45 = vadd.f32 %v4145_v48, %v4144_v37 }
 0x5ac   : > { %10406 = vmatpush.xpose.msk.msrb.mxu0 %vm185_vm0, %v13163_v11 }
 0x5ad   : > { %v3607_v46 = vsel %vm3606_vm4, %v10892_v51, %v3603_v42  ;;  %v4168_v7 = vmul.f32 %v4146_v45, %v16033_v47 }
 0x5ae   : > { %v13171_v52 = vmul.f32 %v3607_v46, %v13042_v57  ;;  %v3719_v35 = vpop.f32.mrf.mxu1 }
 0x5af   : > { %v3720_v31 = vadd.f32 %v13076_v23, %v3719_v35  ;;  %v13181_v51 = vsub.f32 %v13145_v0, %v4168_v7 }
 0x5b0   : > { %16057 = vst [vmem:[#allocation29_spill] sm:$0xff] %v13171_v52  ;;  %10371 = vmatmul.msk.f32.gmra.mxu1 %vm185_vm0, %v13171_v52  ;;  %v4147_v44 = vsel %vm185_vm0, %v13171_v52, 0.0 }
 0x5b1   : > { %v4148_v25 = vrot.slane %v4147_v44, 4  ;;  %v3747_v57 = vmax.f32 %v3720_v31, 0.0  ;;  %10416 = vmatpush.xpose.msk.msrb.mxu3 %vm185_vm0, %v13181_v51 }
 0x5b3   : > { %v4149_v24 = vadd.f32 %v4148_v25, %v4147_v44  ;;  %10382 = vmatmul.msk.f32.gmra.mxu2 %vm541_vm5, %v3747_v57  ;;  %10403 = vmatmul.msk.f32.vlgmr.msra.gmra.mxu0 %vm185_vm0, %v13153_v60 }
 0x5b4   : > { %10410 = vmatpush.xpose.msk.msra.mxu0 %vm185_vm0, %v13186_v53  ;;  %10417 = vmatmul.msk.f32.vlgmr.msrb.gmra.mxu3 %vm185_vm0, %v13181_v51 }
 0x5b5   : > { %v4150_v39 = vrot.slane %v4149_v24, 2 }
 0x5b7   : > { %v4151_v62 = vadd.f32 %v4150_v39, %v4149_v24 }
 0x5b9   : > { %v4152_v55 = vrot.slane %v4151_v62, 1 }
 0x5bb   : > { %v4153_v63 = vadd.f32 %v4152_v55, %v4151_v62  ;;  %10407 = vmatmul.msk.f32.vlgmr.msrb.gmra.mxu0 %vm185_vm0, %v13163_v11 }
 0x5bc   : > { %10414 = vmatpush.xpose.msk.msrb.mxu0 %vm185_vm0, %v13197_v40 }
 0x5bd   : > { %v4169_v36 = vmul.f32 %v4153_v63, %v16033_v47 }
 0x5be   : > { %v3818_v1 = vpop.f32.mrf.mxu0 }
 0x5bf   : > { %v13209_v26 = vadd.f32 %v13206_v41, %v3818_v1  ;;  %v13215_v18 = vsub.f32 %v13171_v52, %v4169_v36 }
 0x5c1   : > { %v3866_v49 = vsel %vm655_vm6, %v13209_v26, -inf }
 0x5c2   : > { %3867 = vmax.xlane.f32.xlu1 %v3866_v49 }
 0x5c3   : > { %10411 = vmatmul.msk.f32.vlgmr.msra.gmra.mxu0 %vm185_vm0, %v13186_v53 }
 0x5c4   : > { %10418 = vmatpush.xpose.msk.msra.mxu0 %vm185_vm0, %v13215_v18 }
 0x5cb   : > { %10415 = vmatmul.msk.f32.vlgmr.msrb.gmra.mxu0 %vm185_vm0, %v13197_v40 }
 0x5cc   : > { %v3821_v3 = vpop.f32.mrf.mxu0 }
 0x5cd   : > { %v13224_v13 = vadd.f32 %v13206_v41, %v3821_v3 }
 0x5cf   : > { %v3869_v37 = vsel %vm655_vm6, %v13224_v13, -inf }
 0x5d0   : > { %3870 = vmax.xlane.f32.xlu2 %v3869_v37 }
 0x5d3   : > { %10419 = vmatmul.msk.f32.vlgmr.msra.gmra.mxu0 %vm185_vm0, %v13215_v18 }
 0x5d5   : > { %v3824_v42 = vpop.f32.mrf.mxu0 }
 0x5d6   : > { %v13231_v9 = vadd.f32 %v13206_v41, %v3824_v42 }
 0x5d8   : > { %v3872_v48 = vsel %vm655_vm6, %v13231_v9, -inf }
 0x5d9   : > { %3873 = vmax.xlane.f32.xlu0 %v3872_v48 }
 0x5dc   : > { %v3722_v28 = vpop.f32.mrf.mxu1 }
 0x5dd   : > { %v3723_v21 = vadd.f32 %v13076_v23, %v3722_v28 }
 0x5df   : > { %v3748_v46 = vmax.f32 %v3723_v21, 0.0 }
 0x5e1   : > { %10383 = vmatmul.msk.f32.gmra.mxu2 %vm541_vm5, %v3748_v46 }
 0x5e9   : > { %v3725_v45 = vpop.f32.mrf.mxu1 }
 0x5ea   : > { %v3726_v7 = vadd.f32 %v13076_v23, %v3725_v45 }
 0x5ec   : > { %v3749_v35 = vmax.f32 %v3726_v7, 0.0 }
 0x5ee   : > { %10384 = vmatmul.msk.f32.gmra.mxu2 %vm541_vm5, %v3749_v35 }
 0x5f8   : > { %v3827_v44 = vpop.f32.mrf.mxu0 }
 0x5f9   : > { %v13240_v16 = vadd.f32 %v13206_v41, %v3827_v44 }
 0x5fb   : > { %v3875_v50 = vsel %vm655_vm6, %v13240_v16, -inf }
 0x5fc   : > { %v3728_v31 = vpop.f32.mrf.mxu1  ;;  %3876 = vmax.xlane.f32.xlu1 %v3875_v50 }
 0x5fd   : > { %v3729_v25 = vadd.f32 %v13076_v23, %v3728_v31 }
 0x5ff   : > { %v3750_v57 = vmax.f32 %v3729_v25, 0.0 }
 0x600   : > { %v3830_v24 = vpop.f32.mrf.mxu0 }
 0x601   : > { %10385 = vmatmul.msk.f32.gmra.mxu2 %vm541_vm5, %v3750_v57  ;;  %v3831_v27 = vadd.f32 %v13206_v41, %v3830_v24 }
 0x603   : > { %v3878_v39 = vsel %vm655_vm6, %v3831_v27, -inf }
 0x604   : > { %3879 = vmax.xlane.f32.xlu2 %v3878_v39 }
 0x608   : > { %v3833_v62 = vpop.f32.mrf.mxu0 }
 0x609   : > { %v13249_v29 = vadd.f32 %v13206_v41, %v3833_v62 }
 0x60b   : > { %v3881_v55 = vsel %vm655_vm6, %v13249_v29, -inf }
 0x60c   : > { %3882 = vmax.xlane.f32.xlu0 %v3881_v55 }
 0x610   : > { %v3836_v63 = vpop.f32.mrf.mxu0 }
 0x611   : > { %v13254_v1 = vadd.f32 %v13206_v41, %v3836_v63 }
 0x613   : > { %v3884_v36 = vsel %vm655_vm6, %v13254_v1, -inf }
 0x614   : > { %3885 = vmax.xlane.f32.xlu1 %v3884_v36 }
 0x61d   : > { %v3731_v49 = vpop.f32.mrf.mxu1 }
 0x61e   : > { %v3732_v3 = vadd.f32 %v13076_v23, %v3731_v49  ;;  %v3839_v37 = vpop.f32.mrf.mxu2 }
 0x61f   : > { %v13260_v42 = vadd.f32 %v13206_v41, %v3839_v37 }
 0x620   : > { %v3751_v48 = vmax.f32 %v3732_v3, 0.0 }
 0x621   : > { %v3887_v28 = vsel %vm655_vm6, %v13260_v42, -inf }
 0x622   : > { %3888 = vmax.xlane.f32.xlu2 %v3887_v28  ;;  %10386 = vmatmul.msk.f32.gmra.mxu2 %vm541_vm5, %v3751_v48 }
 0x626   : > { %v3842_v21 = vpop.f32.mrf.mxu2 }
 0x627   : > { %v13266_v46 = vadd.f32 %v13206_v41, %v3842_v21 }
 0x629   : > { %v3890_v45 = vsel %vm655_vm6, %v13266_v46, -inf }
 0x62a   : > { %3891 = vmax.xlane.f32.xlu0 %v3890_v45 }
 0x62d   : > { %v3734_v7 = vpop.f32.mrf.mxu1 }
 0x62e   : > { %v3735_v35 = vadd.f32 %v13076_v23, %v3734_v7  ;;  %v3845_v50 = vpop.f32.mrf.mxu2 }
 0x62f   : > { %v13272_v31 = vadd.f32 %v13206_v41, %v3845_v50 }
 0x630   : > { %v3752_v44 = vmax.f32 %v3735_v35, 0.0 }
 0x631   : > { %v3893_v25 = vsel %vm655_vm6, %v13272_v31, -inf }
 0x632   : > { %10387 = vmatmul.msk.f32.gmra.mxu2 %vm541_vm5, %v3752_v44  ;;  %3894 = vmax.xlane.f32.xlu1 %v3893_v25 }
 0x635   : > { %v3868_v57 = vpop.xlane.xlu1 %3867 }
 0x636   : > { %v3914_v24 = vsub.f32 %v13209_v26, %v3868_v57  ;;  %v3848_v62 = vpop.f32.mrf.mxu2 }
 0x637   : > { %v13279_v55 = vadd.f32 %v13206_v41, %v3848_v62 }
 0x638   : > { %v3930_v39 = vmul.f32 1.442695, %v3914_v24 }
 0x639   : > { %v3896_v23 = vsel %vm655_vm6, %v13279_v55, -inf }
 0x63a   : > { %10893 = vpow2.f32 %v3930_v39  ;;  %3897 = vmax.xlane.f32.xlu2 %v3896_v23 }
 0x640   : > { %v13283_v63 = vpop.eup %10893 }
 0x641   : > { %v3962_v36 = vsel %vm655_vm6, %v13283_v63, 0.0 }
 0x642   : > { %3963 = vadd.xlane.f32.xlu2 %v3962_v36 }
 0x643   : > { %v3871_v49 = vpop.xlane.xlu2 %3870 }
 0x644   : > { %v3915_v3 = vsub.f32 %v13224_v13, %v3871_v49 }
 0x646   : > { %v3932_v26 = vmul.f32 1.442695, %v3915_v3 }
 0x648   : > { %10895 = vpow2.f32 %v3932_v26 }
 0x64c   : > { %v3874_v57 = vpop.xlane.xlu0 %3873 }
 0x64d   : > { %v3916_v24 = vsub.f32 %v13231_v9, %v3874_v57 }
 0x64e   : > { %v13288_v37 = vpop.eup %10895 }
 0x64f   : > { %v3965_v48 = vsel %vm655_vm6, %v13288_v37, 0.0  ;;  %v3934_v62 = vmul.f32 1.442695, %v3916_v24 }
 0x650   : > { %3966 = vadd.xlane.f32.xlu2 %v3965_v48 }
 0x664   : > { %v3851_v28 = vpop.f32.mrf.mxu2 }
 0x665   : > { %v13293_v21 = vadd.f32 %v13206_v41, %v3851_v28 }
 0x667   : > { %v3899_v45 = vsel %vm655_vm6, %v13293_v21, -inf }
 0x668   : > { %3900 = vmax.xlane.f32.xlu0 %v3899_v45 }
 0x671   : > { %v3854_v7 = vpop.f32.mrf.mxu2 }
 0x672   : > { %v13298_v35 = vadd.f32 %v13206_v41, %v3854_v7 }
 0x674   : > { %v3902_v13 = vsel %vm655_vm6, %v13298_v35, -inf }
 0x675   : > { %3903 = vmax.xlane.f32.xlu1 %v3902_v13 }
 0x677   : > { %v3880_v44 = vpop.xlane.xlu2 %3879 }
 0x678   : > { %v3918_v50 = vsub.f32 %v3831_v27, %v3880_v44 }
 0x67a   : > { %v3938_v25 = vmul.f32 1.442695, %v3918_v50  ;;  %v3877_v50 = vpop.xlane.xlu1 %3876 }
 0x67c   : > { %10897 = vpow2.f32 %v3938_v25  ;;  %v3917_v25 = vsub.f32 %v13240_v16, %v3877_v50 }
 0x67d   : > { %10899 = vpow2.f32 %v3934_v62 }
 0x67f   : > { %v3883_v23 = vpop.xlane.xlu0 %3882 }
 0x680   : > { %v3919_v27 = vsub.f32 %v13249_v29, %v3883_v23  ;;  %v3936_v23 = vmul.f32 1.442695, %v3917_v25 }
 0x682   : > { %v13303_v39 = vpop.eup %10897  ;;  %v3940_v9 = vmul.f32 1.442695, %v3919_v27 }
 0x683   : > { %v3974_v36 = vsel %vm655_vm6, %v13303_v39, 0.0  ;;  %v13313_v48 = vpop.eup %10899 }
 0x684   : > { %v3857_v49 = vpop.f32.mrf.mxu2  ;;  %3975 = vadd.xlane.f32.xlu2 %v3974_v36  ;;  %10901 = vpow2.f32 %v3940_v9  ;;  %v3968_v28 = vsel %vm655_vm6, %v13313_v48, 0.0 }
 0x685   : > { %v13308_v3 = vadd.f32 %v13206_v41, %v3857_v49 }
 0x687   : > { %v3905_v26 = vsel %vm655_vm6, %v13308_v3, -inf  ;;  %v3886_v62 = vpop.xlane.xlu1 %3885 }
 0x688   : > { %3906 = vmax.xlane.f32.xlu0 %v3905_v26  ;;  %v3920_v49 = vsub.f32 %v13254_v1, %v3886_v62 }
 0x68a   : > { %v13317_v45 = vpop.eup %10901  ;;  %v3942_v26 = vmul.f32 1.442695, %v3920_v49 }
 0x68b   : > { %v3977_v29 = vsel %vm655_vm6, %v13317_v45, 0.0 }
 0x690   : > { %3969 = vadd.xlane.f32.xlu0 %v3968_v28 }
 0x695   : > { %v3889_v7 = vpop.xlane.xlu2 %3888 }
 0x696   : > { %v3921_v13 = vsub.f32 %v13260_v42, %v3889_v7 }
 0x698   : > { %v3944_v44 = vmul.f32 1.442695, %v3921_v13  ;;  %3978 = vadd.xlane.f32.xlu0 %v3977_v29 }
 0x69a   : > { %10903 = vpow2.f32 %v3944_v44 }
 0x69b   : > { %10905 = vpow2.f32 %v3936_v23 }
 0x69c   : > { %10907 = vpow2.f32 %v3942_v26 }
 0x69d   : > { %v3892_v9 = vpop.xlane.xlu0 %3891 }
 0x69e   : > { %v3922_v44 = vsub.f32 %v13266_v46, %v3892_v9 }
 0x6a0   : > { %v13323_v57 = vpop.eup %10903 }
 0x6a1   : > { %v3983_v24 = vsel %vm655_vm6, %v13323_v57, 0.0  ;;  %v13333_v28 = vpop.eup %10905 }
 0x6a2   : > { %3984 = vadd.xlane.f32.xlu0 %v3983_v24  ;;  %v3971_v1 = vsel %vm655_vm6, %v13333_v28, 0.0  ;;  %v3946_v24 = vmul.f32 1.442695, %v3922_v44 }
 0x6a5   : > { %v3860_v36 = vpop.f32.mrf.mxu2  ;;  %v3895_v16 = vpop.xlane.xlu1 %3894 }
 0x6a6   : > { %v13328_v42 = vadd.f32 %v13206_v41, %v3860_v36  ;;  %v3923_v7 = vsub.f32 %v13272_v31, %v3895_v16  ;;  %v13343_v36 = vpop.eup %10907 }
 0x6a7   : > { %v3980_v49 = vsel %vm655_vm6, %v13343_v36, 0.0 }
 0x6a8   : > { %v3908_v27 = vsel %vm655_vm6, %v13328_v42, -inf  ;;  %v3948_v25 = vmul.f32 1.442695, %v3923_v7 }
 0x6a9   : > { %3909 = vmax.xlane.f32.xlu1 %v3908_v27 }
 0x6ad   : > { %v3898_v13 = vpop.xlane.xlu2 %3897 }
 0x6ae   : > { %v3924_v29 = vsub.f32 %v13279_v55, %v3898_v13 }
 0x6b0   : > { %v3950_v50 = vmul.f32 1.442695, %v3924_v29 }
 0x6b1   : > { %3972 = vadd.xlane.f32.xlu1 %v3971_v1 }
 0x6b2   : > { %10909 = vpow2.f32 %v3950_v50 }
 0x6b3   : > { %10911 = vpow2.f32 %v3948_v25 }
 0x6b5   : > { %v3863_v62 = vpop.f32.mrf.mxu2  ;;  %v3964_v31 = vpop.xlane.xlu2 %3963 }
 0x6b6   : > { %v13341_v23 = vadd.f32 %v13206_v41, %v3863_v62  ;;  %10913 = vrcp.f32 %v3964_v31 }
 0x6b7   : > { %10915 = vpow2.f32 %v3946_v24 }
 0x6b8   : > { %v3911_v46 = vsel %vm655_vm6, %v13341_v23, -inf  ;;  %v13347_v55 = vpop.eup %10909 }
 0x6b9   : > { %3912 = vmax.xlane.f32.xlu2 %v3911_v46  ;;  %3981 = vadd.xlane.f32.xlu1 %v3980_v49  ;;  %v3992_v41 = vsel %vm655_vm6, %v13347_v55, 0.0  ;;  %v13353_v27 = vpop.eup %10911 }
 0x6ba   : > { %3993 = vadd.xlane.f32.xlu0 %v3992_v41  ;;  %v3989_v7 = vsel %vm655_vm6, %v13353_v27, 0.0 }
 0x6bc   : > { %v10914_v16 = vpop.eup %10913 }
 0x6bd   : > { %v13355_v26 = vpop.eup %10915  ;;  %v4026_v9 = vmul.f32 %v10914_v16, %v13283_v63 }
 0x6be   : > { %v3986_v44 = vsel %vm655_vm6, %v13355_v26, 0.0 }
 0x6bf   : > { %v4186_v13 = vsel %vm655_vm6, %v4026_v9, 0.0 }
 0x6c0   : > { %v4187_v29 = vrot.slane %v4186_v13, 4 }
 0x6c1   : > { %3990 = vadd.xlane.f32.xlu2 %v3989_v7  ;;  %3987 = vadd.xlane.f32.xlu1 %v3986_v44 }
 0x6c2   : > { %v4188_v1 = vadd.f32 %v4187_v29, %v4186_v13 }
 0x6c3   : > { %v3967_v50 = vpop.xlane.xlu2 %3966 }
 0x6c4   : > { %10917 = vrcp.f32 %v3967_v50  ;;  %v4189_v25 = vrot.slane %v4188_v1, 2 }
 0x6c6   : > { %v4190_v24 = vadd.f32 %v4189_v25, %v4188_v1 }
 0x6c8   : > { %v4191_v31 = vrot.slane %v4190_v24, 1 }
 0x6ca   : > { %v10918_v62 = vpop.eup %10917  ;;  %v4192_v46 = vadd.f32 %v4191_v31, %v4190_v24  ;;  %v13371_v24 = vpop.f32.mrf.mxu0 }
 0x6cb   : > { %v4027_v63 = vmul.f32 %v10918_v62, %v13288_v37 }
 0x6cc   : > { %v4298_v41 = vmul.f32 %v4192_v46, %v16033_v47 }
 0x6cd   : > { %v4193_v49 = vsel %vm655_vm6, %v4027_v63, 0.0 }
 0x6ce   : > { %v4194_v16 = vrot.slane %v4193_v49, 4  ;;  %v4314_v7 = vsub.f32 %v4026_v9, %v4298_v41 }
 0x6d0   : > { %v4195_v52 = vadd.f32 %v4194_v16, %v4193_v49  ;;  %10420 = vmatpush.xpose.msk.msra.mxu3 %vm655_vm6, %v4314_v7 }
 0x6d2   : > { %v4196_v0 = vrot.slane %v4195_v52, 2 }
 0x6d3   : > { %10421 = vmatmul.msk.f32.vlgmr.msra.gmra.mxu3 %vm655_vm6, %v4314_v7 }
 0x6d4   : > { %v4197_v44 = vadd.f32 %v4196_v0, %v4195_v52  ;;  %v13376_v52 = vpop.f32.mrf.mxu0 }
 0x6d6   : > { %v4198_v13 = vrot.slane %v4197_v44, 1 }
 0x6d8   : > { %v4199_v29 = vadd.f32 %v4198_v13, %v4197_v44 }
 0x6da   : > { %v4299_v50 = vmul.f32 %v4199_v29, %v16033_v47 }
 0x6db   : > { %v3901_v37 = vpop.xlane.xlu0 %3900 }
 0x6dc   : > { %v4315_v1 = vsub.f32 %v4027_v63, %v4299_v50  ;;  %v3925_v25 = vsub.f32 %v13293_v21, %v3901_v37  ;;  %v13383_v49 = vpop.f32.mrf.mxu0 }
 0x6de   : > { %10422 = vmatpush.xpose.msk.msrb.mxu0 %vm655_vm6, %v4315_v1  ;;  %v3952_v9 = vmul.f32 1.442695, %v3925_v25 }
 0x6e0   : > { %10919 = vpow2.f32 %v3952_v9 }
 0x6e1   : > { %10423 = vmatmul.msk.f32.vlgmr.msrb.gmra.mxu0 %vm655_vm6, %v4315_v1 }
 0x6e4   : > { %v13387_v44 = vpop.f32.mrf.mxu0 }
 0x6e6   : > { %v13374_v62 = vpop.eup %10919 }
 0x6e7   : > { %v3995_v31 = vsel %vm655_vm6, %v13374_v62, 0.0 }
 0x6e8   : > { %v3904_v0 = vpop.xlane.xlu1 %3903  ;;  %3996 = vadd.xlane.f32.xlu1 %v3995_v31 }
 0x6e9   : > { %v3926_v63 = vsub.f32 %v13298_v35, %v3904_v0 }
 0x6eb   : > { %v3954_v46 = vmul.f32 1.442695, %v3926_v63 }
 0x6ec   : > { %v13394_v31 = vpop.f32.mrf.mxu0 }
 0x6ed   : > { %10921 = vpow2.f32 %v3954_v46  ;;  %v13398_v46 = vpop.f32.mrf.mxu3 }
 0x6f3   : > { %v13381_v21 = vpop.eup %10921 }
 0x6f4   : > { %v3998_v41 = vsel %vm655_vm6, %v13381_v21, 0.0 }
 0x6f5   : > { %3999 = vadd.xlane.f32.xlu2 %v3998_v41 }
 0x6f7   : > { %v3976_v16 = vpop.xlane.xlu2 %3975 }
 0x6f8   : > { %10923 = vrcp.f32 %v3976_v16  ;;  %v5226_v16 = vmul.f32 %v13398_v46, %v13398_v46 }
 0x6fb   : > { %v3907_v7 = vpop.xlane.xlu0 %3906 }
 0x6fc   : > { %v3927_v13 = vsub.f32 %v13308_v3, %v3907_v7 }
 0x6fe   : > { %v10924_v29 = vpop.eup %10923  ;;  %v3956_v35 = vmul.f32 1.442695, %v3927_v13 }
 0x6ff   : > { %v4030_v50 = vmul.f32 %v10924_v29, %v13303_v39 }
 0x700   : > { %10925 = vpow2.f32 %v3956_v35 }
 0x701   : > { %v4214_v1 = vsel %vm655_vm6, %v4030_v50, 0.0 }
 0x702   : > { %v4215_v37 = vrot.slane %v4214_v1, 4 }
 0x703   : > { %v3970_v25 = vpop.xlane.xlu0 %3969 }
 0x704   : > { %10927 = vrcp.f32 %v3970_v25  ;;  %v4216_v9 = vadd.f32 %v4215_v37, %v4214_v1  ;;  %v5242_v1 = vsel %vm1879_vm7, %v5226_v16, 0.0  ;;  %v13405_v37 = vpop.f32.mrf.mxu0 }
 0x706   : > { %v13392_v0 = vpop.eup %10925  ;;  %v4217_v3 = vrot.slane %v4216_v9, 2 }
 0x707   : > { %v4001_v63 = vsel %vm655_vm6, %v13392_v0, 0.0 }
 0x708   : > { %4002 = vadd.xlane.f32.xlu0 %v4001_v63  ;;  %v4218_v7 = vadd.f32 %v4217_v3, %v4216_v9 }
 0x70a   : > { %v10928_v41 = vpop.eup %10927  ;;  %v4219_v30 = vrot.slane %v4218_v7, 1 }
 0x70b   : > { %v4028_v39 = vmul.f32 %v10928_v41, %v13313_v48  ;;  %v3979_v29 = vpop.xlane.xlu0 %3978  ;;  %v5237_v48 = vmul.f32 %v13405_v37, %v13405_v37 }
 0x70c   : > { %10929 = vrcp.f32 %v3979_v29  ;;  %v4220_v56 = vadd.f32 %v4219_v30, %v4218_v7 }
 0x70d   : > { %v4200_v13 = vsel %vm655_vm6, %v4028_v39, 0.0  ;;  %v5275_v3 = vsel %vm1879_vm7, %v5237_v48, 0.0 }
 0x70e   : > { %v4201_v35 = vrot.slane %v4200_v13, 4  ;;  %v4302_v16 = vmul.f32 %v4220_v56, %v16033_v47 }
 0x710   : > { %v4202_v25 = vadd.f32 %v4201_v35, %v4200_v13  ;;  %5243 = vadd.xlane.f32.xlu0 %v5242_v1  ;;  %v13415_v1 = vpop.f32.mrf.mxu3  ;;  %v4318_v7 = vsub.f32 %v4030_v50, %v4302_v16 }
 0x712   : > { %v4203_v63 = vrot.slane %v4202_v25, 2  ;;  %v10930_v15 = vpop.eup %10929 }
 0x713   : > { %v13413_v35 = vmul.f32 %v10930_v15, %v13317_v45 }
 0x714   : > { %v4204_v41 = vadd.f32 %v4203_v63, %v4202_v25 }
 0x715   : > { %v3985_v54 = vpop.xlane.xlu0 %3984  ;;  %v4221_v56 = vsel %vm655_vm6, %v13413_v35, 0.0 }
 0x716   : > { %v4205_v9 = vrot.slane %v4204_v41, 1  ;;  %10931 = vrcp.f32 %v3985_v54  ;;  %v4222_v15 = vrot.slane %v4221_v56, 4 }
 0x718   : > { %v4206_v38 = vadd.f32 %v4205_v9, %v4204_v41  ;;  %5276 = vadd.xlane.f32.xlu0 %v5275_v3  ;;  %v13428_v50 = vpop.f32.mrf.mxu3 }
 0x71a   : > { %v4300_v13 = vmul.f32 %v4206_v38, %v16033_v47 }
 0x71c   : > { %v10932_v29 = vpop.eup %10931  ;;  %v4316_v25 = vsub.f32 %v4028_v39, %v4300_v13  ;;  %v3910_v30 = vpop.xlane.xlu1 %3909  ;;  %v4223_v39 = vadd.f32 %v4222_v15, %v4221_v56 }
 0x71d   : > { %v3928_v54 = vsub.f32 %v13328_v42, %v3910_v30  ;;  %v13419_v63 = vmul.f32 %v10932_v29, %v13323_v57 }
 0x71e   : > { %10424 = vmatpush.xpose.msk.msrb.mxu3 %vm655_vm6, %v4316_v25  ;;  %v4224_v3 = vrot.slane %v4223_v39, 2 }
 0x71f   : > { %v3958_v38 = vmul.f32 1.442695, %v3928_v54  ;;  %v4235_v45 = vsel %vm655_vm6, %v13419_v63, 0.0 }
 0x720   : > { %v4236_v57 = vrot.slane %v4235_v45, 4 }
 0x721   : > { %10933 = vpow2.f32 %v3958_v38  ;;  %10425 = vmatmul.msk.f32.vlgmr.msrb.gmra.mxu3 %vm655_vm6, %v4316_v25  ;;  %v13436_v25 = vpop.f32.mrf.mxu3 }
 0x722   : > { %10428 = vmatpush.xpose.msk.msra.mxu3 %vm655_vm6, %v4318_v7  ;;  %v4237_v9 = vadd.f32 %v4236_v57, %v4235_v45 }
 0x724   : > { %v3973_v42 = vpop.xlane.xlu1 %3972  ;;  %v4238_v56 = vrot.slane %v4237_v9, 2 }
 0x725   : > { %10935 = vrcp.f32 %v3973_v42  ;;  %v4225_v42 = vadd.f32 %v4224_v3, %v4223_v39 }
 0x726   : > { %v4239_v57 = vadd.f32 %v4238_v56, %v4237_v9 }
 0x727   : > { %v13430_v48 = vpop.eup %10933  ;;  %v4226_v32 = vrot.slane %v4225_v42, 1 }
 0x728   : > { %v4004_v41 = vsel %vm655_vm6, %v13430_v48, 0.0  ;;  %v4240_v39 = vrot.slane %v4239_v57, 1 }
 0x729   : > { %10429 = vmatmul.msk.f32.vlgmr.msra.gmra.mxu3 %vm655_vm6, %v4318_v7  ;;  %4005 = vadd.xlane.f32.xlu1 %v4004_v41  ;;  %v4227_v9 = vadd.f32 %v4226_v32, %v4225_v42  ;;  %v5227_v42 = vmul.f32 %v13371_v24, %v13371_v24 }
 0x72a   : > { %v4241_v59 = vadd.f32 %v4240_v39, %v4239_v57 }
 0x72b   : > { %v10936_v13 = vpop.eup %10935 }
 0x72c   : > { %v3913_v16 = vpop.xlane.xlu2 %3912  ;;  %v4029_v30 = vmul.f32 %v10936_v13, %v13333_v28  ;;  %v3982_v54 = vpop.xlane.xlu1 %3981  ;;  %v4305_v57 = vmul.f32 %v4241_v59, %v16033_v47 }
 0x72d   : > { %v3929_v29 = vsub.f32 %v13341_v23, %v3913_v16  ;;  %10937 = vrcp.f32 %v3982_v54  ;;  %v3994_v15 = vpop.xlane.xlu0 %3993  ;;  %v13440_v28 = vpop.f32.mrf.mxu3 }
 0x72e   : > { %v4207_v45 = vsel %vm655_vm6, %v4029_v30, 0.0  ;;  %10939 = vrcp.f32 %v3994_v15 }
 0x72f   : > { %v3960_v38 = vmul.f32 1.442695, %v3929_v29  ;;  %v4208_v7 = vrot.slane %v4207_v45, 4 }
 0x731   : > { %10941 = vpow2.f32 %v3960_v38  ;;  %v4209_v41 = vadd.f32 %v4208_v7, %v4207_v45 }
 0x733   : > { %v10938_v23 = vpop.eup %10937  ;;  %v4210_v16 = vrot.slane %v4209_v41, 2 }
 0x734   : > { %v3991_v2 = vpop.xlane.xlu2 %3990  ;;  %v10940_v6 = vpop.eup %10939  ;;  %v4032_v13 = vmul.f32 %v10938_v23, %v13343_v36 }
 0x735   : > { %10943 = vrcp.f32 %v3991_v2  ;;  %v3988_v29 = vpop.xlane.xlu1 %3987  ;;  %v4211_v3 = vadd.f32 %v4210_v16, %v4209_v41  ;;  %v13446_v15 = vmul.f32 %v10940_v6, %v13347_v55  ;;  %v4303_v6 = vmul.f32 %v4227_v9, %v16033_v47 }
 0x736   : > { %10945 = vrcp.f32 %v3988_v29  ;;  %v4228_v56 = vsel %vm655_vm6, %v4032_v13, 0.0 }
 0x737   : > { %v13443_v54 = vpop.eup %10941  ;;  %v4212_v38 = vrot.slane %v4211_v3, 1  ;;  %v4229_v45 = vrot.slane %v4228_v56, 4  ;;  %v4256_v36 = vsel %vm655_vm6, %v13446_v15, 0.0 }
 0x738   : > { %v4007_v2 = vsel %vm655_vm6, %v13443_v54, 0.0  ;;  %v4257_v7 = vrot.slane %v4256_v36, 4 }
 0x739   : > { %4008 = vadd.xlane.f32.xlu2 %v4007_v2  ;;  %v4213_v41 = vadd.f32 %v4212_v38, %v4211_v3  ;;  %v4230_v16 = vadd.f32 %v4229_v45, %v4228_v56  ;;  %v13461_v56 = vpop.f32.mrf.mxu3 }
 0x73a   : > { %v4258_v55 = vadd.f32 %v4257_v7, %v4256_v36  ;;  %v5245_v36 = vsel %vm1879_vm7, %v5227_v42, 0.0 }
 0x73b   : > { %v10944_v23 = vpop.eup %10943  ;;  %v4301_v4 = vmul.f32 %v4213_v41, %v16033_v47  ;;  %v4231_v61 = vrot.slane %v4230_v16, 2 }
 0x73c   : > { %v4035_v32 = vmul.f32 %v10944_v23, %v13353_v27  ;;  %v10946_v29 = vpop.eup %10945  ;;  %v4259_v58 = vrot.slane %v4258_v55, 2  ;;  %v4319_v27 = vsub.f32 %v13413_v35, %v4303_v6 }
 0x73d   : > { %v4034_v22 = vmul.f32 %v10946_v29, %v13355_v26  ;;  %v4317_v39 = vsub.f32 %v4029_v30, %v4301_v4  ;;  %v4232_v3 = vadd.f32 %v4231_v61, %v4230_v16  ;;  %v4321_v61 = vsub.f32 %v13419_v63, %v4305_v57 }
 0x73e   : > { %v4249_v2 = vsel %vm655_vm6, %v4035_v32, 0.0  ;;  %v4260_v38 = vadd.f32 %v4259_v58, %v4258_v55  ;;  %v5228_v58 = vmul.f32 %v13415_v1, %v13415_v1 }
 0x73f   : > { %v4250_v9 = vrot.slane %v4249_v2, 4  ;;  %v4242_v45 = vsel %vm655_vm6, %v4034_v22, 0.0  ;;  %v4233_v7 = vrot.slane %v4232_v3, 1  ;;  %10426 = vmatpush.xpose.msk.msra.mxu0 %vm655_vm6, %v4317_v39 }
 0x740   : > { %v4243_v41 = vrot.slane %v4242_v45, 4  ;;  %v4261_v30 = vrot.slane %v4260_v38, 1  ;;  %v5248_v57 = vsel %vm1879_vm7, %v5228_v58, 0.0 }
 0x741   : > { %v4251_v23 = vadd.f32 %v4250_v9, %v4249_v2  ;;  %5246 = vadd.xlane.f32.xlu2 %v5245_v36  ;;  %v4234_v4 = vadd.f32 %v4233_v7, %v4232_v3  ;;  %v13474_v2 = vpop.f32.mrf.mxu3  ;;  %v13479_v36 = vpop.f32.mrf.mxu0 }
 0x742   : > { %v4244_v26 = vadd.f32 %v4243_v41, %v4242_v45  ;;  %10427 = vmatmul.msk.f32.vlgmr.msra.gmra.mxu0 %vm655_vm6, %v4317_v39  ;;  %v4262_v63 = vadd.f32 %v4261_v30, %v4260_v38 }
 0x743   : > { %10430 = vmatpush.xpose.msk.msrb.mxu0 %vm655_vm6, %v4319_v27  ;;  %v4252_v59 = vrot.slane %v4251_v23, 2  ;;  %v4304_v35 = vmul.f32 %v4234_v4, %v16033_v47 }
 0x744   : > { %v4245_v6 = vrot.slane %v4244_v26, 2  ;;  %v4308_v7 = vmul.f32 %v4262_v63, %v16033_v47 }
 0x745   : > { %v4253_v16 = vadd.f32 %v4252_v59, %v4251_v23  ;;  %v4320_v55 = vsub.f32 %v4032_v13, %v4304_v35  ;;  %v5229_v13 = vmul.f32 %v13376_v52, %v13376_v52 }
 0x746   : > { %v4246_v29 = vadd.f32 %v4245_v6, %v4244_v26  ;;  %v4324_v59 = vsub.f32 %v13446_v15, %v4308_v7 }
 0x747   : > { %10434 = vmatpush.xpose.msk.msra.mxu0 %vm655_vm6, %v4321_v61  ;;  %v4254_v42 = vrot.slane %v4253_v16, 1  ;;  %10432 = vmatpush.xpose.msk.msrb.mxu3 %vm655_vm6, %v4320_v55  ;;  %v5251_v26 = vsel %vm1879_vm7, %v5229_v13, 0.0 }
 0x748   : > { %v4247_v9 = vrot.slane %v4246_v29, 1 }
 0x749   : > { %v4255_v3 = vadd.f32 %v4254_v42, %v4253_v16  ;;  %5249 = vadd.xlane.f32.xlu2 %v5248_v57  ;;  %v13488_v4 = vpop.f32.mrf.mxu3  ;;  %v5232_v57 = vmul.f32 %v13436_v25, %v13436_v25 }
 0x74a   : > { %v4248_v45 = vadd.f32 %v4247_v9, %v4246_v29  ;;  %10431 = vmatmul.msk.f32.vlgmr.msrb.gmra.mxu0 %vm655_vm6, %v4319_v27  ;;  %10433 = vmatmul.msk.f32.vlgmr.msrb.gmra.mxu3 %vm655_vm6, %v4320_v55 }
 0x74b   : > { %v4307_v39 = vmul.f32 %v4255_v3, %v16033_v47  ;;  %v5260_v7 = vsel %vm1879_vm7, %v5232_v57, 0.0 }
 0x74c   : > { %v4306_v23 = vmul.f32 %v4248_v45, %v16033_v47 }
 0x74d   : > { %v4323_v38 = vsub.f32 %v4035_v32, %v4307_v39  ;;  %v13498_v32 = vpop.f32.mrf.mxu0 }
 0x74e   : > { %v4322_v41 = vsub.f32 %v4034_v22, %v4306_v23  ;;  %v5230_v22 = vmul.f32 %v13428_v50, %v13428_v50 }
 0x74f   : > { %10438 = vmatpush.xpose.msk.msrb.mxu0 %vm655_vm6, %v4323_v38 }
 0x750   : > { %10436 = vmatpush.xpose.msk.msra.mxu3 %vm655_vm6, %v4322_v41  ;;  %v5254_v30 = vsel %vm1879_vm7, %v5230_v22, 0.0 }
 0x751   : > { %5252 = vadd.xlane.f32.xlu2 %v5251_v26 }
 0x752   : > { %10435 = vmatmul.msk.f32.vlgmr.msra.gmra.mxu0 %vm655_vm6, %v4321_v61  ;;  %v5231_v61 = vmul.f32 %v13383_v49, %v13383_v49 }
 0x753   : > { %10437 = vmatmul.msk.f32.vlgmr.msra.gmra.mxu3 %vm655_vm6, %v4322_v41 }
 0x754   : > { %10440 = vmatpush.xpose.msk.msrb.mxu3 %vm655_vm6, %v4324_v59  ;;  %v5257_v42 = vsel %vm1879_vm7, %v5231_v61, 0.0 }
 0x756   : > { %v4718_v27 = vpop.f32.mrf.mxu3 }
 0x757   : > { %10452 = vmatmul.msk.f32.vlgmr.msrb.gmra.mxu1 %vm1879_vm7, %v4718_v27  ;;  %v5386_v15 = vmul.f32 %v4718_v27, %v4718_v27  ;;  %v5066_v6 = vmul.f32 %v4718_v27, %v13398_v46 }
 0x758   : > { %5748 = vmatpush.msrb.mxu1 %v13051_v8 }
 0x759   : > { %5255 = vadd.xlane.f32.xlu2 %v5254_v30  ;;  %v5402_v58 = vsel %vm1879_vm7, %v5386_v15, 0.0  ;;  %v5082_v63 = vsel %vm1879_vm7, %v5066_v6, 0.0 }
 0x75a   : > { %5403 = vadd.xlane.f32.xlu1 %v5402_v58  ;;  %10439 = vmatmul.msk.f32.vlgmr.msrb.gmra.mxu0 %vm655_vm6, %v4323_v38 }
 0x75b   : > { %10441 = vmatmul.msk.f32.vlgmr.msrb.gmra.mxu3 %vm655_vm6, %v4324_v59  ;;  %v3997_v35 = vpop.xlane.xlu1 %3996  ;;  %v5233_v59 = vmul.f32 %v13387_v44, %v13387_v44 }
 0x75c   : > { %10947 = vrcp.f32 %v3997_v35 }
 0x75d   : > { %v5263_v27 = vsel %vm1879_vm7, %v5233_v59, 0.0 }
 0x75e   : > { %v4741_v16 = vpop.f32.mrf.mxu0 }
 0x75f   : > { %10453 = vmatmul.msk.f32.vlgmr.msra.gmra.mxu2 %vm1879_vm7, %v4741_v16  ;;  %v5387_v55 = vmul.f32 %v4741_v16, %v4741_v16  ;;  %v5067_v39 = vmul.f32 %v4741_v16, %v13371_v24  ;;  %v5234_v16 = vmul.f32 %v13440_v28, %v13440_v28 }
 0x760   : > { %5771 = vmatpush.msra.mxu2 %v13163_v11 }
 0x761   : > { %5258 = vadd.xlane.f32.xlu2 %v5257_v42  ;;  %v5405_v29 = vsel %vm1879_vm7, %v5387_v55, 0.0  ;;  %v5085_v41 = vsel %vm1879_vm7, %v5067_v39, 0.0 }
 0x762   : > { %5406 = vadd.xlane.f32.xlu0 %v5405_v29  ;;  %5083 = vadd.xlane.f32.xlu1 %v5082_v63  ;;  %v10948_v3 = vpop.eup %10947  ;;  %v5266_v63 = vsel %vm1879_vm7, %v5234_v16, 0.0 }
 0x763   : > { %v4037_v9 = vmul.f32 %v10948_v3, %v13374_v62  ;;  %v5235_v3 = vmul.f32 %v13394_v31, %v13394_v31 }
 0x765   : > { %v4263_v45 = vsel %vm655_vm6, %v4037_v9, 0.0 }
 0x766   : > { %v4264_v13 = vrot.slane %v4263_v45, 4 }
 0x768   : > { %v4000_v38 = vpop.xlane.xlu2 %3999  ;;  %v4265_v23 = vadd.f32 %v4264_v13, %v4263_v45 }
 0x769   : > { %5261 = vadd.xlane.f32.xlu2 %v5260_v7  ;;  %10949 = vrcp.f32 %v4000_v38 }
 0x76a   : > { %5086 = vadd.xlane.f32.xlu1 %v5085_v41  ;;  %v4266_v26 = vrot.slane %v4265_v23, 2 }
 0x76c   : > { %v4267_v22 = vadd.f32 %v4266_v26, %v4265_v23  ;;  %v5236_v23 = vmul.f32 %v13461_v56, %v13461_v56 }
 0x76e   : > { %v4268_v30 = vrot.slane %v4267_v22, 1 }
 0x76f   : > { %v10950_v62 = vpop.eup %10949 }
 0x770   : > { %v4038_v15 = vmul.f32 %v10950_v62, %v13381_v21  ;;  %v4269_v58 = vadd.f32 %v4268_v30, %v4267_v22  ;;  %v5272_v22 = vsel %vm1879_vm7, %v5236_v23, 0.0 }
 0x771   : > { %5264 = vadd.xlane.f32.xlu2 %v5263_v27 }
 0x772   : > { %v4270_v61 = vsel %vm655_vm6, %v4038_v15, 0.0  ;;  %v4309_v6 = vmul.f32 %v4269_v58, %v16033_v47 }
 0x773   : > { %v4271_v35 = vrot.slane %v4270_v61, 4 }
 0x774   : > { %v4325_v42 = vsub.f32 %v4037_v9, %v4309_v6  ;;  %v5269_v9 = vsel %vm1879_vm7, %v5235_v3, 0.0 }
 0x775   : > { %v4272_v55 = vadd.f32 %v4271_v35, %v4270_v61 }
 0x776   : > { %10442 = vmatpush.xpose.msk.msra.mxu0 %vm655_vm6, %v4325_v42 }
 0x777   : > { %v4273_v29 = vrot.slane %v4272_v55, 2 }
 0x779   : > { %5267 = vadd.xlane.f32.xlu2 %v5266_v63  ;;  %v4274_v57 = vadd.f32 %v4273_v29, %v4272_v55  ;;  %10443 = vmatmul.msk.f32.vlgmr.msra.gmra.mxu0 %vm655_vm6, %v4325_v42 }
 0x77b   : > { %v4275_v21 = vrot.slane %v4274_v57, 1  ;;  %v4003_v39 = vpop.xlane.xlu0 %4002 }
 0x77c   : > { %10951 = vrcp.f32 %v4003_v39 }
 0x77d   : > { %v4276_v45 = vadd.f32 %v4275_v21, %v4274_v57 }
 0x77f   : > { %v4310_v7 = vmul.f32 %v4276_v45, %v16033_v47 }
 0x781   : > { %5270 = vadd.xlane.f32.xlu2 %v5269_v9  ;;  %v4326_v13 = vsub.f32 %v4038_v15, %v4310_v7 }
 0x782   : > { %v10952_v38 = vpop.eup %10951 }
 0x783   : > { %10444 = vmatpush.xpose.msk.msra.mxu3 %vm655_vm6, %v4326_v13  ;;  %v4039_v41 = vmul.f32 %v10952_v38, %v13392_v0 }
 0x785   : > { %v4277_v59 = vsel %vm655_vm6, %v4039_v41, 0.0 }
 0x786   : > { %10445 = vmatmul.msk.f32.vlgmr.msra.gmra.mxu3 %vm655_vm6, %v4326_v13  ;;  %v4278_v26 = vrot.slane %v4277_v59, 4 }
 0x788   : > { %v4279_v62 = vadd.f32 %v4278_v26, %v4277_v59 }
 0x789   : > { %5273 = vadd.xlane.f32.xlu2 %v5272_v22 }
 0x78a   : > { %v4280_v27 = vrot.slane %v4279_v62, 2 }
 0x78c   : > { %v4281_v30 = vadd.f32 %v4280_v27, %v4279_v62 }
 0x78e   : > { %v4282_v15 = vrot.slane %v4281_v30, 1 }
 0x790   : > { %v4283_v58 = vadd.f32 %v4282_v15, %v4281_v30 }
 0x792   : > { %v4311_v61 = vmul.f32 %v4283_v58, %v16033_v47 }
 0x794   : > { %v4327_v35 = vsub.f32 %v4039_v41, %v4311_v61 }
 0x796   : > { %10446 = vmatpush.xpose.msk.msrb.mxu0 %vm655_vm6, %v4327_v35 }
 0x799   : > { %10447 = vmatmul.msk.f32.vlgmr.msrb.gmra.mxu0 %vm655_vm6, %v4327_v35 }
 0x79c   : > { %v4006_v0 = vpop.xlane.xlu1 %4005 }
 0x79d   : > { %10953 = vrcp.f32 %v4006_v0 }
 0x7a3   : > { %v10954_v16 = vpop.eup %10953 }
 0x7a4   : > { %v4040_v6 = vmul.f32 %v10954_v16, %v13430_v48  ;;  %v4764_v55 = vpop.f32.mrf.mxu3 }
 0x7a5   : > { %v5388_v42 = vmul.f32 %v4764_v55, %v4764_v55  ;;  %v5068_v29 = vmul.f32 %v4764_v55, %v13415_v1 }
 0x7a6   : > { %v4284_v63 = vsel %vm655_vm6, %v4040_v6, 0.0 }
 0x7a7   : > { %v4285_v57 = vrot.slane %v4284_v63, 4  ;;  %v5408_v21 = vsel %vm1879_vm7, %v5388_v42, 0.0  ;;  %v5088_v3 = vsel %vm1879_vm7, %v5068_v29, 0.0 }
 0x7a8   : > { %5409 = vadd.xlane.f32.xlu0 %v5408_v21  ;;  %5089 = vadd.xlane.f32.xlu1 %v5088_v3 }
 0x7a9   : > { %v4286_v39 = vadd.f32 %v4285_v57, %v4284_v63 }
 0x7ab   : > { %v4287_v7 = vrot.slane %v4286_v39, 2 }
 0x7ac   : > { %v4009_v45 = vpop.xlane.xlu2 %4008  ;;  %v4810_v9 = vpop.f32.mrf.mxu3 }
 0x7ad   : > { %10955 = vrcp.f32 %v4009_v45  ;;  %v4288_v13 = vadd.f32 %v4287_v7, %v4286_v39  ;;  %10456 = vmatmul.msk.f32.vlgmr.msra.gmra.mxu1 %vm1879_vm7, %v4810_v9  ;;  %v5390_v63 = vmul.f32 %v4810_v9, %v4810_v9  ;;  %v5070_v21 = vmul.f32 %v4810_v9, %v13428_v50 }
 0x7ae   : > { %5840 = vmatpush.msra.mxu1 %v13104_v34 }
 0x7af   : > { %v4289_v48 = vrot.slane %v4288_v13, 1  ;;  %v5094_v3 = vsel %vm1879_vm7, %v5070_v21, 0.0 }
 0x7b1   : > { %v4290_v23 = vadd.f32 %v4289_v48, %v4288_v13 }
 0x7b3   : > { %v10956_v38 = vpop.eup %10955  ;;  %v4312_v59 = vmul.f32 %v4290_v23, %v16033_v47 }
 0x7b4   : > { %v4041_v41 = vmul.f32 %v10956_v38, %v13443_v54 }
 0x7b5   : > { %v4328_v22 = vsub.f32 %v4040_v6, %v4312_v59 }
 0x7b6   : > { %v4291_v26 = vsel %vm655_vm6, %v4041_v41, 0.0 }
 0x7b7   : > { %v4292_v62 = vrot.slane %v4291_v26, 4  ;;  %10448 = vmatpush.xpose.msk.msrb.mxu3 %vm655_vm6, %v4328_v22 }
 0x7b9   : > { %v4293_v27 = vadd.f32 %v4292_v62, %v4291_v26 }
 0x7ba   : > { %10449 = vmatmul.msk.f32.vlgmr.msrb.gmra.mxu3 %vm655_vm6, %v4328_v22 }
 0x7bb   : > { %5610 = vmatpush.msra.mxu3 %v12913_v33  ;;  %v4294_v30 = vrot.slane %v4293_v27, 2 }
 0x7bd   : > { %v4295_v15 = vadd.f32 %v4294_v30, %v4293_v27  ;;  %5702 = vmatpush.msrb.mxu3 %v12978_v10 }
 0x7bf   : > { %v4296_v58 = vrot.slane %v4295_v15, 1  ;;  %v4787_v54 = vpop.f32.mrf.mxu0 }
 0x7c0   : > { %v5389_v35 = vmul.f32 %v4787_v54, %v4787_v54  ;;  %v5069_v0 = vmul.f32 %v4787_v54, %v13376_v52 }
 0x7c1   : > { %v4297_v61 = vadd.f32 %v4296_v58, %v4295_v15 }
 0x7c2   : > { %10454 = vmatmul.msk.f32.vlgmr.msra.gmra.mxu3 %vm1879_vm7, %v4764_v55  ;;  %v5411_v6 = vsel %vm1879_vm7, %v5389_v35, 0.0  ;;  %v5091_v42 = vsel %vm1879_vm7, %v5069_v0, 0.0  ;;  %v5414_v55 = vsel %vm1879_vm7, %v5390_v63, 0.0 }
 0x7c3   : > { %v4313_v16 = vmul.f32 %v4297_v61, %v16033_v47  ;;  %5794 = vmatpush.msra.mxu3 %v13064_v12  ;;  %5412 = vadd.xlane.f32.xlu0 %v5411_v6 }
 0x7c4   : > { %5092 = vadd.xlane.f32.xlu1 %v5091_v42 }
 0x7c5   : > { %v4329_v29 = vsub.f32 %v4041_v41, %v4313_v16 }
 0x7c7   : > { %10450 = vmatpush.xpose.msk.msra.mxu0 %vm655_vm6, %v4329_v29  ;;  %v4833_v57 = vpop.f32.mrf.mxu0 }
 0x7c8   : > { %10457 = vmatmul.msk.f32.vlgmr.msrb.gmra.mxu2 %vm1879_vm7, %v4833_v57  ;;  %v5391_v45 = vmul.f32 %v4833_v57, %v4833_v57  ;;  %v5071_v9 = vmul.f32 %v4833_v57, %v13383_v49 }
 0x7c9   : > { %5863 = vmatpush.msrb.mxu2 %v13197_v40 }
 0x7ca   : > { %10451 = vmatmul.msk.f32.vlgmr.msra.gmra.mxu0 %vm655_vm6, %v4329_v29  ;;  %v5417_v13 = vsel %vm1879_vm7, %v5391_v45, 0.0  ;;  %v5097_v48 = vsel %vm1879_vm7, %v5071_v9, 0.0 }
 0x7cb   : > { %5633 = vmatpush.msrb.mxu0 %v13080_v14  ;;  %5415 = vadd.xlane.f32.xlu0 %v5414_v55 }
 0x7cc   : > { %5095 = vadd.xlane.f32.xlu1 %v5094_v3 }
 0x7cd   : > { %5725 = vmatpush.msra.mxu0 %v13153_v60  ;;  %v4856_v39 = vpop.f32.mrf.mxu3 }
 0x7ce   : > { %10458 = vmatmul.msk.f32.vlgmr.msrb.gmra.mxu3 %vm1879_vm7, %v4856_v39  ;;  %v5392_v23 = vmul.f32 %v4856_v39, %v4856_v39  ;;  %v5072_v59 = vmul.f32 %v4856_v39, %v13436_v25 }
 0x7cf   : > { %5886 = vmatpush.msrb.mxu3 %v13181_v51  ;;  %v4879_v7 = vpop.f32.mrf.mxu0 }
 0x7d0   : > { %v5420_v22 = vsel %vm1879_vm7, %v5392_v23, 0.0  ;;  %v5393_v30 = vmul.f32 %v4879_v7, %v4879_v7  ;;  %v5073_v15 = vmul.f32 %v4879_v7, %v13387_v44 }
 0x7d2   : > { %10455 = vmatmul.msk.f32.vlgmr.msrb.gmra.mxu0 %vm1879_vm7, %v4787_v54  ;;  %v5103_v58 = vsel %vm1879_vm7, %v5073_v15, 0.0 }
 0x7d3   : > { %5817 = vmatpush.msrb.mxu0 %v13186_v53  ;;  %5418 = vadd.xlane.f32.xlu0 %v5417_v13 }
 0x7d4   : > { %5098 = vadd.xlane.f32.xlu1 %v5097_v48 }
 0x7d6   : > { %v4902_v38 = vpop.f32.mrf.mxu3 }
 0x7d7   : > { %10460 = vmatmul.msk.f32.vlgmr.msrb.gmra.mxu1 %vm1879_vm7, %v4902_v38  ;;  %v4925_v41 = vpop.f32.mrf.mxu0  ;;  %v5394_v61 = vmul.f32 %v4902_v38, %v4902_v38  ;;  %v5074_v54 = vmul.f32 %v4902_v38, %v13440_v28 }
 0x7d8   : > { %5932 = vmatpush.msrb.mxu1 %v12842_v19  ;;  %10461 = vmatmul.msk.f32.vlgmr.msra.gmra.mxu2 %vm1879_vm7, %v4925_v41  ;;  %v5075_v26 = vmul.f32 %v4925_v41, %v13394_v31  ;;  %v5100_v19 = vsel %vm1879_vm7, %v5072_v59, 0.0  ;;  %v5395_v16 = vmul.f32 %v4925_v41, %v4925_v41 }
 0x7d9   : > { %5955 = vmatpush.msra.mxu2 %v12883_v5  ;;  %v5423_v5 = vsel %vm1879_vm7, %v5393_v30, 0.0  ;;  %v5426_v35 = vsel %vm1879_vm7, %v5394_v61, 0.0  ;;  %v5106_v0 = vsel %vm1879_vm7, %v5074_v54, 0.0 }
 0x7da   : > { %10459 = vmatmul.msk.f32.vlgmr.msra.gmra.mxu0 %vm1879_vm7, %v4879_v7  ;;  %v5109_v62 = vsel %vm1879_vm7, %v5075_v26, 0.0  ;;  %v5429_v6 = vsel %vm1879_vm7, %v5395_v16, 0.0 }
 0x7db   : > { %5909 = vmatpush.msra.mxu0 %v13215_v18  ;;  %5421 = vadd.xlane.f32.xlu0 %v5420_v22 }
 0x7dc   : > { %5110 = vadd.xlane.f32.xlu2 %v5109_v62  ;;  %5101 = vadd.xlane.f32.xlu1 %v5100_v19  ;;  %v13704_v62 = vpop.f32.mrf.mxu1 }
 0x7de   : > { %v4948_v27 = vpop.f32.mrf.mxu3 }
 0x7df   : > { %10462 = vmatmul.msk.f32.vlgmr.msra.gmra.mxu3 %vm1879_vm7, %v4948_v27  ;;  %v5076_v21 = vmul.f32 %v4948_v27, %v13461_v56 }
 0x7e0   : > { %5978 = vmatpush.msra.mxu3 %v12913_v33  ;;  %v5396_v33 = vmul.f32 %v4948_v27, %v4948_v27 }
 0x7e1   : > { %v5112_v55 = vsel %vm1879_vm7, %v5076_v21, 0.0 }
 0x7e2   : > { %v5432_v57 = vsel %vm1879_vm7, %v5396_v33, 0.0 }
 0x7e3   : > { %5424 = vadd.xlane.f32.xlu0 %v5423_v5 }
 0x7e4   : > { %5104 = vadd.xlane.f32.xlu1 %v5103_v58 }
 0x7eb   : > { %5427 = vadd.xlane.f32.xlu0 %v5426_v35 }
 0x7ec   : > { %5107 = vadd.xlane.f32.xlu1 %v5106_v0 }
 0x7f3   : > { %5430 = vadd.xlane.f32.xlu0 %v5429_v6 }
 0x7f6   : > { %v13602_v42 = vpop.f32.mrf.mxu0 }
 0x7f7   : > { %10463 = vmatmul.msk.f32.vlgmr.msrb.gmra.mxu0 %vm1879_vm7, %v13602_v42  ;;  %v5397_v29 = vmul.f32 %v13602_v42, %v13602_v42 }
 0x7f8   : > { %6001 = vmatpush.msrb.mxu0 %v13080_v14 }
 0x7f9   : > { %v5435_v63 = vsel %vm1879_vm7, %v5397_v29, 0.0 }
 0x7fa   : > { %5436 = vadd.xlane.f32.xlu1 %v5435_v63 }
 0x7fb   : > { %5433 = vadd.xlane.f32.xlu0 %v5432_v57 }
 0x803   : > { %5113 = vadd.xlane.f32.xlu0 %v5112_v55 }
 0x809   : > { %v13613_v3 = vpop.f32.mrf.mxu3 }
 0x80a   : > { %10464 = vmatmul.msk.f32.vlgmr.msra.gmra.mxu1 %vm1879_vm7, %v13613_v3  ;;  %v5398_v39 = vmul.f32 %v13613_v3, %v13613_v3 }
 0x80b   : > { %6024 = vmatpush.msra.mxu1 %v12948_v43  ;;  %v11189_v43 = vld [vmem:[%s15894_s1 + $0x18] sm:$0xff] }
 0x80c   : > { %v5438_v14 = vsel %vm1879_vm7, %v5398_v39, 0.0 }
 0x80d   : > { %5439 = vadd.xlane.f32.xlu2 %v5438_v14 }
 0x812   : > { %10468 = vmatmul.msk.f32.vlgmr.msrb.gmra.mxu1 %vm1879_vm7, %v13398_v46  ;;  %v5247_v46 = vpop.xlane.xlu2 %5246 }
 0x813   : > { %6116 = vmatpush.msrb.mxu1 %v13051_v8  ;;  %v11190_v8 = vld [vmem:[%s15894_s1 + $0x10] sm:$0xff]  ;;  %v5296_v59 = vrot.slane %v5247_v46, 4 }
 0x815   : > { %v5297_v27 = vadd.f32 %v5296_v59, %v5247_v46 }
 0x816   : > { %v13624_v45 = vpop.f32.mrf.mxu0 }
 0x817   : > { %10465 = vmatmul.msk.f32.vlgmr.msrb.gmra.mxu2 %vm1879_vm7, %v13624_v45  ;;  %v5298_v5 = vrot.slane %v5297_v27, 2 }
 0x818   : > { %6047 = vmatpush.msrb.mxu2 %v13133_v20  ;;  %v11192_v20 = vld [vmem:[%s15894_s1] sm:$0xff] }
 0x819   : > { %v5299_v16 = vadd.f32 %v5298_v5, %v5297_v27 }
 0x81a   : > { %10472 = vmatmul.msk.f32.vlgmr.msra.gmra.mxu1 %vm1879_vm7, %v13428_v50 }
 0x81b   : > { %6208 = vmatpush.msra.mxu1 %v13104_v34  ;;  %v11191_v34 = vld [vmem:[%s15894_s1 + $0x8] sm:$0xff]  ;;  %v5300_v55 = vrot.slane %v5299_v16, 1 }
 0x81f   : > { %10469 = vmatmul.msk.f32.vlgmr.msra.gmra.mxu2 %vm1879_vm7, %v13371_v24 }
 0x820   : > { %6139 = vmatpush.msra.mxu2 %v13163_v11  ;;  %v11193_v11 = vld [vmem:[%s15894_s1 + $0x30] sm:$0xff] }
 0x822   : > { %10476 = vmatmul.msk.f32.vlgmr.msrb.gmra.mxu1 %vm1879_vm7, %v13440_v28 }
 0x823   : > { %6886 = vmatpush.msrb.mxu1 %v11189_v43 }
 0x825   : > { %6887 = vmatpush.msrb.mxu1 %v11190_v8 }
 0x827   : > { %6888 = vmatpush.msrb.mxu1 %v11191_v34  ;;  %10473 = vmatmul.msk.f32.vlgmr.msrb.gmra.mxu2 %vm1879_vm7, %v13383_v49 }
 0x828   : > { %6231 = vmatpush.msrb.mxu2 %v13197_v40  ;;  %v11194_v40 = vld [vmem:[%s15894_s1 + $0x28] sm:$0xff] }
 0x829   : > { %6889 = vmatpush.msrb.mxu1 %v11192_v20 }
 0x82a   : > { %10480 = vmatmul.msk.f32.vlgmr.msra.gmra.mxu1 %vm1879_vm7, %v13474_v2  ;;  %v13706_v35 = vpop.f32.mrf.mxu1 }
 0x82f   : > { %10477 = vmatmul.msk.f32.vlgmr.msra.gmra.mxu2 %vm1879_vm7, %v13394_v31  ;;  %v5244_v31 = vpop.xlane.xlu0 %5243 }
 0x830   : > { %7017 = vmatpush.msra.mxu2 %v11193_v11 }
 0x832   : > { %7018 = vmatpush.msra.mxu2 %v11194_v40  ;;  %v13718_v40 = vadd.f32 %v5300_v55, %v5299_v16 }
 0x837   : > { %10481 = vmatmul.msk.f32.vlgmr.msrb.gmra.mxu2 %vm1879_vm7, %v13479_v36 }
 0x83d   : > { %v13664_v24 = vpop.f32.mrf.mxu3 }
 0x83e   : > { %10466 = vmatmul.msk.f32.vlgmr.msrb.gmra.mxu3 %vm1879_vm7, %v13664_v24 }
 0x83f   : > { %6070 = vmatpush.msrb.mxu3 %v12978_v10  ;;  %v13683_v10 = vpop.xlane.xlu0 %5276 }
 0x840   : > { %16058 = vst [vmem:[#allocation8_spill] sm:$0xff] %v13683_v10 }
 0x846   : > { %10470 = vmatmul.msk.f32.vlgmr.msra.gmra.mxu3 %vm1879_vm7, %v13415_v1  ;;  %v5404_v1 = vpop.xlane.xlu1 %5403 }
 0x847   : > { %v13669_v49 = vpop.f32.mrf.mxu0  ;;  %6162 = vmatpush.msra.mxu3 %v13064_v12  ;;  %v5450_v50 = vrot.slane %v5404_v1, 4  ;;  %v5290_v12 = vrot.slane %v5244_v31, 4 }
 0x848   : > { %10467 = vmatmul.msk.f32.vlgmr.msra.gmra.mxu0 %vm1879_vm7, %v13669_v49 }
 0x849   : > { %6093 = vmatpush.msra.mxu0 %v13153_v60  ;;  %v5451_v60 = vadd.f32 %v5450_v50, %v5404_v1 }
 0x84e   : > { %10474 = vmatmul.msk.f32.vlgmr.msrb.gmra.mxu3 %vm1879_vm7, %v13436_v25  ;;  %v5291_v25 = vadd.f32 %v5290_v12, %v5244_v31  ;;  %v5084_v19 = vpop.xlane.xlu1 %5083 }
 0x84f   : > { %6254 = vmatpush.msrb.mxu3 %v13181_v51  ;;  %v13690_v51 = vpop.xlane.xlu2 %5249  ;;  %v5130_v61 = vrot.slane %v5084_v19, 4 }
 0x850   : > { %10471 = vmatmul.msk.f32.vlgmr.msrb.gmra.mxu0 %vm1879_vm7, %v13376_v52  ;;  %v5407_v52 = vpop.xlane.xlu0 %5406  ;;  %v5292_v28 = vrot.slane %v5291_v25, 2 }
 0x851   : > { %6185 = vmatpush.msrb.mxu0 %v13186_v53  ;;  %v5452_v53 = vrot.slane %v5451_v60, 2  ;;  %v5456_v38 = vrot.slane %v5407_v52, 4  ;;  %v5131_v33 = vadd.f32 %v5130_v61, %v5084_v19 }
 0x853   : > { %v5457_v22 = vadd.f32 %v5456_v38, %v5407_v52  ;;  %v5132_v14 = vrot.slane %v5131_v33, 2 }
 0x854   : > { %v13715_v20 = vpop.f32.mrf.mxu1 }
 0x855   : > { %v5458_v15 = vrot.slane %v5457_v22, 2  ;;  %v5133_v1 = vadd.f32 %v5132_v14, %v5131_v33 }
 0x856   : > { %10478 = vmatmul.msk.f32.vlgmr.msra.gmra.mxu3 %vm1879_vm7, %v13461_v56  ;;  %v5453_v56 = vadd.f32 %v5452_v53, %v5451_v60  ;;  %v5087_v6 = vpop.xlane.xlu1 %5086  ;;  %v13725_v60 = vpop.f32.mrf.mxu2 }
 0x857   : > { %v13698_v13 = vpop.xlane.xlu2 %5252  ;;  %v5459_v54 = vadd.f32 %v5458_v15, %v5457_v22  ;;  %v5136_v59 = vrot.slane %v5087_v6, 4 }
 0x858   : > { %10475 = vmatmul.msk.f32.vlgmr.msra.gmra.mxu0 %vm1879_vm7, %v13387_v44  ;;  %v13696_v7 = vpop.xlane.xlu0 %5409  ;;  %v5293_v44 = vadd.f32 %v5292_v28, %v5291_v25  ;;  %v5454_v9 = vrot.slane %v5453_v56, 1  ;;  %v5134_v28 = vrot.slane %v5133_v1, 1 }
 0x859   : > { %6277 = vmatpush.msra.mxu0 %v13215_v18  ;;  %v5460_v29 = vrot.slane %v5459_v54, 1  ;;  %v5462_v61 = vrot.slane %v13696_v7, 4 }
 0x85a   : > { %v5294_v18 = vrot.slane %v5293_v44, 1  ;;  %v5455_v48 = vadd.f32 %v5454_v9, %v5453_v56  ;;  %v5135_v19 = vadd.f32 %v5134_v28, %v5133_v1 }
 0x85b   : > { %v5461_v43 = vadd.f32 %v5460_v29, %v5459_v54  ;;  %v5137_v54 = vadd.f32 %v5136_v59, %v5087_v6 }
 0x85c   : > { %v5295_v41 = vadd.f32 %v5294_v18, %v5293_v44 }
 0x85d   : > { %v13723_v50 = vmul.f32 %v5461_v43, %v13718_v40  ;;  %v5138_v1 = vrot.slane %v5137_v54, 2 }
 0x85e   : > { %10482 = vmatmul.msk.f32.vlgmr.msrb.gmra.mxu3 %vm1879_vm7, %v13488_v4  ;;  %v6282_v26 = vmul.f32 %v5455_v48, %v5295_v41  ;;  %v13720_v46 = vpop.xlane.xlu1 %5089  ;;  %v13736_v27 = vpop.f32.mrf.mxu2 }
 0x85f   : > { %v5256_v30 = vpop.xlane.xlu2 %5255  ;;  %vm6314_vm12 = vweird.f32 %v13723_v50 }
 0x860   : > { %10479 = vmatmul.msk.f32.vlgmr.msrb.gmra.mxu0 %vm1879_vm7, %v13405_v37  ;;  %v13702_v23 = vpop.xlane.xlu0 %5412  ;;  %10957 = vrsqrt.f32 %v6282_v26  ;;  %v5314_v39 = vrot.slane %v5256_v30, 4  ;;  %vm6304_vm9 = vweird.f32 %v6282_v26 }
 0x861   : > { %10959 = vrsqrt.f32 %v13723_v50 }
 0x862   : > { %v5315_v31 = vadd.f32 %v5314_v39, %v5256_v30  ;;  %10961 = vrcp.f32 %v5295_v41 }
 0x864   : > { %v5316_v25 = vrot.slane %v5315_v31, 2 }
 0x866   : > { %v13708_v0 = vpop.eup %10957  ;;  %v5317_v18 = vadd.f32 %v5316_v25, %v5315_v31  ;;  %v13734_v38 = vpop.xlane.xlu1 %5092  ;;  %v5463_v31 = vadd.f32 %v5462_v61, %v13696_v7 }
 0x867   : > { %v6299_v57 = vmul.f32 %v13708_v0, %v6282_v26  ;;  %v13711_v21 = vpop.xlane.xlu2 %5258  ;;  %vm6305_vm8 = vweird.f32 %v13708_v0  ;;  %v13740_v15 = vpop.eup %10959  ;;  %v5468_v26 = vrot.slane %v13702_v23, 4 }
 0x868   : > { %10483 = vmatmul.msk.f32.vlgmr.msra.gmra.mxu0 %vm1879_vm7, %v13498_v32  ;;  %v5416_v58 = vpop.xlane.xlu0 %5415  ;;  %v5318_v41 = vrot.slane %v5317_v18, 1  ;;  %v10962_v5 = vpop.eup %10961  ;;  %vm13744_vm10 = vmor %vm6304_vm9, %vm6305_vm8  ;;  %vm6315_vm11 = vweird.f32 %v13740_v15 }
 0x869   : > { %v5474_v63 = vrot.slane %v5416_v58, 4  ;;  %v6300_v11 = vmul.f32 %v13708_v0, %v6299_v57  ;;  %v6474_v29 = vmul.f32 %v10962_v5, %v5135_v19  ;;  %v5464_v19 = vrot.slane %v5463_v31, 2  ;;  %vm13801_vm13 = vmor %vm6314_vm12, %vm6315_vm11 }
 0x86a   : > { %v13755_v14 = vadd.f32 %v5318_v41, %v5317_v18 }
 0x86b   : > { %v5475_v8 = vadd.f32 %v5474_v63, %v5416_v58  ;;  %v6301_v52 = vmul.f32 0.5, %v6300_v11  ;;  %v5302_v58 = vrot.slane %v13690_v51, 4  ;;  %v6309_v63 = vmul.f32 %v13740_v15, %v13723_v50 }
 0x86c   : > { %v5320_v11 = vrot.slane %v13711_v21, 4 }
 0x86d   : > { %v5476_v12 = vrot.slane %v5475_v8, 2  ;;  %v6302_v9 = vsub.f32 1.5, %v6301_v52  ;;  %v5303_v43 = vadd.f32 %v5302_v58, %v13690_v51  ;;  %v6310_v51 = vmul.f32 %v13740_v15, %v6309_v63 }
 0x86e   : > { %v5096_v28 = vpop.xlane.xlu1 %5095 }
 0x86f   : > { %v13727_v53 = vpop.xlane.xlu2 %5261  ;;  %v5477_v56 = vadd.f32 %v5476_v12, %v5475_v8  ;;  %v6303_v30 = vmul.f32 %v13708_v0, %v6302_v9  ;;  %v5308_v8 = vrot.slane %v13698_v13, 4  ;;  %v5469_v9 = vadd.f32 %v5468_v26, %v13702_v23 }
 0x870   : > { %v13713_v34 = vpop.xlane.xlu0 %5418  ;;  %v5304_v59 = vrot.slane %v5303_v43, 2  ;;  %v5154_v41 = vrot.slane %v5096_v28, 4 }
 0x871   : > { %v5478_v22 = vrot.slane %v5477_v56, 1  ;;  %v6307_v39 = vsel %vm13744_vm10, %v13708_v0, %v6303_v30  ;;  %v5309_v7 = vadd.f32 %v5308_v8, %v13698_v13  ;;  %v5139_v30 = vadd.f32 %v5138_v1, %v5137_v54 }
 0x872   : > { %v6490_v0 = vmul.f32 2.0, %v6307_v39  ;;  %v5470_v58 = vrot.slane %v5469_v9, 2  ;;  %v5480_v13 = vrot.slane %v13713_v34, 4  ;;  %v5326_v39 = vrot.slane %v13727_v53, 4 }
 0x873   : > { %v5479_v16 = vadd.f32 %v5478_v22, %v5477_v56  ;;  %v13768_v56 = vpop.f32.mrf.mxu2  ;;  %v5321_v22 = vadd.f32 %v5320_v11, %v13711_v21  ;;  %v5310_v33 = vrot.slane %v5309_v7, 2  ;;  %v5140_v21 = vrot.slane %v5139_v30, 1 }
 0x875   : > { %v13763_v12 = vmul.f32 %v5479_v16, %v13755_v14  ;;  %v5305_v16 = vadd.f32 %v5304_v59, %v5303_v43  ;;  %v5322_v63 = vrot.slane %v5321_v22, 2  ;;  %v5471_v43 = vadd.f32 %v5470_v58, %v5469_v9 }
 0x877   : > { %v13750_v57 = vpop.xlane.xlu2 %5264  ;;  %10963 = vrsqrt.f32 %v13763_v12  ;;  %vm6344_vm15 = vweird.f32 %v13763_v12 }
 0x878   : > { %v13732_v48 = vpop.xlane.xlu0 %5421  ;;  %10965 = vrcp.f32 %v13718_v40  ;;  %v5332_v50 = vrot.slane %v13750_v57, 4 }
 0x879   : > { %10967 = vrcp.f32 %v13755_v14  ;;  %v13832_v14 = vpop.f32.mrf.mxu3 }
 0x87f   : > { %v13778_v23 = vpop.xlane.xlu2 %5267 }
 0x880   : > { %v13765_v52 = vpop.xlane.xlu0 %5424 }
 0x887   : > { %v13730_v44 = vpop.f32.mrf.mxu1 }
 0x888   : > { %16059 = vst [vmem:[#allocation22_spill] sm:$0xff] %v13730_v44  ;;  %v13789_v8 = vpop.xlane.xlu0 %5427 }
 0x88f   : > { %v5934_v55 = vpop.f32.mrf.mxu1 }
 0x890   : > { %v6506_v6 = vmul.f32 %v6474_v29, %v5934_v55  ;;  %v5465_v29 = vadd.f32 %v5464_v19, %v5463_v31  ;;  %v5155_v55 = vadd.f32 %v5154_v41, %v5096_v28  ;;  %v5306_v31 = vrot.slane %v5305_v16, 1 }
 0x891   : > { %v5323_v28 = vadd.f32 %v5322_v63, %v5321_v22  ;;  %v5472_v19 = vrot.slane %v5471_v43, 1  ;;  %v5238_v41 = vmul.f32 %v13474_v2, %v13474_v2  ;;  %v13805_v63 = vpop.xlane.xlu2 %5270 }
 0x892   : > { %v6522_v25 = vsub.f32 %v13704_v62, %v6506_v6  ;;  %v6311_v62 = vmul.f32 0.5, %v6310_v51  ;;  %v13787_v6 = vpop.eup %10963  ;;  %v5466_v1 = vrot.slane %v5465_v29, 1  ;;  %v5156_v40 = vrot.slane %v5155_v55, 2 }
 0x893   : > { %v5141_v51 = vadd.f32 %v5140_v21, %v5139_v30  ;;  %v6339_v59 = vmul.f32 %v13787_v6, %v13763_v12  ;;  %vm6345_vm14 = vweird.f32 %v13787_v6 }
 0x894   : > { %v6538_v18 = vmul.f32 %v6522_v25, %v6490_v0  ;;  %v5481_v0 = vadd.f32 %v5480_v13, %v13713_v34  ;;  %v5311_v25 = vadd.f32 %v5310_v33, %v5309_v7  ;;  %v5467_v34 = vadd.f32 %v5466_v1, %v5465_v29  ;;  %vm13878_vm1 = vmor %vm6344_vm15, %vm6345_vm14 }
 0x895   : > { %v5307_v7 = vadd.f32 %v5306_v31, %v5305_v16  ;;  %v5157_v30 = vadd.f32 %v5156_v40, %v5155_v55  ;;  %v5324_v33 = vrot.slane %v5323_v28, 1  ;;  %v6340_v21 = vmul.f32 %v13787_v6, %v6339_v59  ;;  %v13816_v31 = vpop.xlane.xlu1 %5098 }
 0x896   : > { %v6554_v5 = vmul.f32 0.01, %v6538_v18  ;;  %v5327_v18 = vadd.f32 %v5326_v39, %v13727_v53  ;;  %v5312_v22 = vrot.slane %v5311_v25, 1  ;;  %v5473_v16 = vadd.f32 %v5472_v19, %v5471_v43 }
 0x897   : > { %v5278_v39 = vsel %vm1879_vm7, %v5238_v41, 0.0  ;;  %v5239_v40 = vmul.f32 %v13479_v36, %v13479_v36  ;;  %v5158_v59 = vrot.slane %v5157_v30, 1  ;;  %v5325_v19 = vadd.f32 %v5324_v33, %v5323_v28  ;;  %v13834_v28 = vpop.f32.mrf.mxu0 }
 0x898   : > { %v13776_v61 = vadd.f32 %v6554_v5, %v12805_v17  ;;  %v6312_v17 = vsub.f32 1.5, %v6311_v62  ;;  %v10966_v5 = vpop.eup %10965  ;;  %v5482_v62 = vrot.slane %v5481_v0, 2  ;;  %v5328_v13 = vrot.slane %v5327_v18, 2 }
 0x899   : > { %v6475_v58 = vmul.f32 %v10966_v5, %v5141_v51  ;;  %v5313_v51 = vadd.f32 %v5312_v22, %v5311_v25  ;;  %v6341_v5 = vmul.f32 0.5, %v6340_v21 }
 0x89a   : > { %16062 = vst [vmem:[#allocation10_spill] sm:$0xff] %v13776_v61  ;;  %v6586_v54 = vmul.f32 %v13776_v61, %v13776_v61  ;;  %v13785_v26 = vpop.f32.mrf.mxu2  ;;  %v6313_v9 = vmul.f32 %v13740_v15, %v6312_v17  ;;  %v5338_v17 = vrot.slane %v13778_v23, 4  ;;  %v5483_v1 = vadd.f32 %v5482_v62, %v5481_v0 }
 0x89b   : > { %16063 = vst [vmem:[#allocation15_spill] sm:$0xff] %v13785_v26  ;;  %v5329_v41 = vadd.f32 %v5328_v13, %v5327_v18  ;;  %v13825_v53 = vmul.f32 %v5473_v16, %v5313_v51  ;;  %v5077_v62 = vmul.f32 %v13602_v42, %v13405_v37  ;;  %v5159_v18 = vadd.f32 %v5158_v59, %v5157_v30 }
 0x89c   : > { %v6602_v11 = vsel %vm185_vm0, %v6586_v54, 0.0  ;;  %v6317_v29 = vsel %vm13801_vm13, %v13740_v15, %v6313_v9  ;;  %v13820_v15 = vpop.xlane.xlu0 %5430  ;;  %v5339_v25 = vadd.f32 %v5338_v17, %v13778_v23  ;;  %v5484_v22 = vrot.slane %v5483_v1, 1 }
 0x89d   : > { %6603 = vadd.xlane.f32.xlu1 %v6602_v11  ;;  %v13814_v11 = vmul.f32 %v5467_v34, %v5307_v7  ;;  %v6491_v9 = vmul.f32 2.0, %v6317_v29  ;;  %v5333_v34 = vadd.f32 %v5332_v50, %v13750_v57  ;;  %v5330_v33 = vrot.slane %v5329_v41, 1  ;;  %v5274_v29 = vpop.xlane.xlu2 %5273 }
 0x89e   : > { %v5498_v37 = vrot.slane %v13789_v8, 4  ;;  %v6342_v42 = vsub.f32 1.5, %v6341_v5  ;;  %v5115_v13 = vsel %vm1879_vm7, %v5077_v62, 0.0  ;;  %v5340_v30 = vrot.slane %v5339_v25, 2 }
 0x89f   : > { %10969 = vrsqrt.f32 %v13814_v11  ;;  %v5334_v23 = vrot.slane %v5333_v34, 2  ;;  %v5485_v50 = vadd.f32 %v5484_v22, %v5483_v1  ;;  %v5142_v17 = vrot.slane %v13720_v46, 4 }
 0x8a0   : > { %10971 = vrcp.f32 %v5307_v7  ;;  %v16066_v7 = vld [vmem:[#allocation18_spill] sm:$0xff]  ;;  %v5499_v1 = vadd.f32 %v5498_v37, %v13789_v8  ;;  %v5350_v62 = vrot.slane %v5274_v29, 4  ;;  %v5341_v37 = vadd.f32 %v5340_v30, %v5339_v25 }
 0x8a1   : > { %10973 = vrcp.f32 %v5313_v51  ;;  %vm6324_vm3 = vweird.f32 %v13814_v11  ;;  %vm6334_vm9 = vweird.f32 %v13825_v53 }
 0x8a2   : > { %v5957_v54 = vpop.f32.mrf.mxu2  ;;  %10975 = vrsqrt.f32 %v13825_v53  ;;  %v5500_v25 = vrot.slane %v5499_v1, 2  ;;  %v5342_v26 = vrot.slane %v5341_v37, 1 }
 0x8a3   : > { %v6507_v55 = vmul.f32 %v6475_v58, %v5957_v54  ;;  %v13837_v58 = vsel %vm1879_vm7, %v5239_v40, 0.0  ;;  %v10968_v54 = vpop.eup %10967  ;;  %10977 = vrcp.f32 %v5325_v19 }
 0x8a4   : > { %v6478_v40 = vmul.f32 %v10968_v54, %v5159_v18  ;;  %v5434_v22 = vpop.xlane.xlu0 %5433  ;;  %v5148_v54 = vrot.slane %v13734_v38, 4 }
 0x8a5   : > { %5279 = vadd.xlane.f32.xlu1 %v5278_v39  ;;  %v6523_v43 = vsub.f32 %v13725_v60, %v6507_v55  ;;  %v5486_v60 = vrot.slane %v13732_v48, 4  ;;  %v6026_v55 = vpop.f32.mrf.mxu1  ;;  %v5344_v39 = vrot.slane %v13805_v63, 4  ;;  %v13850_v59 = vpop.eup %10969  ;;  %v5510_v30 = vrot.slane %v5434_v22, 4 }
 0x8a6   : > { %v13859_v5 = vpop.eup %10971  ;;  %vm6325_vm2 = vweird.f32 %v13850_v59 }
 0x8a7   : > { %v6539_v0 = vmul.f32 %v6523_v43, %v6491_v9  ;;  %v5487_v16 = vadd.f32 %v5486_v60, %v13732_v48  ;;  %v13852_v9 = vadd.f32 %v5330_v33, %v5329_v41  ;;  %v13854_v43 = vpop.xlane.xlu1 %5101  ;;  %v6343_v48 = vmul.f32 %v13787_v6, %v6342_v42  ;;  %vm13949_vm8 = vmor %vm6324_vm3, %vm6325_vm2 }
 0x8a8   : > { %v6510_v60 = vmul.f32 %v6478_v40, %v6026_v55  ;;  %v13864_v41 = vmul.f32 %v5485_v50, %v5325_v19  ;;  %v5143_v42 = vadd.f32 %v5142_v17, %v13720_v46  ;;  %v5351_v50 = vadd.f32 %v5350_v62, %v5274_v29 }
 0x8a9   : > { %v6555_v57 = vmul.f32 0.01, %v6539_v0  ;;  %v5335_v0 = vadd.f32 %v5334_v23, %v5333_v34  ;;  %v5488_v33 = vrot.slane %v5487_v16, 2  ;;  %v5345_v34 = vadd.f32 %v5344_v39, %v13805_v63  ;;  %v13889_v39 = vpop.f32.mrf.mxu0 }
 0x8aa   : > { %v6319_v23 = vmul.f32 %v13850_v59, %v13814_v11  ;;  %v6347_v46 = vsel %vm13878_vm1, %v13787_v6, %v6343_v48  ;;  %v5160_v55 = vrot.slane %v13816_v31, 4  ;;  %v6526_v17 = vsub.f32 %v13706_v35, %v6510_v60 }
 0x8ab   : > { %v13843_v21 = vadd.f32 %v6555_v57, %v16066_v7  ;;  %v13862_v57 = vpop.eup %10973  ;;  %v13874_v7 = vpop.f32.mrf.mxu3  ;;  %v5336_v63 = vrot.slane %v5335_v0, 1  ;;  %10979 = vrsqrt.f32 %v13864_v41  ;;  %v5144_v44 = vrot.slane %v5143_v42, 2 }
 0x8ac   : > { %v13868_v8 = vpop.eup %10975  ;;  %v6494_v19 = vmul.f32 2.0, %v6347_v46  ;;  %v6320_v6 = vmul.f32 %v13850_v59, %v6319_v23  ;;  %v5346_v29 = vrot.slane %v5345_v34, 2  ;;  %v5149_v48 = vadd.f32 %v5148_v54, %v13734_v38 }
 0x8ad   : > { %16067 = vst [vmem:[#allocation26_spill] sm:$0xff] %v13843_v21  ;;  %5116 = vadd.xlane.f32.xlu1 %v5115_v13  ;;  %v6587_v51 = vmul.f32 %v13843_v21, %v13843_v21  ;;  %v5492_v13 = vrot.slane %v13765_v52, 4  ;;  %v13882_v12 = vpop.eup %10977  ;;  %v6329_v40 = vmul.f32 %v13868_v8, %v13825_v53  ;;  %v5501_v62 = vadd.f32 %v5500_v25, %v5499_v1 }
 0x8ae   : > { %v5511_v21 = vadd.f32 %v5510_v30, %v5434_v22  ;;  %10981 = vrcp.f32 %v13852_v9  ;;  %v5352_v35 = vrot.slane %v5351_v50, 2  ;;  %v5161_v60 = vadd.f32 %v5160_v55, %v13816_v31 }
 0x8af   : > { %v6605_v18 = vsel %vm185_vm0, %v6587_v51, 0.0  ;;  %v5489_v51 = vadd.f32 %v5488_v33, %v5487_v16  ;;  %v6542_v47 = vmul.f32 %v6526_v17, %v6494_v19  ;;  %v13900_v16 = vpop.xlane.xlu1 %5104  ;;  %v5504_v33 = vrot.slane %v13820_v15, 4 }
 0x8b0   : > { %6606 = vadd.xlane.f32.xlu2 %v6605_v18  ;;  %v5493_v18 = vadd.f32 %v5492_v13, %v13765_v52  ;;  %v6330_v13 = vmul.f32 %v13868_v8, %v6329_v40  ;;  %v13905_v23 = vadd.f32 %v5336_v63, %v5335_v0  ;;  %v5343_v38 = vadd.f32 %v5342_v26, %v5341_v37 }
 0x8b1   : > { %v5490_v61 = vrot.slane %v5489_v51, 1  ;;  %v5145_v1 = vadd.f32 %v5144_v44, %v5143_v42  ;;  %v6321_v54 = vmul.f32 0.5, %v6320_v6  ;;  %v13909_v25 = vpop.eup %10979  ;;  %v13911_v31 = vadd.f32 %v5346_v29, %v5345_v34  ;;  %v13913_v10 = vpop.f32.mrf.mxu0 }
 0x8b2   : > { %v5494_v52 = vrot.slane %v5493_v18, 2  ;;  %v5150_v30 = vrot.slane %v5149_v48, 2  ;;  %v5502_v46 = vrot.slane %v5501_v62, 1  ;;  %v5512_v55 = vrot.slane %v5511_v21, 2  ;;  %16070 = vst [vmem:[#allocation12_spill] sm:$0xff] %v13913_v10 }
 0x8b3   : > { %v13907_v22 = vpop.f32.mrf.mxu3  ;;  %v5353_v17 = vadd.f32 %v5352_v35, %v5351_v50  ;;  %v5162_v19 = vrot.slane %v5161_v60, 2  ;;  %v5078_v0 = vmul.f32 %v13613_v3, %v13474_v2  ;;  %v5491_v26 = vadd.f32 %v5490_v61, %v5489_v51  ;;  %v16071_v61 = vld [vmem:[#allocation21_spill] sm:$0xff] }
 0x8b4   : > { %v5495_v44 = vadd.f32 %v5494_v52, %v5493_v18  ;;  %v5505_v37 = vadd.f32 %v5504_v33, %v13820_v15  ;;  %v6331_v42 = vmul.f32 0.5, %v6330_v13  ;;  %v13918_v63 = vpop.eup %10981  ;;  %10983 = vrcp.f32 %v5343_v38 }
 0x8b5   : > { %v5146_v34 = vrot.slane %v5145_v1, 1  ;;  %v6349_v40 = vmul.f32 %v13909_v25, %v13864_v41  ;;  %v6322_v50 = vsub.f32 1.5, %v6321_v54  ;;  %v5348_v6 = vrot.slane %v13911_v31, 1 }
 0x8b6   : > { %v5151_v29 = vadd.f32 %v5150_v30, %v5149_v48  ;;  %v5513_v35 = vadd.f32 %v5512_v55, %v5511_v21  ;;  %v5354_v10 = vrot.slane %v5353_v17, 1  ;;  %v5163_v2 = vadd.f32 %v5162_v19, %v5161_v60 }
 0x8b7   : > { %v5118_v3 = vsel %vm1879_vm7, %v5078_v0, 0.0  ;;  %v13928_v51 = vmul.f32 %v5491_v26, %v13852_v9  ;;  %v5496_v18 = vrot.slane %v5495_v44, 1  ;;  %v5506_v52 = vrot.slane %v5505_v37, 2  ;;  %v5108_v60 = vpop.xlane.xlu1 %5107 }
 0x8b8   : > { %5282 = vadd.xlane.f32.xlu2 %v13837_v58  ;;  %v6558_v58 = vmul.f32 0.01, %v6542_v47  ;;  %v5503_v47 = vadd.f32 %v5502_v46, %v5501_v62  ;;  %v6332_v33 = vsub.f32 1.5, %v6331_v42  ;;  %v6350_v13 = vmul.f32 %v13909_v25, %v6349_v40 }
 0x8b9   : > { %v5147_v48 = vadd.f32 %v5146_v34, %v5145_v1  ;;  %v6323_v21 = vmul.f32 %v13850_v59, %v6322_v50  ;;  %v5152_v62 = vrot.slane %v5151_v29, 1  ;;  %v5514_v46 = vrot.slane %v5513_v35, 1 }
 0x8ba   : > { %v13925_v15 = vadd.f32 %v6558_v58, %v16071_v61  ;;  %v13935_v30 = vmul.f32 %v5503_v47, %v5343_v38  ;;  %v13938_v9 = vpop.eup %10983  ;;  %v5164_v55 = vrot.slane %v5163_v2, 1  ;;  %v5166_v19 = vrot.slane %v13854_v43, 4 }
 0x8bb   : > { %vm6335_vm4 = vweird.f32 %v13868_v8  ;;  %10985 = vrsqrt.f32 %v13928_v51  ;;  %v5497_v0 = vadd.f32 %v5496_v18, %v5495_v44  ;;  %v5507_v38 = vadd.f32 %v5506_v52, %v5505_v37 }
 0x8bc   : > { %v6590_v1 = vmul.f32 %v13925_v15, %v13925_v15  ;;  %v6333_v26 = vmul.f32 %v13868_v8, %v6332_v33  ;;  %v6351_v42 = vmul.f32 0.5, %v6350_v13  ;;  %v5178_v34 = vrot.slane %v5108_v60, 4  ;;  %vm13967_vm10 = vmor %vm6334_vm9, %vm6335_vm4 }
 0x8bd   : > { %v6327_v40 = vsel %vm13949_vm8, %v13850_v59, %v6323_v21  ;;  %v5080_v50 = vmul.f32 %v13664_v24, %v13488_v4  ;;  %10987 = vrsqrt.f32 %v13935_v30  ;;  %v5515_v44 = vadd.f32 %v5514_v46, %v5513_v35 }
 0x8be   : > { %v5153_v37 = vadd.f32 %v5152_v62, %v5151_v29  ;;  %v13961_v47 = vadd.f32 %v5354_v10, %v5353_v17  ;;  %v5165_v61 = vadd.f32 %v5164_v55, %v5163_v2  ;;  %v6614_v18 = vsel %vm185_vm0, %v6590_v1, 0.0  ;;  %v5114_v55 = vpop.xlane.xlu0 %5113 }
 0x8bf   : > { %v13972_v52 = vmul.f32 %v5497_v0, %v13905_v23  ;;  %v5508_v35 = vrot.slane %v5507_v38, 1  ;;  %v6476_v53 = vmul.f32 %v13859_v5, %v5147_v48  ;;  %v6337_v10 = vsel %vm13967_vm10, %v13868_v8, %v6333_v26 }
 0x8c0   : > { %5119 = vadd.xlane.f32.xlu2 %v5118_v3  ;;  %v5167_v3 = vadd.f32 %v5166_v19, %v13854_v43  ;;  %v13979_v43 = vadd.f32 %v5348_v6, %v13911_v31  ;;  %v5179_v17 = vadd.f32 %v5178_v34, %v5108_v60  ;;  %v6352_v29 = vsub.f32 1.5, %v6351_v42  ;;  %v6049_v42 = vpop.f32.mrf.mxu2 }
 0x8c1   : > { %v13931_v54 = vpop.f32.mrf.mxu3  ;;  %v6492_v33 = vmul.f32 2.0, %v6327_v40  ;;  %v13981_v13 = vpop.eup %10985  ;;  %v13984_v21 = vmul.f32 %v5515_v44, %v13961_v47  ;;  %v6477_v46 = vmul.f32 %v13862_v57, %v5153_v37  ;;  %v5124_v5 = vsel %vm1879_vm7, %v5080_v50, 0.0 }
 0x8c2   : > { %v5168_v48 = vrot.slane %v5167_v3, 2  ;;  %v5172_v8 = vrot.slane %v13900_v16, 4  ;;  %v6479_v31 = vmul.f32 %v13882_v12, %v5165_v61  ;;  %v6493_v60 = vmul.f32 2.0, %v6337_v10  ;;  %v5111_v12 = vpop.xlane.xlu2 %5110 }
 0x8c3   : > { %v13990_v19 = vpop.eup %10987  ;;  %10989 = vrsqrt.f32 %v13972_v52  ;;  %v5509_v1 = vadd.f32 %v5508_v35, %v5507_v38  ;;  %v6359_v57 = vmul.f32 %v13981_v13, %v13928_v51  ;;  %v5180_v26 = vrot.slane %v5179_v17, 2 }
 0x8c4   : > { %v6353_v34 = vmul.f32 %v13909_v25, %v6352_v29  ;;  %vm6355_vm11 = vweird.f32 %v13909_v25  ;;  %10991 = vrsqrt.f32 %v13984_v21  ;;  %v5190_v40 = vrot.slane %v5114_v55, 4 }
 0x8c5   : > { %v13941_v58 = vpop.f32.mrf.mxu0  ;;  %v5169_v38 = vadd.f32 %v5168_v48, %v5167_v3  ;;  %v6379_v37 = vmul.f32 %v13990_v19, %v13935_v30  ;;  %vm6354_vm12 = vweird.f32 %v13864_v41  ;;  %v14005_v61 = vmul.f32 %v5509_v1, %v13979_v43 }
 0x8c6   : > { %v6360_v10 = vmul.f32 %v13981_v13, %v6359_v57  ;;  %v5181_v29 = vadd.f32 %v5180_v26, %v5179_v17  ;;  %vm14010_vm13 = vmor %vm6354_vm12, %vm6355_vm11  ;;  %v5399_v41 = vmul.f32 %v13624_v45, %v13624_v45  ;;  %v5191_v3 = vadd.f32 %v5190_v40, %v5114_v55 }
 0x8c7   : > { %v5170_v17 = vrot.slane %v5169_v38, 1  ;;  %v6380_v48 = vmul.f32 %v13990_v19, %v6379_v37  ;;  %10993 = vrsqrt.f32 %v14005_v61  ;;  %vm6365_vm14 = vweird.f32 %v13981_v13 }
 0x8c8   : > { %6615 = vadd.xlane.f32.xlu2 %v6614_v18  ;;  %v6511_v18 = vmul.f32 %v6479_v31, %v6049_v42  ;;  %v5182_v26 = vrot.slane %v5181_v29, 1  ;;  %v5192_v42 = vrot.slane %v5191_v3, 2  ;;  %10995 = vrcp.f32 %v13905_v23 }
 0x8c9   : > { %v5980_v2 = vpop.f32.mrf.mxu3  ;;  %10997 = vrcp.f32 %v13961_v47  ;;  %v5441_v23 = vsel %vm1879_vm7, %v5399_v41, 0.0  ;;  %vm6385_vm15 = vweird.f32 %v13990_v19  ;;  %vm6364_vm1 = vweird.f32 %v13928_v51 }
 0x8ca   : > { %v6508_v62 = vmul.f32 %v6476_v53, %v5980_v2  ;;  %v5184_v53 = vrot.slane %v5111_v12, 4  ;;  %v6357_v2 = vsel %vm14010_vm13, %v13909_v25, %v6353_v34  ;;  %v6527_v55 = vsub.f32 %v13736_v27, %v6511_v18  ;;  %vm14068_vm2 = vmor %vm6364_vm1, %vm6365_vm14 }
 0x8cb   : > { %v6495_v57 = vmul.f32 2.0, %v6357_v2  ;;  %v6381_v27 = vmul.f32 0.5, %v6380_v48  ;;  %vm6384_vm3 = vweird.f32 %v13935_v30  ;;  %10999 = vrcp.f32 %v13979_v43 }
 0x8cc   : > { %v6524_v0 = vsub.f32 %v13832_v14, %v6508_v62  ;;  %v5173_v14 = vadd.f32 %v5172_v8, %v13900_v16  ;;  %v14016_v16 = vpop.eup %10989  ;;  %v16078_v62 = vld [vmem:[#allocation19_spill] sm:$0xff]  ;;  %v5401_v8 = vmul.f32 %v13669_v49, %v13669_v49  ;;  %v5185_v1 = vadd.f32 %v5184_v53, %v5111_v12  ;;  %vm14083_vm4 = vmor %vm6384_vm3, %vm6385_vm15 }
 0x8cd   : > { %v6003_v6 = vpop.f32.mrf.mxu0  ;;  %v14027_v31 = vpop.eup %10991  ;;  %v5081_v12 = vmul.f32 %v13669_v49, %v13498_v32  ;;  %v6543_v18 = vmul.f32 %v6527_v55, %v6495_v57  ;;  %vm6375_vm8 = vweird.f32 %v14016_v16  ;;  %vm6374_vm9 = vweird.f32 %v13972_v52 }
 0x8ce   : > { %v6509_v11 = vmul.f32 %v6477_v46, %v6003_v6  ;;  %v6540_v50 = vmul.f32 %v6524_v0, %v6492_v33  ;;  %v16079_v6 = vld [vmem:[#allocation23_spill] sm:$0xff]  ;;  %v6361_v0 = vmul.f32 0.5, %v6360_v10  ;;  %v14051_v2 = vpop.eup %10993  ;;  %v5186_v49 = vrot.slane %v5185_v1, 2  ;;  %vm14101_vm11 = vmor %vm6374_vm9, %vm6375_vm8 }
 0x8cf   : > { %v5127_v55 = vsel %vm1879_vm7, %v5081_v12, 0.0  ;;  %v6389_v47 = vmul.f32 %v14051_v2, %v14005_v61  ;;  %vm6405_vm10 = vweird.f32 %v14027_v31  ;;  %vm6404_vm12 = vweird.f32 %v13984_v21 }
 0x8d0   : > { %v6525_v44 = vsub.f32 %v13834_v28, %v6509_v11  ;;  %v6556_v59 = vmul.f32 0.01, %v6540_v50  ;;  %5125 = vadd.xlane.f32.xlu2 %v5124_v5  ;;  %v5174_v5 = vrot.slane %v5173_v14, 2  ;;  %v6369_v11 = vmul.f32 %v14016_v16, %v13972_v52  ;;  %vm6406_vm13 = vmor %vm6404_vm12, %vm6405_vm10 }
 0x8d1   : > { %v6399_v50 = vmul.f32 %v14027_v31, %v13984_v21  ;;  %v6362_v10 = vsub.f32 1.5, %v6361_v0  ;;  %v5240_v28 = vmul.f32 %v13488_v4, %v13488_v4  ;;  %v5079_v52 = vmul.f32 %v13624_v45, %v13479_v36 }
 0x8d2   : > { %v6541_v35 = vmul.f32 %v6525_v44, %v6493_v60  ;;  %v14022_v46 = vadd.f32 %v6556_v59, %v16078_v62  ;;  %v5447_v44 = vsel %vm1879_vm7, %v5401_v8, 0.0  ;;  %v5175_v37 = vadd.f32 %v5174_v5, %v5173_v14 }
 0x8d3   : > { %v5171_v59 = vadd.f32 %v5170_v17, %v5169_v38  ;;  %v6370_v53 = vmul.f32 %v14016_v16, %v6369_v11  ;;  %v5193_v14 = vadd.f32 %v5192_v42, %v5191_v3  ;;  %v6400_v38 = vmul.f32 %v14027_v31, %v6399_v50  ;;  %v6072_v17 = vpop.f32.mrf.mxu3  ;;  %v10996_v11 = vpop.eup %10995 }
 0x8d4   : > { %v6557_v33 = vmul.f32 0.01, %v6541_v35  ;;  %v6588_v25 = vmul.f32 %v14022_v46, %v14022_v46  ;;  %v6382_v62 = vsub.f32 1.5, %v6381_v27  ;;  %v5400_v5 = vmul.f32 %v13664_v24, %v13664_v24 }
 0x8d5   : > { %v5176_v48 = vrot.slane %v5175_v37, 1  ;;  %v6559_v8 = vmul.f32 0.01, %v6543_v18  ;;  %v6480_v4 = vmul.f32 %v13918_v63, %v5171_v59  ;;  %v6363_v3 = vmul.f32 %v13981_v13, %v6362_v10 }
 0x8d6   : > { %v14034_v60 = vadd.f32 %v6557_v33, %v16079_v6  ;;  %v6608_v34 = vsel %vm185_vm0, %v6588_v25, 0.0  ;;  %v5183_v33 = vadd.f32 %v5182_v26, %v5181_v29  ;;  %v6371_v25 = vmul.f32 0.5, %v6370_v53  ;;  %v6118_v29 = vpop.f32.mrf.mxu1  ;;  %v10998_v26 = vpop.eup %10997 }
 0x8d7   : > { %6609 = vadd.xlane.f32.xlu0 %v6608_v34  ;;  %v5187_v6 = vadd.f32 %v5186_v49, %v5185_v1  ;;  %v5194_v41 = vrot.slane %v5193_v14, 1  ;;  %v6512_v24 = vmul.f32 %v6480_v4, %v6072_v17  ;;  %v6401_v57 = vmul.f32 0.5, %v6400_v38  ;;  %v16088_v34 = vld [vmem:[#allocation28_spill] sm:$0xff] }
 0x8d8   : > { %v6589_v40 = vmul.f32 %v14034_v60, %v14034_v60  ;;  %5448 = vadd.xlane.f32.xlu2 %v5447_v44  ;;  %v6482_v0 = vmul.f32 %v13938_v9, %v5183_v33  ;;  %v6383_v63 = vmul.f32 %v13990_v19, %v6382_v62  ;;  %v5177_v1 = vadd.f32 %v5176_v48, %v5175_v37 }
 0x8d9   : > { %v5444_v9 = vsel %vm1879_vm7, %v5400_v5, 0.0  ;;  %v6390_v50 = vmul.f32 %v14051_v2, %v6389_v47  ;;  %v6367_v51 = vsel %vm14068_vm2, %v13981_v13, %v6363_v3  ;;  %v6372_v44 = vsub.f32 1.5, %v6371_v25  ;;  %v11000_v3 = vpop.eup %10999 }
 0x8da   : > { %v6611_v35 = vsel %vm185_vm0, %v6589_v40, 0.0  ;;  %v6514_v42 = vmul.f32 %v6482_v0, %v6118_v29  ;;  %v16082_v40 = vld [vmem:[#allocation7_spill] sm:$0xff]  ;;  %v6528_v37 = vsub.f32 %v13874_v7, %v6512_v24  ;;  %v5195_v18 = vadd.f32 %v5194_v41, %v5193_v14 }
 0x8db   : > { %6612 = vadd.xlane.f32.xlu1 %v6611_v35  ;;  %v14074_v27 = vadd.f32 %v6559_v8, %v16082_v40  ;;  %v5188_v59 = vrot.slane %v5187_v6, 1  ;;  %v6387_v30 = vsel %vm14083_vm4, %v13990_v19, %v6383_v63  ;;  %v6095_v35 = vpop.f32.mrf.mxu0  ;;  %v6402_v53 = vsub.f32 1.5, %v6401_v57  ;;  %v6164_v62 = vpop.f32.mrf.mxu3 }
 0x8dc   : > { %v5284_v13 = vsel %vm1879_vm7, %v5240_v28, 0.0  ;;  %v6530_v10 = vsub.f32 %v13715_v20, %v6514_v42  ;;  %v6496_v49 = vmul.f32 2.0, %v6367_v51  ;;  %v6481_v33 = vmul.f32 %v10996_v11, %v5177_v1 }
 0x8dd   : > { %v6591_v38 = vmul.f32 %v14074_v27, %v14074_v27  ;;  %v6391_v7 = vmul.f32 0.5, %v6390_v50  ;;  %v6373_v14 = vmul.f32 %v14016_v16, %v6372_v44  ;;  %v6498_v19 = vmul.f32 2.0, %v6387_v30 }
 0x8de   : > { %v6544_v17 = vmul.f32 %v6528_v37, %v6496_v49  ;;  %v6484_v5 = vmul.f32 %v10998_v26, %v5195_v18  ;;  %v6403_v20 = vmul.f32 %v14027_v31, %v6402_v53  ;;  %v5189_v48 = vadd.f32 %v5188_v59, %v5187_v6  ;;  %v6141_v6 = vpop.f32.mrf.mxu2  ;;  %v16087_v26 = vld [vmem:[#allocation27_spill] sm:$0xff]  ;;  %v16089_v18 = vld [vmem:[#allocation8_spill] sm:$0xff]  ;;  %v16090_v53 = vld [vmem:[#allocation25_spill] sm:$0xff] }
 0x8df   : > { %5442 = vadd.xlane.f32.xlu0 %v5441_v23  ;;  %v6513_v23 = vmul.f32 %v6481_v33, %v6095_v35  ;;  %v6546_v28 = vmul.f32 %v6530_v10, %v6498_v19  ;;  %v6617_v4 = vsel %vm185_vm0, %v6591_v38, 0.0  ;;  %v6377_v25 = vsel %vm14101_vm11, %v14016_v16, %v6373_v14  ;;  %v16091_v10 = vld [vmem:[#allocation5_spill] sm:$0xff] }
 0x8e0   : > { %5128 = vadd.xlane.f32.xlu2 %v5127_v55  ;;  %v6516_v8 = vmul.f32 %v6484_v5, %v6164_v62  ;;  %v6392_v55 = vsub.f32 1.5, %v6391_v7  ;;  %v6560_v47 = vmul.f32 0.01, %v6544_v17  ;;  %v6407_v41 = vsel %vm6406_vm13, %v14027_v31, %v6403_v20 }
 0x8e1   : > { %v6529_v29 = vsub.f32 %v13889_v39, %v6513_v23  ;;  %v5241_v0 = vmul.f32 %v13498_v32, %v13498_v32  ;;  %v6562_v24 = vmul.f32 0.01, %v6546_v28  ;;  %v6483_v11 = vmul.f32 %v11000_v3, %v5189_v48  ;;  %v5437_v32 = vpop.xlane.xlu1 %5436  ;;  %v16092_v23 = vld [vmem:[#allocation20_spill] sm:$0xff] }
 0x8e2   : > { %v6497_v16 = vmul.f32 2.0, %v6377_v25  ;;  %v6532_v21 = vsub.f32 %v13907_v22, %v6516_v8  ;;  %v6393_v57 = vmul.f32 %v14051_v2, %v6392_v55  ;;  %vm6395_vm14 = vweird.f32 %v14051_v2 }
 0x8e3   : > { %5445 = vadd.xlane.f32.xlu1 %v5444_v9  ;;  %v5121_v36 = vsel %vm1879_vm7, %v5079_v52, 0.0  ;;  %v6515_v45 = vmul.f32 %v6483_v11, %v6141_v6  ;;  %v6500_v63 = vmul.f32 2.0, %v6407_v41  ;;  %v14121_v42 = vadd.f32 %v6560_v47, %v16087_v26 }
 0x8e4   : > { %v6545_v39 = vmul.f32 %v6529_v29, %v6497_v16  ;;  %vm6394_vm15 = vweird.f32 %v14005_v61  ;;  %v5287_v22 = vsel %vm1879_vm7, %v5241_v0, 0.0  ;;  %v14126_v1 = vadd.f32 %v6562_v24, %v16088_v34  ;;  %v5440_v29 = vpop.xlane.xlu2 %5439 }
 0x8e5   : > { %vm6396_vm1 = vmor %vm6394_vm15, %vm6395_vm14  ;;  %v6548_v31 = vmul.f32 %v6532_v21, %v6500_v63  ;;  %v6531_v40 = vsub.f32 %v13768_v56, %v6515_v45  ;;  %v6592_v51 = vmul.f32 %v14121_v42, %v14121_v42  ;;  %v5516_v44 = vrot.slane %v5437_v32, 4 }
 0x8e6   : > { %v6397_v9 = vsel %vm6396_vm1, %v14051_v2, %v6393_v57  ;;  %v6561_v50 = vmul.f32 0.01, %v6545_v39  ;;  %v6594_v37 = vmul.f32 %v14126_v1, %v14126_v1  ;;  %v5356_v59 = vrot.slane %v16089_v18, 4 }
 0x8e7   : > { %5285 = vadd.xlane.f32.xlu0 %v5284_v13  ;;  %v6499_v61 = vmul.f32 2.0, %v6397_v9  ;;  %v6564_v12 = vmul.f32 0.01, %v6548_v31  ;;  %v6620_v35 = vsel %vm185_vm0, %v6592_v51, 0.0  ;;  %v5517_v13 = vadd.f32 %v5516_v44, %v5437_v32 }
 0x8e8   : > { %v14137_v2 = vadd.f32 %v6561_v50, %v16090_v53  ;;  %v6626_v56 = vsel %vm185_vm0, %v6594_v37, 0.0  ;;  %v5357_v33 = vadd.f32 %v5356_v59, %v16089_v18  ;;  %v5522_v3 = vrot.slane %v5440_v29, 4  ;;  %v16093_v18 = vld [vmem:[#allocation10_spill] sm:$0xff] }
 0x8e9   : > { %v6547_v30 = vmul.f32 %v6531_v40, %v6499_v61  ;;  %v14141_v49 = vadd.f32 %v6564_v12, %v16091_v10  ;;  %v5518_v14 = vrot.slane %v5517_v13, 2 }
 0x8ea   : > { %v6593_v7 = vmul.f32 %v14137_v2, %v14137_v2  ;;  %v5358_v19 = vrot.slane %v5357_v33, 2  ;;  %v5523_v41 = vadd.f32 %v5522_v3, %v5440_v29 }
 0x8eb   : > { %6618 = vadd.xlane.f32.xlu1 %v6617_v4  ;;  %v6563_v38 = vmul.f32 0.01, %v6547_v30  ;;  %v6596_v62 = vmul.f32 %v14141_v49, %v14141_v49  ;;  %v5519_v20 = vadd.f32 %v5518_v14, %v5517_v13 }
 0x8ec   : > { %v6623_v17 = vsel %vm185_vm0, %v6593_v7, 0.0  ;;  %v5359_v48 = vadd.f32 %v5358_v19, %v5357_v33  ;;  %v5524_v11 = vrot.slane %v5523_v41, 2 }
 0x8ed   : > { %v14150_v5 = vadd.f32 %v6563_v38, %v16092_v23  ;;  %v6632_v28 = vsel %vm185_vm0, %v6596_v62, 0.0  ;;  %v5520_v8 = vrot.slane %v5519_v20, 1 }
 0x8ee   : > { %v5360_v4 = vrot.slane %v5359_v48, 1  ;;  %v5525_v39 = vadd.f32 %v5524_v11, %v5523_v41 }
 0x8ef   : > { %5122 = vadd.xlane.f32.xlu0 %v5121_v36  ;;  %v6595_v43 = vmul.f32 %v14150_v5, %v14150_v5  ;;  %v5521_v25 = vadd.f32 %v5520_v8, %v5519_v20 }
 0x8f0   : > { %v5361_v52 = vadd.f32 %v5360_v4, %v5359_v48  ;;  %v5526_v34 = vrot.slane %v5525_v39, 1 }
 0x8f1   : > { %v6629_v55 = vsel %vm185_vm0, %v6595_v43, 0.0 }
 0x8f2   : > { %v6293_v47 = vmul.f32 %v5521_v25, %v5361_v52  ;;  %v5527_v37 = vadd.f32 %v5526_v34, %v5525_v39  ;;  %v6187_v25 = vpop.f32.mrf.mxu0 }
 0x8f3   : > { %5288 = vadd.xlane.f32.xlu1 %v5287_v22 }
 0x8f4   : > { %11001 = vrsqrt.f32 %v6293_v47  ;;  %vm6414_vm9 = vweird.f32 %v6293_v47 }
 0x8f7   : > { %6621 = vadd.xlane.f32.xlu0 %v6620_v35 }
 0x8fa   : > { %v14156_v0 = vpop.eup %11001 }
 0x8fb   : > { %6627 = vadd.xlane.f32.xlu1 %v6626_v56  ;;  %v6409_v36 = vmul.f32 %v14156_v0, %v6293_v47  ;;  %vm6415_vm8 = vweird.f32 %v14156_v0 }
 0x8fc   : > { %vm6416_vm10 = vmor %vm6414_vm9, %vm6415_vm8 }
 0x8fd   : > { %v6410_v31 = vmul.f32 %v14156_v0, %v6409_v36  ;;  %v16095_v36 = vld [vmem:[#allocation6_spill] sm:$0xff] }
 0x8ff   : > { %6624 = vadd.xlane.f32.xlu0 %v6623_v17  ;;  %v6411_v61 = vmul.f32 0.5, %v6410_v31 }
 0x901   : > { %v6412_v33 = vsub.f32 1.5, %v6411_v61 }
 0x903   : > { %6633 = vadd.xlane.f32.xlu1 %v6632_v28  ;;  %v6413_v17 = vmul.f32 %v14156_v0, %v6412_v33 }
 0x905   : > { %v6417_v3 = vsel %vm6416_vm10, %v14156_v0, %v6413_v17 }
 0x906   : > { %v6501_v47 = vmul.f32 2.0, %v6417_v3 }
 0x907   : > { %6630 = vadd.xlane.f32.xlu0 %v6629_v55 }
 0x910   : > { %v6604_v6 = vpop.xlane.xlu1 %6603 }
 0x911   : > { %11003 = vrsqrt.f32 %v6604_v6  ;;  %vm6656_vm3 = vweird.f32 %v6604_v6 }
 0x912   : > { %11005 = vrcp.f32 %v5361_v52 }
 0x917   : > { %v11004_v24 = vpop.eup %11003 }
 0x918   : > { %v6651_v16 = vmul.f32 %v11004_v24, %v6604_v6  ;;  %v5280_v21 = vpop.xlane.xlu1 %5279  ;;  %vm6657_vm2 = vweird.f32 %v11004_v24  ;;  %v11006_v23 = vpop.eup %11005 }
 0x919   : > { %v5362_v57 = vrot.slane %v5280_v21, 4  ;;  %vm6658_vm4 = vmor %vm6656_vm3, %vm6657_vm2 }
 0x91a   : > { %v6652_v45 = vmul.f32 %v11004_v24, %v6651_v16  ;;  %v16094_v16 = vld [vmem:[#allocation12_spill] sm:$0xff] }
 0x91b   : > { %v5363_v63 = vadd.f32 %v5362_v57, %v5280_v21 }
 0x91c   : > { %v6653_v26 = vmul.f32 0.5, %v6652_v45 }
 0x91d   : > { %v5364_v32 = vrot.slane %v5363_v63, 2 }
 0x91e   : > { %v6654_v22 = vsub.f32 1.5, %v6653_v26 }
 0x91f   : > { %v5365_v9 = vadd.f32 %v5364_v32, %v5363_v63 }
 0x920   : > { %v6655_v40 = vmul.f32 %v11004_v24, %v6654_v22  ;;  %v5117_v50 = vpop.xlane.xlu1 %5116 }
 0x921   : > { %v5366_v51 = vrot.slane %v5365_v9, 1  ;;  %v5196_v44 = vrot.slane %v5117_v50, 4 }
 0x922   : > { %v6659_v12 = vsel %vm6658_vm4, %v11004_v24, %v6655_v40 }
 0x923   : > { %v14161_v59 = vmul.f32 %v6659_v12, %v16093_v18  ;;  %v5367_v30 = vadd.f32 %v5366_v51, %v5365_v9  ;;  %v5197_v35 = vadd.f32 %v5196_v44, %v5117_v50  ;;  %v6607_v53 = vpop.xlane.xlu2 %6606  ;;  %v16096_v50 = vld [vmem:[#allocation11_spill] sm:$0xff]  ;;  %v16097_v44 = vld [vmem:[#allocation26_spill] sm:$0xff] }
 0x924   : > { %11007 = vrsqrt.f32 %v6607_v53  ;;  %vm6666_vm12 = vweird.f32 %v6607_v53 }
 0x925   : > { %v7244_v13 = vsel %vm185_vm0, %v14161_v59, 0.0  ;;  %v14165_v56 = vmul.f32 %v5527_v37, %v5367_v30  ;;  %v5198_v10 = vrot.slane %v5197_v35, 2  ;;  %10484 = vmatmul.msk.f32.vlgmr.msrb.gmra.mxu1 %vm185_vm0, %v14161_v59 }
 0x926   : > { %v7245_v38 = vrot.slane %v7244_v13, 4 }
 0x927   : > { %11009 = vrsqrt.f32 %v14165_v56  ;;  %v5199_v7 = vadd.f32 %v5198_v10, %v5197_v35  ;;  %vm6424_vm15 = vweird.f32 %v14165_v56 }
 0x928   : > { %v7246_v14 = vadd.f32 %v7245_v38, %v7244_v13  ;;  %11011 = vrcp.f32 %v5367_v30 }
 0x929   : > { %v5200_v62 = vrot.slane %v5199_v7, 1 }
 0x92a   : > { %v7247_v19 = vrot.slane %v7246_v14, 2  ;;  %v11008_v28 = vpop.eup %11007 }
 0x92b   : > { %v5201_v20 = vadd.f32 %v5200_v62, %v5199_v7  ;;  %v14172_v48 = vpop.xlane.xlu2 %5282  ;;  %v6661_v55 = vmul.f32 %v11008_v28, %v6607_v53  ;;  %vm6667_vm11 = vweird.f32 %v11008_v28 }
 0x92c   : > { %v7248_v43 = vadd.f32 %v7247_v19, %v7246_v14  ;;  %vm6668_vm13 = vmor %vm6666_vm12, %vm6667_vm11 }
 0x92d   : > { %v14174_v8 = vpop.eup %11009  ;;  %v6485_v4 = vmul.f32 %v11006_v23, %v5201_v20  ;;  %v6662_v41 = vmul.f32 %v11008_v28, %v6661_v55  ;;  %v6210_v20 = vpop.f32.mrf.mxu1 }
 0x92e   : > { %v6419_v52 = vmul.f32 %v14174_v8, %v14165_v56  ;;  %v7249_v29 = vrot.slane %v7248_v43, 1  ;;  %vm6425_vm14 = vweird.f32 %v14174_v8  ;;  %v11012_v19 = vpop.eup %11011 }
 0x92f   : > { %v6517_v6 = vmul.f32 %v6485_v4, %v6187_v25  ;;  %v6663_v11 = vmul.f32 0.5, %v6662_v41  ;;  %vm6426_vm1 = vmor %vm6424_vm15, %vm6425_vm14  ;;  %v16099_v41 = vld [vmem:[#allocation22_spill] sm:$0xff] }
 0x930   : > { %v7250_v24 = vadd.f32 %v7249_v29, %v7248_v43  ;;  %v6420_v57 = vmul.f32 %v14174_v8, %v6419_v52  ;;  %v5368_v29 = vrot.slane %v14172_v48, 4 }
 0x931   : > { %v6533_v21 = vsub.f32 %v16094_v16, %v6517_v6  ;;  %v6664_v39 = vsub.f32 1.5, %v6663_v11 }
 0x932   : > { %v7356_v45 = vmul.f32 %v7250_v24, %v16095_v36  ;;  %v6421_v34 = vmul.f32 0.5, %v6420_v57 }
 0x933   : > { %v6549_v63 = vmul.f32 %v6533_v21, %v6501_v47  ;;  %v5120_v26 = vpop.xlane.xlu2 %5119  ;;  %v6665_v31 = vmul.f32 %v11008_v28, %v6664_v39  ;;  %v5369_v21 = vadd.f32 %v5368_v29, %v14172_v48 }
 0x934   : > { %v14183_v32 = vsub.f32 %v14161_v59, %v7356_v45  ;;  %v5202_v0 = vrot.slane %v5120_v26, 4  ;;  %v6422_v18 = vsub.f32 1.5, %v6421_v34 }
 0x935   : > { %v6565_v22 = vmul.f32 0.01, %v6549_v63  ;;  %v6669_v9 = vsel %vm6668_vm13, %v11008_v28, %v6665_v31  ;;  %v16100_v63 = vld [vmem:[#allocation9_spill] sm:$0xff]  ;;  %v5370_v48 = vrot.slane %v5369_v21, 2 }
 0x936   : > { %10516 = vmatpush.xpose.msk.msra.mxu3 %vm185_vm0, %v14183_v32  ;;  %8766 = vmatpush.msra.mxu1 %v14183_v32  ;;  %v5203_v40 = vadd.f32 %v5202_v0, %v5120_v26  ;;  %v14192_v61 = vmul.f32 %v6669_v9, %v16097_v44  ;;  %v6423_v14 = vmul.f32 %v14174_v8, %v6422_v18 }
 0x937   : > { %v14189_v51 = vadd.f32 %v6565_v22, %v16096_v50  ;;  %v5371_v44 = vadd.f32 %v5370_v48, %v5369_v21 }
 0x938   : > { %16098 = vst [vmem:[#allocation30_spill] sm:$0xff] %v14192_v61  ;;  %v5204_v12 = vrot.slane %v5203_v40, 2  ;;  %10485 = vmatmul.msk.f32.gmra.mxu1 %vm185_vm0, %v14192_v61  ;;  %v7251_v35 = vsel %vm185_vm0, %v14192_v61, 0.0  ;;  %v6427_v28 = vsel %vm6426_vm1, %v14174_v8, %v6423_v14 }
 0x939   : > { %10517 = vmatmul.msk.f32.vlgmr.msra.gmra.mxu3 %vm185_vm0, %v14183_v32  ;;  %v6597_v37 = vmul.f32 %v14189_v51, %v14189_v51  ;;  %v7252_v13 = vrot.slane %v7251_v35, 4  ;;  %v6502_v6 = vmul.f32 2.0, %v6427_v28 }
 0x93a   : > { %v5205_v53 = vadd.f32 %v5204_v12, %v5203_v40 }
 0x93b   : > { %v6635_v10 = vsel %vm185_vm0, %v6597_v37, 0.0  ;;  %v6616_v33 = vpop.xlane.xlu2 %6615  ;;  %v7253_v7 = vadd.f32 %v7252_v13, %v7251_v35 }
 0x93c   : > { %6636 = vadd.xlane.f32.xlu2 %v6635_v10  ;;  %v5206_v38 = vrot.slane %v5205_v53, 1  ;;  %11013 = vrsqrt.f32 %v6616_v33  ;;  %vm6696_vm3 = vweird.f32 %v6616_v33 }
 0x93d   : > { %v7254_v62 = vrot.slane %v7253_v7, 2 }
 0x93e   : > { %v5207_v30 = vadd.f32 %v5206_v38, %v5205_v53 }
 0x93f   : > { %v7255_v23 = vadd.f32 %v7254_v62, %v7253_v7  ;;  %v5372_v7 = vrot.slane %v5371_v44, 1 }
 0x940   : > { %v6486_v17 = vmul.f32 %v11012_v19, %v5207_v30 }
 0x941   : > { %v7256_v55 = vrot.slane %v7255_v23, 1 }
 0x942   : > { %v11014_v43 = vpop.eup %11013  ;;  %v6518_v4 = vmul.f32 %v6486_v17, %v6210_v20 }
 0x943   : > { %v6691_v25 = vmul.f32 %v11014_v43, %v6616_v33  ;;  %v5126_v52 = vpop.xlane.xlu2 %5125  ;;  %v7257_v3 = vadd.f32 %v7256_v55, %v7255_v23  ;;  %vm6697_vm2 = vweird.f32 %v11014_v43 }
 0x944   : > { %v6534_v24 = vsub.f32 %v16099_v41, %v6518_v4  ;;  %vm6698_vm4 = vmor %vm6696_vm3, %vm6697_vm2  ;;  %v5214_v10 = vrot.slane %v5126_v52, 4 }
 0x945   : > { %v6692_v11 = vmul.f32 %v11014_v43, %v6691_v25  ;;  %v7357_v56 = vmul.f32 %v7257_v3, %v16095_v36  ;;  %v5373_v3 = vadd.f32 %v5372_v7, %v5371_v44 }
 0x946   : > { %v6550_v47 = vmul.f32 %v6534_v24, %v6502_v6  ;;  %v5215_v4 = vadd.f32 %v5214_v10, %v5126_v52 }
 0x947   : > { %v6693_v16 = vmul.f32 0.5, %v6692_v11  ;;  %v14212_v8 = vsub.f32 %v14192_v61, %v7357_v56 }
 0x948   : > { %v6566_v57 = vmul.f32 0.01, %v6550_v47 }
 0x949   : > { %v6694_v45 = vsub.f32 1.5, %v6693_v16  ;;  %10518 = vmatpush.xpose.msk.msrb.mxu0 %vm185_vm0, %v14212_v8  ;;  %8789 = vmatpush.msrb.mxu2 %v14212_v8 }
 0x94a   : > { %v6610_v39 = vpop.xlane.xlu0 %6609  ;;  %v14218_v26 = vadd.f32 %v6566_v57, %v16100_v63  ;;  %v5216_v63 = vrot.slane %v5215_v4, 2 }
 0x94b   : > { %v6695_v31 = vmul.f32 %v11014_v43, %v6694_v45  ;;  %v5449_v0 = vpop.xlane.xlu2 %5448  ;;  %11015 = vrsqrt.f32 %v6610_v39  ;;  %vm6676_vm10 = vweird.f32 %v6610_v39 }
 0x94c   : > { %v6598_v22 = vmul.f32 %v14218_v26, %v14218_v26  ;;  %10519 = vmatmul.msk.f32.vlgmr.msrb.gmra.mxu0 %vm185_vm0, %v14212_v8  ;;  %v5540_v20 = vrot.slane %v5449_v0, 4 }
 0x94d   : > { %v6699_v9 = vsel %vm6698_vm4, %v11014_v43, %v6695_v31 }
 0x94e   : > { %v6613_v34 = vpop.xlane.xlu1 %6612  ;;  %v14225_v40 = vmul.f32 %v6699_v9, %v13925_v15  ;;  %v6638_v50 = vsel %vm185_vm0, %v6598_v22, 0.0  ;;  %v5541_v16 = vadd.f32 %v5540_v20, %v5449_v0 }
 0x94f   : > { %11017 = vrsqrt.f32 %v6613_v34  ;;  %6639 = vadd.xlane.f32.xlu0 %v6638_v50  ;;  %vm6686_vm12 = vweird.f32 %v6613_v34 }
 0x950   : > { %16101 = vst [vmem:[#allocation16_spill] sm:$0xff] %v14225_v40  ;;  %v7272_v12 = vsel %vm185_vm0, %v14225_v40, 0.0 }
 0x951   : > { %v11016_v37 = vpop.eup %11015  ;;  %v7273_v18 = vrot.slane %v7272_v12, 4 }
 0x952   : > { %v6671_v35 = vmul.f32 %v11016_v37, %v6610_v39  ;;  %v5443_v53 = vpop.xlane.xlu0 %5442  ;;  %vm6677_vm8 = vweird.f32 %v11016_v37  ;;  %v5542_v39 = vrot.slane %v5541_v16, 2 }
 0x953   : > { %v5528_v33 = vrot.slane %v5443_v53, 4  ;;  %v7274_v38 = vadd.f32 %v7273_v18, %v7272_v12  ;;  %v5129_v62 = vpop.xlane.xlu2 %5128  ;;  %vm14230_vm11 = vmor %vm6676_vm10, %vm6677_vm8 }
 0x954   : > { %v6672_v14 = vmul.f32 %v11016_v37, %v6671_v35  ;;  %v5220_v24 = vrot.slane %v5129_v62, 4 }
 0x955   : > { %v11018_v13 = vpop.eup %11017  ;;  %v5529_v19 = vadd.f32 %v5528_v33, %v5443_v53  ;;  %v7275_v23 = vrot.slane %v7274_v38, 2  ;;  %v14240_v33 = vadd.f32 %v5216_v63, %v5215_v4 }
 0x956   : > { %v6681_v30 = vmul.f32 %v11018_v13, %v6613_v34  ;;  %v5446_v15 = vpop.xlane.xlu1 %5445  ;;  %v6673_v28 = vmul.f32 0.5, %v6672_v14  ;;  %vm6687_vm9 = vweird.f32 %v11018_v13  ;;  %v5221_v9 = vadd.f32 %v5220_v24, %v5129_v62 }
 0x957   : > { %v5534_v17 = vrot.slane %v5446_v15, 4  ;;  %v5530_v55 = vrot.slane %v5529_v19, 2  ;;  %v7276_v29 = vadd.f32 %v7275_v23, %v7274_v38  ;;  %vm6688_vm13 = vmor %vm6686_vm12, %vm6687_vm9  ;;  %v14254_v62 = vadd.f32 %v5542_v39, %v5541_v16 }
 0x958   : > { %v6682_v43 = vmul.f32 %v11018_v13, %v6681_v30  ;;  %v6674_v6 = vsub.f32 1.5, %v6673_v28  ;;  %v5222_v7 = vrot.slane %v5221_v9, 2  ;;  %v5218_v4 = vrot.slane %v14240_v33, 1 }
 0x959   : > { %v5535_v25 = vadd.f32 %v5534_v17, %v5446_v15  ;;  %v5531_v11 = vadd.f32 %v5530_v55, %v5529_v19  ;;  %v7277_v47 = vrot.slane %v7276_v29, 1 }
 0x95a   : > { %v6683_v41 = vmul.f32 0.5, %v6682_v43  ;;  %v6675_v21 = vmul.f32 %v11016_v37, %v6674_v6  ;;  %v5286_v45 = vpop.xlane.xlu0 %5285  ;;  %v5223_v55 = vadd.f32 %v5222_v7, %v5221_v9 }
 0x95b   : > { %v5536_v56 = vrot.slane %v5535_v25, 2  ;;  %v5532_v31 = vrot.slane %v5531_v11, 1  ;;  %v5374_v52 = vrot.slane %v5286_v45, 4  ;;  %v7278_v50 = vadd.f32 %v7277_v47, %v7276_v29 }
 0x95c   : > { %v6684_v57 = vsub.f32 1.5, %v6683_v41  ;;  %v6679_v0 = vsel %vm14230_vm11, %v11016_v37, %v6675_v21 }
 0x95d   : > { %v5533_v12 = vadd.f32 %v5532_v31, %v5531_v11  ;;  %v5537_v18 = vadd.f32 %v5536_v56, %v5535_v25  ;;  %v5375_v35 = vadd.f32 %v5374_v52, %v5286_v45  ;;  %v7360_v10 = vmul.f32 %v7278_v50, %v16095_v36 }
 0x95e   : > { %v6685_v22 = vmul.f32 %v11018_v13, %v6684_v57  ;;  %v14234_v44 = vpop.xlane.xlu1 %6618  ;;  %v14248_v37 = vmul.f32 %v6679_v0, %v14022_v46  ;;  %v5544_v11 = vrot.slane %v14254_v62, 1 }
 0x95f   : > { %11019 = vrsqrt.f32 %v14234_v44  ;;  %v14242_v34 = vmul.f32 %v5533_v12, %v5373_v3  ;;  %v5376_v38 = vrot.slane %v5375_v35, 2  ;;  %v14245_v14 = vsub.f32 %v14225_v40, %v7360_v10 }
 0x960   : > { %v6689_v53 = vsel %vm6688_vm13, %v11018_v13, %v6685_v22  ;;  %16104 = vst [vmem:[#allocation31_spill] sm:$0xff] %v14248_v37  ;;  %v5538_v13 = vrot.slane %v5537_v18, 1  ;;  %v7258_v19 = vsel %vm185_vm0, %v14248_v37, 0.0  ;;  %10486 = vmatmul.msk.f32.gmra.mxu1 %vm185_vm0, %v14248_v37  ;;  %v5224_v22 = vrot.slane %v5223_v55, 1 }
 0x961   : > { %v14251_v30 = vmul.f32 %v6689_v53, %v14034_v60  ;;  %11021 = vrsqrt.f32 %v14242_v34  ;;  %v5377_v15 = vadd.f32 %v5376_v38, %v5375_v35  ;;  %8858 = vmatpush.msrb.mxu1 %v14245_v14  ;;  %v7259_v60 = vrot.slane %v7258_v19, 4 }
 0x962   : > { %v5123_v17 = vpop.xlane.xlu0 %5122  ;;  %11023 = vrcp.f32 %v5373_v3  ;;  %v5539_v29 = vadd.f32 %v5538_v13, %v5537_v18  ;;  %vm6706_vm15 = vweird.f32 %v14234_v44  ;;  %vm6434_vm2 = vweird.f32 %v14242_v34 }
 0x963   : > { %16105 = vst [vmem:[#allocation14_spill] sm:$0xff] %v14251_v30  ;;  %v7265_v23 = vsel %vm185_vm0, %v14251_v30, 0.0  ;;  %v5378_v46 = vrot.slane %v5377_v15, 1  ;;  %v5208_v20 = vrot.slane %v5123_v17, 4  ;;  %v7260_v24 = vadd.f32 %v7259_v60, %v7258_v19 }
 0x964   : > { %v7266_v28 = vrot.slane %v7265_v23, 4 }
 0x965   : > { %v14263_v43 = vpop.eup %11019  ;;  %v5379_v6 = vadd.f32 %v5378_v46, %v5377_v15  ;;  %v5209_v56 = vadd.f32 %v5208_v20, %v5123_v17  ;;  %v7261_v45 = vrot.slane %v7260_v24, 2  ;;  %v5219_v20 = vadd.f32 %v5218_v4, %v14240_v33 }
 0x966   : > { %v5289_v25 = vpop.xlane.xlu1 %5288  ;;  %v6701_v41 = vmul.f32 %v14263_v43, %v14234_v44  ;;  %v7267_v16 = vadd.f32 %v7266_v28, %v7265_v23  ;;  %vm6707_vm14 = vweird.f32 %v14263_v43  ;;  %v14303_v4 = vadd.f32 %v5224_v22, %v5223_v55 }
 0x967   : > { %v5380_v47 = vrot.slane %v5289_v25, 4  ;;  %v14269_v21 = vpop.eup %11021  ;;  %v14271_v57 = vmul.f32 %v5539_v29, %v5379_v6  ;;  %11025 = vrcp.f32 %v5379_v6  ;;  %v5210_v31 = vrot.slane %v5209_v56, 2  ;;  %vm14292_vm1 = vmor %vm6706_vm15, %vm6707_vm14 }
 0x968   : > { %v6702_v3 = vmul.f32 %v14263_v43, %v6701_v41  ;;  %v6429_v63 = vmul.f32 %v14269_v21, %v14242_v34  ;;  %v7268_v48 = vrot.slane %v7267_v16, 2  ;;  %v7262_v50 = vadd.f32 %v7261_v45, %v7260_v24  ;;  %v11024_v0 = vpop.eup %11023  ;;  %10487 = vmatmul.msk.f32.gmra.mxu1 %vm185_vm0, %v14251_v30 }
 0x969   : > { %v5381_v52 = vadd.f32 %v5380_v47, %v5289_v25  ;;  %11027 = vrsqrt.f32 %v14271_v57  ;;  %v5211_v18 = vadd.f32 %v5210_v31, %v5209_v56  ;;  %v5545_v24 = vadd.f32 %v5544_v11, %v14254_v62 }
 0x96a   : > { %v6703_v9 = vmul.f32 0.5, %v6702_v3  ;;  %v6430_v12 = vmul.f32 %v14269_v21, %v6429_v63  ;;  %v14278_v39 = vpop.xlane.xlu0 %6621  ;;  %v7269_v53 = vadd.f32 %v7268_v48, %v7267_v16  ;;  %v7263_v38 = vrot.slane %v7262_v50, 1 }
 0x96b   : > { %v5382_v35 = vrot.slane %v5381_v52, 2  ;;  %11029 = vrsqrt.f32 %v14278_v39  ;;  %v5212_v13 = vrot.slane %v5211_v18, 1  ;;  %vm6435_vm3 = vweird.f32 %v14269_v21 }
 0x96c   : > { %v6704_v10 = vsub.f32 1.5, %v6703_v9  ;;  %v6431_v7 = vmul.f32 0.5, %v6430_v12  ;;  %v7270_v17 = vrot.slane %v7269_v53, 1  ;;  %v7264_v60 = vadd.f32 %v7263_v38, %v7262_v50  ;;  %vm6436_vm10 = vmor %vm6434_vm2, %vm6435_vm3 }
 0x96d   : > { %v5383_v15 = vadd.f32 %v5382_v35, %v5381_v52  ;;  %v11026_v23 = vpop.eup %11025  ;;  %v5213_v25 = vadd.f32 %v5212_v13, %v5211_v18  ;;  %vm6716_vm4 = vweird.f32 %v14278_v39  ;;  %vm6444_vm9 = vweird.f32 %v14271_v57 }
 0x96e   : > { %v14284_v19 = vpop.xlane.xlu1 %6627  ;;  %v6705_v46 = vmul.f32 %v14263_v43, %v6704_v10  ;;  %v7271_v6 = vadd.f32 %v7270_v17, %v7269_v53  ;;  %v6432_v56 = vsub.f32 1.5, %v6431_v7  ;;  %v7358_v33 = vmul.f32 %v7264_v60, %v16095_v36 }
 0x96f   : > { %11031 = vrsqrt.f32 %v14284_v19  ;;  %v5384_v29 = vrot.slane %v5383_v15, 1  ;;  %v14296_v41 = vpop.eup %11027  ;;  %v6487_v16 = vmul.f32 %v11024_v0, %v5213_v25  ;;  %vm6736_vm8 = vweird.f32 %v14284_v19 }
 0x970   : > { %v6709_v44 = vsel %vm14292_vm1, %v14263_v43, %v6705_v46  ;;  %v6439_v47 = vmul.f32 %v14296_v41, %v14271_v57  ;;  %v14311_v62 = vsub.f32 %v14248_v37, %v7358_v33  ;;  %v7359_v11 = vmul.f32 %v7271_v6, %v16095_v36  ;;  %v6233_v43 = vpop.f32.mrf.mxu2  ;;  %10488 = vmatmul.msk.f32.gmra.mxu1 %vm185_vm0, %v14225_v40 }
 0x971   : > { %v5385_v3 = vadd.f32 %v5384_v29, %v5383_v15  ;;  %v14307_v45 = vpop.eup %11029  ;;  %v14321_v52 = vmul.f32 %v6709_v44, %v14074_v27  ;;  %v6519_v22 = vmul.f32 %v6487_v16, %v6233_v43  ;;  %v6433_v50 = vmul.f32 %v14269_v21, %v6432_v56 }
 0x972   : > { %v6440_v55 = vmul.f32 %v14296_v41, %v6439_v47  ;;  %v14318_v31 = vpop.xlane.xlu0 %6624  ;;  %v6711_v9 = vmul.f32 %v14307_v45, %v14278_v39  ;;  %10520 = vmatpush.xpose.msk.msrb.mxu3 %vm185_vm0, %v14311_v62  ;;  %v14345_v35 = vsub.f32 %v14251_v30, %v7359_v11  ;;  %v6488_v53 = vmul.f32 %v11026_v23, %v5219_v20  ;;  %v16109_v23 = vld [vmem:[#allocation15_spill] sm:$0xff]  ;;  %v6256_v20 = vpop.f32.mrf.mxu3 }
 0x973   : > { %v14316_v63 = vmul.f32 %v5545_v24, %v5385_v3  ;;  %11033 = vrcp.f32 %v5385_v3  ;;  %16108 = vst [vmem:[#allocation17_spill] sm:$0xff] %v14321_v52  ;;  %v7279_v7 = vsel %vm185_vm0, %v14321_v52, 0.0  ;;  %vm6445_vm11 = vweird.f32 %v14296_v41 }
 0x974   : > { %11035 = vrsqrt.f32 %v14318_v31  ;;  %v6441_v27 = vmul.f32 0.5, %v6440_v55  ;;  %v6712_v18 = vmul.f32 %v14307_v45, %v6711_v9  ;;  %10522 = vmatpush.xpose.msk.msra.mxu0 %vm185_vm0, %v14345_v35  ;;  %v7280_v15 = vrot.slane %v7279_v7, 4 }
 0x975   : > { %v14323_v48 = vpop.eup %11031  ;;  %11037 = vrsqrt.f32 %v14316_v63  ;;  %10521 = vmatmul.msk.f32.vlgmr.msrb.gmra.mxu3 %vm185_vm0, %v14311_v62  ;;  %v6437_v17 = vsel %vm6436_vm10, %v14269_v21, %v6433_v50  ;;  %v6535_v46 = vsub.f32 %v16109_v23, %v6519_v22  ;;  %vm6717_vm12 = vweird.f32 %v14307_v45 }
 0x976   : > { %v6731_v0 = vmul.f32 %v14323_v48, %v14284_v19  ;;  %10524 = vmatpush.xpose.msk.msra.mxu3 %vm185_vm0, %v14245_v14  ;;  %v14340_v12 = vpop.xlane.xlu1 %6633  ;;  %v6442_v10 = vsub.f32 1.5, %v6441_v27  ;;  %v6713_v13 = vmul.f32 0.5, %v6712_v18  ;;  %vm6737_vm13 = vweird.f32 %v14323_v48  ;;  %vm6718_vm15 = vmor %vm6716_vm4, %vm6717_vm12 }
 0x977   : > { %11039 = vrsqrt.f32 %v14340_v12  ;;  %v6503_v34 = vmul.f32 2.0, %v6437_v17  ;;  %v7281_v6 = vadd.f32 %v7280_v15, %v7279_v7  ;;  %v14367_v56 = vmul.f32 %v6488_v53, %v6256_v20  ;;  %10523 = vmatmul.msk.f32.vlgmr.msra.gmra.mxu0 %vm185_vm0, %v14345_v35  ;;  %vm14405_vm3 = vmor %vm6736_vm8, %vm6737_vm13  ;;  %v16113_v7 = vld [vmem:[#allocation13_spill] sm:$0xff] }
 0x978   : > { %v6732_v38 = vmul.f32 %v14323_v48, %v6731_v0  ;;  %v6714_v29 = vsub.f32 1.5, %v6713_v13  ;;  %v6443_v24 = vmul.f32 %v14296_v41, %v6442_v10  ;;  %vm6726_vm14 = vweird.f32 %v14318_v31  ;;  %10489 = vmatmul.msk.f32.gmra.mxu1 %vm185_vm0, %v14321_v52  ;;  %vm6446_vm8 = vmor %vm6444_vm9, %vm6445_vm11 }
 0x979   : > { %v11034_v60 = vpop.eup %11033  ;;  %v6551_v16 = vmul.f32 %v6535_v46, %v6503_v34  ;;  %v7282_v22 = vrot.slane %v7281_v6, 2  ;;  %vm6756_vm2 = vweird.f32 %v14340_v12  ;;  %vm6454_vm10 = vweird.f32 %v14316_v63 }
 0x97a   : > { %v6733_v28 = vmul.f32 0.5, %v6732_v38  ;;  %v14364_v25 = vpop.eup %11035  ;;  %v14376_v47 = vpop.xlane.xlu0 %6630  ;;  %v14379_v3 = vmul.f32 %v11034_v60, %v14303_v4  ;;  %v6715_v55 = vmul.f32 %v14307_v45, %v6714_v29 }
 0x97b   : > { %v14369_v44 = vpop.eup %11037  ;;  %v6721_v33 = vmul.f32 %v14364_v25, %v14318_v31  ;;  %11041 = vrsqrt.f32 %v14376_v47  ;;  %vm6727_vm1 = vweird.f32 %v14364_v25  ;;  %v6567_v18 = vmul.f32 0.01, %v6551_v16 }
 0x97c   : > { %v6734_v21 = vsub.f32 1.5, %v6733_v28  ;;  %v6449_v43 = vmul.f32 %v14369_v44, %v14316_v63  ;;  %v6719_v0 = vsel %vm6718_vm15, %v14307_v45, %v6715_v55  ;;  %v7283_v15 = vadd.f32 %v7282_v22, %v7281_v6  ;;  %vm6728_vm12 = vmor %vm6726_vm14, %vm6727_vm1 }
 0x97d   : > { %v14381_v11 = vpop.eup %11039  ;;  %v6722_v9 = vmul.f32 %v14364_v25, %v6721_v33  ;;  %10525 = vmatmul.msk.f32.vlgmr.msra.gmra.mxu3 %vm185_vm0, %v14245_v14  ;;  %v14417_v45 = vmul.f32 %v6719_v0, %v14121_v42  ;;  %v14424_v13 = vadd.f32 %v6567_v18, %v16113_v7  ;;  %vm6746_vm9 = vweird.f32 %v14376_v47 }
 0x97e   : > { %v6735_v4 = vmul.f32 %v14323_v48, %v6734_v21  ;;  %v6751_v50 = vmul.f32 %v14381_v11, %v14340_v12  ;;  %v6450_v27 = vmul.f32 %v14369_v44, %v6449_v43  ;;  %vm6757_vm4 = vweird.f32 %v14381_v11 }
 0x97f   : > { %v6723_v10 = vmul.f32 0.5, %v6722_v9  ;;  %16112 = vst [vmem:[#allocation18_spill] sm:$0xff] %v14417_v45  ;;  %v7286_v46 = vsel %vm185_vm0, %v14417_v45, 0.0  ;;  %v6599_v57 = vmul.f32 %v14424_v13, %v14424_v13  ;;  %v7284_v34 = vrot.slane %v7283_v15, 1  ;;  %vm6758_vm13 = vmor %vm6756_vm2, %vm6757_vm4 }
 0x980   : > { %v6739_v53 = vsel %vm14405_vm3, %v14323_v48, %v6735_v4  ;;  %v6752_v38 = vmul.f32 %v14381_v11, %v6751_v50  ;;  %v6451_v19 = vmul.f32 0.5, %v6450_v27  ;;  %v6447_v48 = vsel %vm6446_vm8, %v14296_v41, %v6443_v24  ;;  %10490 = vmatmul.msk.f32.gmra.mxu1 %vm185_vm0, %v14417_v45 }
 0x981   : > { %v6724_v17 = vsub.f32 1.5, %v6723_v10  ;;  %v6504_v60 = vmul.f32 2.0, %v6447_v48  ;;  %v14429_v42 = vpop.eup %11041  ;;  %v7287_v28 = vrot.slane %v7286_v46, 4  ;;  %v6641_v24 = vsel %vm185_vm0, %v6599_v57, 0.0 }
 0x982   : > { %v6753_v23 = vmul.f32 0.5, %v6752_v38  ;;  %v6452_v20 = vsub.f32 1.5, %v6451_v19  ;;  %v6741_v41 = vmul.f32 %v14429_v42, %v14376_v47  ;;  %vm6747_vm11 = vweird.f32 %v14429_v42  ;;  %6642 = vadd.xlane.f32.xlu1 %v6641_v24 }
 0x983   : > { %v6725_v29 = vmul.f32 %v14364_v25, %v6724_v17  ;;  %v7288_v21 = vadd.f32 %v7287_v28, %v7286_v46  ;;  %v7285_v33 = vadd.f32 %v7284_v34, %v7283_v15  ;;  %v6536_v16 = vsub.f32 %v13931_v54, %v14367_v56  ;;  %vm6748_vm1 = vmor %vm6746_vm9, %vm6747_vm11 }
 0x984   : > { %v6754_v6 = vsub.f32 1.5, %v6753_v23  ;;  %v6742_v22 = vmul.f32 %v14429_v42, %v6741_v41  ;;  %v14452_v31 = vmul.f32 %v6739_v53, %v14126_v1  ;;  %v6453_v1 = vmul.f32 %v14369_v44, %v6452_v20 }
 0x985   : > { %v6729_v43 = vsel %vm6728_vm12, %v14364_v25, %v6725_v29  ;;  %v7289_v4 = vrot.slane %v7288_v21, 2  ;;  %v7361_v9 = vmul.f32 %v7285_v33, %v16095_v36  ;;  %v6552_v50 = vmul.f32 %v6536_v16, %v6504_v60 }
 0x986   : > { %v6755_v55 = vmul.f32 %v14381_v11, %v6754_v6  ;;  %16114 = vst [vmem:[#allocation21_spill] sm:$0xff] %v14452_v31  ;;  %v14460_v54 = vmul.f32 %v6729_v43, %v14137_v2  ;;  %v6743_v56 = vmul.f32 0.5, %v6742_v22  ;;  %v7300_v27 = vsel %vm185_vm0, %v14452_v31, 0.0  ;;  %v6279_v2 = vpop.f32.mrf.mxu0 }
 0x987   : > { %v14470_v12 = vsub.f32 %v14321_v52, %v7361_v9  ;;  %v6568_v39 = vmul.f32 0.01, %v6552_v50  ;;  %v7290_v38 = vadd.f32 %v7289_v4, %v7288_v21  ;;  %vm6455_vm14 = vweird.f32 %v14369_v44 }
 0x988   : > { %16115 = vst [vmem:[#allocation19_spill] sm:$0xff] %v14460_v54  ;;  %v6759_v25 = vsel %vm6758_vm13, %v14381_v11, %v6755_v55  ;;  %v7293_v18 = vsel %vm185_vm0, %v14460_v54, 0.0  ;;  %v6744_v53 = vsub.f32 1.5, %v6743_v56  ;;  %v7301_v11 = vrot.slane %v7300_v27, 4  ;;  %vm6456_vm15 = vmor %vm6454_vm10, %vm6455_vm14  ;;  %10491 = vmatmul.msk.f32.gmra.mxu1 %vm185_vm0, %v14460_v54 }
 0x989   : > { %v14467_v0 = vmul.f32 %v6759_v25, %v14141_v49  ;;  %v7294_v10 = vrot.slane %v7293_v18, 4  ;;  %10526 = vmatpush.xpose.msk.msrb.mxu0 %vm185_vm0, %v14470_v12  ;;  %v16117_v49 = vld [vmem:[#allocation24_spill] sm:$0xff]  ;;  %v6521_v15 = vmul.f32 %v14379_v3, %v6279_v2  ;;  %v7291_v3 = vrot.slane %v7290_v38, 1 }
 0x98a   : > { %v14479_v7 = vadd.f32 %v6568_v39, %v16117_v49  ;;  %v6745_v17 = vmul.f32 %v14429_v42, %v6744_v53  ;;  %v7302_v46 = vadd.f32 %v7301_v11, %v7300_v27  ;;  %v6457_v20 = vsel %vm6456_vm15, %v14369_v44, %v6453_v1  ;;  %v16119_v1 = vld [vmem:[#allocation29_spill] sm:$0xff] }
 0x98b   : > { %16116 = vst [vmem:[#allocation23_spill] sm:$0xff] %v14467_v0  ;;  %v7314_v19 = vsel %vm185_vm0, %v14467_v0, 0.0  ;;  %v7295_v23 = vadd.f32 %v7294_v10, %v7293_v18  ;;  %v6537_v57 = vsub.f32 %v13941_v58, %v6521_v15  ;;  %v7292_v6 = vadd.f32 %v7291_v3, %v7290_v38 }
 0x98c   : > { %v7315_v48 = vrot.slane %v7314_v19, 4  ;;  %v6600_v60 = vmul.f32 %v14479_v7, %v14479_v7  ;;  %v6749_v63 = vsel %vm6748_vm1, %v14429_v42, %v6745_v17  ;;  %10527 = vmatmul.msk.f32.vlgmr.msrb.gmra.mxu0 %vm185_vm0, %v14470_v12  ;;  %v7303_v47 = vrot.slane %v7302_v46, 2 }
 0x98d   : > { %v7296_v34 = vrot.slane %v7295_v23, 2  ;;  %v6505_v41 = vmul.f32 2.0, %v6457_v20  ;;  %v14501_v24 = vmul.f32 %v6749_v63, %v14150_v5  ;;  %v7362_v58 = vmul.f32 %v7292_v6, %v16095_v36 }
 0x98e   : > { %v7316_v28 = vadd.f32 %v7315_v48, %v7314_v19  ;;  %v6644_v29 = vsel %vm185_vm0, %v6600_v60, 0.0  ;;  %v7304_v44 = vadd.f32 %v7303_v47, %v7302_v46 }
 0x98f   : > { %16118 = vst [vmem:[#allocation7_spill] sm:$0xff] %v14501_v24  ;;  %6645 = vadd.xlane.f32.xlu2 %v6644_v29  ;;  %v7297_v33 = vadd.f32 %v7296_v34, %v7295_v23  ;;  %v6553_v16 = vmul.f32 %v6537_v57, %v6505_v41  ;;  %v7307_v42 = vsel %vm185_vm0, %v14501_v24, 0.0  ;;  %v14507_v9 = vsub.f32 %v14417_v45, %v7362_v58  ;;  %v14554_v57 = vld [vmem:[%s15894_s1 + $0x20] ss:$0 sm:$0xff] }
 0x990   : > { %v7317_v21 = vrot.slane %v7316_v28, 2  ;;  %v7305_v43 = vrot.slane %v7304_v44, 1  ;;  %v7308_v55 = vrot.slane %v7307_v42, 4  ;;  %10492 = vmatmul.msk.f32.gmra.mxu1 %vm185_vm0, %v14452_v31 }
 0x991   : > { %v7298_v22 = vrot.slane %v7297_v33, 1  ;;  %v6569_v50 = vmul.f32 0.01, %v6553_v16  ;;  %10528 = vmatpush.xpose.msk.msrb.mxu3 %vm185_vm0, %v14507_v9 }
 0x992   : > { %v7318_v4 = vadd.f32 %v7317_v21, %v7316_v28  ;;  %v7306_v5 = vadd.f32 %v7305_v43, %v7304_v44  ;;  %v7309_v25 = vadd.f32 %v7308_v55, %v7307_v42 }
 0x993   : > { %v7299_v56 = vadd.f32 %v7298_v22, %v7297_v33  ;;  %v14514_v39 = vadd.f32 %v6569_v50, %v16119_v1 }
 0x994   : > { %v7319_v27 = vrot.slane %v7318_v4, 1  ;;  %v7364_v18 = vmul.f32 %v7306_v5, %v16095_v36  ;;  %v7310_v2 = vrot.slane %v7309_v25, 2  ;;  %10529 = vmatmul.msk.f32.vlgmr.msrb.gmra.mxu3 %vm185_vm0, %v14507_v9 }
 0x995   : > { %v7363_v53 = vmul.f32 %v7299_v56, %v16095_v36  ;;  %v6601_v11 = vmul.f32 %v14514_v39, %v14514_v39 }
 0x996   : > { %v7320_v10 = vadd.f32 %v7319_v27, %v7318_v4  ;;  %v14523_v38 = vsub.f32 %v14452_v31, %v7364_v18  ;;  %v7311_v15 = vadd.f32 %v7310_v2, %v7309_v25 }
 0x997   : > { %v14526_v19 = vsub.f32 %v14460_v54, %v7363_v53  ;;  %v6647_v48 = vsel %vm185_vm0, %v6601_v11, 0.0 }
 0x998   : > { %v7366_v49 = vmul.f32 %v7320_v10, %v16095_v36  ;;  %6648 = vadd.xlane.f32.xlu0 %v6647_v48  ;;  %10532 = vmatpush.xpose.msk.msra.mxu3 %vm185_vm0, %v14523_v38  ;;  %v7312_v23 = vrot.slane %v7311_v15, 1 }
 0x999   : > { %10530 = vmatpush.xpose.msk.msra.mxu0 %vm185_vm0, %v14526_v19  ;;  %10493 = vmatmul.msk.f32.gmra.mxu1 %vm185_vm0, %v14501_v24 }
 0x99a   : > { %v14533_v17 = vsub.f32 %v14467_v0, %v7366_v49  ;;  %v7313_v46 = vadd.f32 %v7312_v23, %v7311_v15 }
 0x99c   : > { %10536 = vmatpush.xpose.msk.msrb.mxu3 %vm185_vm0, %v14533_v17  ;;  %10531 = vmatmul.msk.f32.vlgmr.msra.gmra.mxu0 %vm185_vm0, %v14526_v19  ;;  %v7365_v60 = vmul.f32 %v7313_v46, %v16095_v36 }
 0x99d   : > { %10533 = vmatmul.msk.f32.vlgmr.msra.gmra.mxu3 %vm185_vm0, %v14523_v38 }
 0x99e   : > { %v14547_v3 = vsub.f32 %v14501_v24, %v7365_v60 }
 0x9a0   : > { %10534 = vmatpush.xpose.msk.msrb.mxu0 %vm185_vm0, %v14547_v3 }
 0x9a1   : > { %10494 = vmatmul.msk.f32.gmra.mxu1 %vm185_vm0, %v14467_v0 }
 0x9a2   : > { %v6891_v20 = vpop.f32.mrf.mxu1 }
 0x9a3   : > { %v6892_v28 = vadd.f32 %v14554_v57, %v6891_v20 }
 0x9a4   : > { %10535 = vmatmul.msk.f32.vlgmr.msrb.gmra.mxu0 %vm185_vm0, %v14547_v3 }
 0x9a5   : > { %v6939_v63 = vmax.f32 %v6892_v28, 0.0  ;;  %10537 = vmatmul.msk.f32.vlgmr.msrb.gmra.mxu3 %vm185_vm0, %v14533_v17 }
 0x9a7   : > { %10500 = vmatmul.msk.f32.vlgmr.msra.gmra.mxu2 %vm541_vm5, %v6939_v63 }
 0x9a8   : > { %8881 = vmatpush.msra.mxu2 %v14470_v12 }
 0x9af   : > { %v6637_v34 = vpop.xlane.xlu2 %6636 }
 0x9b0   : > { %11043 = vrsqrt.f32 %v6637_v34  ;;  %vm6766_vm3 = vweird.f32 %v6637_v34 }
 0x9b5   : > { %v6894_v6 = vpop.f32.mrf.mxu1 }
 0x9b6   : > { %v11044_v47 = vpop.eup %11043  ;;  %v6895_v41 = vadd.f32 %v14554_v57, %v6894_v6 }
 0x9b7   : > { %v6761_v29 = vmul.f32 %v11044_v47, %v6637_v34  ;;  %vm6767_vm2 = vweird.f32 %v11044_v47 }
 0x9b8   : > { %v6940_v44 = vmax.f32 %v6895_v41, 0.0  ;;  %vm6768_vm4 = vmor %vm6766_vm3, %vm6767_vm2 }
 0x9b9   : > { %v6762_v21 = vmul.f32 %v11044_v47, %v6761_v29 }
 0x9ba   : > { %10501 = vmatmul.msk.f32.gmra.mxu2 %vm541_vm5, %v6940_v44 }
 0x9bb   : > { %v6763_v33 = vmul.f32 0.5, %v6762_v21 }
 0x9bd   : > { %v6764_v58 = vsub.f32 1.5, %v6763_v33 }
 0x9bf   : > { %v6765_v16 = vmul.f32 %v11044_v47, %v6764_v58 }
 0x9c1   : > { %v6769_v42 = vsel %vm6768_vm4, %v11044_v47, %v6765_v16 }
 0x9c2   : > { %v14568_v43 = vmul.f32 %v6769_v42, %v14189_v51  ;;  %v6640_v55 = vpop.xlane.xlu0 %6639 }
 0x9c3   : > { %11045 = vrsqrt.f32 %v6640_v55  ;;  %vm6776_vm10 = vweird.f32 %v6640_v55 }
 0x9c4   : > { %16120 = vst [vmem:[#allocation27_spill] sm:$0xff] %v14568_v43  ;;  %10495 = vmatmul.msk.f32.gmra.mxu1 %vm185_vm0, %v14568_v43  ;;  %v7321_v22 = vsel %vm185_vm0, %v14568_v43, 0.0 }
 0x9c5   : > { %v7322_v4 = vrot.slane %v7321_v22, 4 }
 0x9c7   : > { %v7323_v50 = vadd.f32 %v7322_v4, %v7321_v22 }
 0x9c9   : > { %v7324_v5 = vrot.slane %v7323_v50, 2  ;;  %v11046_v25 = vpop.eup %11045 }
 0x9ca   : > { %v6771_v56 = vmul.f32 %v11046_v25, %v6640_v55  ;;  %vm6777_vm8 = vweird.f32 %v11046_v25 }
 0x9cb   : > { %v7325_v27 = vadd.f32 %v7324_v5, %v7323_v50  ;;  %vm6778_vm9 = vmor %vm6776_vm10, %vm6777_vm8 }
 0x9cc   : > { %v6772_v1 = vmul.f32 %v11046_v25, %v6771_v56 }
 0x9cd   : > { %v7326_v18 = vrot.slane %v7325_v27, 1 }
 0x9ce   : > { %v6773_v2 = vmul.f32 0.5, %v6772_v1 }
 0x9cf   : > { %v7327_v53 = vadd.f32 %v7326_v18, %v7325_v27 }
 0x9d0   : > { %v6774_v51 = vsub.f32 1.5, %v6773_v2 }
 0x9d1   : > { %v7367_v10 = vmul.f32 %v7327_v53, %v16095_v36 }
 0x9d2   : > { %v6775_v11 = vmul.f32 %v11046_v25, %v6774_v51 }
 0x9d3   : > { %v14576_v49 = vsub.f32 %v14568_v43, %v7367_v10 }
 0x9d4   : > { %v6779_v15 = vsel %vm6778_vm9, %v11046_v25, %v6775_v11 }
 0x9d5   : > { %10538 = vmatpush.xpose.msk.msra.mxu0 %vm185_vm0, %v14576_v49  ;;  %v14581_v48 = vmul.f32 %v6779_v15, %v14218_v26 }
 0x9d7   : > { %16121 = vst [vmem:[#allocation28_spill] sm:$0xff] %v14581_v48  ;;  %10496 = vmatmul.msk.f32.gmra.mxu1 %vm185_vm0, %v14581_v48  ;;  %v7328_v23 = vsel %vm185_vm0, %v14581_v48, 0.0 }
 0x9d8   : > { %10539 = vmatmul.msk.f32.vlgmr.msra.gmra.mxu0 %vm185_vm0, %v14576_v49  ;;  %v7329_v46 = vrot.slane %v7328_v23, 4 }
 0x9da   : > { %v7330_v60 = vadd.f32 %v7329_v46, %v7328_v23 }
 0x9dc   : > { %v7331_v20 = vrot.slane %v7330_v60, 2 }
 0x9dd   : > { %v6897_v63 = vpop.f32.mrf.mxu1 }
 0x9de   : > { %v7332_v28 = vadd.f32 %v7331_v20, %v7330_v60  ;;  %v6898_v47 = vadd.f32 %v14554_v57, %v6897_v63 }
 0x9e0   : > { %v7333_v34 = vrot.slane %v7332_v28, 1  ;;  %v6941_v26 = vmax.f32 %v6898_v47, 0.0 }
 0x9e2   : > { %v7334_v29 = vadd.f32 %v7333_v34, %v7332_v28  ;;  %10502 = vmatmul.msk.f32.gmra.mxu2 %vm541_vm5, %v6941_v26 }
 0x9e4   : > { %v7368_v6 = vmul.f32 %v7334_v29, %v16095_v36 }
 0x9e5   : > { %v6900_v21 = vpop.f32.mrf.mxu1 }
 0x9e6   : > { %v14593_v41 = vsub.f32 %v14581_v48, %v7368_v6  ;;  %v6901_v44 = vadd.f32 %v14554_v57, %v6900_v21 }
 0x9e8   : > { %10540 = vmatpush.xpose.msk.msra.mxu3 %vm185_vm0, %v14593_v41  ;;  %v6942_v33 = vmax.f32 %v6901_v44, 0.0 }
 0x9ea   : > { %10503 = vmatmul.msk.f32.gmra.mxu2 %vm541_vm5, %v6942_v33 }
 0x9eb   : > { %10541 = vmatmul.msk.f32.vlgmr.msra.gmra.mxu3 %vm185_vm0, %v14593_v41 }
 0x9ed   : > { %v6903_v58 = vpop.f32.mrf.mxu1 }
 0x9ee   : > { %v6904_v16 = vadd.f32 %v14554_v57, %v6903_v58 }
 0x9f0   : > { %v6943_v42 = vmax.f32 %v6904_v16, 0.0 }
 0x9f2   : > { %10504 = vmatmul.msk.f32.gmra.mxu2 %vm541_vm5, %v6943_v42 }
 0x9f5   : > { %v6643_v55 = vpop.xlane.xlu1 %6642  ;;  %v6906_v22 = vpop.f32.mrf.mxu1 }
 0x9f6   : > { %11047 = vrsqrt.f32 %v6643_v55  ;;  %v6907_v4 = vadd.f32 %v14554_v57, %v6906_v22  ;;  %vm6786_vm12 = vweird.f32 %v6643_v55 }
 0x9f8   : > { %v6944_v50 = vmax.f32 %v6907_v4, 0.0 }
 0x9fa   : > { %10505 = vmatmul.msk.f32.gmra.mxu2 %vm541_vm5, %v6944_v50 }
 0x9fc   : > { %v11048_v5 = vpop.eup %11047 }
 0x9fd   : > { %v6781_v25 = vmul.f32 %v11048_v5, %v6643_v55  ;;  %v6909_v56 = vpop.f32.mrf.mxu1  ;;  %vm6787_vm11 = vweird.f32 %v11048_v5 }
 0x9fe   : > { %v6910_v18 = vadd.f32 %v14554_v57, %v6909_v56  ;;  %vm6788_vm13 = vmor %vm6786_vm12, %vm6787_vm11 }
 0x9ff   : > { %v6782_v27 = vmul.f32 %v11048_v5, %v6781_v25 }
 0xa00   : > { %v6945_v53 = vmax.f32 %v6910_v18, 0.0 }
 0xa01   : > { %v6783_v2 = vmul.f32 0.5, %v6782_v27 }
 0xa02   : > { %v6646_v1 = vpop.xlane.xlu2 %6645  ;;  %10506 = vmatmul.msk.f32.gmra.mxu2 %vm541_vm5, %v6945_v53 }
 0xa03   : > { %11049 = vrsqrt.f32 %v6646_v1  ;;  %v6784_v51 = vsub.f32 1.5, %v6783_v2  ;;  %vm6796_vm15 = vweird.f32 %v6646_v1 }
 0xa05   : > { %v6785_v10 = vmul.f32 %v11048_v5, %v6784_v51  ;;  %v6912_v15 = vpop.f32.mrf.mxu1 }
 0xa06   : > { %v6913_v60 = vadd.f32 %v14554_v57, %v6912_v15 }
 0xa07   : > { %v6789_v23 = vsel %vm6788_vm13, %v11048_v5, %v6785_v10 }
 0xa08   : > { %v14609_v20 = vmul.f32 %v6789_v23, %v14424_v13  ;;  %v6946_v63 = vmax.f32 %v6913_v60, 0.0 }
 0xa09   : > { %v11050_v11 = vpop.eup %11049 }
 0xa0a   : > { %v6791_v46 = vmul.f32 %v11050_v11, %v6646_v1  ;;  %16122 = vst [vmem:[#allocation8_spill] sm:$0xff] %v14609_v20  ;;  %10497 = vmatmul.msk.f32.gmra.mxu1 %vm185_vm0, %v14609_v20  ;;  %v7335_v47 = vsel %vm185_vm0, %v14609_v20, 0.0  ;;  %10507 = vmatmul.msk.f32.gmra.mxu2 %vm541_vm5, %v6946_v63  ;;  %vm6797_vm14 = vweird.f32 %v11050_v11 }
 0xa0b   : > { %v6649_v34 = vpop.xlane.xlu0 %6648  ;;  %v7336_v26 = vrot.slane %v7335_v47, 4  ;;  %vm6798_vm1 = vmor %vm6796_vm15, %vm6797_vm14 }
 0xa0c   : > { %v6792_v28 = vmul.f32 %v11050_v11, %v6791_v46  ;;  %11051 = vrsqrt.f32 %v6649_v34  ;;  %vm6806_vm3 = vweird.f32 %v6649_v34 }
 0xa0d   : > { %v7337_v21 = vadd.f32 %v7336_v26, %v7335_v47  ;;  %v6915_v44 = vpop.f32.mrf.mxu1 }
 0xa0e   : > { %v6793_v29 = vmul.f32 0.5, %v6792_v28  ;;  %v6916_v58 = vadd.f32 %v14554_v57, %v6915_v44 }
 0xa0f   : > { %v7338_v33 = vrot.slane %v7337_v21, 2 }
 0xa10   : > { %v6794_v6 = vsub.f32 1.5, %v6793_v29  ;;  %v6947_v22 = vmax.f32 %v6916_v58, 0.0 }
 0xa11   : > { %v7339_v50 = vadd.f32 %v7338_v33, %v7337_v21 }
 0xa12   : > { %v6795_v13 = vmul.f32 %v11050_v11, %v6794_v6  ;;  %v11052_v16 = vpop.eup %11051  ;;  %10508 = vmatmul.msk.f32.gmra.mxu2 %vm541_vm5, %v6947_v22  ;;  %v14655_v22 = vld [vmem:[%s15894_s1 + $0x38] ss:$0 sm:$0xff] }
 0xa13   : > { %v6801_v55 = vmul.f32 %v11052_v16, %v6649_v34  ;;  %v7340_v56 = vrot.slane %v7339_v50, 1  ;;  %vm6807_vm2 = vweird.f32 %v11052_v16 }
 0xa14   : > { %v6799_v42 = vsel %vm6798_vm1, %v11050_v11, %v6795_v13  ;;  %vm6808_vm4 = vmor %vm6806_vm3, %vm6807_vm2 }
 0xa15   : > { %v14618_v4 = vmul.f32 %v6799_v42, %v14479_v7  ;;  %v6802_v5 = vmul.f32 %v11052_v16, %v6801_v55  ;;  %v7341_v2 = vadd.f32 %v7340_v56, %v7339_v50 }
 0xa16   : > { %v6918_v18 = vpop.f32.mrf.mxu1 }
 0xa17   : > { %16123 = vst [vmem:[#allocation25_spill] sm:$0xff] %v14618_v4  ;;  %10498 = vmatmul.msk.f32.gmra.mxu1 %vm185_vm0, %v14618_v4  ;;  %v7342_v25 = vsel %vm185_vm0, %v14618_v4, 0.0  ;;  %v6803_v27 = vmul.f32 0.5, %v6802_v5  ;;  %v6919_v7 = vadd.f32 %v14554_v57, %v6918_v18  ;;  %v7369_v10 = vmul.f32 %v7341_v2, %v16095_v36 }
 0xa18   : > { %v7343_v1 = vrot.slane %v7342_v25, 4 }
 0xa19   : > { %v6804_v53 = vsub.f32 1.5, %v6803_v27  ;;  %v6948_v23 = vmax.f32 %v6919_v7, 0.0  ;;  %v14628_v46 = vsub.f32 %v14609_v20, %v7369_v10 }
 0xa1a   : > { %v7344_v51 = vadd.f32 %v7343_v1, %v7342_v25 }
 0xa1b   : > { %v6805_v11 = vmul.f32 %v11052_v16, %v6804_v53  ;;  %10509 = vmatmul.msk.f32.gmra.mxu2 %vm541_vm5, %v6948_v23  ;;  %10542 = vmatpush.xpose.msk.msrb.mxu0 %vm185_vm0, %v14628_v46 }
 0xa1c   : > { %v7345_v15 = vrot.slane %v7344_v51, 2 }
 0xa1d   : > { %v6809_v60 = vsel %vm6808_vm4, %v11052_v16, %v6805_v11 }
 0xa1e   : > { %v7346_v28 = vadd.f32 %v7345_v15, %v7344_v51  ;;  %v14634_v63 = vmul.f32 %v6809_v60, %v14514_v39  ;;  %v6921_v29 = vpop.f32.mrf.mxu1  ;;  %10543 = vmatmul.msk.f32.vlgmr.msrb.gmra.mxu0 %vm185_vm0, %v14628_v46 }
 0xa1f   : > { %v6922_v6 = vadd.f32 %v14554_v57, %v6921_v29 }
 0xa20   : > { %16124 = vst [vmem:[#allocation5_spill] sm:$0xff] %v14634_v63  ;;  %v7347_v47 = vrot.slane %v7346_v28, 1  ;;  %10499 = vmatmul.msk.f32.gmra.mxu1 %vm185_vm0, %v14634_v63  ;;  %v7349_v34 = vsel %vm185_vm0, %v14634_v63, 0.0 }
 0xa21   : > { %v7350_v26 = vrot.slane %v7349_v34, 4  ;;  %v6949_v13 = vmax.f32 %v6922_v6, 0.0 }
 0xa22   : > { %v7348_v21 = vadd.f32 %v7347_v47, %v7346_v28 }
 0xa23   : > { %v7351_v44 = vadd.f32 %v7350_v26, %v7349_v34  ;;  %10510 = vmatmul.msk.f32.gmra.mxu2 %vm541_vm5, %v6949_v13 }
 0xa24   : > { %v7370_v39 = vmul.f32 %v7348_v21, %v16095_v36 }
 0xa25   : > { %v7352_v33 = vrot.slane %v7351_v44, 2 }
 0xa26   : > { %v14645_v58 = vsub.f32 %v14618_v4, %v7370_v39 }
 0xa27   : > { %v7353_v16 = vadd.f32 %v7352_v33, %v7351_v44 }
 0xa28   : > { %10544 = vmatpush.xpose.msk.msrb.mxu3 %vm185_vm0, %v14645_v58 }
 0xa29   : > { %v7354_v55 = vrot.slane %v7353_v16, 1 }
 0xa2a   : > { %v7020_v42 = vpop.f32.mrf.mxu2 }
 0xa2b   : > { %10545 = vmatmul.msk.f32.vlgmr.msrb.gmra.mxu3 %vm185_vm0, %v14645_v58  ;;  %v14658_v50 = vadd.f32 %v14655_v22, %v7020_v42  ;;  %v7355_v5 = vadd.f32 %v7354_v55, %v7353_v16 }
 0xa2d   : > { %v7068_v25 = vsel %vm655_vm6, %v14658_v50, -inf  ;;  %v7371_v56 = vmul.f32 %v7355_v5, %v16095_v36 }
 0xa2e   : > { %7069 = vmax.xlane.f32.xlu1 %v7068_v25 }
 0xa2f   : > { %v14664_v27 = vsub.f32 %v14634_v63, %v7371_v56 }
 0xa31   : > { %10546 = vmatpush.xpose.msk.msra.mxu0 %vm185_vm0, %v14664_v27 }
 0xa34   : > { %10547 = vmatmul.msk.f32.vlgmr.msra.gmra.mxu0 %vm185_vm0, %v14664_v27 }
 0xa3d   : > { %v7023_v1 = vpop.f32.mrf.mxu2 }
 0xa3e   : > { %v14671_v18 = vadd.f32 %v14655_v22, %v7023_v1 }
 0xa40   : > { %v7071_v53 = vsel %vm655_vm6, %v14671_v18, -inf }
 0xa41   : > { %v6924_v2 = vpop.f32.mrf.mxu1  ;;  %7072 = vmax.xlane.f32.xlu2 %v7071_v53 }
 0xa42   : > { %v6925_v51 = vadd.f32 %v14554_v57, %v6924_v2 }
 0xa44   : > { %v6950_v7 = vmax.f32 %v6925_v51, 0.0 }
 0xa46   : > { %10511 = vmatmul.msk.f32.gmra.mxu2 %vm541_vm5, %v6950_v7 }
 0xa54   : > { %v6927_v10 = vpop.f32.mrf.mxu1 }
 0xa55   : > { %v6928_v11 = vadd.f32 %v14554_v57, %v6927_v10 }
 0xa57   : > { %v6951_v15 = vmax.f32 %v6928_v11, 0.0 }
 0xa59   : > { %10512 = vmatmul.msk.f32.gmra.mxu2 %vm541_vm5, %v6951_v15 }
 0xa65   : > { %v7026_v23 = vpop.f32.mrf.mxu2 }
 0xa66   : > { %v14680_v60 = vadd.f32 %v14655_v22, %v7026_v23 }
 0xa68   : > { %v7074_v28 = vsel %vm655_vm6, %v14680_v60, -inf }
 0xa69   : > { %7075 = vmax.xlane.f32.xlu0 %v7074_v28 }
 0xa6d   : > { %v7029_v47 = vpop.f32.mrf.mxu2 }
 0xa6e   : > { %v14685_v34 = vadd.f32 %v14655_v22, %v7029_v47 }
 0xa70   : > { %v7077_v29 = vsel %vm655_vm6, %v14685_v34, -inf }
 0xa71   : > { %7078 = vmax.xlane.f32.xlu1 %v7077_v29 }
 0xa75   : > { %v7032_v26 = vpop.f32.mrf.mxu2 }
 0xa76   : > { %v14690_v6 = vadd.f32 %v14655_v22, %v7032_v26 }
 0xa78   : > { %v7080_v21 = vsel %vm655_vm6, %v14690_v6, -inf }
 0xa79   : > { %7081 = vmax.xlane.f32.xlu2 %v7080_v21 }
 0xa7d   : > { %v7035_v44 = vpop.f32.mrf.mxu2 }
 0xa7e   : > { %v14695_v13 = vadd.f32 %v14655_v22, %v7035_v44 }
 0xa80   : > { %v7083_v39 = vsel %vm655_vm6, %v14695_v13, -inf }
 0xa81   : > { %7084 = vmax.xlane.f32.xlu0 %v7083_v39 }
 0xa85   : > { %v7038_v33 = vpop.f32.mrf.mxu2 }
 0xa86   : > { %v14700_v42 = vadd.f32 %v14655_v22, %v7038_v33 }
 0xa87   : > { %v6930_v16 = vpop.f32.mrf.mxu1 }
 0xa88   : > { %v6931_v55 = vadd.f32 %v14554_v57, %v6930_v16  ;;  %v7086_v5 = vsel %vm655_vm6, %v14700_v42, -inf }
 0xa89   : > { %7087 = vmax.xlane.f32.xlu1 %v7086_v5 }
 0xa8a   : > { %v6952_v25 = vmax.f32 %v6931_v55, 0.0 }
 0xa8c   : > { %10513 = vmatmul.msk.f32.gmra.mxu2 %vm541_vm5, %v6952_v25 }
 0xa8d   : > { %v7041_v56 = vpop.f32.mrf.mxu2 }
 0xa8e   : > { %v14707_v1 = vadd.f32 %v14655_v22, %v7041_v56 }
 0xa90   : > { %v7089_v53 = vsel %vm655_vm6, %v14707_v1, -inf }
 0xa91   : > { %7090 = vmax.xlane.f32.xlu2 %v7089_v53 }
 0xa94   : > { %v6933_v2 = vpop.f32.mrf.mxu1 }
 0xa95   : > { %v6934_v51 = vadd.f32 %v14554_v57, %v6933_v2  ;;  %v7044_v10 = vpop.f32.mrf.mxu2 }
 0xa96   : > { %v14714_v11 = vadd.f32 %v14655_v22, %v7044_v10 }
 0xa97   : > { %v6953_v7 = vmax.f32 %v6934_v51, 0.0 }
 0xa98   : > { %v7092_v15 = vsel %vm655_vm6, %v14714_v11, -inf }
 0xa99   : > { %10514 = vmatmul.msk.f32.gmra.mxu2 %vm541_vm5, %v6953_v7  ;;  %7093 = vmax.xlane.f32.xlu0 %v7092_v15 }
 0xa9d   : > { %v6936_v23 = vpop.f32.mrf.mxu1 }
 0xa9e   : > { %v6937_v28 = vadd.f32 %v14554_v57, %v6936_v23  ;;  %v7047_v29 = vpop.f32.mrf.mxu2 }
 0xa9f   : > { %v14720_v21 = vadd.f32 %v14655_v22, %v7047_v29 }
 0xaa0   : > { %v6954_v47 = vmax.f32 %v6937_v28, 0.0 }
 0xaa1   : > { %v7070_v26 = vpop.xlane.xlu1 %7069  ;;  %v7095_v39 = vsel %vm655_vm6, %v14720_v21, -inf }
 0xaa2   : > { %10515 = vmatmul.msk.f32.gmra.mxu2 %vm541_vm5, %v6954_v47  ;;  %v7116_v44 = vsub.f32 %v14658_v50, %v7070_v26  ;;  %7096 = vmax.xlane.f32.xlu1 %v7095_v39 }
 0xaa4   : > { %v7132_v33 = vmul.f32 1.442695, %v7116_v44 }
 0xaa6   : > { %v7050_v16 = vpop.f32.mrf.mxu2  ;;  %11053 = vpow2.f32 %v7132_v33 }
 0xaa7   : > { %v14727_v55 = vadd.f32 %v14655_v22, %v7050_v16 }
 0xaa9   : > { %v7098_v57 = vsel %vm655_vm6, %v14727_v55, -inf }
 0xaaa   : > { %7099 = vmax.xlane.f32.xlu2 %v7098_v57 }
 0xaac   : > { %v14731_v5 = vpop.eup %11053 }
 0xaad   : > { %v7164_v25 = vsel %vm655_vm6, %v14731_v5, 0.0 }
 0xab2   : > { %7165 = vadd.xlane.f32.xlu2 %v7164_v25 }
 0xab4   : > { %v7073_v50 = vpop.xlane.xlu2 %7072 }
 0xab5   : > { %v7117_v56 = vsub.f32 %v14671_v18, %v7073_v50 }
 0xab7   : > { %v7134_v2 = vmul.f32 1.442695, %v7117_v56 }
 0xab9   : > { %11055 = vpow2.f32 %v7134_v2 }
 0xabf   : > { %v14736_v53 = vpop.eup %11055 }
 0xac0   : > { %v7167_v51 = vsel %vm655_vm6, %v14736_v53, 0.0 }
 0xac1   : > { %7168 = vadd.xlane.f32.xlu2 %v7167_v51 }
 0xac9   : > { %v7053_v7 = vpop.f32.mrf.mxu2 }
 0xaca   : > { %v14741_v10 = vadd.f32 %v14655_v22, %v7053_v7 }
 0xacc   : > { %v7101_v15 = vsel %vm655_vm6, %v14741_v10, -inf }
 0xacd   : > { %7102 = vmax.xlane.f32.xlu0 %v7101_v15 }
 0xadc   : > { %v7056_v23 = vpop.f32.mrf.mxu2  ;;  %v7076_v33 = vpop.xlane.xlu0 %7075 }
 0xadd   : > { %v14746_v28 = vadd.f32 %v14655_v22, %v7056_v23  ;;  %v7118_v16 = vsub.f32 %v14680_v60, %v7076_v33 }
 0xadf   : > { %v7104_v18 = vsel %vm655_vm6, %v14746_v28, -inf  ;;  %v7136_v25 = vmul.f32 1.442695, %v7118_v16 }
 0xae0   : > { %7105 = vmax.xlane.f32.xlu1 %v7104_v18 }
 0xae4   : > { %v7079_v57 = vpop.xlane.xlu1 %7078 }
 0xae5   : > { %v7119_v15 = vsub.f32 %v14685_v34, %v7079_v57 }
 0xaec   : > { %v7082_v47 = vpop.xlane.xlu2 %7081 }
 0xaed   : > { %v7120_v29 = vsub.f32 %v14690_v6, %v7082_v47  ;;  %v7138_v47 = vmul.f32 1.442695, %v7119_v15 }
 0xaef   : > { %v7140_v26 = vmul.f32 1.442695, %v7120_v29 }
 0xaf1   : > { %11057 = vpow2.f32 %v7140_v26 }
 0xaf2   : > { %11059 = vpow2.f32 %v7136_v25 }
 0xaf4   : > { %v7085_v50 = vpop.xlane.xlu0 %7084 }
 0xaf5   : > { %v7121_v6 = vsub.f32 %v14695_v13, %v7085_v50 }
 0xaf7   : > { %v14751_v44 = vpop.eup %11057  ;;  %v7142_v23 = vmul.f32 1.442695, %v7121_v6 }
 0xaf8   : > { %v7176_v39 = vsel %vm655_vm6, %v14751_v44, 0.0  ;;  %v14763_v60 = vpop.eup %11059 }
 0xaf9   : > { %7177 = vadd.xlane.f32.xlu2 %v7176_v39  ;;  %11061 = vpow2.f32 %v7142_v23  ;;  %v7170_v13 = vsel %vm655_vm6, %v14763_v60, 0.0 }
 0xafa   : > { %11063 = vpow2.f32 %v7138_v47 }
 0xafc   : > { %v7088_v51 = vpop.xlane.xlu1 %7087 }
 0xafd   : > { %v7122_v34 = vsub.f32 %v14700_v42, %v7088_v51 }
 0xaff   : > { %v14775_v50 = vpop.eup %11061 }
 0xb00   : > { %v7179_v42 = vsel %vm655_vm6, %v14775_v50, 0.0 }
 0xb04   : > { %v7091_v18 = vpop.xlane.xlu2 %7090 }
 0xb05   : > { %v7123_v29 = vsub.f32 %v14707_v1, %v7091_v18 }
 0xb07   : > { %v7146_v57 = vmul.f32 1.442695, %v7123_v29 }
 0xb09   : > { %11065 = vpow2.f32 %v7146_v57 }
 0xb0c   : > { %v7094_v6 = vpop.xlane.xlu0 %7093 }
 0xb0d   : > { %v7124_v51 = vsub.f32 %v14714_v11, %v7094_v6 }
 0xb0f   : > { %v7059_v56 = vpop.f32.mrf.mxu2 }
 0xb10   : > { %v14757_v2 = vadd.f32 %v14655_v22, %v7059_v56  ;;  %v7144_v56 = vmul.f32 1.442695, %v7122_v34 }
 0xb12   : > { %v7107_v7 = vsel %vm655_vm6, %v14757_v2, -inf  ;;  %11067 = vpow2.f32 %v7144_v56 }
 0xb13   : > { %7108 = vmax.xlane.f32.xlu0 %v7107_v7  ;;  %v14777_v7 = vpop.eup %11063 }
 0xb15   : > { %v7097_v39 = vpop.xlane.xlu1 %7096 }
 0xb16   : > { %v7125_v25 = vsub.f32 %v14720_v21, %v7097_v39  ;;  %v7173_v21 = vsel %vm655_vm6, %v14777_v7, 0.0  ;;  %v14790_v39 = vpop.eup %11065 }
 0xb17   : > { %v7185_v34 = vsel %vm655_vm6, %v14790_v39, 0.0 }
 0xb18   : > { %v7150_v15 = vmul.f32 1.442695, %v7125_v25  ;;  %v14792_v11 = vpop.eup %11067 }
 0xb19   : > { %v7182_v57 = vsel %vm655_vm6, %v14792_v11, 0.0 }
 0xb1a   : > { %11069 = vpow2.f32 %v7150_v15 }
 0xb1b   : > { %7171 = vadd.xlane.f32.xlu0 %v7170_v13  ;;  %v7148_v13 = vmul.f32 1.442695, %v7124_v51 }
 0xb1c   : > { %v7062_v26 = vpop.f32.mrf.mxu2 }
 0xb1d   : > { %v14767_v33 = vadd.f32 %v14655_v22, %v7062_v26  ;;  %v7100_v1 = vpop.xlane.xlu2 %7099 }
 0xb1e   : > { %v7126_v23 = vsub.f32 %v14727_v55, %v7100_v1 }
 0xb1f   : > { %v7110_v16 = vsel %vm655_vm6, %v14767_v33, -inf }
 0xb20   : > { %7111 = vmax.xlane.f32.xlu1 %v7110_v16  ;;  %v7152_v29 = vmul.f32 1.442695, %v7126_v23 }
 0xb23   : > { %7180 = vadd.xlane.f32.xlu0 %v7179_v42 }
 0xb25   : > { %v7065_v18 = vpop.f32.mrf.mxu2  ;;  %v7166_v26 = vpop.xlane.xlu2 %7165 }
 0xb26   : > { %v14786_v47 = vadd.f32 %v14655_v22, %v7065_v18  ;;  %11071 = vrcp.f32 %v7166_v26  ;;  %v14796_v22 = vpop.eup %11069 }
 0xb27   : > { %11073 = vpow2.f32 %v7152_v29  ;;  %v7191_v1 = vsel %vm655_vm6, %v14796_v22, 0.0 }
 0xb28   : > { %7174 = vadd.xlane.f32.xlu1 %v7173_v21  ;;  %v7113_v55 = vsel %vm655_vm6, %v14786_v47, -inf  ;;  %11075 = vpow2.f32 %v7148_v13 }
 0xb29   : > { %7114 = vmax.xlane.f32.xlu2 %v7113_v55 }
 0xb2b   : > { %7186 = vadd.xlane.f32.xlu0 %v7185_v34 }
 0xb2c   : > { %v11072_v16 = vpop.eup %11071 }
 0xb2d   : > { %v7228_v25 = vmul.f32 %v11072_v16, %v14731_v5  ;;  %v14803_v56 = vpop.eup %11073 }
 0xb2e   : > { %v14806_v23 = vpop.eup %11075  ;;  %v7194_v51 = vsel %vm655_vm6, %v14803_v56, 0.0 }
 0xb2f   : > { %v7388_v6 = vsel %vm655_vm6, %v7228_v25, 0.0  ;;  %v7188_v5 = vsel %vm655_vm6, %v14806_v23, 0.0 }
 0xb30   : > { %7183 = vadd.xlane.f32.xlu1 %v7182_v57  ;;  %v7389_v15 = vrot.slane %v7388_v6, 4 }
 0xb31   : > { %7192 = vadd.xlane.f32.xlu2 %v7191_v1 }
 0xb32   : > { %v7390_v42 = vadd.f32 %v7389_v15, %v7388_v6 }
 0xb33   : > { %7195 = vadd.xlane.f32.xlu0 %v7194_v51 }
 0xb34   : > { %v7169_v18 = vpop.xlane.xlu2 %7168  ;;  %v7391_v21 = vrot.slane %v7390_v42, 2 }
 0xb35   : > { %11077 = vrcp.f32 %v7169_v18 }
 0xb36   : > { %v7392_v29 = vadd.f32 %v7391_v21, %v7390_v42 }
 0xb38   : > { %7189 = vadd.xlane.f32.xlu1 %v7188_v5  ;;  %v7393_v26 = vrot.slane %v7392_v29, 1 }
 0xb3a   : > { %v7394_v13 = vadd.f32 %v7393_v26, %v7392_v29 }
 0xb3b   : > { %v11078_v55 = vpop.eup %11077 }
 0xb3c   : > { %v7229_v34 = vmul.f32 %v11078_v55, %v14736_v53  ;;  %v7500_v16 = vmul.f32 %v7394_v13, %v16095_v36 }
 0xb3e   : > { %v7395_v57 = vsel %vm655_vm6, %v7229_v34, 0.0  ;;  %v7516_v6 = vsub.f32 %v7228_v25, %v7500_v16 }
 0xb3f   : > { %v7396_v15 = vrot.slane %v7395_v57, 4 }
 0xb40   : > { %v7103_v1 = vpop.xlane.xlu0 %7102  ;;  %10548 = vmatpush.xpose.msk.msra.mxu3 %vm655_vm6, %v7516_v6 }
 0xb41   : > { %v7127_v51 = vsub.f32 %v14741_v10, %v7103_v1  ;;  %v7397_v63 = vadd.f32 %v7396_v15, %v7395_v57 }
 0xb43   : > { %v7154_v18 = vmul.f32 1.442695, %v7127_v51  ;;  %v7398_v5 = vrot.slane %v7397_v63, 2  ;;  %10549 = vmatmul.msk.f32.vlgmr.msra.gmra.mxu3 %vm655_vm6, %v7516_v6  ;;  %v14830_v6 = vpop.f32.mrf.mxu3 }
 0xb45   : > { %11079 = vpow2.f32 %v7154_v18  ;;  %v7399_v42 = vadd.f32 %v7398_v5, %v7397_v63 }
 0xb47   : > { %v7400_v21 = vrot.slane %v7399_v42, 1 }
 0xb49   : > { %v7401_v29 = vadd.f32 %v7400_v21, %v7399_v42  ;;  %v14840_v21 = vpop.f32.mrf.mxu0 }
 0xb4b   : > { %v14818_v53 = vpop.eup %11079  ;;  %v7501_v25 = vmul.f32 %v7401_v29, %v16095_v36 }
 0xb4c   : > { %v7197_v26 = vsel %vm655_vm6, %v14818_v53, 0.0 }
 0xb4d   : > { %7198 = vadd.xlane.f32.xlu1 %v7197_v26  ;;  %v7517_v10 = vsub.f32 %v7229_v34, %v7501_v25 }
 0xb4f   : > { %10550 = vmatpush.xpose.msk.msrb.mxu0 %vm655_vm6, %v7517_v10 }
 0xb52   : > { %10551 = vmatmul.msk.f32.vlgmr.msrb.gmra.mxu0 %vm655_vm6, %v7517_v10 }
 0xb53   : > { %v7106_v55 = vpop.xlane.xlu1 %7105 }
 0xb54   : > { %v7128_v13 = vsub.f32 %v14746_v28, %v7106_v55  ;;  %v14836_v28 = vpop.f32.mrf.mxu3 }
 0xb56   : > { %v7156_v16 = vmul.f32 1.442695, %v7128_v13 }
 0xb58   : > { %11081 = vpow2.f32 %v7156_v16 }
 0xb5c   : > { %v14845_v13 = vpop.f32.mrf.mxu3 }
 0xb5e   : > { %v14826_v63 = vpop.eup %11081 }
 0xb5f   : > { %v7200_v57 = vsel %vm655_vm6, %v14826_v63, 0.0 }
 0xb60   : > { %7201 = vadd.xlane.f32.xlu2 %v7200_v57  ;;  %v14849_v57 = vpop.f32.mrf.mxu0 }
 0xb6c   : > { %v7178_v1 = vpop.xlane.xlu2 %7177 }
 0xb6d   : > { %11083 = vrcp.f32 %v7178_v1 }
 0xb73   : > { %v11084_v34 = vpop.eup %11083 }
 0xb74   : > { %v14833_v15 = vmul.f32 %v11084_v34, %v14751_v44 }
 0xb76   : > { %v7416_v5 = vsel %vm655_vm6, %v14833_v15, 0.0 }
 0xb77   : > { %v7417_v29 = vrot.slane %v7416_v5, 4 }
 0xb79   : > { %v7418_v25 = vadd.f32 %v7417_v29, %v7416_v5 }
 0xb7b   : > { %v7419_v1 = vrot.slane %v7418_v25, 2 }
 0xb86   : > { %v7109_v51 = vpop.xlane.xlu0 %7108 }
 0xb87   : > { %v7129_v18 = vsub.f32 %v14757_v2, %v7109_v51  ;;  %v8428_v51 = vmul.f32 %v14830_v6, %v14830_v6 }
 0xb89   : > { %v7158_v42 = vmul.f32 1.442695, %v7129_v18 }
 0xb8b   : > { %11085 = vpow2.f32 %v7158_v42 }
 0xb8e   : > { %v7172_v26 = vpop.xlane.xlu0 %7171 }
 0xb8f   : > { %11087 = vrcp.f32 %v7172_v26 }
 0xb91   : > { %v14842_v55 = vpop.eup %11085 }
 0xb92   : > { %v7203_v2 = vsel %vm655_vm6, %v14842_v55, 0.0 }
 0xb93   : > { %v7112_v10 = vpop.xlane.xlu1 %7111  ;;  %7204 = vadd.xlane.f32.xlu0 %v7203_v2  ;;  %v8444_v2 = vsel %vm1879_vm7, %v8428_v51, 0.0 }
 0xb94   : > { %v7130_v44 = vsub.f32 %v14767_v33, %v7112_v10  ;;  %v7420_v33 = vadd.f32 %v7419_v1, %v7418_v25  ;;  %v14855_v10 = vpop.f32.mrf.mxu3 }
 0xb95   : > { %v11088_v34 = vpop.eup %11087 }
 0xb96   : > { %v7160_v16 = vmul.f32 1.442695, %v7130_v44  ;;  %v7230_v18 = vmul.f32 %v11088_v34, %v14763_v60  ;;  %v7181_v5 = vpop.xlane.xlu0 %7180  ;;  %v14861_v60 = vpop.f32.mrf.mxu0  ;;  %v7421_v34 = vrot.slane %v7420_v33, 1 }
 0xb98   : > { %11089 = vpow2.f32 %v7160_v16  ;;  %v7402_v42 = vsel %vm655_vm6, %v7230_v18, 0.0 }
 0xb99   : > { %11091 = vrcp.f32 %v7181_v5  ;;  %v7403_v26 = vrot.slane %v7402_v42, 4 }
 0xb9b   : > { %v7175_v29 = vpop.xlane.xlu1 %7174  ;;  %v7404_v16 = vadd.f32 %v7403_v26, %v7402_v42  ;;  %8445 = vadd.xlane.f32.xlu0 %v8444_v2  ;;  %v7422_v42 = vadd.f32 %v7421_v34, %v7420_v33 }
 0xb9c   : > { %11093 = vrcp.f32 %v7175_v29  ;;  %v7115_v44 = vpop.xlane.xlu2 %7114 }
 0xb9d   : > { %v7131_v20 = vsub.f32 %v14786_v47, %v7115_v44  ;;  %v7405_v5 = vrot.slane %v7404_v16, 2 }
 0xb9e   : > { %v14858_v4 = vpop.eup %11089  ;;  %v7187_v51 = vpop.xlane.xlu0 %7186 }
 0xb9f   : > { %v7206_v25 = vsel %vm655_vm6, %v14858_v4, 0.0  ;;  %v11092_v1 = vpop.eup %11091  ;;  %v7162_v29 = vmul.f32 1.442695, %v7131_v20  ;;  %v7406_v0 = vadd.f32 %v7405_v5, %v7404_v16  ;;  %v14875_v33 = vpop.f32.mrf.mxu0 }
 0xba0   : > { %7207 = vadd.xlane.f32.xlu1 %v7206_v25  ;;  %v14866_v48 = vmul.f32 %v11092_v1, %v14775_v50 }
 0xba1   : > { %11095 = vpow2.f32 %v7162_v29  ;;  %v7407_v2 = vrot.slane %v7406_v0, 1 }
 0xba2   : > { %v11094_v43 = vpop.eup %11093  ;;  %v7423_v26 = vsel %vm655_vm6, %v14866_v48, 0.0  ;;  %11097 = vrcp.f32 %v7187_v51 }
 0xba3   : > { %v14869_v47 = vmul.f32 %v11094_v43, %v14777_v7  ;;  %v7184_v44 = vpop.xlane.xlu1 %7183  ;;  %v7424_v24 = vrot.slane %v7423_v26, 4  ;;  %v7408_v25 = vadd.f32 %v7407_v2, %v7406_v0  ;;  %v14877_v43 = vpop.f32.mrf.mxu3  ;;  %v7504_v7 = vmul.f32 %v7422_v42, %v16095_v36 }
 0xba4   : > { %11099 = vrcp.f32 %v7184_v44  ;;  %v7193_v50 = vpop.xlane.xlu2 %7192 }
 0xba5   : > { %v7409_v20 = vsel %vm655_vm6, %v14869_v47, 0.0  ;;  %v7425_v16 = vadd.f32 %v7424_v24, %v7423_v26  ;;  %11101 = vrcp.f32 %v7193_v50  ;;  %v7502_v5 = vmul.f32 %v7408_v25, %v16095_v36 }
 0xba6   : > { %v7410_v1 = vrot.slane %v7409_v20, 4  ;;  %v7196_v31 = vpop.xlane.xlu0 %7195  ;;  %v7520_v42 = vsub.f32 %v14833_v15, %v7504_v7 }
 0xba7   : > { %v14880_v34 = vpop.eup %11095  ;;  %v7426_v51 = vrot.slane %v7425_v16, 2  ;;  %v7518_v24 = vsub.f32 %v7230_v18, %v7502_v5  ;;  %11103 = vrcp.f32 %v7196_v31 }
 0xba8   : > { %v7411_v29 = vadd.f32 %v7410_v1, %v7409_v20  ;;  %v11098_v44 = vpop.eup %11097  ;;  %v7209_v0 = vsel %vm655_vm6, %v14880_v34, 0.0 }
 0xba9   : > { %v7427_v50 = vadd.f32 %v7426_v51, %v7425_v16  ;;  %v14886_v54 = vmul.f32 %v11098_v44, %v14790_v39  ;;  %7210 = vadd.xlane.f32.xlu2 %v7209_v0  ;;  %10552 = vmatpush.xpose.msk.msrb.mxu3 %vm655_vm6, %v7518_v24  ;;  %v8429_v39 = vmul.f32 %v14840_v21, %v14840_v21 }
 0xbaa   : > { %v11100_v2 = vpop.eup %11099  ;;  %v7412_v26 = vrot.slane %v7411_v29, 2 }
 0xbab   : > { %v14890_v45 = vmul.f32 %v11100_v2, %v14792_v11  ;;  %v7190_v20 = vpop.xlane.xlu1 %7189  ;;  %v11102_v25 = vpop.eup %11101  ;;  %v7428_v52 = vrot.slane %v7427_v50, 1  ;;  %v7437_v40 = vsel %vm655_vm6, %v14886_v54, 0.0 }
 0xbac   : > { %v7413_v1 = vadd.f32 %v7412_v26, %v7411_v29  ;;  %11105 = vrcp.f32 %v7190_v20  ;;  %v7438_v18 = vrot.slane %v7437_v40, 4  ;;  %v7237_v11 = vmul.f32 %v11102_v25, %v14796_v22  ;;  %10553 = vmatmul.msk.f32.vlgmr.msrb.gmra.mxu3 %vm655_vm6, %v7518_v24  ;;  %v14904_v20 = vpop.f32.mrf.mxu0  ;;  %v14906_v30 = vpop.f32.mrf.mxu3 }
 0xbad   : > { %v7430_v15 = vsel %vm655_vm6, %v14890_v45, 0.0  ;;  %10556 = vmatpush.xpose.msk.msra.mxu3 %vm655_vm6, %v7520_v42  ;;  %v7429_v16 = vadd.f32 %v7428_v52, %v7427_v50  ;;  %v11104_v26 = vpop.eup %11103  ;;  %v8447_v25 = vsel %vm1879_vm7, %v8429_v39, 0.0  ;;  %v8430_v39 = vmul.f32 %v14836_v28, %v14836_v28 }
 0xbae   : > { %v7414_v31 = vrot.slane %v7413_v1, 1  ;;  %v7431_v7 = vrot.slane %v7430_v15, 4  ;;  %v7439_v5 = vadd.f32 %v7438_v18, %v7437_v40  ;;  %v7451_v29 = vsel %vm655_vm6, %v7237_v11, 0.0 }
 0xbaf   : > { %v7505_v44 = vmul.f32 %v7429_v16, %v16095_v36  ;;  %v7452_v2 = vrot.slane %v7451_v29, 4 }
 0xbb0   : > { %v7415_v51 = vadd.f32 %v7414_v31, %v7413_v1  ;;  %v7432_v0 = vadd.f32 %v7431_v7, %v7430_v15  ;;  %v7440_v22 = vrot.slane %v7439_v5, 2  ;;  %v7238_v31 = vmul.f32 %v11104_v26, %v14803_v56 }
 0xbb1   : > { %v7453_v18 = vadd.f32 %v7452_v2, %v7451_v29  ;;  %8448 = vadd.xlane.f32.xlu2 %v8447_v25  ;;  %v7521_v24 = vsub.f32 %v14866_v48, %v7505_v44 }
 0xbb2   : > { %v11106_v52 = vpop.eup %11105  ;;  %v7503_v40 = vmul.f32 %v7415_v51, %v16095_v36  ;;  %v7433_v50 = vrot.slane %v7432_v0, 2  ;;  %v7441_v1 = vadd.f32 %v7440_v22, %v7439_v5  ;;  %v7458_v29 = vsel %vm655_vm6, %v7238_v31, 0.0 }
 0xbb3   : > { %v7236_v15 = vmul.f32 %v11106_v52, %v14806_v23  ;;  %v7454_v37 = vrot.slane %v7453_v18, 2  ;;  %v7459_v5 = vrot.slane %v7458_v29, 4 }
 0xbb4   : > { %v7519_v16 = vsub.f32 %v14869_v47, %v7503_v40  ;;  %v7434_v7 = vadd.f32 %v7433_v50, %v7432_v0  ;;  %v7442_v61 = vrot.slane %v7441_v1, 1  ;;  %10557 = vmatmul.msk.f32.vlgmr.msra.gmra.mxu3 %vm655_vm6, %v7520_v42  ;;  %v14921_v26 = vpop.f32.mrf.mxu0  ;;  %v14923_v22 = vpop.f32.mrf.mxu3 }
 0xbb5   : > { %v7444_v51 = vsel %vm655_vm6, %v7236_v15, 0.0  ;;  %v7455_v25 = vadd.f32 %v7454_v37, %v7453_v18  ;;  %v7460_v0 = vadd.f32 %v7459_v5, %v7458_v29  ;;  %v8450_v37 = vsel %vm1879_vm7, %v8430_v39, 0.0 }
 0xbb6   : > { %v7435_v2 = vrot.slane %v7434_v7, 1  ;;  %v7445_v48 = vrot.slane %v7444_v51, 4  ;;  %10554 = vmatpush.xpose.msk.msra.mxu0 %vm655_vm6, %v7519_v16  ;;  %v7443_v23 = vadd.f32 %v7442_v61, %v7441_v1 }
 0xbb7   : > { %v7456_v47 = vrot.slane %v7455_v25, 1  ;;  %v7461_v18 = vrot.slane %v7460_v0, 2 }
 0xbb8   : > { %v7436_v56 = vadd.f32 %v7435_v2, %v7434_v7  ;;  %v7446_v44 = vadd.f32 %v7445_v48, %v7444_v51  ;;  %v7507_v52 = vmul.f32 %v7443_v23, %v16095_v36  ;;  %v8431_v2 = vmul.f32 %v14849_v57, %v14849_v57 }
 0xbb9   : > { %10555 = vmatmul.msk.f32.vlgmr.msra.gmra.mxu0 %vm655_vm6, %v7519_v16  ;;  %v7457_v40 = vadd.f32 %v7456_v47, %v7455_v25  ;;  %8451 = vadd.xlane.f32.xlu2 %v8450_v37  ;;  %v7462_v29 = vadd.f32 %v7461_v18, %v7460_v0 }
 0xbba   : > { %10558 = vmatpush.xpose.msk.msrb.mxu0 %vm655_vm6, %v7521_v24  ;;  %v7506_v61 = vmul.f32 %v7436_v56, %v16095_v36  ;;  %v7447_v50 = vrot.slane %v7446_v44, 2  ;;  %v7523_v42 = vsub.f32 %v14886_v54, %v7507_v52  ;;  %v8453_v56 = vsel %vm1879_vm7, %v8431_v2, 0.0 }
 0xbbb   : > { %v7509_v7 = vmul.f32 %v7457_v40, %v16095_v36  ;;  %v7463_v48 = vrot.slane %v7462_v29, 1  ;;  %v8432_v52 = vmul.f32 %v14845_v13, %v14845_v13 }
 0xbbc   : > { %v7522_v1 = vsub.f32 %v14890_v45, %v7506_v61  ;;  %v7448_v51 = vadd.f32 %v7447_v50, %v7446_v44  ;;  %v14936_v54 = vpop.f32.mrf.mxu0  ;;  %v14938_v45 = vpop.f32.mrf.mxu3 }
 0xbbd   : > { %v7525_v16 = vsub.f32 %v7237_v11, %v7509_v7  ;;  %v7464_v5 = vadd.f32 %v7463_v48, %v7462_v29  ;;  %v8456_v40 = vsel %vm1879_vm7, %v8432_v52, 0.0 }
 0xbbe   : > { %10562 = vmatpush.xpose.msk.msra.mxu0 %vm655_vm6, %v7523_v42  ;;  %v7449_v39 = vrot.slane %v7448_v51, 1  ;;  %10560 = vmatpush.xpose.msk.msrb.mxu3 %vm655_vm6, %v7522_v1 }
 0xbbf   : > { %v7510_v47 = vmul.f32 %v7464_v5, %v16095_v36 }
 0xbc0   : > { %v7450_v25 = vadd.f32 %v7449_v39, %v7448_v51  ;;  %v7199_v23 = vpop.xlane.xlu1 %7198 }
 0xbc1   : > { %10559 = vmatmul.msk.f32.vlgmr.msrb.gmra.mxu0 %vm655_vm6, %v7521_v24  ;;  %10561 = vmatmul.msk.f32.vlgmr.msrb.gmra.mxu3 %vm655_vm6, %v7522_v1  ;;  %11107 = vrcp.f32 %v7199_v23  ;;  %v7526_v0 = vsub.f32 %v7238_v31, %v7510_v47  ;;  %v8433_v1 = vmul.f32 %v14861_v60, %v14861_v60 }
 0xbc2   : > { %v7508_v11 = vmul.f32 %v7450_v25, %v16095_v36  ;;  %10566 = vmatpush.xpose.msk.msrb.mxu0 %vm655_vm6, %v7525_v16  ;;  %8454 = vadd.xlane.f32.xlu2 %v8453_v56 }
 0xbc3   : > { %v8459_v2 = vsel %vm1879_vm7, %v8433_v1, 0.0 }
 0xbc4   : > { %v7524_v44 = vsub.f32 %v7236_v15, %v7508_v11  ;;  %v14951_v61 = vpop.f32.mrf.mxu0 }
 0xbc6   : > { %10564 = vmatpush.xpose.msk.msra.mxu3 %vm655_vm6, %v7524_v44  ;;  %v7920_v15 = vpop.f32.mrf.mxu3 }
 0xbc7   : > { %v11108_v24 = vpop.eup %11107  ;;  %v8588_v50 = vmul.f32 %v7920_v15, %v7920_v15  ;;  %10580 = vmatmul.msk.f32.vlgmr.msra.gmra.mxu1 %vm1879_vm7, %v7920_v15  ;;  %v8268_v51 = vmul.f32 %v7920_v15, %v14830_v6 }
 0xbc8   : > { %v7239_v37 = vmul.f32 %v11108_v24, %v14818_v53  ;;  %8950 = vmatpush.msra.mxu1 %v14523_v38 }
 0xbc9   : > { %10563 = vmatmul.msk.f32.vlgmr.msra.gmra.mxu0 %vm655_vm6, %v7523_v42  ;;  %10565 = vmatmul.msk.f32.vlgmr.msra.gmra.mxu3 %vm655_vm6, %v7524_v44  ;;  %v8604_v53 = vsel %vm1879_vm7, %v8588_v50, 0.0  ;;  %v8284_v23 = vsel %vm1879_vm7, %v8268_v51, 0.0 }
 0xbca   : > { %10568 = vmatpush.xpose.msk.msrb.mxu3 %vm655_vm6, %v7526_v0  ;;  %v7465_v31 = vsel %vm655_vm6, %v7239_v37, 0.0  ;;  %8457 = vadd.xlane.f32.xlu2 %v8456_v40 }
 0xbcb   : > { %v7466_v18 = vrot.slane %v7465_v31, 4  ;;  %8605 = vadd.xlane.f32.xlu1 %v8604_v53 }
 0xbcd   : > { %v7467_v42 = vadd.f32 %v7466_v18, %v7465_v31  ;;  %v8435_v31 = vmul.f32 %v14875_v33, %v14875_v33 }
 0xbcf   : > { %v7468_v7 = vrot.slane %v7467_v42, 2  ;;  %v7943_v39 = vpop.f32.mrf.mxu0  ;;  %v8465_v53 = vsel %vm1879_vm7, %v8435_v31, 0.0 }
 0xbd0   : > { %v8589_v48 = vmul.f32 %v7943_v39, %v7943_v39  ;;  %10581 = vmatmul.msk.f32.vlgmr.msrb.gmra.mxu2 %vm1879_vm7, %v7943_v39  ;;  %v8269_v44 = vmul.f32 %v7943_v39, %v14840_v21  ;;  %v8437_v39 = vmul.f32 %v14904_v20, %v14904_v20 }
 0xbd1   : > { %v7469_v29 = vadd.f32 %v7468_v7, %v7467_v42  ;;  %10567 = vmatmul.msk.f32.vlgmr.msrb.gmra.mxu0 %vm655_vm6, %v7525_v16  ;;  %10569 = vmatmul.msk.f32.vlgmr.msrb.gmra.mxu3 %vm655_vm6, %v7526_v0  ;;  %v8434_v16 = vmul.f32 %v14855_v10, %v14855_v10  ;;  %v8436_v42 = vmul.f32 %v14877_v43, %v14877_v43 }
 0xbd2   : > { %8460 = vadd.xlane.f32.xlu2 %v8459_v2  ;;  %8973 = vmatpush.msrb.mxu2 %v14547_v3  ;;  %v8607_v56 = vsel %vm1879_vm7, %v8589_v48, 0.0  ;;  %v8287_v15 = vsel %vm1879_vm7, %v8269_v44, 0.0 }
 0xbd3   : > { %v7470_v25 = vrot.slane %v7469_v29, 1  ;;  %v7202_v5 = vpop.xlane.xlu2 %7201  ;;  %8285 = vadd.xlane.f32.xlu1 %v8284_v23  ;;  %8608 = vadd.xlane.f32.xlu0 %v8607_v56  ;;  %v8462_v52 = vsel %vm1879_vm7, %v8434_v16, 0.0  ;;  %v8439_v56 = vmul.f32 %v14921_v26, %v14921_v26 }
 0xbd4   : > { %11109 = vrcp.f32 %v7202_v5  ;;  %v8438_v5 = vmul.f32 %v14906_v30, %v14906_v30 }
 0xbd5   : > { %v7471_v11 = vadd.f32 %v7470_v25, %v7469_v29  ;;  %v8468_v29 = vsel %vm1879_vm7, %v8436_v42, 0.0  ;;  %v8471_v25 = vsel %vm1879_vm7, %v8437_v39, 0.0  ;;  %v8477_v16 = vsel %vm1879_vm7, %v8439_v56, 0.0 }
 0xbd6   : > { %v8474_v23 = vsel %vm1879_vm7, %v8438_v5, 0.0 }
 0xbd7   : > { %v7511_v47 = vmul.f32 %v7471_v11, %v16095_v36  ;;  %v8440_v11 = vmul.f32 %v14923_v22, %v14923_v22 }
 0xbd9   : > { %v7527_v0 = vsub.f32 %v7239_v37, %v7511_v47  ;;  %v8480_v44 = vsel %vm1879_vm7, %v8440_v11, 0.0 }
 0xbda   : > { %8463 = vadd.xlane.f32.xlu2 %v8462_v52  ;;  %v11110_v24 = vpop.eup %11109 }
 0xbdb   : > { %10570 = vmatpush.xpose.msk.msra.mxu0 %vm655_vm6, %v7527_v0  ;;  %v7240_v40 = vmul.f32 %v11110_v24, %v14826_v63  ;;  %8288 = vadd.xlane.f32.xlu1 %v8287_v15 }
 0xbdd   : > { %v7472_v50 = vsel %vm655_vm6, %v7240_v40, 0.0 }
 0xbde   : > { %10571 = vmatmul.msk.f32.vlgmr.msra.gmra.mxu0 %vm655_vm6, %v7527_v0  ;;  %v7473_v18 = vrot.slane %v7472_v50, 4  ;;  %v8441_v0 = vmul.f32 %v14936_v54, %v14936_v54 }
 0xbe0   : > { %v7474_v37 = vadd.f32 %v7473_v18, %v7472_v50  ;;  %v8442_v18 = vmul.f32 %v14938_v45, %v14938_v45 }
 0xbe2   : > { %8466 = vadd.xlane.f32.xlu2 %v8465_v53  ;;  %v7475_v1 = vrot.slane %v7474_v37, 2 }
 0xbe4   : > { %v7476_v63 = vadd.f32 %v7475_v1, %v7474_v37  ;;  %v8486_v1 = vsel %vm1879_vm7, %v8442_v18, 0.0 }
 0xbe6   : > { %v7477_v7 = vrot.slane %v7476_v63, 1 }
 0xbe8   : > { %v7478_v51 = vadd.f32 %v7477_v7, %v7476_v63 }
 0xbea   : > { %8469 = vadd.xlane.f32.xlu2 %v8468_v29  ;;  %v7512_v2 = vmul.f32 %v7478_v51, %v16095_v36  ;;  %v8443_v51 = vmul.f32 %v14951_v61, %v14951_v61 }
 0xbec   : > { %v7528_v48 = vsub.f32 %v7240_v40, %v7512_v2  ;;  %v8483_v40 = vsel %vm1879_vm7, %v8441_v0, 0.0 }
 0xbee   : > { %10572 = vmatpush.xpose.msk.msra.mxu3 %vm655_vm6, %v7528_v48 }
 0xbf1   : > { %10573 = vmatmul.msk.f32.vlgmr.msra.gmra.mxu3 %vm655_vm6, %v7528_v48 }
 0xbf2   : > { %8472 = vadd.xlane.f32.xlu2 %v8471_v25 }
 0xbfa   : > { %8475 = vadd.xlane.f32.xlu2 %v8474_v23  ;;  %v8489_v23 = vsel %vm1879_vm7, %v8443_v51, 0.0 }
 0xc02   : > { %8478 = vadd.xlane.f32.xlu2 %v8477_v16 }
 0xc06   : > { %v7205_v47 = vpop.xlane.xlu0 %7204 }
 0xc07   : > { %11111 = vrcp.f32 %v7205_v47 }
 0xc0a   : > { %8481 = vadd.xlane.f32.xlu2 %v8480_v44 }
 0xc0d   : > { %v11112_v52 = vpop.eup %11111 }
 0xc0e   : > { %v7241_v24 = vmul.f32 %v11112_v52, %v14842_v55 }
 0xc10   : > { %v7479_v15 = vsel %vm655_vm6, %v7241_v24, 0.0 }
 0xc11   : > { %v7480_v50 = vrot.slane %v7479_v15, 4 }
 0xc12   : > { %8484 = vadd.xlane.f32.xlu2 %v8483_v40 }
 0xc13   : > { %v7208_v31 = vpop.xlane.xlu1 %7207  ;;  %v7481_v37 = vadd.f32 %v7480_v50, %v7479_v15 }
 0xc14   : > { %11113 = vrcp.f32 %v7208_v31 }
 0xc15   : > { %v7482_v53 = vrot.slane %v7481_v37, 2 }
 0xc17   : > { %v7483_v63 = vadd.f32 %v7482_v53, %v7481_v37 }
 0xc19   : > { %v7484_v7 = vrot.slane %v7483_v63, 1 }
 0xc1a   : > { %v11114_v42 = vpop.eup %11113  ;;  %8487 = vadd.xlane.f32.xlu2 %v8486_v1 }
 0xc1b   : > { %v7242_v55 = vmul.f32 %v11114_v42, %v14858_v4  ;;  %v7485_v39 = vadd.f32 %v7484_v7, %v7483_v63 }
 0xc1c   : > { %v7211_v2 = vpop.xlane.xlu2 %7210 }
 0xc1d   : > { %v7486_v29 = vsel %vm655_vm6, %v7242_v55, 0.0  ;;  %11115 = vrcp.f32 %v7211_v2  ;;  %v7513_v25 = vmul.f32 %v7485_v39, %v16095_v36 }
 0xc1e   : > { %v7487_v48 = vrot.slane %v7486_v29, 4 }
 0xc1f   : > { %v7529_v56 = vsub.f32 %v7241_v24, %v7513_v25 }
 0xc20   : > { %v7488_v5 = vadd.f32 %v7487_v48, %v7486_v29 }
 0xc21   : > { %10574 = vmatpush.xpose.msk.msrb.mxu0 %vm655_vm6, %v7529_v56 }
 0xc22   : > { %v7489_v16 = vrot.slane %v7488_v5, 2  ;;  %8490 = vadd.xlane.f32.xlu2 %v8489_v23 }
 0xc23   : > { %v11116_v4 = vpop.eup %11115 }
 0xc24   : > { %v7490_v11 = vadd.f32 %v7489_v16, %v7488_v5  ;;  %v7243_v44 = vmul.f32 %v11116_v4, %v14880_v34  ;;  %10575 = vmatmul.msk.f32.vlgmr.msrb.gmra.mxu0 %vm655_vm6, %v7529_v56 }
 0xc26   : > { %v7491_v47 = vrot.slane %v7490_v11, 1  ;;  %v7493_v52 = vsel %vm655_vm6, %v7243_v44, 0.0 }
 0xc27   : > { %v7494_v40 = vrot.slane %v7493_v52, 4 }
 0xc28   : > { %v7492_v0 = vadd.f32 %v7491_v47, %v7490_v11 }
 0xc29   : > { %v7495_v31 = vadd.f32 %v7494_v40, %v7493_v52 }
 0xc2a   : > { %v7514_v15 = vmul.f32 %v7492_v0, %v16095_v36 }
 0xc2b   : > { %v7496_v24 = vrot.slane %v7495_v31, 2 }
 0xc2c   : > { %v7530_v50 = vsub.f32 %v7242_v55, %v7514_v15 }
 0xc2d   : > { %v7497_v18 = vadd.f32 %v7496_v24, %v7495_v31 }
 0xc2e   : > { %10576 = vmatpush.xpose.msk.msrb.mxu3 %vm655_vm6, %v7530_v50 }
 0xc2f   : > { %v7498_v37 = vrot.slane %v7497_v18, 1  ;;  %v7966_v34 = vpop.f32.mrf.mxu3 }
 0xc30   : > { %v8270_v1 = vmul.f32 %v7966_v34, %v14836_v28  ;;  %v8590_v42 = vmul.f32 %v7966_v34, %v7966_v34 }
 0xc31   : > { %10577 = vmatmul.msk.f32.vlgmr.msrb.gmra.mxu3 %vm655_vm6, %v7530_v50  ;;  %v7499_v53 = vadd.f32 %v7498_v37, %v7497_v18 }
 0xc32   : > { %8812 = vmatpush.msra.mxu3 %v14311_v62  ;;  %v8610_v55 = vsel %vm1879_vm7, %v8590_v42, 0.0  ;;  %v8290_v7 = vsel %vm1879_vm7, %v8270_v1, 0.0 }
 0xc33   : > { %v7515_v63 = vmul.f32 %v7499_v53, %v16095_v36  ;;  %8611 = vadd.xlane.f32.xlu0 %v8610_v55  ;;  %8291 = vadd.xlane.f32.xlu1 %v8290_v7 }
 0xc34   : > { %8904 = vmatpush.msrb.mxu3 %v14507_v9 }
 0xc35   : > { %v7531_v29 = vsub.f32 %v7243_v44, %v7515_v63 }
 0xc36   : > { %v7989_v51 = vpop.f32.mrf.mxu0 }
 0xc37   : > { %v8271_v2 = vmul.f32 %v7989_v51, %v14849_v57  ;;  %v8591_v39 = vmul.f32 %v7989_v51, %v7989_v51  ;;  %10578 = vmatpush.xpose.msk.msra.mxu0 %vm655_vm6, %v7531_v29  ;;  %v8012_v36 = vpop.f32.mrf.mxu3 }
 0xc38   : > { %10584 = vmatmul.msk.f32.vlgmr.msrb.gmra.mxu1 %vm1879_vm7, %v8012_v36  ;;  %v8592_v23 = vmul.f32 %v8012_v36, %v8012_v36  ;;  %v8272_v56 = vmul.f32 %v8012_v36, %v14845_v13 }
 0xc39   : > { %10582 = vmatmul.msk.f32.vlgmr.msra.gmra.mxu3 %vm1879_vm7, %v7966_v34  ;;  %9042 = vmatpush.msrb.mxu1 %v14593_v41  ;;  %v8613_v48 = vsel %vm1879_vm7, %v8591_v39, 0.0  ;;  %v8293_v25 = vsel %vm1879_vm7, %v8271_v2, 0.0 }
 0xc3a   : > { %8996 = vmatpush.msra.mxu3 %v14533_v17  ;;  %10579 = vmatmul.msk.f32.vlgmr.msra.gmra.mxu0 %vm655_vm6, %v7531_v29  ;;  %v8616_v11 = vsel %vm1879_vm7, %v8592_v23, 0.0  ;;  %v8296_v47 = vsel %vm1879_vm7, %v8272_v56, 0.0 }
 0xc3b   : > { %8835 = vmatpush.msrb.mxu0 %v14345_v35  ;;  %8614 = vadd.xlane.f32.xlu0 %v8613_v48 }
 0xc3c   : > { %8294 = vadd.xlane.f32.xlu1 %v8293_v25 }
 0xc3d   : > { %8927 = vmatpush.msra.mxu0 %v14526_v19 }
 0xc3e   : > { %v8035_v5 = vpop.f32.mrf.mxu0 }
 0xc3f   : > { %10585 = vmatmul.msk.f32.vlgmr.msra.gmra.mxu2 %vm1879_vm7, %v8035_v5  ;;  %v8593_v44 = vmul.f32 %v8035_v5, %v8035_v5  ;;  %v8273_v0 = vmul.f32 %v8035_v5, %v14861_v60 }
 0xc40   : > { %9065 = vmatpush.msra.mxu2 %v14628_v46 }
 0xc41   : > { %v8619_v40 = vsel %vm1879_vm7, %v8593_v44, 0.0  ;;  %v8299_v31 = vsel %vm1879_vm7, %v8273_v0, 0.0 }
 0xc42   : > { %10583 = vmatmul.msk.f32.vlgmr.msrb.gmra.mxu0 %vm1879_vm7, %v7989_v51 }
 0xc43   : > { %9019 = vmatpush.msrb.mxu0 %v14576_v49  ;;  %8617 = vadd.xlane.f32.xlu0 %v8616_v11 }
 0xc44   : > { %v8058_v16 = vpop.f32.mrf.mxu3  ;;  %8297 = vadd.xlane.f32.xlu1 %v8296_v47 }
 0xc45   : > { %10586 = vmatmul.msk.f32.vlgmr.msrb.gmra.mxu3 %vm1879_vm7, %v8058_v16  ;;  %v8594_v50 = vmul.f32 %v8058_v16, %v8058_v16  ;;  %v8274_v24 = vmul.f32 %v8058_v16, %v14855_v10 }
 0xc46   : > { %9088 = vmatpush.msrb.mxu3 %v14645_v58  ;;  %v8081_v4 = vpop.f32.mrf.mxu0 }
 0xc47   : > { %v8622_v37 = vsel %vm1879_vm7, %v8594_v50, 0.0  ;;  %v8595_v34 = vmul.f32 %v8081_v4, %v8081_v4  ;;  %v8275_v53 = vmul.f32 %v8081_v4, %v14875_v33 }
 0xc49   : > { %v8305_v42 = vsel %vm1879_vm7, %v8275_v53, 0.0 }
 0xc4a   : > { %10587 = vmatmul.msk.f32.vlgmr.msra.gmra.mxu0 %vm1879_vm7, %v8081_v4 }
 0xc4b   : > { %9111 = vmatpush.msra.mxu0 %v14664_v27  ;;  %8620 = vadd.xlane.f32.xlu0 %v8619_v40 }
 0xc4c   : > { %v8104_v52 = vpop.f32.mrf.mxu3  ;;  %8300 = vadd.xlane.f32.xlu1 %v8299_v31 }
 0xc4d   : > { %10588 = vmatmul.msk.f32.vlgmr.msra.gmra.mxu1 %vm1879_vm7, %v8104_v52  ;;  %v8596_v63 = vmul.f32 %v8104_v52, %v8104_v52 }
 0xc4e   : > { %9134 = vmatpush.msra.mxu1 %v14183_v32  ;;  %v8127_v15 = vpop.f32.mrf.mxu0  ;;  %v8302_v32 = vsel %vm1879_vm7, %v8274_v24, 0.0 }
 0xc4f   : > { %10589 = vmatmul.msk.f32.vlgmr.msrb.gmra.mxu2 %vm1879_vm7, %v8127_v15  ;;  %v8628_v55 = vsel %vm1879_vm7, %v8596_v63, 0.0  ;;  %v8597_v51 = vmul.f32 %v8127_v15, %v8127_v15  ;;  %v8277_v29 = vmul.f32 %v8127_v15, %v14904_v20 }
 0xc50   : > { %9157 = vmatpush.msrb.mxu2 %v14212_v8  ;;  %v8625_v8 = vsel %vm1879_vm7, %v8595_v34, 0.0 }
 0xc51   : > { %v8631_v2 = vsel %vm1879_vm7, %v8597_v51, 0.0 }
 0xc53   : > { %8623 = vadd.xlane.f32.xlu0 %v8622_v37  ;;  %v11201_v37 = vld [vmem:[%s15894_s1 + $0x30] sm:$0xff] }
 0xc54   : > { %v8150_v18 = vpop.f32.mrf.mxu3  ;;  %8303 = vadd.xlane.f32.xlu1 %v8302_v32  ;;  %v8446_v32 = vpop.xlane.xlu0 %8445 }
 0xc55   : > { %10590 = vmatmul.msk.f32.vlgmr.msra.gmra.mxu3 %vm1879_vm7, %v8150_v18  ;;  %v8598_v39 = vmul.f32 %v8150_v18, %v8150_v18  ;;  %v8278_v36 = vmul.f32 %v8150_v18, %v14906_v30 }
 0xc56   : > { %9180 = vmatpush.msra.mxu3 %v14311_v62  ;;  %v8276_v62 = vmul.f32 %v8104_v52, %v14877_v43 }
 0xc57   : > { %v8634_v48 = vsel %vm1879_vm7, %v8598_v39, 0.0  ;;  %v8314_v5 = vsel %vm1879_vm7, %v8278_v36, 0.0 }
 0xc58   : > { %v8308_v7 = vsel %vm1879_vm7, %v8276_v62, 0.0 }
 0xc5b   : > { %v8173_v1 = vpop.f32.mrf.mxu0  ;;  %8626 = vadd.xlane.f32.xlu0 %v8625_v8 }
 0xc5c   : > { %10591 = vmatmul.msk.f32.vlgmr.msrb.gmra.mxu0 %vm1879_vm7, %v8173_v1  ;;  %8306 = vadd.xlane.f32.xlu1 %v8305_v42  ;;  %v8599_v23 = vmul.f32 %v8173_v1, %v8173_v1  ;;  %v8279_v56 = vmul.f32 %v8173_v1, %v14921_v26  ;;  %v8609_v51 = vpop.xlane.xlu0 %8608 }
 0xc5d   : > { %9203 = vmatpush.msrb.mxu0 %v14345_v35  ;;  %v8311_v35 = vsel %vm1879_vm7, %v8277_v29, 0.0 }
 0xc5e   : > { %v8637_v16 = vsel %vm1879_vm7, %v8599_v23, 0.0  ;;  %v8317_v11 = vsel %vm1879_vm7, %v8279_v56, 0.0 }
 0xc63   : > { %8629 = vadd.xlane.f32.xlu0 %v8628_v55 }
 0xc64   : > { %8309 = vadd.xlane.f32.xlu1 %v8308_v7 }
 0xc6b   : > { %8632 = vadd.xlane.f32.xlu0 %v8631_v2 }
 0xc6c   : > { %8312 = vadd.xlane.f32.xlu1 %v8311_v35 }
 0xc73   : > { %8635 = vadd.xlane.f32.xlu0 %v8634_v48 }
 0xc74   : > { %v8196_v25 = vpop.f32.mrf.mxu3  ;;  %8315 = vadd.xlane.f32.xlu1 %v8314_v5 }
 0xc75   : > { %10592 = vmatmul.msk.f32.vlgmr.msrb.gmra.mxu1 %vm1879_vm7, %v8196_v25  ;;  %v8600_v4 = vmul.f32 %v8196_v25, %v8196_v25  ;;  %v8280_v47 = vmul.f32 %v8196_v25, %v14923_v22 }
 0xc76   : > { %9226 = vmatpush.msrb.mxu1 %v14245_v14 }
 0xc77   : > { %v8640_v44 = vsel %vm1879_vm7, %v8600_v4, 0.0  ;;  %v8320_v14 = vsel %vm1879_vm7, %v8280_v47, 0.0 }
 0xc7b   : > { %8638 = vadd.xlane.f32.xlu0 %v8637_v16  ;;  %v8658_v16 = vrot.slane %v8609_v51, 4 }
 0xc7c   : > { %8318 = vadd.xlane.f32.xlu1 %v8317_v11 }
 0xc7d   : > { %10596 = vmatmul.msk.f32.vlgmr.msra.gmra.mxu1 %vm1879_vm7, %v14830_v6  ;;  %v11198_v6 = vld [vmem:[%s15894_s1 + $0x10] sm:$0xff] }
 0xc7e   : > { %9318 = vmatpush.msra.mxu1 %v14523_v38  ;;  %v11197_v38 = vld [vmem:[%s15894_s1 + $0x18] sm:$0xff] }
 0xc83   : > { %8641 = vadd.xlane.f32.xlu0 %v8640_v44 }
 0xc84   : > { %8321 = vadd.xlane.f32.xlu1 %v8320_v14 }
 0xc85   : > { %10600 = vmatmul.msk.f32.vlgmr.msrb.gmra.mxu1 %vm1879_vm7, %v14845_v13  ;;  %v11199_v13 = vld [vmem:[%s15894_s1 + $0x8] sm:$0xff] }
 0xc86   : > { %9410 = vmatpush.msrb.mxu1 %v14593_v41  ;;  %v11200_v41 = vld [vmem:[%s15894_s1] sm:$0xff] }
 0xc8d   : > { %10604 = vmatmul.msk.f32.vlgmr.msra.gmra.mxu1 %vm1879_vm7, %v14877_v43 }
 0xc8e   : > { %9848 = vmatpush.msra.mxu1 %v11197_v38  ;;  %v8659_v38 = vadd.f32 %v8658_v16, %v8609_v51  ;;  %v15197_v51 = vpop.f32.mrf.mxu2 }
 0xc90   : > { %9849 = vmatpush.msra.mxu1 %v11198_v6 }
 0xc92   : > { %9850 = vmatpush.msra.mxu1 %v11199_v13 }
 0xc94   : > { %9851 = vmatpush.msra.mxu1 %v11200_v41 }
 0xc95   : > { %10608 = vmatmul.msk.f32.vlgmr.msrb.gmra.mxu1 %vm1879_vm7, %v14923_v22 }
 0xca1   : > { %v8219_v43 = vpop.f32.mrf.mxu0 }
 0xca2   : > { %v8281_v0 = vmul.f32 %v8219_v43, %v14936_v54  ;;  %v8601_v52 = vmul.f32 %v8219_v43, %v8219_v43  ;;  %10593 = vmatmul.msk.f32.vlgmr.msra.gmra.mxu2 %vm1879_vm7, %v8219_v43 }
 0xca3   : > { %9249 = vmatpush.msra.mxu2 %v14470_v12 }
 0xca4   : > { %v8643_v40 = vsel %vm1879_vm7, %v8601_v52, 0.0  ;;  %v8323_v15 = vsel %vm1879_vm7, %v8281_v0, 0.0  ;;  %v8660_v0 = vrot.slane %v8659_v38, 2 }
 0xca5   : > { %8644 = vadd.xlane.f32.xlu0 %v8643_v40  ;;  %8324 = vadd.xlane.f32.xlu1 %v8323_v15 }
 0xca6   : > { %v8612_v36 = vpop.xlane.xlu0 %8611 }
 0xcaa   : > { %10597 = vmatmul.msk.f32.vlgmr.msrb.gmra.mxu2 %vm1879_vm7, %v14840_v21 }
 0xcab   : > { %9341 = vmatpush.msrb.mxu2 %v14547_v3 }
 0xcae   : > { %v8615_v47 = vpop.xlane.xlu0 %8614 }
 0xcb2   : > { %10601 = vmatmul.msk.f32.vlgmr.msra.gmra.mxu2 %vm1879_vm7, %v14861_v60 }
 0xcb3   : > { %9433 = vmatpush.msra.mxu2 %v14628_v46 }
 0xcb4   : > { %v8242_v22 = vpop.f32.mrf.mxu3 }
 0xcb5   : > { %v8282_v31 = vmul.f32 %v8242_v22, %v14938_v45  ;;  %v8602_v50 = vmul.f32 %v8242_v22, %v8242_v22  ;;  %10594 = vmatmul.msk.f32.vlgmr.msrb.gmra.mxu3 %vm1879_vm7, %v8242_v22 }
 0xcb6   : > { %9272 = vmatpush.msrb.mxu3 %v14507_v9  ;;  %v8606_v9 = vpop.xlane.xlu1 %8605 }
 0xcb7   : > { %v8646_v12 = vsel %vm1879_vm7, %v8602_v50, 0.0  ;;  %v8326_v24 = vsel %vm1879_vm7, %v8282_v31, 0.0  ;;  %v8265_v3 = vpop.f32.mrf.mxu0 }
 0xcb8   : > { %8647 = vadd.xlane.f32.xlu0 %v8646_v12  ;;  %8327 = vadd.xlane.f32.xlu1 %v8326_v24  ;;  %v8283_v21 = vmul.f32 %v8265_v3, %v14951_v61  ;;  %v8603_v18 = vmul.f32 %v8265_v3, %v8265_v3  ;;  %v8618_v12 = vpop.xlane.xlu0 %8617 }
 0xcb9   : > { %10595 = vmatmul.msk.f32.vlgmr.msra.gmra.mxu0 %vm1879_vm7, %v8265_v3 }
 0xcba   : > { %9295 = vmatpush.msra.mxu0 %v14526_v19  ;;  %v8329_v60 = vsel %vm1879_vm7, %v8283_v21, 0.0  ;;  %10605 = vmatmul.msk.f32.vlgmr.msrb.gmra.mxu2 %vm1879_vm7, %v14904_v20  ;;  %v8649_v46 = vsel %vm1879_vm7, %v8603_v18, 0.0  ;;  %v8449_v19 = vpop.xlane.xlu2 %8448  ;;  %v8492_v20 = vrot.slane %v8446_v32, 4  ;;  %v8661_v21 = vadd.f32 %v8660_v0, %v8659_v38 }
 0xcbb   : > { %8330 = vadd.xlane.f32.xlu2 %v8329_v60  ;;  %9979 = vmatpush.msrb.mxu2 %v11201_v37  ;;  %v8498_v44 = vrot.slane %v8449_v19, 4 }
 0xcbc   : > { %v8493_v53 = vadd.f32 %v8492_v20, %v8446_v32  ;;  %v8664_v20 = vrot.slane %v8612_v36, 4 }
 0xcbd   : > { %10598 = vmatmul.msk.f32.vlgmr.msra.gmra.mxu3 %vm1879_vm7, %v14836_v28  ;;  %v11202_v28 = vld [vmem:[%s15894_s1 + $0x28] sm:$0xff]  ;;  %v8499_v41 = vadd.f32 %v8498_v44, %v8449_v19 }
 0xcbe   : > { %9364 = vmatpush.msra.mxu3 %v14533_v17  ;;  %9980 = vmatpush.msrb.mxu2 %v11202_v28  ;;  %v8652_v17 = vrot.slane %v8606_v9, 4  ;;  %v8286_v55 = vpop.xlane.xlu1 %8285 }
 0xcbf   : > { %v8332_v7 = vrot.slane %v8286_v55, 4  ;;  %v8500_v31 = vrot.slane %v8499_v41, 2 }
 0xcc0   : > { %8650 = vadd.xlane.f32.xlu0 %v8649_v46  ;;  %v8653_v34 = vadd.f32 %v8652_v17, %v8606_v9  ;;  %v8662_v46 = vrot.slane %v8661_v21, 1 }
 0xcc1   : > { %10599 = vmatmul.msk.f32.vlgmr.msrb.gmra.mxu0 %vm1879_vm7, %v14849_v57  ;;  %v8333_v2 = vadd.f32 %v8332_v7, %v8286_v55  ;;  %v8501_v60 = vadd.f32 %v8500_v31, %v8499_v41 }
 0xcc2   : > { %9387 = vmatpush.msrb.mxu0 %v14576_v49  ;;  %10609 = vmatmul.msk.f32.vlgmr.msra.gmra.mxu2 %vm1879_vm7, %v14936_v54  ;;  %v15146_v1 = vpop.xlane.xlu2 %8451  ;;  %v8654_v8 = vrot.slane %v8653_v34, 2  ;;  %v8494_v49 = vrot.slane %v8493_v53, 2  ;;  %v8663_v17 = vadd.f32 %v8662_v46, %v8661_v21 }
 0xcc3   : > { %v8502_v19 = vrot.slane %v8501_v60, 1 }
 0xcc4   : > { %v8655_v57 = vadd.f32 %v8654_v8, %v8653_v34  ;;  %v15180_v34 = vpop.xlane.xlu0 %8620  ;;  %v8504_v8 = vrot.slane %v15146_v1, 4 }
 0xcc5   : > { %10602 = vmatmul.msk.f32.vlgmr.msrb.gmra.mxu3 %vm1879_vm7, %v14855_v10  ;;  %v8495_v10 = vadd.f32 %v8494_v49, %v8493_v53  ;;  %v15182_v53 = vadd.f32 %v8502_v19, %v8501_v60 }
 0xcc6   : > { %9456 = vmatpush.msrb.mxu3 %v14645_v58  ;;  %v8656_v42 = vrot.slane %v8655_v57, 1  ;;  %v8289_v50 = vpop.xlane.xlu1 %8288 }
 0xcc7   : > { %v8496_v58 = vrot.slane %v8495_v10, 1 }
 0xcc8   : > { %v8657_v63 = vadd.f32 %v8656_v42, %v8655_v57  ;;  %v8665_v57 = vadd.f32 %v8664_v20, %v8612_v36 }
 0xcc9   : > { %10603 = vmatmul.msk.f32.vlgmr.msra.gmra.mxu0 %vm1879_vm7, %v14875_v33  ;;  %v8497_v33 = vadd.f32 %v8496_v58, %v8495_v10  ;;  %v8670_v10 = vrot.slane %v8615_v47, 4  ;;  %v8505_v58 = vadd.f32 %v8504_v8, %v15146_v1 }
 0xcca   : > { %9479 = vmatpush.msra.mxu0 %v14664_v27  ;;  %v15155_v54 = vpop.xlane.xlu2 %8454  ;;  %v8768_v27 = vpop.f32.mrf.mxu1 }
 0xccb   : > { %v9484_v62 = vmul.f32 %v8657_v63, %v8497_v33  ;;  %v8510_v49 = vrot.slane %v15155_v54, 4  ;;  %v8671_v55 = vadd.f32 %v8670_v10, %v8615_v47  ;;  %v8338_v47 = vrot.slane %v8289_v50, 4 }
 0xccc   : > { %v15203_v36 = vpop.xlane.xlu0 %8623 }
 0xccd   : > { %10606 = vmatmul.msk.f32.vlgmr.msra.gmra.mxu3 %vm1879_vm7, %v14906_v30  ;;  %11117 = vrsqrt.f32 %v9484_v62  ;;  %v8511_v63 = vadd.f32 %v8510_v49, %v15155_v54  ;;  %v8339_v31 = vadd.f32 %v8338_v47, %v8289_v50 }
 0xcce   : > { %11119 = vrcp.f32 %v8497_v33  ;;  %v15176_v32 = vpop.xlane.xlu1 %8291 }
 0xccf   : > { %v8512_v1 = vrot.slane %v8511_v63, 2  ;;  %v8340_v50 = vrot.slane %v8339_v31, 2 }
 0xcd1   : > { %10607 = vmatmul.msk.f32.vlgmr.msrb.gmra.mxu0 %vm1879_vm7, %v14921_v26 }
 0xcd2   : > { %v15161_v30 = vpop.xlane.xlu2 %8457  ;;  %v15163_v26 = vpop.f32.mrf.mxu1 }
 0xcd3   : > { %v11118_v29 = vpop.eup %11117  ;;  %v8516_v42 = vrot.slane %v15161_v30, 4 }
 0xcd4   : > { %v9501_v35 = vmul.f32 %v11118_v29, %v9484_v62  ;;  %vm9507_vm6 = vweird.f32 %v11118_v29  ;;  %v11120_v13 = vpop.eup %11119 }
 0xcd5   : > { %10610 = vmatmul.msk.f32.vlgmr.msrb.gmra.mxu3 %vm1879_vm7, %v14938_v45  ;;  %v8334_v45 = vrot.slane %v8333_v2, 2  ;;  %v8517_v7 = vadd.f32 %v8516_v42, %v15161_v30 }
 0xcd6   : > { %v9502_v25 = vmul.f32 %v11118_v29, %v9501_v35 }
 0xcd8   : > { %v9503_v5 = vmul.f32 0.5, %v9502_v25 }
 0xcd9   : > { %10611 = vmatmul.msk.f32.vlgmr.msra.gmra.mxu0 %vm1879_vm7, %v14951_v61  ;;  %v8335_v61 = vadd.f32 %v8334_v45, %v8333_v2  ;;  %vm9506_vm7 = vweird.f32 %v9484_v62  ;;  %v8666_v62 = vrot.slane %v8665_v57, 2  ;;  %v8506_v2 = vrot.slane %v8505_v58, 2 }
 0xcda   : > { %v15165_v39 = vpop.xlane.xlu2 %8460  ;;  %v15167_v48 = vpop.f32.mrf.mxu1  ;;  %v9504_v4 = vsub.f32 1.5, %v9503_v5  ;;  %vm9508_vm8 = vmor %vm9506_vm7, %vm9507_vm6  ;;  %v8676_v5 = vrot.slane %v8618_v12, 4 }
 0xcdb   : > { %v8336_v23 = vrot.slane %v8335_v61, 1  ;;  %v8522_v33 = vrot.slane %v15165_v39, 4  ;;  %v8667_v25 = vadd.f32 %v8666_v62, %v8665_v57  ;;  %v8507_v30 = vadd.f32 %v8506_v2, %v8505_v58  ;;  %v15218_v57 = vpop.f32.mrf.mxu0 }
 0xcdc   : > { %v9505_v6 = vmul.f32 %v11118_v29, %v9504_v4 }
 0xcdd   : > { %v8337_v14 = vadd.f32 %v8336_v23, %v8335_v61  ;;  %v8523_v54 = vadd.f32 %v8522_v33, %v15165_v39  ;;  %v8672_v61 = vrot.slane %v8671_v55, 2  ;;  %v8518_v23 = vrot.slane %v8517_v7, 2 }
 0xcde   : > { %v9509_v40 = vsel %vm9508_vm8, %v11118_v29, %v9505_v6  ;;  %v8677_v39 = vadd.f32 %v8676_v5, %v8618_v12 }
 0xcdf   : > { %v9676_v43 = vmul.f32 %v11120_v13, %v8337_v14  ;;  %v9692_v24 = vmul.f32 2.0, %v9509_v40  ;;  %v8513_v14 = vadd.f32 %v8512_v1, %v8511_v63  ;;  %v8524_v38 = vrot.slane %v8523_v54, 2 }
 0xce0   : > { %v8668_v13 = vrot.slane %v8667_v25, 1  ;;  %v8673_v41 = vadd.f32 %v8672_v61, %v8671_v55  ;;  %v8508_v40 = vrot.slane %v8507_v30, 1  ;;  %v8678_v46 = vrot.slane %v8677_v39, 2 }
 0xce1   : > { %v8525_v21 = vadd.f32 %v8524_v38, %v8523_v54  ;;  %v8341_v61 = vadd.f32 %v8340_v50, %v8339_v31 }
 0xce2   : > { %v15169_v56 = vpop.xlane.xlu2 %8463  ;;  %v8674_v12 = vrot.slane %v8673_v41, 1  ;;  %v8509_v8 = vadd.f32 %v8508_v40, %v8507_v30  ;;  %v8679_v55 = vadd.f32 %v8678_v46, %v8677_v39  ;;  %v8344_v40 = vrot.slane %v15176_v32, 4 }
 0xce3   : > { %v8528_v35 = vrot.slane %v15169_v56, 4  ;;  %v8526_v42 = vrot.slane %v8525_v21, 1 }
 0xce4   : > { %v8675_v62 = vadd.f32 %v8674_v12, %v8673_v41  ;;  %v8345_v50 = vadd.f32 %v8344_v40, %v15176_v32 }
 0xce5   : > { %v8529_v4 = vadd.f32 %v8528_v35, %v15169_v56  ;;  %v8514_v56 = vrot.slane %v8513_v14, 1 }
 0xce7   : > { %v8515_v10 = vadd.f32 %v8514_v56, %v8513_v14 }
 0xce9   : > { %v15232_v30 = vmul.f32 %v8675_v62, %v8515_v10 }
 0xcea   : > { %v8467_v15 = vpop.xlane.xlu2 %8466 }
 0xceb   : > { %v8534_v45 = vrot.slane %v8467_v15, 4  ;;  %vm9536_vm1 = vweird.f32 %v15232_v30 }
 0xced   : > { %v8535_v6 = vadd.f32 %v8534_v45, %v8467_v15  ;;  %v8682_v15 = vrot.slane %v15180_v34, 4 }
 0xcef   : > { %v8683_v63 = vadd.f32 %v8682_v15, %v15180_v34  ;;  %v15229_v34 = vadd.f32 %v8526_v42, %v8525_v21 }
 0xcf2   : > { %v15171_v11 = vpop.f32.mrf.mxu1  ;;  %v8470_v28 = vpop.xlane.xlu2 %8469 }
 0xcf3   : > { %16125 = vst [vmem:[#allocation20_spill] sm:$0xff] %v15171_v11  ;;  %v8540_v44 = vrot.slane %v8470_v28, 4 }
 0xcfa   : > { %v9136_v52 = vpop.f32.mrf.mxu1  ;;  %v15199_v29 = vpop.xlane.xlu2 %8472 }
 0xcfb   : > { %v9708_v22 = vmul.f32 %v9676_v43, %v9136_v52  ;;  %v8519_v43 = vadd.f32 %v8518_v23, %v8517_v7  ;;  %v15210_v52 = vpop.f32.mrf.mxu2  ;;  %v15224_v7 = vpop.f32.mrf.mxu3  ;;  %v8546_v35 = vrot.slane %v15199_v29, 4  ;;  %v8684_v23 = vrot.slane %v8683_v63, 2 }
 0xcfd   : > { %v9724_v3 = vsub.f32 %v8768_v27, %v9708_v22  ;;  %v15194_v27 = vpop.xlane.xlu1 %8294  ;;  %v8530_v22 = vrot.slane %v8529_v4, 2  ;;  %v8520_v19 = vrot.slane %v8519_v43, 1  ;;  %v8547_v14 = vadd.f32 %v8546_v35, %v15199_v29 }
 0xcfe   : > { %v8685_v31 = vadd.f32 %v8684_v23, %v8683_v63 }
 0xcff   : > { %v9740_v18 = vmul.f32 %v9724_v3, %v9692_v24  ;;  %v8541_v24 = vadd.f32 %v8540_v44, %v8470_v28  ;;  %v8531_v49 = vadd.f32 %v8530_v22, %v8529_v4  ;;  %v8521_v2 = vadd.f32 %v8520_v19, %v8519_v43 }
 0xd00   : > { %v8680_v4 = vrot.slane %v8679_v55, 1  ;;  %v8688_v44 = vrot.slane %v15203_v36, 4  ;;  %v8342_v43 = vrot.slane %v8341_v61, 1  ;;  %v8350_v22 = vrot.slane %v15194_v27, 4 }
 0xd01   : > { %v9756_v9 = vmul.f32 0.01, %v9740_v18  ;;  %v8536_v18 = vrot.slane %v8535_v6, 2  ;;  %v8542_v28 = vrot.slane %v8541_v24, 2  ;;  %v8548_v12 = vrot.slane %v8547_v14, 2 }
 0xd02   : > { %v8476_v60 = vpop.xlane.xlu2 %8475  ;;  %v8681_v21 = vadd.f32 %v8680_v4, %v8679_v55  ;;  %v8689_v15 = vadd.f32 %v8688_v44, %v15203_v36  ;;  %v8351_v42 = vadd.f32 %v8350_v22, %v15194_v27  ;;  %v8686_v63 = vrot.slane %v8685_v31, 1 }
 0xd03   : > { %v15174_v37 = vadd.f32 %v9756_v9, %v14161_v59  ;;  %v15187_v59 = vmul.f32 %v8663_v17, %v15182_v53  ;;  %v8669_v9 = vadd.f32 %v8668_v13, %v8667_v25  ;;  %v15215_v17 = vpop.xlane.xlu0 %8626  ;;  %v8537_v58 = vadd.f32 %v8536_v18, %v8535_v6  ;;  %v15227_v54 = vpop.f32.mrf.mxu2 }
 0xd04   : > { %v8552_v1 = vrot.slane %v8476_v60, 4  ;;  %v8532_v25 = vrot.slane %v8531_v49, 1  ;;  %v8543_v5 = vadd.f32 %v8542_v28, %v8541_v24  ;;  %v15251_v18 = vpop.f32.mrf.mxu3  ;;  %v8343_v28 = vadd.f32 %v8342_v43, %v8341_v61 }
 0xd05   : > { %16126 = vst [vmem:[#allocation10_spill] sm:$0xff] %v15174_v37  ;;  %10612 = vmatmul.msk.f32.vlgmr.msra.gmra.mxu1 %vm185_vm0, %v15174_v37  ;;  %11121 = vrsqrt.f32 %v15187_v59  ;;  %v15212_v3 = vpop.xlane.xlu1 %8297  ;;  %v15222_v33 = vmul.f32 %v8669_v9, %v8509_v8  ;;  %vm9516_vm10 = vweird.f32 %v15187_v59  ;;  %v15273_v62 = vmul.f32 %v8681_v21, %v8521_v2 }
 0xd06   : > { %11123 = vrcp.f32 %v15182_v53  ;;  %v8538_v53 = vrot.slane %v8537_v58, 1  ;;  %v8553_v38 = vadd.f32 %v8552_v1, %v8476_v60  ;;  %v15238_v39 = vadd.f32 %v8532_v25, %v8531_v49  ;;  %v15253_v60 = vpop.f32.mrf.mxu0 }
 0xd07   : > { %11125 = vrcp.f32 %v8509_v8  ;;  %v8690_v55 = vrot.slane %v8689_v15, 2  ;;  %v8694_v35 = vrot.slane %v15215_v17, 4  ;;  %v8549_v27 = vadd.f32 %v8548_v12, %v8547_v14 }
 0xd08   : > { %11127 = vrcp.f32 %v8515_v10  ;;  %v15248_v56 = vadd.f32 %v8538_v53, %v8537_v58  ;;  %v8554_v46 = vrot.slane %v8553_v38, 2  ;;  %v8356_v58 = vrot.slane %v15212_v3, 4 }
 0xd09   : > { %11129 = vrsqrt.f32 %v15222_v33  ;;  %v8352_v44 = vrot.slane %v8351_v42, 2  ;;  %v8691_v43 = vadd.f32 %v8690_v55, %v8689_v15  ;;  %v8550_v21 = vrot.slane %v8549_v27, 1 }
 0xd0a   : > { %11131 = vrcp.f32 %v8521_v2  ;;  %v8479_v6 = vpop.xlane.xlu2 %8478  ;;  %v8357_v14 = vadd.f32 %v8356_v58, %v15212_v3  ;;  %vm9526_vm13 = vweird.f32 %v15222_v33  ;;  %vm9546_vm4 = vweird.f32 %v15273_v62 }
 0xd0b   : > { %v15205_v16 = vpop.eup %11121  ;;  %11133 = vrcp.f32 %v15229_v34  ;;  %v15243_v24 = vpop.xlane.xlu0 %8629  ;;  %v8558_v10 = vrot.slane %v8479_v6, 4  ;;  %v8353_v58 = vadd.f32 %v8352_v44, %v8351_v42 }
 0xd0c   : > { %v9511_v0 = vmul.f32 %v15205_v16, %v15187_v59  ;;  %v11124_v41 = vpop.eup %11123  ;;  %11135 = vrsqrt.f32 %v15232_v30  ;;  %vm9517_vm9 = vweird.f32 %v15205_v16  ;;  %v8346_v59 = vrot.slane %v8345_v50, 2 }
 0xd0d   : > { %v15234_v47 = vpop.xlane.xlu1 %8300  ;;  %v15246_v29 = vpop.eup %11125  ;;  %11137 = vrcp.f32 %v15238_v39  ;;  %vm15280_vm11 = vmor %vm9516_vm10, %vm9517_vm9  ;;  %v9677_v53 = vmul.f32 %v11124_v41, %v8343_v28  ;;  %v8559_v23 = vadd.f32 %v8558_v10, %v8479_v6 }
 0xd0e   : > { %v9512_v20 = vmul.f32 %v15205_v16, %v9511_v0  ;;  %v8544_v0 = vrot.slane %v8543_v5, 1  ;;  %v15256_v9 = vpop.eup %11127  ;;  %11139 = vrcp.f32 %v15248_v56  ;;  %v15303_v40 = vpop.f32.mrf.mxu0  ;;  %v8347_v15 = vadd.f32 %v8346_v59, %v8345_v50 }
 0xd0f   : > { %v15262_v8 = vpop.eup %11129  ;;  %16131 = vst [vmem:[#allocation11_spill] sm:$0xff] %v15303_v40  ;;  %v8560_v10 = vrot.slane %v8559_v23, 2  ;;  %v8354_v40 = vrot.slane %v8353_v58, 1 }
 0xd10   : > { %v9513_v45 = vmul.f32 0.5, %v9512_v20  ;;  %v15265_v49 = vadd.f32 %v8544_v0, %v8543_v5  ;;  %v15268_v36 = vpop.eup %11131  ;;  %v9521_v25 = vmul.f32 %v15262_v8, %v15222_v33  ;;  %v15301_v0 = vpop.f32.mrf.mxu3  ;;  %v8348_v42 = vrot.slane %v8347_v15, 1 }
 0xd11   : > { %v15284_v1 = vpop.eup %11133  ;;  %16130 = vst [vmem:[#allocation6_spill] sm:$0xff] %v15301_v0  ;;  %v15329_v11 = vadd.f32 %v8560_v10, %v8559_v23  ;;  %vm9527_vm12 = vweird.f32 %v15262_v8 }
 0xd12   : > { %v9514_v13 = vsub.f32 1.5, %v9513_v45  ;;  %v8555_v45 = vadd.f32 %v8554_v46, %v8553_v38  ;;  %v15291_v61 = vpop.eup %11135  ;;  %11141 = vrcp.f32 %v15265_v49  ;;  %v8482_v4 = vpop.xlane.xlu2 %8481  ;;  %v8687_v38 = vadd.f32 %v8686_v63, %v8685_v31  ;;  %vm15372_vm14 = vmor %vm9526_vm13, %vm9527_vm12 }
 0xd13   : > { %11143 = vrsqrt.f32 %v15273_v62  ;;  %v9531_v6 = vmul.f32 %v15291_v61, %v15232_v30  ;;  %v15307_v12 = vpop.xlane.xlu0 %8632  ;;  %v9522_v31 = vmul.f32 %v15262_v8, %v9521_v25  ;;  %v8358_v63 = vrot.slane %v8357_v14, 2 }
 0xd14   : > { %v9515_v20 = vmul.f32 %v15205_v16, %v9514_v13  ;;  %v15297_v13 = vpop.eup %11137  ;;  %v8556_v41 = vrot.slane %v8555_v45, 1  ;;  %v15315_v55 = vmul.f32 %v8687_v38, %v15229_v34  ;;  %v8564_v32 = vrot.slane %v8482_v4, 4 }
 0xd15   : > { %v15294_v5 = vpop.xlane.xlu1 %8303  ;;  %v15310_v46 = vpop.eup %11139  ;;  %v9523_v59 = vmul.f32 0.5, %v9522_v31  ;;  %v8359_v0 = vadd.f32 %v8358_v63, %v8357_v14  ;;  %v8562_v10 = vrot.slane %v15329_v11, 1  ;;  %vm9537_vm15 = vweird.f32 %v15291_v61 }
 0xd16   : > { %v9519_v2 = vsel %vm15280_vm11, %v15205_v16, %v9515_v20  ;;  %v8695_v16 = vadd.f32 %v8694_v35, %v15215_v17  ;;  %v8362_v17 = vrot.slane %v15234_v47, 4  ;;  %v8700_v20 = vrot.slane %v15243_v24, 4  ;;  %vm15394_vm2 = vmor %vm9536_vm1, %vm9537_vm15 }
 0xd17   : > { %v9693_v22 = vmul.f32 2.0, %v9519_v2  ;;  %v8692_v2 = vrot.slane %v8691_v43, 1  ;;  %v15322_v50 = vadd.f32 %v8556_v41, %v8555_v45  ;;  %11145 = vrsqrt.f32 %v15315_v55 }
 0xd18   : > { %v15317_v35 = vpop.eup %11141  ;;  %v8696_v37 = vrot.slane %v8695_v16, 2  ;;  %v8363_v34 = vadd.f32 %v8362_v17, %v15234_v47  ;;  %v8701_v44 = vadd.f32 %v8700_v20, %v15243_v24  ;;  %v9524_v23 = vsub.f32 1.5, %v9523_v59 }
 0xd19   : > { %vm9556_vm7 = vweird.f32 %v15315_v55 }
 0xd1a   : > { %v8702_v31 = vrot.slane %v8701_v44, 2  ;;  %v9525_v59 = vmul.f32 %v15262_v8, %v9524_v23 }
 0xd1b   : > { %v8636_v20 = vpop.xlane.xlu0 %8635 }
 0xd1d   : > { %v15334_v45 = vpop.xlane.xlu1 %8306 }
 0xd25   : > { %v15258_v19 = vpop.f32.mrf.mxu2 }
 0xd26   : > { %16127 = vst [vmem:[#allocation12_spill] sm:$0xff] %v15258_v19  ;;  %v15320_v19 = vadd.f32 %v8550_v21, %v8549_v27  ;;  %v8693_v27 = vadd.f32 %v8692_v2, %v8691_v43  ;;  %v8697_v21 = vadd.f32 %v8696_v37, %v8695_v16  ;;  %v8349_v43 = vadd.f32 %v8348_v42, %v8347_v15 }
 0xd27   : > { %v8360_v37 = vrot.slane %v8359_v0, 1  ;;  %v8706_v16 = vrot.slane %v15307_v12, 4 }
 0xd28   : > { %11147 = vrcp.f32 %v15320_v19  ;;  %v8698_v2 = vrot.slane %v8697_v21, 1 }
 0xd29   : > { %11149 = vrcp.f32 %v15322_v50 }
 0xd2d   : > { %v9159_v3 = vpop.f32.mrf.mxu2 }
 0xd2e   : > { %v9709_v28 = vmul.f32 %v9677_v53, %v9159_v3  ;;  %v9532_v53 = vmul.f32 %v15291_v61, %v9531_v6  ;;  %v15325_v3 = vpop.eup %11143 }
 0xd2f   : > { %v9541_v47 = vmul.f32 %v15325_v3, %v15273_v62  ;;  %vm9547_vm3 = vweird.f32 %v15325_v3 }
 0xd30   : > { %v9725_v25 = vsub.f32 %v15197_v51, %v9709_v28  ;;  %v15332_v51 = vadd.f32 %v8564_v32, %v8482_v4  ;;  %v9533_v14 = vmul.f32 0.5, %v9532_v53  ;;  %v16132_v4 = vld [vmem:[#allocation30_spill] sm:$0xff]  ;;  %v8355_v28 = vadd.f32 %v8354_v40, %v8353_v58  ;;  %vm15433_vm6 = vmor %vm9546_vm4, %vm9547_vm3 }
 0xd31   : > { %v15351_v32 = vmul.f32 %v8693_v27, %v15238_v39  ;;  %v9542_v15 = vmul.f32 %v15325_v3, %v9541_v47  ;;  %v8703_v53 = vadd.f32 %v8702_v31, %v8701_v44  ;;  %v9678_v39 = vmul.f32 %v15246_v29, %v8349_v43  ;;  %v15383_v31 = vpop.xlane.xlu1 %8309 }
 0xd32   : > { %v9741_v38 = vmul.f32 %v9725_v25, %v9693_v22  ;;  %v8364_v22 = vrot.slane %v8363_v34, 2  ;;  %v15355_v25 = vpop.eup %11145  ;;  %v9534_v40 = vsub.f32 1.5, %v9533_v14  ;;  %v8707_v27 = vadd.f32 %v8706_v16, %v15307_v12 }
 0xd33   : > { %v15362_v42 = vpop.eup %11147  ;;  %v9679_v47 = vmul.f32 %v15256_v9, %v8355_v28  ;;  %v9551_v23 = vmul.f32 %v15355_v25, %v15315_v55  ;;  %11151 = vrsqrt.f32 %v15351_v32  ;;  %v9543_v9 = vmul.f32 0.5, %v9542_v15 }
 0xd34   : > { %v9757_v41 = vmul.f32 0.01, %v9741_v38  ;;  %v8365_v58 = vadd.f32 %v8364_v22, %v8363_v34  ;;  %v8368_v38 = vrot.slane %v15294_v5, 4  ;;  %v8699_v34 = vadd.f32 %v8698_v2, %v8697_v21  ;;  %v15377_v12 = vpop.eup %11149 }
 0xd35   : > { %v9529_v14 = vsel %vm15372_vm14, %v15262_v8, %v9525_v59  ;;  %v9535_v21 = vmul.f32 %v15291_v61, %v9534_v40  ;;  %v8704_v43 = vrot.slane %v8703_v53, 1  ;;  %v8708_v63 = vrot.slane %v8707_v27, 2 }
 0xd36   : > { %v15336_v6 = vpop.f32.mrf.mxu0  ;;  %v15344_v17 = vadd.f32 %v9757_v41, %v16132_v4  ;;  %v8361_v41 = vadd.f32 %v8360_v37, %v8359_v0  ;;  %v8485_v4 = vpop.xlane.xlu2 %8484  ;;  %v8712_v0 = vrot.slane %v8636_v20, 4  ;;  %v8366_v22 = vrot.slane %v8365_v58, 1 }
 0xd37   : > { %v8570_v28 = vrot.slane %v8485_v4, 4  ;;  %v8369_v2 = vadd.f32 %v8368_v38, %v15294_v5  ;;  %v15388_v15 = vmul.f32 %v8699_v34, %v15248_v56  ;;  %v9552_v33 = vmul.f32 %v15355_v25, %v9551_v23 }
 0xd38   : > { %v15341_v24 = vpop.f32.mrf.mxu3  ;;  %10613 = vmatmul.msk.f32.gmra.mxu1 %vm185_vm0, %v15344_v17  ;;  %v9694_v8 = vmul.f32 2.0, %v9529_v14  ;;  %v9544_v5 = vsub.f32 1.5, %v9543_v9  ;;  %v9680_v38 = vmul.f32 %v15268_v36, %v8361_v41  ;;  %v9539_v30 = vsel %vm15394_vm2, %v15291_v61, %v9535_v21 }
 0xd39   : > { %v15402_v56 = vpop.eup %11151  ;;  %v8705_v23 = vadd.f32 %v8704_v43, %v8703_v53  ;;  %v8367_v34 = vadd.f32 %v8366_v22, %v8365_v58  ;;  %v8374_v14 = vrot.slane %v15334_v45, 4  ;;  %11153 = vrsqrt.f32 %v15388_v15 }
 0xd3a   : > { %v9553_v36 = vmul.f32 0.5, %v9552_v33  ;;  %v9561_v61 = vmul.f32 %v15402_v56, %v15351_v32  ;;  %v9545_v9 = vmul.f32 %v15325_v3, %v9544_v5  ;;  %v15420_v43 = vadd.f32 %v8562_v10, %v15329_v11  ;;  %v8313_v5 = vpop.xlane.xlu1 %8312 }
 0xd3b   : > { %vm9557_vm8 = vweird.f32 %v15355_v25  ;;  %vm9567_vm9 = vweird.f32 %v15402_v56  ;;  %vm9566_vm11 = vweird.f32 %v15351_v32  ;;  %vm9576_vm14 = vweird.f32 %v15388_v15 }
 0xd3c   : > { %v9554_v11 = vsub.f32 1.5, %v9553_v36  ;;  %v9562_v10 = vmul.f32 %v15402_v56, %v9561_v61  ;;  %vm15464_vm10 = vmor %vm9556_vm7, %vm9557_vm8 }
 0xd3d   : > { %vm15500_vm12 = vmor %vm9566_vm11, %vm9567_vm9 }
 0xd3e   : > { %v9205_v29 = vpop.f32.mrf.mxu0 }
 0xd3f   : > { %v9711_v16 = vmul.f32 %v9679_v47, %v9205_v29  ;;  %v8639_v47 = vpop.xlane.xlu0 %8638 }
 0xd40   : > { %v9182_v44 = vpop.f32.mrf.mxu3  ;;  %v8718_v58 = vrot.slane %v8639_v47, 4 }
 0xd41   : > { %v9710_v37 = vmul.f32 %v9678_v39, %v9182_v44  ;;  %v8713_v39 = vadd.f32 %v8712_v0, %v8636_v20  ;;  %v9727_v29 = vsub.f32 %v15218_v57, %v9711_v16  ;;  %v8370_v44 = vrot.slane %v8369_v2, 2  ;;  %v9228_v20 = vpop.f32.mrf.mxu1 }
 0xd42   : > { %v9695_v0 = vmul.f32 2.0, %v9539_v30  ;;  %v15412_v57 = vmul.f32 %v8705_v23, %v15265_v49  ;;  %v9712_v21 = vmul.f32 %v9680_v38, %v9228_v20  ;;  %v8375_v16 = vadd.f32 %v8374_v14, %v15334_v45 }
 0xd43   : > { %v9726_v59 = vsub.f32 %v15224_v7, %v9710_v37  ;;  %v8709_v37 = vadd.f32 %v8708_v63, %v8707_v27  ;;  %v8714_v53 = vrot.slane %v8713_v39, 2  ;;  %v16137_v63 = vld [vmem:[#allocation31_spill] sm:$0xff]  ;;  %v8371_v40 = vadd.f32 %v8370_v44, %v8369_v2 }
 0xd44   : > { %v9743_v22 = vmul.f32 %v9727_v29, %v9695_v0  ;;  %v8719_v45 = vadd.f32 %v8718_v58, %v8639_v47  ;;  %11155 = vrsqrt.f32 %v15412_v57  ;;  %v9681_v2 = vmul.f32 %v15284_v1, %v8367_v34  ;;  %v9251_v29 = vpop.f32.mrf.mxu2  ;;  %v8488_v58 = vpop.xlane.xlu2 %8487 }
 0xd45   : > { %v9742_v7 = vmul.f32 %v9726_v59, %v9694_v8  ;;  %v8710_v33 = vrot.slane %v8709_v37, 1  ;;  %v16138_v8 = vrot.slane %v15332_v51, 2  ;;  %v15429_v59 = vadd.f32 %v8570_v28, %v8485_v4  ;;  %v15443_v4 = vpop.eup %11153 }
 0xd46   : > { %v8715_v62 = vadd.f32 %v8714_v53, %v8713_v39  ;;  %v9728_v28 = vsub.f32 %v15163_v26, %v9712_v21  ;;  %v9759_v30 = vmul.f32 0.01, %v9743_v22  ;;  %v8376_v23 = vrot.slane %v8375_v16, 2 }
 0xd47   : > { %v9758_v41 = vmul.f32 0.01, %v9742_v7  ;;  %v15427_v49 = vadd.f32 %v16138_v8, %v15332_v51  ;;  %v9549_v51 = vsel %vm15433_vm6, %v15325_v3, %v9545_v9  ;;  %v8380_v7 = vrot.slane %v15383_v31, 4  ;;  %v8642_v47 = vpop.xlane.xlu0 %8641 }
 0xd48   : > { %v8711_v39 = vadd.f32 %v8710_v33, %v8709_v37  ;;  %v8372_v3 = vrot.slane %v8371_v40, 1  ;;  %v9696_v44 = vmul.f32 2.0, %v9549_v51  ;;  %v9555_v14 = vmul.f32 %v15355_v25, %v9554_v11  ;;  %v16141_v37 = vld [vmem:[#allocation14_spill] sm:$0xff] }
 0xd49   : > { %v15415_v27 = vadd.f32 %v9758_v41, %v16137_v63  ;;  %v9571_v26 = vmul.f32 %v15443_v4, %v15388_v15  ;;  %v8716_v20 = vrot.slane %v8715_v62, 1  ;;  %v8720_v1 = vrot.slane %v8719_v45, 2 }
 0xd4a   : > { %v9563_v34 = vmul.f32 0.5, %v9562_v10  ;;  %v8724_v36 = vrot.slane %v8642_v47, 4  ;;  %v9744_v41 = vmul.f32 %v9728_v28, %v9696_v44  ;;  %v9713_v0 = vmul.f32 %v9681_v2, %v9251_v29  ;;  %v15468_v33 = vpop.eup %11155  ;;  %v8316_v28 = vpop.xlane.xlu1 %8315 }
 0xd4b   : > { %10614 = vmatmul.msk.f32.gmra.mxu1 %vm185_vm0, %v15415_v27  ;;  %v15455_v61 = vadd.f32 %v9759_v30, %v16141_v37  ;;  %v8568_v53 = vrot.slane %v15427_v49, 1  ;;  %v8377_v9 = vadd.f32 %v8376_v23, %v8375_v16  ;;  %v8381_v21 = vadd.f32 %v8380_v7, %v15383_v31  ;;  %v9274_v29 = vpop.f32.mrf.mxu3 }
 0xd4c   : > { %v15460_v63 = vmul.f32 %v8711_v39, %v15320_v19  ;;  %v8572_v8 = vrot.slane %v15429_v59, 2  ;;  %v8386_v38 = vrot.slane %v8313_v5, 4  ;;  %v9559_v16 = vsel %vm15464_vm10, %v15355_v25, %v9555_v14 }
 0xd4d   : > { %v8373_v11 = vadd.f32 %v8372_v3, %v8371_v40  ;;  %v8717_v19 = vadd.f32 %v8716_v20, %v8715_v62  ;;  %v8721_v31 = vadd.f32 %v8720_v1, %v8719_v45  ;;  %v9564_v55 = vsub.f32 1.5, %v9563_v34  ;;  %v16144_v20 = vld [vmem:[#allocation16_spill] sm:$0xff] }
 0xd4e   : > { %v9572_v51 = vmul.f32 %v15443_v4, %v9571_v26  ;;  %v8576_v10 = vrot.slane %v8488_v58, 4  ;;  %v8725_v2 = vadd.f32 %v8724_v36, %v8642_v47  ;;  %v9760_v30 = vmul.f32 0.01, %v9744_v41 }
 0xd4f   : > { %v9729_v23 = vsub.f32 %v15210_v52, %v9713_v0  ;;  %v8378_v7 = vrot.slane %v8377_v9, 1  ;;  %v8382_v39 = vrot.slane %v8381_v21, 2  ;;  %v9581_v25 = vmul.f32 %v15468_v33, %v15412_v57  ;;  %v8645_v40 = vpop.xlane.xlu0 %8644 }
 0xd50   : > { %11157 = vrsqrt.f32 %v15460_v63  ;;  %v8387_v62 = vadd.f32 %v8386_v38, %v8313_v5  ;;  %v9697_v45 = vmul.f32 2.0, %v9559_v16  ;;  %v9682_v3 = vmul.f32 %v15297_v13, %v8373_v11 }
 0xd51   : > { %v15484_v47 = vmul.f32 %v8717_v19, %v15322_v50  ;;  %v8722_v44 = vrot.slane %v8721_v31, 1  ;;  %v9565_v52 = vmul.f32 %v15402_v56, %v9564_v55  ;;  %v9573_v14 = vmul.f32 0.5, %v9572_v51 }
 0xd52   : > { %v8726_v26 = vrot.slane %v8725_v2, 2  ;;  %v15488_v1 = vadd.f32 %v9760_v30, %v16144_v20  ;;  %v9745_v34 = vmul.f32 %v9729_v23, %v9697_v45  ;;  %v9714_v36 = vmul.f32 %v9682_v3, %v9274_v29  ;;  %v9297_v30 = vpop.f32.mrf.mxu0 }
 0xd53   : > { %10615 = vmatmul.msk.f32.gmra.mxu1 %vm185_vm0, %v15455_v61  ;;  %v8383_v41 = vadd.f32 %v8382_v39, %v8381_v21  ;;  %v9582_v5 = vmul.f32 %v15468_v33, %v9581_v25  ;;  %v8379_v0 = vadd.f32 %v8378_v7, %v8377_v9  ;;  %v15493_v13 = vadd.f32 %v8568_v53, %v15427_v49 }
 0xd54   : > { %v15496_v50 = vadd.f32 %v8572_v8, %v15429_v59  ;;  %v8388_v37 = vrot.slane %v8387_v62, 2  ;;  %v8730_v22 = vrot.slane %v8645_v40, 4  ;;  %v8392_v32 = vrot.slane %v8316_v28, 4 }
 0xd55   : > { %v8723_v9 = vadd.f32 %v8722_v44, %v8721_v31  ;;  %v9569_v49 = vsel %vm15500_vm12, %v15402_v56, %v9565_v52  ;;  %v9574_v59 = vsub.f32 1.5, %v9573_v14  ;;  %11159 = vrsqrt.f32 %v15484_v47 }
 0xd56   : > { %v15506_v21 = vpop.eup %11157  ;;  %v8727_v53 = vadd.f32 %v8726_v26, %v8725_v2  ;;  %v9761_v8 = vmul.f32 0.01, %v9745_v34  ;;  %v9730_v16 = vsub.f32 %v15251_v18, %v9714_v36  ;;  %v8577_v11 = vadd.f32 %v8576_v10, %v8488_v58  ;;  %v8319_v2 = vpop.xlane.xlu1 %8318  ;;  %v16147_v10 = vld [vmem:[#allocation17_spill] sm:$0xff] }
 0xd57   : > { %v8384_v19 = vrot.slane %v8383_v41, 1  ;;  %v9583_v55 = vmul.f32 0.5, %v9582_v5  ;;  %v8648_v51 = vpop.xlane.xlu0 %8647  ;;  %v9683_v23 = vmul.f32 %v15310_v46, %v8379_v0  ;;  %v9591_v31 = vmul.f32 %v15506_v21, %v15460_v63  ;;  %v9343_v34 = vpop.f32.mrf.mxu2 }
 0xd58   : > { %v8731_v7 = vadd.f32 %v8730_v22, %v8645_v40  ;;  %v9698_v39 = vmul.f32 2.0, %v9569_v49  ;;  %vm9577_vm13 = vweird.f32 %v15443_v4  ;;  %v8389_v56 = vadd.f32 %v8388_v37, %v8387_v62 }
 0xd59   : > { %v8393_v25 = vadd.f32 %v8392_v32, %v8316_v28  ;;  %v15518_v29 = vmul.f32 %v8723_v9, %v15420_v43  ;;  %v9575_v18 = vmul.f32 %v15443_v4, %v9574_v59  ;;  %v8728_v58 = vrot.slane %v8727_v53, 1  ;;  %vm15531_vm15 = vmor %vm9576_vm14, %vm9577_vm13  ;;  %v9320_v32 = vpop.f32.mrf.mxu1 }
 0xd5a   : > { %v15522_v45 = vadd.f32 %v9761_v8, %v16147_v10  ;;  %v9746_v46 = vmul.f32 %v9730_v16, %v9698_v39  ;;  %v9715_v3 = vmul.f32 %v9683_v23, %v9297_v30  ;;  %v8574_v44 = vrot.slane %v15496_v50, 1  ;;  %v8491_v30 = vpop.xlane.xlu2 %8490 }
 0xd5b   : > { %10616 = vmatmul.msk.f32.gmra.mxu1 %vm185_vm0, %v15488_v1  ;;  %v8385_v40 = vadd.f32 %v8384_v19, %v8383_v41  ;;  %v9584_v52 = vsub.f32 1.5, %v9583_v55  ;;  %v15526_v62 = vpop.eup %11159  ;;  %v8578_v28 = vrot.slane %v8577_v11, 2  ;;  %v8732_v14 = vrot.slane %v8731_v7, 2 }
 0xd5c   : > { %v8736_v26 = vrot.slane %v8648_v51, 4  ;;  %v9592_v20 = vmul.f32 %v15506_v21, %v9591_v31  ;;  %v8390_v36 = vrot.slane %v8389_v56, 1  ;;  %v8394_v41 = vrot.slane %v8393_v25, 2 }
 0xd5d   : > { %v8398_v5 = vrot.slane %v8319_v2, 4  ;;  %v9579_v15 = vsel %vm15531_vm15, %v15443_v4, %v9575_v18  ;;  %11161 = vrsqrt.f32 %v15518_v29  ;;  %v8729_v0 = vadd.f32 %v8728_v58, %v8727_v53 }
 0xd5e   : > { %v9762_v37 = vmul.f32 0.01, %v9746_v46  ;;  %v9731_v22 = vsub.f32 %v15253_v60, %v9715_v3  ;;  %v9601_v38 = vmul.f32 %v15526_v62, %v15484_v47  ;;  %v9585_v9 = vmul.f32 %v15468_v33, %v9584_v52 }
 0xd5f   : > { %vm9587_vm1 = vweird.f32 %v15468_v33  ;;  %v9684_v49 = vmul.f32 %v15317_v35, %v8385_v40  ;;  %v8733_v59 = vadd.f32 %v8732_v14, %v8731_v7  ;;  %v8737_v8 = vadd.f32 %v8736_v26, %v8648_v51  ;;  %v8651_v53 = vpop.xlane.xlu0 %8650  ;;  %v16152_v35 = vld [vmem:[#allocation18_spill] sm:$0xff] }
 0xd60   : > { %v9593_v16 = vmul.f32 0.5, %v9592_v20  ;;  %v9699_v4 = vmul.f32 2.0, %v9579_v15  ;;  %v8395_v19 = vadd.f32 %v8394_v41, %v8393_v25  ;;  %v8399_v55 = vadd.f32 %v8398_v5, %v8319_v2 }
 0xd61   : > { %vm9586_vm2 = vweird.f32 %v15412_v57  ;;  %v8391_v60 = vadd.f32 %v8390_v36, %v8389_v56  ;;  %v15549_v23 = vmul.f32 %v8729_v0, %v15493_v13  ;;  %v9716_v39 = vmul.f32 %v9684_v49, %v9320_v32  ;;  %v8322_v57 = vpop.xlane.xlu1 %8321 }
 0xd62   : > { %vm15551_vm3 = vmor %vm9586_vm2, %vm9587_vm1  ;;  %v15556_v7 = vadd.f32 %v9762_v37, %v16152_v35  ;;  %v9747_v51 = vmul.f32 %v9731_v22, %v9699_v4  ;;  %v15559_v25 = vadd.f32 %v8574_v44, %v15496_v50  ;;  %v15561_v2 = vadd.f32 %v8578_v28, %v8577_v11 }
 0xd63   : > { %10617 = vmatmul.msk.f32.gmra.mxu1 %vm185_vm0, %v15522_v45  ;;  %v9589_v56 = vsel %vm15551_vm3, %v15468_v33, %v9585_v9  ;;  %v9602_v18 = vmul.f32 %v15526_v62, %v9601_v38  ;;  %v15567_v58 = vpop.eup %11161  ;;  %v8734_v10 = vrot.slane %v8733_v59, 1  ;;  %v8738_v46 = vrot.slane %v8737_v8, 2  ;;  %v16153_v9 = vld [vmem:[#allocation19_spill] sm:$0xff] }
 0xd64   : > { %v8742_v3 = vrot.slane %v8651_v53, 4  ;;  %v9594_v40 = vsub.f32 1.5, %v9593_v16  ;;  %v8582_v50 = vrot.slane %v8491_v30, 4  ;;  %v8396_v44 = vrot.slane %v8395_v19, 1 }
 0xd65   : > { %v8400_v11 = vrot.slane %v8399_v55, 2  ;;  %v9685_v52 = vmul.f32 %v15362_v42, %v8391_v60  ;;  %v8404_v28 = vrot.slane %v8322_v57, 4  ;;  %11163 = vrsqrt.f32 %v15549_v23 }
 0xd66   : > { %v9732_v33 = vsub.f32 %v15167_v48, %v9716_v39  ;;  %v9763_v14 = vmul.f32 0.01, %v9747_v51  ;;  %v9611_v26 = vmul.f32 %v15567_v58, %v15518_v29  ;;  %v9700_v20 = vmul.f32 2.0, %v9589_v56 }
 0xd67   : > { %vm9597_vm4 = vweird.f32 %v15506_v21  ;;  %v9603_v36 = vmul.f32 0.5, %v9602_v18  ;;  %v8735_v41 = vadd.f32 %v8734_v10, %v8733_v59  ;;  %v8739_v5 = vadd.f32 %v8738_v46, %v8737_v8  ;;  %v9366_v18 = vpop.f32.mrf.mxu3 }
 0xd68   : > { %v8743_v15 = vadd.f32 %v8742_v3, %v8651_v53  ;;  %v9595_v0 = vmul.f32 %v15506_v21, %v9594_v40  ;;  %v8583_v42 = vadd.f32 %v8582_v50, %v8491_v30  ;;  %v8401_v37 = vadd.f32 %v8400_v11, %v8399_v55 }
 0xd69   : > { %vm9596_vm6 = vweird.f32 %v15460_v63  ;;  %v8397_v22 = vadd.f32 %v8396_v44, %v8395_v19  ;;  %v8405_v48 = vadd.f32 %v8404_v28, %v8322_v57  ;;  %v9748_v38 = vmul.f32 %v9732_v33, %v9700_v20  ;;  %v8325_v31 = vpop.xlane.xlu1 %8324  ;;  %v16156_v28 = vld [vmem:[#allocation21_spill] sm:$0xff] }
 0xd6a   : > { %v9717_v32 = vmul.f32 %v9685_v52, %v9343_v34  ;;  %v15580_v49 = vadd.f32 %v9763_v14, %v16153_v9  ;;  %11165 = vrcp.f32 %v15420_v43  ;;  %vm15585_vm7 = vmor %vm9596_vm6, %vm9597_vm4  ;;  %v9604_v8 = vsub.f32 1.5, %v9603_v36  ;;  %v9412_v36 = vpop.f32.mrf.mxu1 }
 0xd6b   : > { %10618 = vmatmul.msk.f32.gmra.mxu1 %vm185_vm0, %v15556_v7  ;;  %v9612_v16 = vmul.f32 %v15567_v58, %v9611_v26  ;;  %v15590_v4 = vpop.eup %11163  ;;  %v15593_v63 = vmul.f32 %v8735_v41, %v15559_v25  ;;  %v8740_v19 = vrot.slane %v8739_v5, 1  ;;  %v8744_v55 = vrot.slane %v8743_v15, 2 }
 0xd6c   : > { %v9599_v43 = vsel %vm15585_vm7, %v15506_v21, %v9595_v0  ;;  %v8580_v53 = vrot.slane %v15561_v2, 1  ;;  %v8584_v60 = vrot.slane %v8583_v42, 2  ;;  %v8402_v30 = vrot.slane %v8401_v37, 1 }
 0xd6d   : > { %v9686_v39 = vmul.f32 %v15377_v12, %v8397_v22  ;;  %v8406_v35 = vrot.slane %v8405_v48, 2  ;;  %v9764_v51 = vmul.f32 0.01, %v9748_v38  ;;  %v9733_v57 = vsub.f32 %v15227_v54, %v9717_v32  ;;  %v16159_v38 = vld [vmem:[#allocation6_spill] sm:$0xff] }
 0xd6e   : > { %vm9607_vm8 = vweird.f32 %v15526_v62  ;;  %v9621_v56 = vmul.f32 %v15590_v4, %v15549_v23  ;;  %v9701_v21 = vmul.f32 2.0, %v9599_v43  ;;  %v9605_v10 = vmul.f32 %v15526_v62, %v9604_v8 }
 0xd6f   : > { %v9613_v46 = vmul.f32 0.5, %v9612_v16  ;;  %v8410_v3 = vrot.slane %v8325_v31, 4  ;;  %11167 = vrsqrt.f32 %v15593_v63  ;;  %v8741_v40 = vadd.f32 %v8740_v19, %v8739_v5  ;;  %v9389_v16 = vpop.f32.mrf.mxu0 }
 0xd70   : > { %v8745_v50 = vadd.f32 %v8744_v55, %v8743_v15  ;;  %v11166_v12 = vpop.eup %11165  ;;  %v15609_v44 = vadd.f32 %v8580_v53, %v15561_v2  ;;  %v8585_v54 = vadd.f32 %v8584_v60, %v8583_v42  ;;  %vm9606_vm10 = vweird.f32 %v15484_v47 }
 0xd71   : > { %v8403_v11 = vadd.f32 %v8402_v30, %v8401_v37  ;;  %v8407_v52 = vadd.f32 %v8406_v35, %v8405_v48  ;;  %v15613_v33 = vadd.f32 %v9764_v51, %v16156_v28  ;;  %v9749_v14 = vmul.f32 %v9733_v57, %v9701_v21  ;;  %vm15618_vm9 = vmor %vm9606_vm10, %vm9607_vm8  ;;  %v8328_v42 = vpop.xlane.xlu1 %8327  ;;  %v16160_v30 = vld [vmem:[#allocation7_spill] sm:$0xff] }
 0xd72   : > { %v9718_v26 = vmul.f32 %v9686_v39, %v9366_v18  ;;  %v9622_v20 = vmul.f32 %v15590_v4, %v9621_v56  ;;  %v9614_v2 = vsub.f32 1.5, %v9613_v46  ;;  %v8411_v41 = vadd.f32 %v8410_v3, %v8325_v31  ;;  %v8331_v3 = vpop.xlane.xlu2 %8330  ;;  %v16163_v28 = vld [vmem:[#allocation11_spill] sm:$0xff] }
 0xd73   : > { %10619 = vmatmul.msk.f32.gmra.mxu1 %vm185_vm0, %v15580_v49  ;;  %v15623_v47 = vmul.f32 %v8741_v40, %v15609_v44  ;;  %v8746_v5 = vrot.slane %v8745_v50, 1  ;;  %v9609_v15 = vsel %vm15618_vm9, %v15526_v62, %v9605_v10  ;;  %11169 = vrcp.f32 %v15493_v13  ;;  %v16166_v56 = vld [vmem:[#allocation27_spill] sm:$0xff] }
 0xd74   : > { %v8586_v0 = vrot.slane %v8585_v54, 1  ;;  %v8408_v22 = vrot.slane %v8407_v52, 1  ;;  %v9765_v48 = vmul.f32 0.01, %v9749_v14  ;;  %v9734_v32 = vsub.f32 %v16159_v38, %v9718_v26 }
 0xd75   : > { %v15631_v37 = vpop.eup %11167  ;;  %v9687_v9 = vmul.f32 %v11166_v12, %v8403_v11  ;;  %v9623_v59 = vmul.f32 0.5, %v9622_v20  ;;  %v9702_v8 = vmul.f32 2.0, %v9609_v15  ;;  %v9615_v19 = vmul.f32 %v15567_v58, %v9614_v2 }
 0xd76   : > { %vm9617_vm11 = vweird.f32 %v15567_v58  ;;  %v8412_v62 = vrot.slane %v8411_v41, 2  ;;  %v8416_v55 = vrot.slane %v8328_v42, 4  ;;  %11171 = vrsqrt.f32 %v15623_v47 }
 0xd77   : > { %v8747_v13 = vadd.f32 %v8746_v5, %v8745_v50  ;;  %v15637_v43 = vadd.f32 %v8586_v0, %v8585_v54  ;;  %v9631_v53 = vmul.f32 %v15631_v37, %v15593_v63  ;;  %vm9616_vm12 = vweird.f32 %v15518_v29  ;;  %v15661_v50 = vld [vmem:[%s15894_s1 + $0x20] ss:$0 sm:$0xff] }
 0xd78   : > { %v8409_v60 = vadd.f32 %v8408_v22, %v8407_v52  ;;  %v15643_v31 = vadd.f32 %v9765_v48, %v16160_v30  ;;  %v9750_v39 = vmul.f32 %v9734_v32, %v9702_v8  ;;  %v9719_v35 = vmul.f32 %v9687_v9, %v9389_v16  ;;  %vm15645_vm13 = vmor %vm9616_vm12, %vm9617_vm11 }
 0xd79   : > { %v11170_v51 = vpop.eup %11169  ;;  %v9624_v57 = vsub.f32 1.5, %v9623_v59  ;;  %v8413_v21 = vadd.f32 %v8412_v62, %v8411_v41  ;;  %v8417_v18 = vadd.f32 %v8416_v55, %v8328_v42  ;;  %v15650_v10 = vmul.f32 %v8747_v13, %v15637_v43  ;;  %v16164_v42 = vld [vmem:[#allocation23_spill] sm:$0xff]  ;;  %v9435_v13 = vpop.f32.mrf.mxu2 }
 0xd7a   : > { %v9619_v29 = vsel %vm15645_vm13, %v15567_v58, %v9615_v19  ;;  %v9632_v40 = vmul.f32 %v15631_v37, %v9631_v53  ;;  %v9688_v11 = vmul.f32 %v11170_v51, %v8409_v60  ;;  %v9766_v52 = vmul.f32 0.01, %v9750_v39  ;;  %v16165_v19 = vld [vmem:[#allocation20_spill] sm:$0xff] }
 0xd7b   : > { %10620 = vmatmul.msk.f32.gmra.mxu1 %vm185_vm0, %v15613_v33  ;;  %v9735_v58 = vsub.f32 %v16163_v28, %v9719_v35  ;;  %v9625_v14 = vmul.f32 %v15590_v4, %v9624_v57  ;;  %vm9627_vm14 = vweird.f32 %v15590_v4  ;;  %v9703_v26 = vmul.f32 2.0, %v9619_v29  ;;  %v9458_v28 = vpop.f32.mrf.mxu3 }
 0xd7c   : > { %v15664_v54 = vpop.eup %11171  ;;  %v8414_v34 = vrot.slane %v8413_v21, 1  ;;  %v8418_v2 = vrot.slane %v8417_v18, 2  ;;  %v8422_v41 = vrot.slane %v8331_v3, 4  ;;  %11173 = vrsqrt.f32 %v15650_v10 }
 0xd7d   : > { %11175 = vrcp.f32 %v15559_v25  ;;  %vm9626_vm15 = vweird.f32 %v15549_v23  ;;  %v9641_v5 = vmul.f32 %v15664_v54, %v15623_v47  ;;  %v9633_v15 = vmul.f32 0.5, %v9632_v40 }
 0xd7e   : > { %vm9628_vm1 = vmor %vm9626_vm15, %vm9627_vm14  ;;  %v9720_v0 = vmul.f32 %v9688_v11, %v9412_v36  ;;  %v15676_v22 = vadd.f32 %v9766_v52, %v16164_v42  ;;  %v9751_v48 = vmul.f32 %v9735_v58, %v9703_v26  ;;  %v8419_v32 = vadd.f32 %v8418_v2, %v8417_v18  ;;  %v16167_v11 = vld [vmem:[#allocation12_spill] sm:$0xff] }
 0xd7f   : > { %v9629_v38 = vsel %vm9628_vm1, %v15590_v4, %v9625_v14  ;;  %v8423_v9 = vadd.f32 %v8422_v41, %v8331_v3  ;;  %v8415_v59 = vadd.f32 %v8414_v34, %v8413_v21  ;;  %v9634_v23 = vsub.f32 1.5, %v9633_v15  ;;  %v16168_v34 = vld [vmem:[#allocation28_spill] sm:$0xff] }
 0xd80   : > { %v9642_v25 = vmul.f32 %v15664_v54, %v9641_v5  ;;  %v9704_v16 = vmul.f32 2.0, %v9629_v38  ;;  %v9736_v62 = vsub.f32 %v16165_v19, %v9720_v0  ;;  %v9767_v36 = vmul.f32 0.01, %v9751_v48  ;;  %v9481_v38 = vpop.f32.mrf.mxu0 }
 0xd81   : > { %11177 = vrcp.f32 %v15609_v44  ;;  %v8420_v53 = vrot.slane %v8419_v32, 1  ;;  %v8424_v4 = vrot.slane %v8423_v9, 2  ;;  %v9635_v39 = vmul.f32 %v15631_v37, %v9634_v23  ;;  %v16169_v23 = vld [vmem:[#allocation8_spill] sm:$0xff] }
 0xd82   : > { %v9853_v46 = vpop.f32.mrf.mxu1  ;;  %v11174_v8 = vpop.eup %11173  ;;  %vm9637_vm2 = vweird.f32 %v15631_v37  ;;  %v9643_v35 = vmul.f32 0.5, %v9642_v25  ;;  %v9752_v51 = vmul.f32 %v9736_v62, %v9704_v16  ;;  %v15688_v21 = vadd.f32 %v9767_v36, %v16166_v56  ;;  %v16170_v36 = vld [vmem:[#allocation25_spill] sm:$0xff] }
 0xd83   : > { %10621 = vmatmul.msk.f32.gmra.mxu1 %vm185_vm0, %v15643_v31  ;;  %v9854_v12 = vadd.f32 %v15661_v50, %v9853_v46  ;;  %v11176_v55 = vpop.eup %11175  ;;  %v9651_v30 = vmul.f32 %v11174_v8, %v15650_v10  ;;  %vm9636_vm3 = vweird.f32 %v15593_v63  ;;  %v8425_v18 = vadd.f32 %v8424_v4, %v8423_v9  ;;  %v16171_v4 = vld [vmem:[#allocation5_spill] sm:$0xff] }
 0xd84   : > { %v9689_v60 = vmul.f32 %v11176_v55, %v8415_v59  ;;  %vm9638_vm4 = vmor %vm9636_vm3, %vm9637_vm2  ;;  %v8421_v44 = vadd.f32 %v8420_v53, %v8419_v32  ;;  %v9644_v46 = vsub.f32 1.5, %v9643_v35  ;;  %11179 = vrcp.f32 %v15637_v43 }
 0xd85   : > { %v9901_v20 = vmax.f32 %v9854_v12, 0.0  ;;  %v9639_v29 = vsel %vm9638_vm4, %v15631_v37, %v9635_v39  ;;  %v9652_v3 = vmul.f32 %v11174_v8, %v9651_v30  ;;  %v9768_v12 = vmul.f32 0.01, %v9752_v51 }
 0xd86   : > { %v9721_v57 = vmul.f32 %v9689_v60, %v9435_v13  ;;  %v8426_v58 = vrot.slane %v8425_v18, 1  ;;  %v9705_v14 = vmul.f32 2.0, %v9639_v29  ;;  %v9645_v63 = vmul.f32 %v15664_v54, %v9644_v46 }
 0xd87   : > { %10628 = vmatmul.msk.f32.vlgmr.msrb.gmra.mxu2 %vm541_vm5, %v9901_v20  ;;  %v11178_v40 = vpop.eup %11177  ;;  %vm9647_vm6 = vweird.f32 %v15664_v54  ;;  %v9653_v20 = vmul.f32 0.5, %v9652_v3  ;;  %v15699_v2 = vadd.f32 %v9768_v12, %v16168_v34  ;;  %vm9646_vm7 = vweird.f32 %v15623_v47 }
 0xd88   : > { %v9737_v52 = vsub.f32 %v16167_v11, %v9721_v57  ;;  %v9690_v26 = vmul.f32 %v11178_v40, %v8421_v44  ;;  %vm9648_vm8 = vmor %vm9646_vm7, %vm9647_vm6  ;;  %v8427_v5 = vadd.f32 %v8426_v58, %v8425_v18  ;;  %vm9657_vm10 = vweird.f32 %v11174_v8 }
 0xd89   : > { %v9649_v15 = vsel %vm9648_vm8, %v15664_v54, %v9645_v63  ;;  %v9654_v43 = vsub.f32 1.5, %v9653_v20  ;;  %vm9656_vm9 = vweird.f32 %v15650_v10 }
 0xd8a   : > { %v9753_v37 = vmul.f32 %v9737_v52, %v9705_v14  ;;  %v9722_v41 = vmul.f32 %v9690_v26, %v9458_v28  ;;  %v11180_v48 = vpop.eup %11179  ;;  %v9706_v32 = vmul.f32 2.0, %v9649_v15  ;;  %vm9658_vm11 = vmor %vm9656_vm9, %vm9657_vm10 }
 0xd8b   : > { %10622 = vmatmul.msk.f32.gmra.mxu1 %vm185_vm0, %v15676_v22  ;;  %v9691_v9 = vmul.f32 %v11180_v48, %v8427_v5  ;;  %v9655_v59 = vmul.f32 %v11174_v8, %v9654_v43 }
 0xd8c   : > { %v9769_v0 = vmul.f32 0.01, %v9753_v37  ;;  %v9738_v42 = vsub.f32 %v15341_v24, %v9722_v41 }
 0xd8d   : > { %v9723_v16 = vmul.f32 %v9691_v9, %v9481_v38  ;;  %v9659_v54 = vsel %vm9658_vm11, %v11174_v8, %v9655_v59 }
 0xd8e   : > { %v15707_v25 = vadd.f32 %v9769_v0, %v16169_v23  ;;  %v9754_v47 = vmul.f32 %v9738_v42, %v9706_v32  ;;  %v9707_v62 = vmul.f32 2.0, %v9659_v54  ;;  %v15745_v42 = vld [vmem:[%s15894_s1 + $0x38] ss:$0 sm:$0xff] }
 0xd8f   : > { %v9739_v24 = vsub.f32 %v15336_v6, %v9723_v16 }
 0xd90   : > { %v9770_v19 = vmul.f32 0.01, %v9754_v47 }
 0xd91   : > { %v9755_v13 = vmul.f32 %v9739_v24, %v9707_v62 }
 0xd92   : > { %v15714_v55 = vadd.f32 %v9770_v19, %v16170_v36 }
 0xd93   : > { %10623 = vmatmul.msk.f32.gmra.mxu1 %vm185_vm0, %v15688_v21  ;;  %v9771_v53 = vmul.f32 0.01, %v9755_v13 }
 0xd95   : > { %v15719_v60 = vadd.f32 %v9771_v53, %v16171_v4 }
 0xd9b   : > { %10624 = vmatmul.msk.f32.gmra.mxu1 %vm185_vm0, %v15699_v2 }
 0xda3   : > { %10625 = vmatmul.msk.f32.gmra.mxu1 %vm185_vm0, %v15707_v25 }
 0xdab   : > { %10626 = vmatmul.msk.f32.gmra.mxu1 %vm185_vm0, %v15714_v55 }
 0xdb3   : > { %10627 = vmatmul.msk.f32.gmra.mxu1 %vm185_vm0, %v15719_v60 }
 0xdb5   : > { %v9856_v10 = vpop.f32.mrf.mxu1 }
 0xdb6   : > { %v9857_v8 = vadd.f32 %v15661_v50, %v9856_v10 }
 0xdb8   : > { %v9902_v30 = vmax.f32 %v9857_v8, 0.0 }
 0xdba   : > { %10629 = vmatmul.msk.f32.gmra.mxu2 %vm541_vm5, %v9902_v30 }
 0xdc8   : > { %v9859_v6 = vpop.f32.mrf.mxu1 }
 0xdc9   : > { %v9860_v39 = vadd.f32 %v15661_v50, %v9859_v6 }
 0xdcb   : > { %v9903_v35 = vmax.f32 %v9860_v39, 0.0 }
 0xdcd   : > { %10630 = vmatmul.msk.f32.gmra.mxu2 %vm541_vm5, %v9903_v35 }
 0xdd0   : > { %v9862_v51 = vpop.f32.mrf.mxu1 }
 0xdd1   : > { %v9863_v57 = vadd.f32 %v15661_v50, %v9862_v51 }
 0xdd3   : > { %v9904_v56 = vmax.f32 %v9863_v57, 0.0 }
 0xdd5   : > { %10631 = vmatmul.msk.f32.gmra.mxu2 %vm541_vm5, %v9904_v56 }
 0xdd8   : > { %v9865_v18 = vpop.f32.mrf.mxu1 }
 0xdd9   : > { %v9866_v44 = vadd.f32 %v15661_v50, %v9865_v18 }
 0xddb   : > { %v9905_v29 = vmax.f32 %v9866_v44, 0.0 }
 0xddd   : > { %10632 = vmatmul.msk.f32.gmra.mxu2 %vm541_vm5, %v9905_v29 }
 0xde0   : > { %v9868_v46 = vpop.f32.mrf.mxu1 }
 0xde1   : > { %v9869_v3 = vadd.f32 %v15661_v50, %v9868_v46 }
 0xde3   : > { %v9906_v40 = vmax.f32 %v9869_v3, 0.0 }
 0xde5   : > { %10633 = vmatmul.msk.f32.gmra.mxu2 %vm541_vm5, %v9906_v40 }
 0xde8   : > { %v9871_v12 = vpop.f32.mrf.mxu1 }
 0xde9   : > { %v9872_v11 = vadd.f32 %v15661_v50, %v9871_v12 }
 0xdeb   : > { %v9907_v52 = vmax.f32 %v9872_v11, 0.0  ;;  %v16172_v11 = vld [vmem:[#allocation10_spill] sm:$0xff] }
 0xded   : > { %10634 = vmatmul.msk.f32.gmra.mxu2 %vm541_vm5, %v9907_v52 }
 0xdf0   : > { %v9874_v28 = vpop.f32.mrf.mxu1 }
 0xdf1   : > { %v9875_v58 = vadd.f32 %v15661_v50, %v9874_v28 }
 0xdf3   : > { %v9908_v14 = vmax.f32 %v9875_v58, 0.0 }
 0xdf5   : > { %10635 = vmatmul.msk.f32.gmra.mxu2 %vm541_vm5, %v9908_v14 }
 0xdf8   : > { %v9877_v26 = vpop.f32.mrf.mxu1 }
 0xdf9   : > { %v9878_v63 = vadd.f32 %v15661_v50, %v9877_v26 }
 0xdfb   : > { %v9909_v20 = vmax.f32 %v9878_v63, 0.0 }
 0xdfd   : > { %10636 = vmatmul.msk.f32.gmra.mxu2 %vm541_vm5, %v9909_v20 }
 0xe00   : > { %v9880_v34 = vpop.f32.mrf.mxu1 }
 0xe01   : > { %v9881_v37 = vadd.f32 %v15661_v50, %v9880_v34 }
 0xe03   : > { %v9910_v41 = vmax.f32 %v9881_v37, 0.0 }
 0xe05   : > { %10637 = vmatmul.msk.f32.gmra.mxu2 %vm541_vm5, %v9910_v41 }
 0xe08   : > { %v9883_v5 = vpop.f32.mrf.mxu1 }
 0xe09   : > { %v9884_v15 = vadd.f32 %v15661_v50, %v9883_v5 }
 0xe0a   : > { %v9982_v0 = vpop.f32.mrf.mxu2 }
 0xe0b   : > { %v9911_v43 = vmax.f32 %v9884_v15, 0.0  ;;  %v9983_v48 = vadd.f32 %v15745_v42, %v9982_v0 }
 0xe0d   : > { %10638 = vmatmul.msk.f32.gmra.mxu2 %vm541_vm5, %v9911_v43  ;;  %10046 = vrot.lane.b32.xlu0 %v9983_v48, %s11270_s5 }
 0xe10   : > { %v9886_v38 = vpop.f32.mrf.mxu1 }
 0xe11   : > { %v9887_v32 = vadd.f32 %v15661_v50, %v9886_v38 }
 0xe13   : > { %v9912_v9 = vmax.f32 %v9887_v32, 0.0 }
 0xe15   : > { %10639 = vmatmul.msk.f32.gmra.mxu2 %vm541_vm5, %v9912_v9 }
 0xe18   : > { %v9889_v59 = vpop.f32.mrf.mxu1 }
 0xe19   : > { %v9890_v23 = vadd.f32 %v15661_v50, %v9889_v59 }
 0xe1b   : > { %v9913_v47 = vmax.f32 %v9890_v23, 0.0 }
 0xe1d   : > { %10640 = vmatmul.msk.f32.gmra.mxu2 %vm541_vm5, %v9913_v47 }
 0xe20   : > { %v9892_v16 = vpop.f32.mrf.mxu1 }
 0xe21   : > { %v9893_v54 = vadd.f32 %v15661_v50, %v9892_v16 }
 0xe23   : > { %v9914_v19 = vmax.f32 %v9893_v54, 0.0 }
 0xe25   : > { %10641 = vmatmul.msk.f32.gmra.mxu2 %vm541_vm5, %v9914_v19 }
 0xe28   : > { %v9895_v24 = vpop.f32.mrf.mxu1 }
 0xe29   : > { %v9896_v62 = vadd.f32 %v15661_v50, %v9895_v24 }
 0xe2b   : > { %v9915_v36 = vmax.f32 %v9896_v62, 0.0 }
 0xe2d   : > { %10642 = vmatmul.msk.f32.gmra.mxu2 %vm541_vm5, %v9915_v36 }
 0xe30   : > { %v9898_v13 = vpop.f32.mrf.mxu1 }
 0xe31   : > { %v9899_v53 = vadd.f32 %v15661_v50, %v9898_v13 }
 0xe33   : > { %v9916_v4 = vmax.f32 %v9899_v53, 0.0 }
 0xe35   : > { %10643 = vmatmul.msk.f32.gmra.mxu2 %vm541_vm5, %v9916_v4  ;;  %vm10110_vm5 = vcmask 293888  }
 0xe3d   : > { %v9985_v10 = vpop.f32.mrf.mxu2 }
 0xe3e   : > { %v9986_v8 = vadd.f32 %v15745_v42, %v9985_v10 }
 0xe40   : > { %10048 = vrot.lane.b32.xlu1 %v9986_v8, %s11270_s5 }
 0xe50   : > { %v9988_v30 = vpop.f32.mrf.mxu2 }
 0xe51   : > { %v9989_v6 = vadd.f32 %v15745_v42, %v9988_v30 }
 0xe53   : > { %10050 = vrot.lane.b32.xlu2 %v9989_v6, %s11270_s5 }
 0xe58   : > { %v9991_v39 = vpop.f32.mrf.mxu2 }
 0xe59   : > { %v9992_v35 = vadd.f32 %v15745_v42, %v9991_v39 }
 0xe5b   : > { %10052 = vrot.lane.b32.xlu0 %v9992_v35, %s11270_s5 }
 0xe60   : > { %v9994_v50 = vpop.f32.mrf.mxu2 }
 0xe61   : > { %v9995_v51 = vadd.f32 %v15745_v42, %v9994_v50 }
 0xe63   : > { %10054 = vrot.lane.b32.xlu2 %v9995_v51, %s11270_s5 }
 0xe68   : > { %v9997_v57 = vpop.f32.mrf.mxu2 }
 0xe69   : > { %v9998_v56 = vadd.f32 %v15745_v42, %v9997_v57 }
 0xe6b   : > { %10056 = vrot.lane.b32.xlu1 %v9998_v56, %s11270_s5 }
 0xe70   : > { %v10000_v18 = vpop.f32.mrf.mxu2 }
 0xe71   : > { %v10001_v44 = vadd.f32 %v15745_v42, %v10000_v18 }
 0xe73   : > { %10058 = vrot.lane.b32.xlu0 %v10001_v44, %s11270_s5 }
 0xe78   : > { %v10003_v29 = vpop.f32.mrf.mxu2 }
 0xe79   : > { %v10004_v46 = vadd.f32 %v15745_v42, %v10003_v29 }
 0xe7b   : > { %10060 = vrot.lane.b32.xlu2 %v10004_v46, %s11270_s5 }
 0xe7f   : > { %v10047_v40 = vpop.permute.xlu0 %10046 }
 0xe80   : > { %v10006_v3 = vpop.f32.mrf.mxu2  ;;  %v10094_v52 = vsel %vm185_vm0, %v16172_v11, %v10047_v40 }
 0xe81   : > { %v10007_v12 = vadd.f32 %v15745_v42, %v10006_v3  ;;  %v10111_v28 = vsel %vm10110_vm5, %v10094_v52, 0.0 }
 0xe82   : > { %10127 = vst [vmem:[%s15782_s8] sm:$0xff] %v10111_v28 }
 0xe83   : > { %10062 = vrot.lane.b32.xlu1 %v10007_v12, %s11270_s5 }
 0xe88   : > { %v10009_v58 = vpop.f32.mrf.mxu2 }
 0xe89   : > { %v10010_v14 = vadd.f32 %v15745_v42, %v10009_v58 }
 0xe8b   : > { %10064 = vrot.lane.b32.xlu0 %v10010_v14, %s11270_s5 }
 0xe90   : > { %v10012_v26 = vpop.f32.mrf.mxu2 }
 0xe91   : > { %v10013_v63 = vadd.f32 %v15745_v42, %v10012_v26 }
 0xe93   : > { %10066 = vrot.lane.b32.xlu2 %v10013_v63, %s11270_s5 }
 0xe98   : > { %v10015_v20 = vpop.f32.mrf.mxu2 }
 0xe99   : > { %v10016_v34 = vadd.f32 %v15745_v42, %v10015_v20 }
 0xe9b   : > { %10068 = vrot.lane.b32.xlu1 %v10016_v34, %s11270_s5 }
 0xea0   : > { %v10018_v37 = vpop.f32.mrf.mxu2 }
 0xea1   : > { %v10019_v41 = vadd.f32 %v15745_v42, %v10018_v37 }
 0xea3   : > { %10070 = vrot.lane.b32.xlu0 %v10019_v41, %s11270_s5 }
 0xea8   : > { %v10021_v5 = vpop.f32.mrf.mxu2 }
 0xea9   : > { %v10022_v15 = vadd.f32 %v15745_v42, %v10021_v5 }
 0xeab   : > { %10072 = vrot.lane.b32.xlu2 %v10022_v15, %s11270_s5 }
 0xead   : > { %v10051_v43 = vpop.permute.xlu2 %10050 }
 0xeae   : > { %v10096_v0 = vsel %vm185_vm0, %v15415_v27, %v10051_v43 }
 0xeaf   : > { %v10113_v48 = vsel %vm10110_vm5, %v10096_v0, 0.0 }
 0xeb0   : > { %10129 = vst [vmem:[%s15782_s8 + $0x10] sm:$0xff] %v10113_v48  ;;  %v10024_v38 = vpop.f32.mrf.mxu2 }
 0xeb1   : > { %v10025_v32 = vadd.f32 %v15745_v42, %v10024_v38 }
 0xeb2   : > { %v10049_v9 = vpop.permute.xlu1 %10048 }
 0xeb3   : > { %10074 = vrot.lane.b32.xlu1 %v10025_v32, %s11270_s5  ;;  %v10095_v59 = vsel %vm185_vm0, %v15344_v17, %v10049_v9 }
 0xeb4   : > { %v10112_v23 = vsel %vm10110_vm5, %v10095_v59, 0.0 }
 0xeb5   : > { %10128 = vst [vmem:[%s15782_s8 + $0x8] sm:$0xff] %v10112_v23 }
 0xeb8   : > { %v10027_v47 = vpop.f32.mrf.mxu2 }
 0xeb9   : > { %v10028_v27 = vadd.f32 %v15745_v42, %v10027_v47 }
 0xebb   : > { %10076 = vrot.lane.b32.xlu0 %v10028_v27, %s11270_s5 }
 0xebd   : > { %v10055_v16 = vpop.permute.xlu2 %10054 }
 0xebe   : > { %v10098_v54 = vsel %vm185_vm0, %v15488_v1, %v10055_v16 }
 0xebf   : > { %v10115_v19 = vsel %vm10110_vm5, %v10098_v54, 0.0 }
 0xec0   : > { %10131 = vst [vmem:[%s15782_s8 + $0x20] sm:$0xff] %v10115_v19 }
 0xecd   : > { %v10053_v24 = vpop.permute.xlu0 %10052 }
 0xece   : > { %v10097_v17 = vsel %vm185_vm0, %v15455_v61, %v10053_v24 }
 0xecf   : > { %v10114_v62 = vsel %vm10110_vm5, %v10097_v17, 0.0 }
 0xed0   : > { %10130 = vst [vmem:[%s15782_s8 + $0x18] sm:$0xff] %v10114_v62 }
 0xed5   : > { %v10061_v42 = vpop.permute.xlu2 %10060 }
 0xed6   : > { %v10101_v36 = vsel %vm185_vm0, %v15580_v49, %v10061_v42 }
 0xed7   : > { %v10118_v13 = vsel %vm10110_vm5, %v10101_v36, 0.0 }
 0xed8   : > { %10134 = vst [vmem:[%s15782_s8 + $0x38] sm:$0xff] %v10118_v13 }
 0xedd   : > { %v10057_v1 = vpop.permute.xlu1 %10056 }
 0xede   : > { %v10099_v53 = vsel %vm185_vm0, %v15522_v45, %v10057_v1 }
 0xedf   : > { %v10116_v4 = vsel %vm10110_vm5, %v10099_v53, 0.0 }
 0xee0   : > { %10132 = vst [vmem:[%s15782_s8 + $0x28] sm:$0xff] %v10116_v4 }
 0xee5   : > { %v10059_v61 = vpop.permute.xlu0 %10058 }
 0xee6   : > { %v10100_v10 = vsel %vm185_vm0, %v15556_v7, %v10059_v61 }
 0xee7   : > { %v10117_v8 = vsel %vm10110_vm5, %v10100_v10, 0.0 }
 0xee8   : > { %10133 = vst [vmem:[%s15782_s8 + $0x30] sm:$0xff] %v10117_v8 }
 0xeed   : > { %v10067_v49 = vpop.permute.xlu2 %10066 }
 0xeee   : > { %v10104_v30 = vsel %vm185_vm0, %v15676_v22, %v10067_v49 }
 0xeef   : > { %v10121_v6 = vsel %vm10110_vm5, %v10104_v30, 0.0 }
 0xef0   : > { %10137 = vst [vmem:[%s15782_s8 + $0x50] sm:$0xff] %v10121_v6 }
 0xef5   : > { %v10063_v45 = vpop.permute.xlu1 %10062 }
 0xef6   : > { %v10102_v39 = vsel %vm185_vm0, %v15613_v33, %v10063_v45 }
 0xef7   : > { %v10119_v35 = vsel %vm10110_vm5, %v10102_v39, 0.0 }
 0xef8   : > { %10135 = vst [vmem:[%s15782_s8 + $0x40] sm:$0xff] %v10119_v35 }
 0xefd   : > { %v10065_v7 = vpop.permute.xlu0 %10064 }
 0xefe   : > { %v10103_v50 = vsel %vm185_vm0, %v15643_v31, %v10065_v7 }
 0xeff   : > { %v10120_v51 = vsel %vm10110_vm5, %v10103_v50, 0.0 }
 0xf00   : > { %10136 = vst [vmem:[%s15782_s8 + $0x48] sm:$0xff] %v10120_v51 }
 0xf05   : > { %v10073_v22 = vpop.permute.xlu2 %10072 }
 0xf06   : > { %v10107_v57 = vsel %vm185_vm0, %v15707_v25, %v10073_v22 }
 0xf07   : > { %v10124_v56 = vsel %vm10110_vm5, %v10107_v57, 0.0 }
 0xf08   : > { %10140 = vst [vmem:[%s15782_s8 + $0x68] sm:$0xff] %v10124_v56 }
 0xf0d   : > { %v10069_v33 = vpop.permute.xlu1 %10068 }
 0xf0e   : > { %v10105_v18 = vsel %vm185_vm0, %v15688_v21, %v10069_v33 }
 0xf0f   : > { %v10122_v44 = vsel %vm10110_vm5, %v10105_v18, 0.0 }
 0xf10   : > { %10138 = vst [vmem:[%s15782_s8 + $0x58] sm:$0xff] %v10122_v44 }
 0xf15   : > { %v10071_v31 = vpop.permute.xlu0 %10070 }
 0xf16   : > { %v10106_v29 = vsel %vm185_vm0, %v15699_v2, %v10071_v31 }
 0xf17   : > { %v10123_v46 = vsel %vm10110_vm5, %v10106_v29, 0.0 }
 0xf18   : > { %10139 = vst [vmem:[%s15782_s8 + $0x60] sm:$0xff] %v10123_v46 }
 0xf25   : > { %v10075_v25 = vpop.permute.xlu1 %10074 }
 0xf26   : > { %v10108_v3 = vsel %vm185_vm0, %v15714_v55, %v10075_v25 }
 0xf27   : > { %v10125_v40 = vsel %vm10110_vm5, %v10108_v3, 0.0 }
 0xf28   : > { %10141 = vst [vmem:[%s15782_s8 + $0x70] sm:$0xff] %v10125_v40 }
 0xf2d   : > { %v10077_v21 = vpop.permute.xlu0 %10076 }
 0xf2e   : > { %v10109_v2 = vsel %vm185_vm0, %v15719_v60, %v10077_v21 }
 0xf2f   : > { %v10126_v12 = vsel %vm10110_vm5, %v10109_v2, 0.0 }
 0xf30   : > { %10142 = vst [vmem:[%s15782_s8 + $0x78] sm:$0xff] %v10126_v12 }
 0xf31   : > { %11232 = shalt.err (!%p11229_p3)
}
 0xf32   : > { %s11271_s3 = smov 128   ;;  %s11272_s4 = smov 8  }
 0xf33   : > { %10654 = dma.vmem_to_hbm [thread:$0]  (%p11326_p5), %s10157_s22, 2048, %s10159_s23, %s10144_s13, %s11271_s3, %s11271_s3, %s11272_s4  }
 0xf34 PF: > { %p10660_p4 = scmp.ge.s32.totalorder %s11267_s12, 2  ;;  %s10173_s5 = sand.u32 1, %s11255_s9  }
 0xf35   : > { %s10174_s6 = scalar_lea.sflag [#allocation3], %s10173_s5 }
 0xf36   : > { %p10657_p7 = pnand %p10660_p4, %p11330_p6 }
 0xf38   : > { %p10658_p8 = pneg %p10657_p7 }
 0xf3a   : > { %11250 = dma.done.wait (%p10658_p8), %s10174_s6, 2048  }
 0xf3b   : > { %11252 = vsyncadd (%p10658_p8), %s10174_s6, 4294965248  ;;  %p12_p9 = scmp.ge.s32.totalorder %s11313_s15, 6   ;;  %s16173_s9 = smov %s11259_s10 }
 0xf3c   : > { %s16174_s10 = smov %s11263_s11  ;;  %s16175_s11 = smov %s11324_s18 }
 0xf3d   : > { %s16176_s12 = smov %s11313_s15  ;;  %14 = sbr.rel (!%p12_p9) target bundleno = 3 (0x3), region = 63 }
 0xf42   :  { %10180 = vsyncpa [#allocation3], 1 }
 0xf43   :  { %10182 = vsyncpa [#allocation3 + $0x1], 1 }

</bundles_post_ra>
